<compile_context>
chip_gen: v7x
topology: tpu7x:2x2x1
jax: 0.10.0
libtpu: 0.0.40
codegen_flags: <defaults>
</compile_context>

<pallas_src>
import functools
import math

import jax
import jax.numpy as jnp
from jax.experimental import pallas as pl
from jax.experimental.pallas import tpu as pltpu


# ----------------------------- small helpers (trace-time static) ---------------------------------
def _round_up(v, m):
    return (v + m - 1) // m * m


def _apply_act(x, act):
    if act == "relu":
        return jnp.maximum(x, 0.0)
    if act == "tanh":
        return jnp.tanh(x)
    if act == "sigmoid":
        return jax.nn.sigmoid(x)
    return x


# ------------------------------ tiled matmul + affine + act kernels ------------------------------
def _mm_affine_act_kernel(a_ref, w_ref, s_ref, b_ref, o_ref, acc_ref, *, act):
    @pl.when(pl.program_id(2) == 0)
    def _init():
        acc_ref[...] = jnp.zeros_like(acc_ref)

    acc_ref[...] += jnp.dot(a_ref[...], w_ref[...], preferred_element_type=jnp.float32)

    @pl.when(pl.program_id(2) == pl.num_programs(2) - 1)
    def _fin():
        o_ref[...] = _apply_act(acc_ref[...] * s_ref[...] + b_ref[...], act).astype(o_ref.dtype)


def _mm_affine_res_act_kernel(a_ref, w_ref, s_ref, b_ref, r_ref, o_ref, acc_ref, *, act):
    @pl.when(pl.program_id(2) == 0)
    def _init():
        acc_ref[...] = jnp.zeros_like(acc_ref)

    acc_ref[...] += jnp.dot(a_ref[...], w_ref[...], preferred_element_type=jnp.float32)

    @pl.when(pl.program_id(2) == pl.num_programs(2) - 1)
    def _fin():
        o_ref[...] = _apply_act(
            acc_ref[...] * s_ref[...] + b_ref[...] + r_ref[...], act
        ).astype(o_ref.dtype)


def pack_matmul_weight(w_kn, scale, shift):
    """One-time weight prep: (K,N) layout, bf16, K padded to the tile boundary,
    N padded to a lane-dense multiple of 128.  scale/shift kept at true N (f32)."""
    K, N = w_kn.shape
    TK = 512 if K > 512 else _round_up(max(K, 128), 128)
    Kp = _round_up(K, TK)
    Np = _round_up(max(N, 128), 128)
    wp = jnp.pad(w_kn.astype(jnp.bfloat16), ((0, Kp - K), (0, Np - N)))
    return {
        "w": wp,
        "s": scale.reshape(1, N).astype(jnp.float32),
        "b": shift.reshape(1, N).astype(jnp.float32),
    }


def matmul_affine_act(a, wp, act="none", residual=None):
    """O = act((a @ W) * scale + shift [+ residual]).
    a:(M,K) any float  ->  bf16 MXU inputs, f32 accumulate, f32 output (M,N)."""
    M, K = a.shape
    Kp, Np = wp["w"].shape
    N = wp["s"].shape[1]

    TN = 128
    TK = 512 if Kp > 512 else Kp
    TM = 256 if M > 256 else _round_up(max(M, 8), 8)
    Mp = _round_up(M, TM)

    a_p = jnp.pad(a.astype(jnp.bfloat16), ((0, Mp - M), (0, Kp - K)))
    s_p = jnp.pad(wp["s"], ((0, 0), (0, Np - N)))
    b_p = jnp.pad(wp["b"], ((0, 0), (0, Np - N)))

    grid = (Mp // TM, Np // TN, Kp // TK)
    in_specs = [
        pl.BlockSpec((TM, TK), lambda i, j, k: (i, k)),
        pl.BlockSpec((TK, TN), lambda i, j, k: (k, j)),
        pl.BlockSpec((1, TN), lambda i, j, k: (0, j)),
        pl.BlockSpec((1, TN), lambda i, j, k: (0, j)),
    ]
    args = [a_p, wp["w"], s_p, b_p]
    if residual is not None:
        r_p = jnp.pad(residual.astype(jnp.float32), ((0, Mp - M), (0, Np - N)))
        in_specs.append(pl.BlockSpec((TM, TN), lambda i, j, k: (i, j)))
        args.append(r_p)
        kernel = functools.partial(_mm_affine_res_act_kernel, act=act)
    else:
        kernel = functools.partial(_mm_affine_act_kernel, act=act)

    out = pl.pallas_call(
        kernel,
        grid_spec=pltpu.PrefetchScalarGridSpec(
            num_scalar_prefetch=0,
            grid=grid,
            in_specs=in_specs,
            out_specs=pl.BlockSpec((TM, TN), lambda i, j, k: (i, j)),
            scratch_shapes=[pltpu.VMEM((TM, TN), jnp.float32)],
        ),
        out_shape=jax.ShapeDtypeStruct((Mp, Np), jnp.float32),
        compiler_params=pltpu.CompilerParams(
            dimension_semantics=("parallel", "parallel", "arbitrary")
        ),
    )(*args)
    return out[:M, :N]


# --------------------------------- conv glue (im2col, pooling) -----------------------------------
def im2col_3d(x, ksize, stride, pad):
    """x:(B,D,H,W,C) -> (B*Do*Ho*Wo, kd*kh*kw*C) in bf16; columns ordered (kd,kh,kw,Cin)."""
    # TODO(synk): patch gather still materialized by XLA in HBM (kd*kh*kw blowup);
    #             acceptable at these shapes, would be fused into the kernel for large inputs.
    kd, kh, kw = ksize
    sd, sh, sw = stride
    pd, ph, pw = pad
    B, D, H, W, C = x.shape
    xp = jnp.pad(x.astype(jnp.bfloat16), ((0, 0), (pd, pd), (ph, ph), (pw, pw), (0, 0)))
    Do = (D + 2 * pd - kd) // sd + 1
    Ho = (H + 2 * ph - kh) // sh + 1
    Wo = (W + 2 * pw - kw) // sw + 1
    cols = []
    for a in range(kd):
        for b in range(kh):
            for c in range(kw):
                cols.append(
                    xp[:, a : a + (Do - 1) * sd + 1 : sd,
                          b : b + (Ho - 1) * sh + 1 : sh,
                          c : c + (Wo - 1) * sw + 1 : sw, :]
                )
    patches = jnp.stack(cols, axis=4)                       # (B, Do, Ho, Wo, K, C)
    return patches.reshape(B * Do * Ho * Wo, kd * kh * kw * C), (B, Do, Ho, Wo)


def conv3d_bn_act(x, cp, ksize, stride, pad, act, residual=None):
    """Conv3d + folded BatchNorm + activation (+ fused residual add) via the tiled matmul."""
    patches, (B, Do, Ho, Wo) = im2col_3d(x, ksize, stride, pad)
    N = cp["s"].shape[1]
    res2 = None if residual is None else residual.reshape(B * Do * Ho * Wo, N)
    out = matmul_affine_act(patches, cp, act=act, residual=res2)
    return out.reshape(B, Do, Ho, Wo, N)


def maxpool2d_3x3s2p1(x):
    """MaxPool2d(3, stride=2, padding=1) over (H, W) per (b, d, c).
    Left to XLA: 9 shifted strided views + elementwise max fuse into one pass
    (no 9x HBM patch materialization)."""
    B, D, H, W, C = x.shape
    Ho = (H + 2 - 3) // 2 + 1
    Wo = (W + 2 - 3) // 2 + 1
    xp = jnp.pad(x, ((0, 0), (0, 0), (1, 1), (1, 1), (0, 0)), constant_values=-jnp.inf)
    out = None
    for a in range(3):
        for b in range(3):
            win = xp[:, :, a : a + (Ho - 1) * 2 + 1 : 2, b : b + (Wo - 1) * 2 + 1 : 2, :]
            out = win if out is None else jnp.maximum(out, win)
    return out


# --------------------------------------------- FRBNet --------------------------------------------
def resblock_forward(x, p, stride):
    if "ds" in p:
        identity = conv3d_bn_act(x, p["ds"], (1, 1, 1), (1, stride, stride), (0, 0, 0), "none")
    else:
        identity = x
    h = conv3d_bn_act(x, p["c1"], (1, 1, 1), (1, 1, 1), (0, 0, 0), "relu")
    h = conv3d_bn_act(h, p["c2"], (1, 3, 3), (1, stride, stride), (0, 1, 1), "relu")
    # conv3 + bn + residual-add + relu fused in one kernel epilogue
    h = conv3d_bn_act(h, p["c3"], (1, 1, 1), (1, 1, 1), (0, 0, 0), "relu", residual=identity)
    # TODO(synk): F.dropout(p=0.3) omitted (eval-mode identity)
    return h


def frbnet_trunk(x2, p):
    # x2: (B, D, H, W) -> unsqueeze channel -> NDHWC (B, D, H, W, 1)
    x = x2[..., None].astype(jnp.float32)
    x = conv3d_bn_act(x, p["conv1"], (1, 7, 7), (1, 2, 2), (0, 3, 3), "tanh")
    x = maxpool2d_3x3s2p1(x)           # reshape->MaxPool2d->reshape == per-(b,d,c) spatial pool
    x = resblock_forward(x, p["layer1"], stride=1)
    x = conv3d_bn_act(x, p["conv2"], (3, 3, 3), (1, 1, 1), (1, 1, 1), "relu")
    x = resblock_forward(x, p["layer2"], stride=2)
    x = conv3d_bn_act(x, p["conv3"], (3, 3, 3), (1, 1, 1), (1, 1, 1), "relu")
    x = resblock_forward(x, p["layer3"], stride=2)
    return x                           # (B, D, H, W, 256)


# ----------------------------------- fused TABNet branch kernel ----------------------------------
def positional_encoding_table(n, E):
    pos = jnp.arange(n, dtype=jnp.float32)[:, None]
    div = jnp.power(10000.0, jnp.arange(0, E, 2, dtype=jnp.float32) / E)
    X = pos / div
    P = jnp.zeros((n, E), jnp.float32)
    P = P.at[:, 0::2].set(jnp.sin(X))
    P = P.at[:, 1::2].set(jnp.cos(X))
    return P


def _tabnet_kernel(x_ref, pe_ref, bias_ref,
                   wq_ref, bq_ref, wk_ref, bk_ref, wv_ref, bv_ref, wo_ref, bo_ref,
                   ln0g_ref, ln0b_ref, ln1g_ref, ln1b_ref, elng_ref, elnb_ref,
                   fc1w_ref, fc1b_ref, fc2w_ref, fc2b_ref,
                   cw_ref, cb_ref, pool_ref,
                   l1w_ref, l1b_ref, l2w_ref, l2b_ref,
                   o_ref, *, T, B, E, Lc):
    f32 = jnp.float32

    def dot(a, b):
        return jnp.dot(a, b, preferred_element_type=f32)

    def layer_norm(v, g, b):
        mu = jnp.mean(v, axis=-1, keepdims=True)
        var = jnp.mean((v - mu) ** 2, axis=-1, keepdims=True)
        return (v - mu) * jax.lax.rsqrt(var + 1e-5) * g + b

    # embed-scale + positional encoding (PyTorch quirk: P is indexed by the batch dim)
    x = x_ref[...] * math.sqrt(E) + pe_ref[...]                      # (T*B, E), rows = (t, b)

    # ---- self-attention block (pre-norm, num_heads=1, all dropouts 0) ----
    residual = x
    xn = layer_norm(x, ln0g_ref[...], ln0b_ref[...])
    q = (dot(xn, wq_ref[...]) + bq_ref[...]) * (E ** -0.5)
    k = dot(xn, wk_ref[...]) + bk_ref[...]
    v = dot(xn, wv_ref[...]) + bv_ref[...]
    # scores over the flattened (T*B) rows; cross-batch pairs masked via additive bias
    s = jax.lax.dot_general(q, k, (((1,), (1,)), ((), ())),
                            preferred_element_type=f32) * (1.0 / math.sqrt(T))
    s = s + bias_ref[...]
    s = s - jnp.max(s, axis=-1, keepdims=True)
    p = jnp.exp(s)
    p = p / jnp.sum(p, axis=-1, keepdims=True)
    attn = dot(p, v)
    x = residual + dot(attn, wo_ref[...]) + bo_ref[...]

    # ---- feed-forward block (pre-norm) ----
    residual = x
    xn = layer_norm(x, ln1g_ref[...], ln1b_ref[...])
    h = jnp.maximum(dot(xn, fc1w_ref[...]) + fc1b_ref[...], 0.0)
    x = residual + dot(h, fc2w_ref[...]) + fc2b_ref[...]
    x = layer_norm(x, elng_ref[...], elnb_ref[...])                  # final encoder LayerNorm

    # ---- Conv1d(E -> 64, k=7) over time + ReLU + AdaptiveAvgPool1d(1) ----
    acc = jnp.zeros((Lc * B, 64), f32)
    for kk in range(7):
        acc = acc + dot(x[kk * B:(kk + Lc) * B, :], cw_ref[kk])      # tap kk contribution
    y = jnp.maximum(acc + cb_ref[...], 0.0)
    y = dot(pool_ref[...], y)                                        # (B, 64) mean over time

    # ---- head: Linear(64,16)+sigmoid, dropout(0.8)=identity (eval), Linear(16,4)+relu ----
    # TODO(synk): F.dropout(p=0.8) after sigmoid omitted (eval-mode identity)
    y = jax.nn.sigmoid(dot(y, l1w_ref[...]) + l1b_ref[...])
    y = jnp.maximum(dot(y, l2w_ref[...]) + l2b_ref[...], 0.0)
    o_ref[...] = y


def tabnet_forward(x1, p):
    # x1: (B, C, T); unsqueeze(1)+squeeze(1) cancel; permute(2,0,1) -> (T, B, E) -> (T*B, E)
    B, E, T = x1.shape
    Lc = T - 6
    x = jnp.transpose(x1, (2, 0, 1)).reshape(T * B, E).astype(jnp.float32)
    # NOTE: PositionalEncoding slices P by X.shape[1] (= batch) in the reference — reproduced.
    pe = jnp.tile(positional_encoding_table(B, E), (T, 1))
    row_b = jnp.arange(T * B, dtype=jnp.int32) % B
    attn_bias = jnp.where(row_b[:, None] == row_b[None, :], 0.0, -1e30).astype(jnp.float32)
    poolmat = jnp.tile(jnp.eye(B, dtype=jnp.float32), (1, Lc)) / Lc   # (B, Lc*B) time-average

    kernel = functools.partial(_tabnet_kernel, T=T, B=B, E=E, Lc=Lc)
    return pl.pallas_call(
        kernel,
        out_shape=jax.ShapeDtypeStruct((B, 4), jnp.float32),
    )(x, pe, attn_bias,
      p["wq"], p["bq"], p["wk"], p["bk"], p["wv"], p["bv"], p["wo"], p["bo"],
      p["ln0_g"], p["ln0_b"], p["ln1_g"], p["ln1_b"], p["enc_ln_g"], p["enc_ln_b"],
      p["fc1_w"], p["fc1_b"], p["fc2_w"], p["fc2_b"],
      p["conv1d_w"], p["conv1d_b"], poolmat,
      p["lin1_w"], p["lin1_b"], p["lin2_w"], p["lin2_b"])


# --------------------------- fused head: conv5 + pool + concat + linear --------------------------
def _head_kernel(xa_ref, w5_ref, s5_ref, b5_ref, pool_ref, seq_ref,
                 wfs_ref, wff_ref, bf_ref, o_ref):
    f32 = jnp.float32
    h = jnp.dot(xa_ref[...], w5_ref[...], preferred_element_type=f32)
    h = jnp.maximum(h * s5_ref[...] + b5_ref[...], 0.0)                     # conv5 + bn5 + relu
    fre = jnp.maximum(jnp.dot(pool_ref[...], h, preferred_element_type=f32), 0.0)  # avgpool+relu
    # final Linear(8, 2) on concat([seq, fre]) expressed with a pre-split weight (no lane concat)
    o_ref[...] = (jnp.dot(seq_ref[...], wfs_ref[...], preferred_element_type=f32)
                  + jnp.dot(fre, wff_ref[...], preferred_element_type=f32)
                  + bf_ref[...])


# --------------------------------------------- dbpnet --------------------------------------------
def dbpnet_forward(x1, x2, pp):
    seq = tabnet_forward(x1, pp["tem"])                    # (B, 4)
    x = frbnet_trunk(x2, pp["fre"])                        # (B, D, H, W, 256)
    B, D, H, W, C = x.shape
    DHW = D * H * W
    xa = x.reshape(B * DHW, C)
    poolmat = jnp.kron(jnp.eye(B, dtype=jnp.float32),
                       jnp.ones((1, DHW), jnp.float32)) / DHW          # (B, B*DHW)
    h = pp["head"]
    return pl.pallas_call(
        _head_kernel,
        out_shape=jax.ShapeDtypeStruct((B, 2), jnp.float32),
    )(xa, h["w5"], h["s5"], h["b5"], poolmat, seq, h["wf_seq"], h["wf_fre"], h["bf"])


# ------------------------------------ deterministic parameter init -------------------------------
def init_params(key, in_channels):
    keys = iter(jax.random.split(key, 512))

    def nrm(shape, std=0.05):
        return std * jax.random.normal(next(keys), shape, jnp.float32)

    def bn(c):
        return (
            1.0 + 0.1 * jax.random.normal(next(keys), (c,), jnp.float32),  # gamma
            0.1 * jax.random.normal(next(keys), (c,), jnp.float32),        # beta
            0.1 * jax.random.normal(next(keys), (c,), jnp.float32),        # running_mean
            jax.random.uniform(next(keys), (c,), jnp.float32, minval=0.5, maxval=1.5),  # running_var
        )

    def conv_bn(cout, cin, kd, kh, kw):
        return {"w": nrm((cout, cin, kd, kh, kw)), "bn": bn(cout)}

    def resblock(cin, cnum, cout):
        return {
            "c1": conv_bn(cnum, cin, 1, 1, 1),
            "c2": conv_bn(cnum, cnum, 1, 3, 3),
            "c3": conv_bn(cout, cnum, 1, 1, 1),
            "ds": conv_bn(cout, cin, 1, 1, 1),
        }

    E = in_channels
    fre = {
        "conv1": conv_bn(32, 1, 1, 7, 7),
        "layer1": resblock(32, 32, 64),
        "conv2": {"w": nrm((64, 64, 3, 3, 3)), "b": nrm((64,), 0.01), "bn": bn(64)},
        "layer2": resblock(64, 64, 128),
        "conv3": {"w": nrm((128, 128, 3, 3, 3)), "b": nrm((128,), 0.01), "bn": bn(128)},
        "layer3": resblock(128, 128, 256),
        "conv5": {"w": nrm((4, 256, 1, 1, 1)), "b": nrm((4,), 0.01), "bn": bn(4)},
    }
    tem = {
        "attn": {
            "in_proj_w": nrm((3 * E, E), 0.3),
            "in_proj_b": nrm((3 * E,), 0.01),
            "out_w": nrm((E, E), 0.3),
            "out_b": nrm((E,), 0.01),
        },
        "fc1_w": nrm((E, E), 0.3), "fc1_b": nrm((E,), 0.01),
        "fc2_w": nrm((E, E), 0.3), "fc2_b": nrm((E,), 0.01),
        "ln0_g": 1.0 + 0.1 * jax.random.normal(next(keys), (E,), jnp.float32),
        "ln0_b": 0.1 * jax.random.normal(next(keys), (E,), jnp.float32),
        "ln1_g": 1.0 + 0.1 * jax.random.normal(next(keys), (E,), jnp.float32),
        "ln1_b": 0.1 * jax.random.normal(next(keys), (E,), jnp.float32),
        "enc_ln_g": 1.0 + 0.1 * jax.random.normal(next(keys), (E,), jnp.float32),
        "enc_ln_b": 0.1 * jax.random.normal(next(keys), (E,), jnp.float32),
        "conv1d_w": nrm((64, E, 7)), "conv1d_b": nrm((64,), 0.01),
        "lin1_w": nrm((16, 64)), "lin1_b": nrm((16,), 0.01),
        "lin2_w": nrm((4, 16)), "lin2_b": nrm((4,), 0.01),
    }
    return {"fre": fre, "tem": tem, "linear_w": nrm((2, 8)), "linear_b": nrm((2,), 0.01)}


# --------------------------- one-time parameter packing (hoisted re-layout) ----------------------
def pack_params(raw):
    """Fold eval-mode BatchNorm into scale/shift, transpose weights into (K,N) matmul layout,
    cast MXU weights to bf16 and pad them to tile boundaries — done once, outside the forward."""

    def fold_bn(bnp, bias, cout):
        gamma, beta, mean, var = bnp
        scale = gamma / jnp.sqrt(var + 1e-5)
        shift = beta - mean * scale
        if bias is not None:
            shift = shift + bias * scale
        return scale.astype(jnp.float32), shift.astype(jnp.float32)

    def pack_conv(q):
        w = q["w"]                                           # (Cout, Cin, kd, kh, kw)
        cout = w.shape[0]
        wm = jnp.transpose(w, (2, 3, 4, 1, 0)).reshape(-1, cout)   # (kd*kh*kw*Cin, Cout)
        scale, shift = fold_bn(q["bn"], q.get("b"), cout)
        return pack_matmul_weight(wm, scale, shift)

    fre_raw = raw["fre"]
    fre = {
        "conv1": pack_conv(fre_raw["conv1"]),
        "layer1": {k: pack_conv(v) for k, v in fre_raw["layer1"].items()},
        "conv2": pack_conv(fre_raw["conv2"]),
        "layer2": {k: pack_conv(v) for k, v in fre_raw["layer2"].items()},
        "conv3": pack_conv(fre_raw["conv3"]),
        "layer3": {k: pack_conv(v) for k, v in fre_raw["layer3"].items()},
    }

    t = raw["tem"]
    E = t["fc1_w"].shape[0]
    inw = t["attn"]["in_proj_w"]
    inb = t["attn"]["in_proj_b"]
    row = lambda v: v.reshape(1, -1).astype(jnp.float32)
    T32 = lambda m: jnp.transpose(m).astype(jnp.float32)
    tem = {
        "wq": T32(inw[:E]), "bq": row(inb[:E]),
        "wk": T32(inw[E:2 * E]), "bk": row(inb[E:2 * E]),
        "wv": T32(inw[2 * E:]), "bv": row(inb[2 * E:]),
        "wo": T32(t["attn"]["out_w"]), "bo": row(t["attn"]["out_b"]),
        "ln0_g": row(t["ln0_g"]), "ln0_b": row(t["ln0_b"]),
        "ln1_g": row(t["ln1_g"]), "ln1_b": row(t["ln1_b"]),
        "enc_ln_g": row(t["enc_ln_g"]), "enc_ln_b": row(t["enc_ln_b"]),
        "fc1_w": T32(t["fc1_w"]), "fc1_b": row(t["fc1_b"]),
        "fc2_w": T32(t["fc2_w"]), "fc2_b": row(t["fc2_b"]),
        "conv1d_w": jnp.transpose(t["conv1d_w"], (2, 1, 0)).astype(jnp.float32),  # (7, E, 64)
        "conv1d_b": row(t["conv1d_b"]),
        "lin1_w": T32(t["lin1_w"]), "lin1_b": row(t["lin1_b"]),
        "lin2_w": T32(t["lin2_w"]), "lin2_b": row(t["lin2_b"]),
    }

    c5 = fre_raw["conv5"]
    s5, b5 = fold_bn(c5["bn"], c5.get("b"), 4)
    wf_t = jnp.transpose(raw["linear_w"]).astype(jnp.float32)        # (8, 2)
    head = {
        "w5": jnp.transpose(c5["w"], (2, 3, 4, 1, 0)).reshape(-1, 4).astype(jnp.float32),
        "s5": s5.reshape(1, 4), "b5": b5.reshape(1, 4),
        "wf_seq": wf_t[:4], "wf_fre": wf_t[4:], "bf": row(raw["linear_b"]),
    }
    return {"fre": fre, "tem": tem, "head": head}


# ---------------------------------------------- main ---------------------------------------------
if __name__ == "__main__":
    key = jax.random.PRNGKey(0)
    k1, k2, kp = jax.random.split(key, 3)

    B, C_in, T = 2, 8, 16          # temporal EEG branch: (batch, channels, time)
    D, H, W = 4, 16, 16            # spectral branch: (batch, depth, height, width)

    x1 = jax.random.normal(k1, (B, C_in, T), jnp.float32)
    x2 = jax.random.normal(k2, (B, D, H, W), jnp.float32)
    params = pack_params(init_params(kp, C_in))

    fwd = jax.jit(dbpnet_forward)
    out = jax.block_until_ready(fwd(x1, x2, params))
    assert out.shape == (B, 2) and out.dtype == jnp.float32
    print("KERNEL_OK")
</pallas_src>

<mosaic_0001>
module attributes {stable_mosaic.version = 11 : i64} {
  func.func @_mm_affine_act_kernel(%arg0: i32, %arg1: i32, %arg2: i32, %arg3: memref<256x128xbf16, #tpu.memory_space<vmem>>, %arg4: memref<128x128xbf16, #tpu.memory_space<vmem>>, %arg5: memref<1x128xf32, #tpu.memory_space<vmem>>, %arg6: memref<1x128xf32, #tpu.memory_space<vmem>>, %arg7: memref<256x128xf32, #tpu.memory_space<vmem>>, %arg8: memref<256x128xf32, #tpu.memory_space<vmem>>) attributes {dimension_semantics = [#tpu.dimension_semantics<parallel>, #tpu.dimension_semantics<parallel>, #tpu.dimension_semantics<arbitrary>], iteration_bounds = array<i64: 2, 1, 1>, scalar_prefetch = 0 : i64, scratch_operands = 1 : i64, tpu.core_type = #tpu.core_type<tc>, window_params = [{transform_indices = @transform_0, window_bounds = array<i64: 256, 128>}, {transform_indices = @transform_1, window_bounds = array<i64: 128, 128>}, {transform_indices = @transform_2, window_bounds = array<i64: 1, 128>}, {transform_indices = @transform_3, window_bounds = array<i64: 1, 128>}, {transform_indices = @transform_4, window_bounds = array<i64: 256, 128>}]} {
    %c0_i32 = arith.constant 0 : i32
    %0 = arith.cmpi eq, %arg2, %c0_i32 : i32
    %1 = arith.extui %0 : i1 to i32
    %c0_i32_0 = arith.constant 0 : i32
    %2 = arith.cmpi ne, %1, %c0_i32_0 : i32
    scf.if %2 {
      %cst_10 = arith.constant 0.000000e+00 : f32
      %12 = vector.broadcast %cst_10 : f32 to vector<256x128xf32>
      %c0_11 = arith.constant 0 : index
      %c0_12 = arith.constant 0 : index
      %13 = vector.load %arg8[%c0_11, %c0_12] : memref<256x128xf32, #tpu.memory_space<vmem>>, vector<256x128xf32>
      tpu.vector_store %arg8[%c0_11, %c0_12], %12 {strides = array<i32>} : memref<256x128xf32, #tpu.memory_space<vmem>>, vector<256x128xf32>,
    } else {
    }
    %c0 = arith.constant 0 : index
    %c0_1 = arith.constant 0 : index
    %3 = vector.load %arg8[%c0, %c0_1] : memref<256x128xf32, #tpu.memory_space<vmem>>, vector<256x128xf32>
    %c0_2 = arith.constant 0 : index
    %c0_3 = arith.constant 0 : index
    %4 = vector.load %arg3[%c0_2, %c0_3] : memref<256x128xbf16, #tpu.memory_space<vmem>>, vector<256x128xbf16>
    %c0_4 = arith.constant 0 : index
    %c0_5 = arith.constant 0 : index
    %5 = vector.load %arg4[%c0_4, %c0_5] : memref<128x128xbf16, #tpu.memory_space<vmem>>, vector<128x128xbf16>
    %cst = arith.constant dense<0.000000e+00> : vector<256x128xf32>
    %6 = tpu.matmul %4, %5, %cst {dimension_numbers = #tpu.dot_dimension_numbers<[1], [0], [0], [1], [0, 0, 1, 1], [], []>} : vector<256x128xbf16>, vector<128x128xbf16>, vector<256x128xf32> -> vector<256x128xf32>
    %7 = arith.addf %3, %6 : vector<256x128xf32>
    %c0_6 = arith.constant 0 : index
    %c0_7 = arith.constant 0 : index
    %8 = vector.load %arg8[%c0_6, %c0_7] : memref<256x128xf32, #tpu.memory_space<vmem>>, vector<256x128xf32>
    tpu.vector_store %arg8[%c0_6, %c0_7], %7 {strides = array<i32>} : memref<256x128xf32, #tpu.memory_space<vmem>>, vector<256x128xf32>,
    %c0_i32_8 = arith.constant 0 : i32
    %9 = arith.cmpi eq, %arg2, %c0_i32_8 : i32
    %10 = arith.extui %9 : i1 to i32
    %c0_i32_9 = arith.constant 0 : i32
    %11 = arith.cmpi ne, %10, %c0_i32_9 : i32
    scf.if %11 {
      %c0_10 = arith.constant 0 : index
      %c0_11 = arith.constant 0 : index
      %12 = vector.load %arg8[%c0_10, %c0_11] : memref<256x128xf32, #tpu.memory_space<vmem>>, vector<256x128xf32>
      %c0_12 = arith.constant 0 : index
      %c0_13 = arith.constant 0 : index
      %13 = vector.load %arg5[%c0_12, %c0_13] : memref<1x128xf32, #tpu.memory_space<vmem>>, vector<1x128xf32>
      %14 = vector.broadcast %13 : vector<1x128xf32> to vector<256x128xf32>
      %15 = arith.mulf %12, %14 : vector<256x128xf32>
      %c0_14 = arith.constant 0 : index
      %c0_15 = arith.constant 0 : index
      %16 = vector.load %arg6[%c0_14, %c0_15] : memref<1x128xf32, #tpu.memory_space<vmem>>, vector<1x128xf32>
      %17 = vector.broadcast %16 : vector<1x128xf32> to vector<256x128xf32>
      %18 = arith.addf %15, %17 : vector<256x128xf32>
      %19 = math.tanh %18 : vector<256x128xf32>
      %c0_16 = arith.constant 0 : index
      %c0_17 = arith.constant 0 : index
      %20 = vector.load %arg7[%c0_16, %c0_17] : memref<256x128xf32, #tpu.memory_space<vmem>>, vector<256x128xf32>
      tpu.vector_store %arg7[%c0_16, %c0_17], %19 {strides = array<i32>} : memref<256x128xf32, #tpu.memory_space<vmem>>, vector<256x128xf32>,
    } else {
    }
    return
  }
  func.func @transform_0(%arg0: i32, %arg1: i32, %arg2: i32) -> (i32, i32) {
    %c0_i32 = arith.constant 0 : i32
    return %arg0, %arg2 : i32, i32
  }
  func.func @transform_1(%arg0: i32, %arg1: i32, %arg2: i32) -> (i32, i32) {
    %c0_i32 = arith.constant 0 : i32
    return %arg2, %arg1 : i32, i32
  }
  func.func @transform_2(%arg0: i32, %arg1: i32, %arg2: i32) -> (i32, i32) {
    %c0_i32 = arith.constant 0 : i32
    %c0_i32_0 = arith.constant 0 : i32
    return %c0_i32, %arg1 : i32, i32
  }
  func.func @transform_3(%arg0: i32, %arg1: i32, %arg2: i32) -> (i32, i32) {
    %c0_i32 = arith.constant 0 : i32
    %c0_i32_0 = arith.constant 0 : i32
    return %c0_i32, %arg1 : i32, i32
  }
  func.func @transform_4(%arg0: i32, %arg1: i32, %arg2: i32) -> (i32, i32) {
    %c0_i32 = arith.constant 0 : i32
    return %arg0, %arg1 : i32, i32
  }
}

module attributes {stable_mosaic.version = 11 : i64} {
  func.func @_mm_affine_act_kernel(%arg0: i32, %arg1: i32, %arg2: i32, %arg3: memref<128x128xbf16, #tpu.memory_space<vmem>>, %arg4: memref<128x128xbf16, #tpu.memory_space<vmem>>, %arg5: memref<1x128xf32, #tpu.memory_space<vmem>>, %arg6: memref<1x128xf32, #tpu.memory_space<vmem>>, %arg7: memref<128x128xf32, #tpu.memory_space<vmem>>, %arg8: memref<128x128xf32, #tpu.memory_space<vmem>>) attributes {dimension_semantics = [#tpu.dimension_semantics<parallel>, #tpu.dimension_semantics<parallel>, #tpu.dimension_semantics<arbitrary>], iteration_bounds = array<i64: 1, 1, 1>, scalar_prefetch = 0 : i64, scratch_operands = 1 : i64, tpu.core_type = #tpu.core_type<tc>, window_params = [{transform_indices = @transform_0, window_bounds = array<i64: 128, 128>}, {transform_indices = @transform_1, window_bounds = array<i64: 128, 128>}, {transform_indices = @transform_2, window_bounds = array<i64: 1, 128>}, {transform_indices = @transform_3, window_bounds = array<i64: 1, 128>}, {transform_indices = @transform_4, window_bounds = array<i64: 128, 128>}]} {
    %c0_i32 = arith.constant 0 : i32
    %0 = arith.cmpi eq, %arg2, %c0_i32 : i32
    %1 = arith.extui %0 : i1 to i32
    %c0_i32_0 = arith.constant 0 : i32
    %2 = arith.cmpi ne, %1, %c0_i32_0 : i32
    scf.if %2 {
      %cst_10 = arith.constant 0.000000e+00 : f32
      %12 = vector.broadcast %cst_10 : f32 to vector<128x128xf32>
      %c0_11 = arith.constant 0 : index
      %c0_12 = arith.constant 0 : index
      %13 = vector.load %arg8[%c0_11, %c0_12] : memref<128x128xf32, #tpu.memory_space<vmem>>, vector<128x128xf32>
      tpu.vector_store %arg8[%c0_11, %c0_12], %12 {strides = array<i32>} : memref<128x128xf32, #tpu.memory_space<vmem>>, vector<128x128xf32>,
    } else {
    }
    %c0 = arith.constant 0 : index
    %c0_1 = arith.constant 0 : index
    %3 = vector.load %arg8[%c0, %c0_1] : memref<128x128xf32, #tpu.memory_space<vmem>>, vector<128x128xf32>
    %c0_2 = arith.constant 0 : index
    %c0_3 = arith.constant 0 : index
    %4 = vector.load %arg3[%c0_2, %c0_3] : memref<128x128xbf16, #tpu.memory_space<vmem>>, vector<128x128xbf16>
    %c0_4 = arith.constant 0 : index
    %c0_5 = arith.constant 0 : index
    %5 = vector.load %arg4[%c0_4, %c0_5] : memref<128x128xbf16, #tpu.memory_space<vmem>>, vector<128x128xbf16>
    %cst = arith.constant dense<0.000000e+00> : vector<128x128xf32>
    %6 = tpu.matmul %4, %5, %cst {dimension_numbers = #tpu.dot_dimension_numbers<[1], [0], [0], [1], [0, 0, 1, 1], [], []>} : vector<128x128xbf16>, vector<128x128xbf16>, vector<128x128xf32> -> vector<128x128xf32>
    %7 = arith.addf %3, %6 : vector<128x128xf32>
    %c0_6 = arith.constant 0 : index
    %c0_7 = arith.constant 0 : index
    %8 = vector.load %arg8[%c0_6, %c0_7] : memref<128x128xf32, #tpu.memory_space<vmem>>, vector<128x128xf32>
    tpu.vector_store %arg8[%c0_6, %c0_7], %7 {strides = array<i32>} : memref<128x128xf32, #tpu.memory_space<vmem>>, vector<128x128xf32>,
    %c0_i32_8 = arith.constant 0 : i32
    %9 = arith.cmpi eq, %arg2, %c0_i32_8 : i32
    %10 = arith.extui %9 : i1 to i32
    %c0_i32_9 = arith.constant 0 : i32
    %11 = arith.cmpi ne, %10, %c0_i32_9 : i32
    scf.if %11 {
      %c0_10 = arith.constant 0 : index
      %c0_11 = arith.constant 0 : index
      %12 = vector.load %arg8[%c0_10, %c0_11] : memref<128x128xf32, #tpu.memory_space<vmem>>, vector<128x128xf32>
      %c0_12 = arith.constant 0 : index
      %c0_13 = arith.constant 0 : index
      %13 = vector.load %arg5[%c0_12, %c0_13] : memref<1x128xf32, #tpu.memory_space<vmem>>, vector<1x128xf32>
      %14 = vector.broadcast %13 : vector<1x128xf32> to vector<128x128xf32>
      %15 = arith.mulf %12, %14 : vector<128x128xf32>
      %c0_14 = arith.constant 0 : index
      %c0_15 = arith.constant 0 : index
      %16 = vector.load %arg6[%c0_14, %c0_15] : memref<1x128xf32, #tpu.memory_space<vmem>>, vector<1x128xf32>
      %17 = vector.broadcast %16 : vector<1x128xf32> to vector<128x128xf32>
      %18 = arith.addf %15, %17 : vector<128x128xf32>
      %cst_16 = arith.constant 0.000000e+00 : f32
      %19 = vector.broadcast %cst_16 : f32 to vector<128x128xf32>
      %20 = arith.maximumf %18, %19 : vector<128x128xf32>
      %c0_17 = arith.constant 0 : index
      %c0_18 = arith.constant 0 : index
      %21 = vector.load %arg7[%c0_17, %c0_18] : memref<128x128xf32, #tpu.memory_space<vmem>>, vector<128x128xf32>
      tpu.vector_store %arg7[%c0_17, %c0_18], %20 {strides = array<i32>} : memref<128x128xf32, #tpu.memory_space<vmem>>, vector<128x128xf32>,
    } else {
    }
    return
  }
  func.func @transform_0(%arg0: i32, %arg1: i32, %arg2: i32) -> (i32, i32) {
    %c0_i32 = arith.constant 0 : i32
    return %arg0, %arg2 : i32, i32
  }
  func.func @transform_1(%arg0: i32, %arg1: i32, %arg2: i32) -> (i32, i32) {
    %c0_i32 = arith.constant 0 : i32
    return %arg2, %arg1 : i32, i32
  }
  func.func @transform_2(%arg0: i32, %arg1: i32, %arg2: i32) -> (i32, i32) {
    %c0_i32 = arith.constant 0 : i32
    %c0_i32_0 = arith.constant 0 : i32
    return %c0_i32, %arg1 : i32, i32
  }
  func.func @transform_3(%arg0: i32, %arg1: i32, %arg2: i32) -> (i32, i32) {
    %c0_i32 = arith.constant 0 : i32
    %c0_i32_0 = arith.constant 0 : i32
    return %c0_i32, %arg1 : i32, i32
  }
  func.func @transform_4(%arg0: i32, %arg1: i32, %arg2: i32) -> (i32, i32) {
    %c0_i32 = arith.constant 0 : i32
    return %arg0, %arg1 : i32, i32
  }
}

module attributes {stable_mosaic.version = 11 : i64} {
  func.func @_mm_affine_act_kernel(%arg0: i32, %arg1: i32, %arg2: i32, %arg3: memref<128x128xbf16, #tpu.memory_space<vmem>>, %arg4: memref<128x128xbf16, #tpu.memory_space<vmem>>, %arg5: memref<1x128xf32, #tpu.memory_space<vmem>>, %arg6: memref<1x128xf32, #tpu.memory_space<vmem>>, %arg7: memref<128x128xf32, #tpu.memory_space<vmem>>, %arg8: memref<128x128xf32, #tpu.memory_space<vmem>>) attributes {dimension_semantics = [#tpu.dimension_semantics<parallel>, #tpu.dimension_semantics<parallel>, #tpu.dimension_semantics<arbitrary>], iteration_bounds = array<i64: 1, 1, 1>, scalar_prefetch = 0 : i64, scratch_operands = 1 : i64, tpu.core_type = #tpu.core_type<tc>, window_params = [{transform_indices = @transform_0, window_bounds = array<i64: 128, 128>}, {transform_indices = @transform_1, window_bounds = array<i64: 128, 128>}, {transform_indices = @transform_2, window_bounds = array<i64: 1, 128>}, {transform_indices = @transform_3, window_bounds = array<i64: 1, 128>}, {transform_indices = @transform_4, window_bounds = array<i64: 128, 128>}]} {
    %c0_i32 = arith.constant 0 : i32
    %0 = arith.cmpi eq, %arg2, %c0_i32 : i32
    %1 = arith.extui %0 : i1 to i32
    %c0_i32_0 = arith.constant 0 : i32
    %2 = arith.cmpi ne, %1, %c0_i32_0 : i32
    scf.if %2 {
      %cst_10 = arith.constant 0.000000e+00 : f32
      %12 = vector.broadcast %cst_10 : f32 to vector<128x128xf32>
      %c0_11 = arith.constant 0 : index
      %c0_12 = arith.constant 0 : index
      %13 = vector.load %arg8[%c0_11, %c0_12] : memref<128x128xf32, #tpu.memory_space<vmem>>, vector<128x128xf32>
      tpu.vector_store %arg8[%c0_11, %c0_12], %12 {strides = array<i32>} : memref<128x128xf32, #tpu.memory_space<vmem>>, vector<128x128xf32>,
    } else {
    }
    %c0 = arith.constant 0 : index
    %c0_1 = arith.constant 0 : index
    %3 = vector.load %arg8[%c0, %c0_1] : memref<128x128xf32, #tpu.memory_space<vmem>>, vector<128x128xf32>
    %c0_2 = arith.constant 0 : index
    %c0_3 = arith.constant 0 : index
    %4 = vector.load %arg3[%c0_2, %c0_3] : memref<128x128xbf16, #tpu.memory_space<vmem>>, vector<128x128xbf16>
    %c0_4 = arith.constant 0 : index
    %c0_5 = arith.constant 0 : index
    %5 = vector.load %arg4[%c0_4, %c0_5] : memref<128x128xbf16, #tpu.memory_space<vmem>>, vector<128x128xbf16>
    %cst = arith.constant dense<0.000000e+00> : vector<128x128xf32>
    %6 = tpu.matmul %4, %5, %cst {dimension_numbers = #tpu.dot_dimension_numbers<[1], [0], [0], [1], [0, 0, 1, 1], [], []>} : vector<128x128xbf16>, vector<128x128xbf16>, vector<128x128xf32> -> vector<128x128xf32>
    %7 = arith.addf %3, %6 : vector<128x128xf32>
    %c0_6 = arith.constant 0 : index
    %c0_7 = arith.constant 0 : index
    %8 = vector.load %arg8[%c0_6, %c0_7] : memref<128x128xf32, #tpu.memory_space<vmem>>, vector<128x128xf32>
    tpu.vector_store %arg8[%c0_6, %c0_7], %7 {strides = array<i32>} : memref<128x128xf32, #tpu.memory_space<vmem>>, vector<128x128xf32>,
    %c0_i32_8 = arith.constant 0 : i32
    %9 = arith.cmpi eq, %arg2, %c0_i32_8 : i32
    %10 = arith.extui %9 : i1 to i32
    %c0_i32_9 = arith.constant 0 : i32
    %11 = arith.cmpi ne, %10, %c0_i32_9 : i32
    scf.if %11 {
      %c0_10 = arith.constant 0 : index
      %c0_11 = arith.constant 0 : index
      %12 = vector.load %arg8[%c0_10, %c0_11] : memref<128x128xf32, #tpu.memory_space<vmem>>, vector<128x128xf32>
      %c0_12 = arith.constant 0 : index
      %c0_13 = arith.constant 0 : index
      %13 = vector.load %arg5[%c0_12, %c0_13] : memref<1x128xf32, #tpu.memory_space<vmem>>, vector<1x128xf32>
      %14 = vector.broadcast %13 : vector<1x128xf32> to vector<128x128xf32>
      %15 = arith.mulf %12, %14 : vector<128x128xf32>
      %c0_14 = arith.constant 0 : index
      %c0_15 = arith.constant 0 : index
      %16 = vector.load %arg6[%c0_14, %c0_15] : memref<1x128xf32, #tpu.memory_space<vmem>>, vector<1x128xf32>
      %17 = vector.broadcast %16 : vector<1x128xf32> to vector<128x128xf32>
      %18 = arith.addf %15, %17 : vector<128x128xf32>
      %c0_16 = arith.constant 0 : index
      %c0_17 = arith.constant 0 : index
      %19 = vector.load %arg7[%c0_16, %c0_17] : memref<128x128xf32, #tpu.memory_space<vmem>>, vector<128x128xf32>
      tpu.vector_store %arg7[%c0_16, %c0_17], %18 {strides = array<i32>} : memref<128x128xf32, #tpu.memory_space<vmem>>, vector<128x128xf32>,
    } else {
    }
    return
  }
  func.func @transform_0(%arg0: i32, %arg1: i32, %arg2: i32) -> (i32, i32) {
    %c0_i32 = arith.constant 0 : i32
    return %arg0, %arg2 : i32, i32
  }
  func.func @transform_1(%arg0: i32, %arg1: i32, %arg2: i32) -> (i32, i32) {
    %c0_i32 = arith.constant 0 : i32
    return %arg2, %arg1 : i32, i32
  }
  func.func @transform_2(%arg0: i32, %arg1: i32, %arg2: i32) -> (i32, i32) {
    %c0_i32 = arith.constant 0 : i32
    %c0_i32_0 = arith.constant 0 : i32
    return %c0_i32, %arg1 : i32, i32
  }
  func.func @transform_3(%arg0: i32, %arg1: i32, %arg2: i32) -> (i32, i32) {
    %c0_i32 = arith.constant 0 : i32
    %c0_i32_0 = arith.constant 0 : i32
    return %c0_i32, %arg1 : i32, i32
  }
  func.func @transform_4(%arg0: i32, %arg1: i32, %arg2: i32) -> (i32, i32) {
    %c0_i32 = arith.constant 0 : i32
    return %arg0, %arg1 : i32, i32
  }
}

module attributes {stable_mosaic.version = 11 : i64} {
  func.func @_mm_affine_act_kernel(%arg0: i32, %arg1: i32, %arg2: i32, %arg3: memref<128x384xbf16, #tpu.memory_space<vmem>>, %arg4: memref<384x128xbf16, #tpu.memory_space<vmem>>, %arg5: memref<1x128xf32, #tpu.memory_space<vmem>>, %arg6: memref<1x128xf32, #tpu.memory_space<vmem>>, %arg7: memref<128x128xf32, #tpu.memory_space<vmem>>, %arg8: memref<128x128xf32, #tpu.memory_space<vmem>>) attributes {dimension_semantics = [#tpu.dimension_semantics<parallel>, #tpu.dimension_semantics<parallel>, #tpu.dimension_semantics<arbitrary>], iteration_bounds = array<i64: 1, 1, 1>, scalar_prefetch = 0 : i64, scratch_operands = 1 : i64, tpu.core_type = #tpu.core_type<tc>, window_params = [{transform_indices = @transform_0, window_bounds = array<i64: 128, 384>}, {transform_indices = @transform_1, window_bounds = array<i64: 384, 128>}, {transform_indices = @transform_2, window_bounds = array<i64: 1, 128>}, {transform_indices = @transform_3, window_bounds = array<i64: 1, 128>}, {transform_indices = @transform_4, window_bounds = array<i64: 128, 128>}]} {
    %c0_i32 = arith.constant 0 : i32
    %0 = arith.cmpi eq, %arg2, %c0_i32 : i32
    %1 = arith.extui %0 : i1 to i32
    %c0_i32_0 = arith.constant 0 : i32
    %2 = arith.cmpi ne, %1, %c0_i32_0 : i32
    scf.if %2 {
      %cst_10 = arith.constant 0.000000e+00 : f32
      %12 = vector.broadcast %cst_10 : f32 to vector<128x128xf32>
      %c0_11 = arith.constant 0 : index
      %c0_12 = arith.constant 0 : index
      %13 = vector.load %arg8[%c0_11, %c0_12] : memref<128x128xf32, #tpu.memory_space<vmem>>, vector<128x128xf32>
      tpu.vector_store %arg8[%c0_11, %c0_12], %12 {strides = array<i32>} : memref<128x128xf32, #tpu.memory_space<vmem>>, vector<128x128xf32>,
    } else {
    }
    %c0 = arith.constant 0 : index
    %c0_1 = arith.constant 0 : index
    %3 = vector.load %arg8[%c0, %c0_1] : memref<128x128xf32, #tpu.memory_space<vmem>>, vector<128x128xf32>
    %c0_2 = arith.constant 0 : index
    %c0_3 = arith.constant 0 : index
    %4 = vector.load %arg3[%c0_2, %c0_3] : memref<128x384xbf16, #tpu.memory_space<vmem>>, vector<128x384xbf16>
    %c0_4 = arith.constant 0 : index
    %c0_5 = arith.constant 0 : index
    %5 = vector.load %arg4[%c0_4, %c0_5] : memref<384x128xbf16, #tpu.memory_space<vmem>>, vector<384x128xbf16>
    %cst = arith.constant dense<0.000000e+00> : vector<128x128xf32>
    %6 = tpu.matmul %4, %5, %cst {dimension_numbers = #tpu.dot_dimension_numbers<[1], [0], [0], [1], [0, 0, 1, 1], [], []>} : vector<128x384xbf16>, vector<384x128xbf16>, vector<128x128xf32> -> vector<128x128xf32>
    %7 = arith.addf %3, %6 : vector<128x128xf32>
    %c0_6 = arith.constant 0 : index
    %c0_7 = arith.constant 0 : index
    %8 = vector.load %arg8[%c0_6, %c0_7] : memref<128x128xf32, #tpu.memory_space<vmem>>, vector<128x128xf32>
    tpu.vector_store %arg8[%c0_6, %c0_7], %7 {strides = array<i32>} : memref<128x128xf32, #tpu.memory_space<vmem>>, vector<128x128xf32>,
    %c0_i32_8 = arith.constant 0 : i32
    %9 = arith.cmpi eq, %arg2, %c0_i32_8 : i32
    %10 = arith.extui %9 : i1 to i32
    %c0_i32_9 = arith.constant 0 : i32
    %11 = arith.cmpi ne, %10, %c0_i32_9 : i32
    scf.if %11 {
      %c0_10 = arith.constant 0 : index
      %c0_11 = arith.constant 0 : index
      %12 = vector.load %arg8[%c0_10, %c0_11] : memref<128x128xf32, #tpu.memory_space<vmem>>, vector<128x128xf32>
      %c0_12 = arith.constant 0 : index
      %c0_13 = arith.constant 0 : index
      %13 = vector.load %arg5[%c0_12, %c0_13] : memref<1x128xf32, #tpu.memory_space<vmem>>, vector<1x128xf32>
      %14 = vector.broadcast %13 : vector<1x128xf32> to vector<128x128xf32>
      %15 = arith.mulf %12, %14 : vector<128x128xf32>
      %c0_14 = arith.constant 0 : index
      %c0_15 = arith.constant 0 : index
      %16 = vector.load %arg6[%c0_14, %c0_15] : memref<1x128xf32, #tpu.memory_space<vmem>>, vector<1x128xf32>
      %17 = vector.broadcast %16 : vector<1x128xf32> to vector<128x128xf32>
      %18 = arith.addf %15, %17 : vector<128x128xf32>
      %cst_16 = arith.constant 0.000000e+00 : f32
      %19 = vector.broadcast %cst_16 : f32 to vector<128x128xf32>
      %20 = arith.maximumf %18, %19 : vector<128x128xf32>
      %c0_17 = arith.constant 0 : index
      %c0_18 = arith.constant 0 : index
      %21 = vector.load %arg7[%c0_17, %c0_18] : memref<128x128xf32, #tpu.memory_space<vmem>>, vector<128x128xf32>
      tpu.vector_store %arg7[%c0_17, %c0_18], %20 {strides = array<i32>} : memref<128x128xf32, #tpu.memory_space<vmem>>, vector<128x128xf32>,
    } else {
    }
    return
  }
  func.func @transform_0(%arg0: i32, %arg1: i32, %arg2: i32) -> (i32, i32) {
    %c0_i32 = arith.constant 0 : i32
    return %arg0, %arg2 : i32, i32
  }
  func.func @transform_1(%arg0: i32, %arg1: i32, %arg2: i32) -> (i32, i32) {
    %c0_i32 = arith.constant 0 : i32
    return %arg2, %arg1 : i32, i32
  }
  func.func @transform_2(%arg0: i32, %arg1: i32, %arg2: i32) -> (i32, i32) {
    %c0_i32 = arith.constant 0 : i32
    %c0_i32_0 = arith.constant 0 : i32
    return %c0_i32, %arg1 : i32, i32
  }
  func.func @transform_3(%arg0: i32, %arg1: i32, %arg2: i32) -> (i32, i32) {
    %c0_i32 = arith.constant 0 : i32
    %c0_i32_0 = arith.constant 0 : i32
    return %c0_i32, %arg1 : i32, i32
  }
  func.func @transform_4(%arg0: i32, %arg1: i32, %arg2: i32) -> (i32, i32) {
    %c0_i32 = arith.constant 0 : i32
    return %arg0, %arg1 : i32, i32
  }
}

module attributes {stable_mosaic.version = 11 : i64} {
  func.func @_mm_affine_res_act_kernel(%arg0: i32, %arg1: i32, %arg2: i32, %arg3: memref<128x128xbf16, #tpu.memory_space<vmem>>, %arg4: memref<128x128xbf16, #tpu.memory_space<vmem>>, %arg5: memref<1x128xf32, #tpu.memory_space<vmem>>, %arg6: memref<1x128xf32, #tpu.memory_space<vmem>>, %arg7: memref<128x128xf32, #tpu.memory_space<vmem>>, %arg8: memref<128x128xf32, #tpu.memory_space<vmem>>, %arg9: memref<128x128xf32, #tpu.memory_space<vmem>>) attributes {dimension_semantics = [#tpu.dimension_semantics<parallel>, #tpu.dimension_semantics<parallel>, #tpu.dimension_semantics<arbitrary>], iteration_bounds = array<i64: 1, 1, 1>, scalar_prefetch = 0 : i64, scratch_operands = 1 : i64, tpu.core_type = #tpu.core_type<tc>, window_params = [{transform_indices = @transform_0, window_bounds = array<i64: 128, 128>}, {transform_indices = @transform_1, window_bounds = array<i64: 128, 128>}, {transform_indices = @transform_2, window_bounds = array<i64: 1, 128>}, {transform_indices = @transform_3, window_bounds = array<i64: 1, 128>}, {transform_indices = @transform_4, window_bounds = array<i64: 128, 128>}, {transform_indices = @transform_5, window_bounds = array<i64: 128, 128>}]} {
    %c0_i32 = arith.constant 0 : i32
    %0 = arith.cmpi eq, %arg2, %c0_i32 : i32
    %1 = arith.extui %0 : i1 to i32
    %c0_i32_0 = arith.constant 0 : i32
    %2 = arith.cmpi ne, %1, %c0_i32_0 : i32
    scf.if %2 {
      %cst_10 = arith.constant 0.000000e+00 : f32
      %12 = vector.broadcast %cst_10 : f32 to vector<128x128xf32>
      %c0_11 = arith.constant 0 : index
      %c0_12 = arith.constant 0 : index
      %13 = vector.load %arg9[%c0_11, %c0_12] : memref<128x128xf32, #tpu.memory_space<vmem>>, vector<128x128xf32>
      tpu.vector_store %arg9[%c0_11, %c0_12], %12 {strides = array<i32>} : memref<128x128xf32, #tpu.memory_space<vmem>>, vector<128x128xf32>,
    } else {
    }
    %c0 = arith.constant 0 : index
    %c0_1 = arith.constant 0 : index
    %3 = vector.load %arg9[%c0, %c0_1] : memref<128x128xf32, #tpu.memory_space<vmem>>, vector<128x128xf32>
    %c0_2 = arith.constant 0 : index
    %c0_3 = arith.constant 0 : index
    %4 = vector.load %arg3[%c0_2, %c0_3] : memref<128x128xbf16, #tpu.memory_space<vmem>>, vector<128x128xbf16>
    %c0_4 = arith.constant 0 : index
    %c0_5 = arith.constant 0 : index
    %5 = vector.load %arg4[%c0_4, %c0_5] : memref<128x128xbf16, #tpu.memory_space<vmem>>, vector<128x128xbf16>
    %cst = arith.constant dense<0.000000e+00> : vector<128x128xf32>
    %6 = tpu.matmul %4, %5, %cst {dimension_numbers = #tpu.dot_dimension_numbers<[1], [0], [0], [1], [0, 0, 1, 1], [], []>} : vector<128x128xbf16>, vector<128x128xbf16>, vector<128x128xf32> -> vector<128x128xf32>
    %7 = arith.addf %3, %6 : vector<128x128xf32>
    %c0_6 = arith.constant 0 : index
    %c0_7 = arith.constant 0 : index
    %8 = vector.load %arg9[%c0_6, %c0_7] : memref<128x128xf32, #tpu.memory_space<vmem>>, vector<128x128xf32>
    tpu.vector_store %arg9[%c0_6, %c0_7], %7 {strides = array<i32>} : memref<128x128xf32, #tpu.memory_space<vmem>>, vector<128x128xf32>,
    %c0_i32_8 = arith.constant 0 : i32
    %9 = arith.cmpi eq, %arg2, %c0_i32_8 : i32
    %10 = arith.extui %9 : i1 to i32
    %c0_i32_9 = arith.constant 0 : i32
    %11 = arith.cmpi ne, %10, %c0_i32_9 : i32
    scf.if %11 {
      %c0_10 = arith.constant 0 : index
      %c0_11 = arith.constant 0 : index
      %12 = vector.load %arg9[%c0_10, %c0_11] : memref<128x128xf32, #tpu.memory_space<vmem>>, vector<128x128xf32>
      %c0_12 = arith.constant 0 : index
      %c0_13 = arith.constant 0 : index
      %13 = vector.load %arg5[%c0_12, %c0_13] : memref<1x128xf32, #tpu.memory_space<vmem>>, vector<1x128xf32>
      %14 = vector.broadcast %13 : vector<1x128xf32> to vector<128x128xf32>
      %15 = arith.mulf %12, %14 : vector<128x128xf32>
      %c0_14 = arith.constant 0 : index
      %c0_15 = arith.constant 0 : index
      %16 = vector.load %arg6[%c0_14, %c0_15] : memref<1x128xf32, #tpu.memory_space<vmem>>, vector<1x128xf32>
      %17 = vector.broadcast %16 : vector<1x128xf32> to vector<128x128xf32>
      %18 = arith.addf %15, %17 : vector<128x128xf32>
      %c0_16 = arith.constant 0 : index
      %c0_17 = arith.constant 0 : index
      %19 = vector.load %arg7[%c0_16, %c0_17] : memref<128x128xf32, #tpu.memory_space<vmem>>, vector<128x128xf32>
      %20 = arith.addf %18, %19 : vector<128x128xf32>
      %cst_18 = arith.constant 0.000000e+00 : f32
      %21 = vector.broadcast %cst_18 : f32 to vector<128x128xf32>
      %22 = arith.maximumf %20, %21 : vector<128x128xf32>
      %c0_19 = arith.constant 0 : index
      %c0_20 = arith.constant 0 : index
      %23 = vector.load %arg8[%c0_19, %c0_20] : memref<128x128xf32, #tpu.memory_space<vmem>>, vector<128x128xf32>
      tpu.vector_store %arg8[%c0_19, %c0_20], %22 {strides = array<i32>} : memref<128x128xf32, #tpu.memory_space<vmem>>, vector<128x128xf32>,
    } else {
    }
    return
  }
  func.func @transform_0(%arg0: i32, %arg1: i32, %arg2: i32) -> (i32, i32) {
    %c0_i32 = arith.constant 0 : i32
    return %arg0, %arg2 : i32, i32
  }
  func.func @transform_1(%arg0: i32, %arg1: i32, %arg2: i32) -> (i32, i32) {
    %c0_i32 = arith.constant 0 : i32
    return %arg2, %arg1 : i32, i32
  }
  func.func @transform_2(%arg0: i32, %arg1: i32, %arg2: i32) -> (i32, i32) {
    %c0_i32 = arith.constant 0 : i32
    %c0_i32_0 = arith.constant 0 : i32
    return %c0_i32, %arg1 : i32, i32
  }
  func.func @transform_3(%arg0: i32, %arg1: i32, %arg2: i32) -> (i32, i32) {
    %c0_i32 = arith.constant 0 : i32
    %c0_i32_0 = arith.constant 0 : i32
    return %c0_i32, %arg1 : i32, i32
  }
  func.func @transform_4(%arg0: i32, %arg1: i32, %arg2: i32) -> (i32, i32) {
    %c0_i32 = arith.constant 0 : i32
    return %arg0, %arg1 : i32, i32
  }
  func.func @transform_5(%arg0: i32, %arg1: i32, %arg2: i32) -> (i32, i32) {
    %c0_i32 = arith.constant 0 : i32
    return %arg0, %arg1 : i32, i32
  }
}

module attributes {stable_mosaic.version = 11 : i64} {
  func.func @_mm_affine_act_kernel(%arg0: i32, %arg1: i32, %arg2: i32, %arg3: memref<128x512xbf16, #tpu.memory_space<vmem>>, %arg4: memref<512x128xbf16, #tpu.memory_space<vmem>>, %arg5: memref<1x128xf32, #tpu.memory_space<vmem>>, %arg6: memref<1x128xf32, #tpu.memory_space<vmem>>, %arg7: memref<128x128xf32, #tpu.memory_space<vmem>>, %arg8: memref<128x128xf32, #tpu.memory_space<vmem>>) attributes {dimension_semantics = [#tpu.dimension_semantics<parallel>, #tpu.dimension_semantics<parallel>, #tpu.dimension_semantics<arbitrary>], iteration_bounds = array<i64: 1, 1, 4>, scalar_prefetch = 0 : i64, scratch_operands = 1 : i64, tpu.core_type = #tpu.core_type<tc>, window_params = [{transform_indices = @transform_0, window_bounds = array<i64: 128, 512>}, {transform_indices = @transform_1, window_bounds = array<i64: 512, 128>}, {transform_indices = @transform_2, window_bounds = array<i64: 1, 128>}, {transform_indices = @transform_3, window_bounds = array<i64: 1, 128>}, {transform_indices = @transform_4, window_bounds = array<i64: 128, 128>}]} {
    %c0_i32 = arith.constant 0 : i32
    %0 = arith.cmpi eq, %arg2, %c0_i32 : i32
    %1 = arith.extui %0 : i1 to i32
    %c0_i32_0 = arith.constant 0 : i32
    %2 = arith.cmpi ne, %1, %c0_i32_0 : i32
    scf.if %2 {
      %cst_9 = arith.constant 0.000000e+00 : f32
      %12 = vector.broadcast %cst_9 : f32 to vector<128x128xf32>
      %c0_10 = arith.constant 0 : index
      %c0_11 = arith.constant 0 : index
      %13 = vector.load %arg8[%c0_10, %c0_11] : memref<128x128xf32, #tpu.memory_space<vmem>>, vector<128x128xf32>
      tpu.vector_store %arg8[%c0_10, %c0_11], %12 {strides = array<i32>} : memref<128x128xf32, #tpu.memory_space<vmem>>, vector<128x128xf32>,
    } else {
    }
    %c0 = arith.constant 0 : index
    %c0_1 = arith.constant 0 : index
    %3 = vector.load %arg8[%c0, %c0_1] : memref<128x128xf32, #tpu.memory_space<vmem>>, vector<128x128xf32>
    %c0_2 = arith.constant 0 : index
    %c0_3 = arith.constant 0 : index
    %4 = vector.load %arg3[%c0_2, %c0_3] : memref<128x512xbf16, #tpu.memory_space<vmem>>, vector<128x512xbf16>
    %c0_4 = arith.constant 0 : index
    %c0_5 = arith.constant 0 : index
    %5 = vector.load %arg4[%c0_4, %c0_5] : memref<512x128xbf16, #tpu.memory_space<vmem>>, vector<512x128xbf16>
    %cst = arith.constant dense<0.000000e+00> : vector<128x128xf32>
    %6 = tpu.matmul %4, %5, %cst {dimension_numbers = #tpu.dot_dimension_numbers<[1], [0], [0], [1], [0, 0, 1, 1], [], []>} : vector<128x512xbf16>, vector<512x128xbf16>, vector<128x128xf32> -> vector<128x128xf32>
    %7 = arith.addf %3, %6 : vector<128x128xf32>
    %c0_6 = arith.constant 0 : index
    %c0_7 = arith.constant 0 : index
    %8 = vector.load %arg8[%c0_6, %c0_7] : memref<128x128xf32, #tpu.memory_space<vmem>>, vector<128x128xf32>
    tpu.vector_store %arg8[%c0_6, %c0_7], %7 {strides = array<i32>} : memref<128x128xf32, #tpu.memory_space<vmem>>, vector<128x128xf32>,
    %c3_i32 = arith.constant 3 : i32
    %9 = arith.cmpi eq, %arg2, %c3_i32 : i32
    %10 = arith.extui %9 : i1 to i32
    %c0_i32_8 = arith.constant 0 : i32
    %11 = arith.cmpi ne, %10, %c0_i32_8 : i32
    scf.if %11 {
      %c0_9 = arith.constant 0 : index
      %c0_10 = arith.constant 0 : index
      %12 = vector.load %arg8[%c0_9, %c0_10] : memref<128x128xf32, #tpu.memory_space<vmem>>, vector<128x128xf32>
      %c0_11 = arith.constant 0 : index
      %c0_12 = arith.constant 0 : index
      %13 = vector.load %arg5[%c0_11, %c0_12] : memref<1x128xf32, #tpu.memory_space<vmem>>, vector<1x128xf32>
      %14 = vector.broadcast %13 : vector<1x128xf32> to vector<128x128xf32>
      %15 = arith.mulf %12, %14 : vector<128x128xf32>
      %c0_13 = arith.constant 0 : index
      %c0_14 = arith.constant 0 : index
      %16 = vector.load %arg6[%c0_13, %c0_14] : memref<1x128xf32, #tpu.memory_space<vmem>>, vector<1x128xf32>
      %17 = vector.broadcast %16 : vector<1x128xf32> to vector<128x128xf32>
      %18 = arith.addf %15, %17 : vector<128x128xf32>
      %cst_15 = arith.constant 0.000000e+00 : f32
      %19 = vector.broadcast %cst_15 : f32 to vector<128x128xf32>
      %20 = arith.maximumf %18, %19 : vector<128x128xf32>
      %c0_16 = arith.constant 0 : index
      %c0_17 = arith.constant 0 : index
      %21 = vector.load %arg7[%c0_16, %c0_17] : memref<128x128xf32, #tpu.memory_space<vmem>>, vector<128x128xf32>
      tpu.vector_store %arg7[%c0_16, %c0_17], %20 {strides = array<i32>} : memref<128x128xf32, #tpu.memory_space<vmem>>, vector<128x128xf32>,
    } else {
    }
    return
  }
  func.func @transform_0(%arg0: i32, %arg1: i32, %arg2: i32) -> (i32, i32) {
    %c0_i32 = arith.constant 0 : i32
    return %arg0, %arg2 : i32, i32
  }
  func.func @transform_1(%arg0: i32, %arg1: i32, %arg2: i32) -> (i32, i32) {
    %c0_i32 = arith.constant 0 : i32
    return %arg2, %arg1 : i32, i32
  }
  func.func @transform_2(%arg0: i32, %arg1: i32, %arg2: i32) -> (i32, i32) {
    %c0_i32 = arith.constant 0 : i32
    %c0_i32_0 = arith.constant 0 : i32
    return %c0_i32, %arg1 : i32, i32
  }
  func.func @transform_3(%arg0: i32, %arg1: i32, %arg2: i32) -> (i32, i32) {
    %c0_i32 = arith.constant 0 : i32
    %c0_i32_0 = arith.constant 0 : i32
    return %c0_i32, %arg1 : i32, i32
  }
  func.func @transform_4(%arg0: i32, %arg1: i32, %arg2: i32) -> (i32, i32) {
    %c0_i32 = arith.constant 0 : i32
    return %arg0, %arg1 : i32, i32
  }
}

module attributes {stable_mosaic.version = 11 : i64} {
  func.func @_mm_affine_act_kernel(%arg0: i32, %arg1: i32, %arg2: i32, %arg3: memref<32x512xbf16, #tpu.memory_space<vmem>>, %arg4: memref<512x128xbf16, #tpu.memory_space<vmem>>, %arg5: memref<1x128xf32, #tpu.memory_space<vmem>>, %arg6: memref<1x128xf32, #tpu.memory_space<vmem>>, %arg7: memref<32x128xf32, #tpu.memory_space<vmem>>, %arg8: memref<32x128xf32, #tpu.memory_space<vmem>>) attributes {dimension_semantics = [#tpu.dimension_semantics<parallel>, #tpu.dimension_semantics<parallel>, #tpu.dimension_semantics<arbitrary>], iteration_bounds = array<i64: 1, 1, 2>, scalar_prefetch = 0 : i64, scratch_operands = 1 : i64, tpu.core_type = #tpu.core_type<tc>, window_params = [{transform_indices = @transform_0, window_bounds = array<i64: 32, 512>}, {transform_indices = @transform_1, window_bounds = array<i64: 512, 128>}, {transform_indices = @transform_2, window_bounds = array<i64: 1, 128>}, {transform_indices = @transform_3, window_bounds = array<i64: 1, 128>}, {transform_indices = @transform_4, window_bounds = array<i64: 32, 128>}]} {
    %c0_i32 = arith.constant 0 : i32
    %0 = arith.cmpi eq, %arg2, %c0_i32 : i32
    %1 = arith.extui %0 : i1 to i32
    %c0_i32_0 = arith.constant 0 : i32
    %2 = arith.cmpi ne, %1, %c0_i32_0 : i32
    scf.if %2 {
      %cst_9 = arith.constant 0.000000e+00 : f32
      %12 = vector.broadcast %cst_9 : f32 to vector<32x128xf32>
      %c0_10 = arith.constant 0 : index
      %c0_11 = arith.constant 0 : index
      %13 = vector.load %arg8[%c0_10, %c0_11] : memref<32x128xf32, #tpu.memory_space<vmem>>, vector<32x128xf32>
      tpu.vector_store %arg8[%c0_10, %c0_11], %12 {strides = array<i32>} : memref<32x128xf32, #tpu.memory_space<vmem>>, vector<32x128xf32>,
    } else {
    }
    %c0 = arith.constant 0 : index
    %c0_1 = arith.constant 0 : index
    %3 = vector.load %arg8[%c0, %c0_1] : memref<32x128xf32, #tpu.memory_space<vmem>>, vector<32x128xf32>
    %c0_2 = arith.constant 0 : index
    %c0_3 = arith.constant 0 : index
    %4 = vector.load %arg3[%c0_2, %c0_3] : memref<32x512xbf16, #tpu.memory_space<vmem>>, vector<32x512xbf16>
    %c0_4 = arith.constant 0 : index
    %c0_5 = arith.constant 0 : index
    %5 = vector.load %arg4[%c0_4, %c0_5] : memref<512x128xbf16, #tpu.memory_space<vmem>>, vector<512x128xbf16>
    %cst = arith.constant dense<0.000000e+00> : vector<32x128xf32>
    %6 = tpu.matmul %4, %5, %cst {dimension_numbers = #tpu.dot_dimension_numbers<[1], [0], [0], [1], [0, 0, 1, 1], [], []>} : vector<32x512xbf16>, vector<512x128xbf16>, vector<32x128xf32> -> vector<32x128xf32>
    %7 = arith.addf %3, %6 : vector<32x128xf32>
    %c0_6 = arith.constant 0 : index
    %c0_7 = arith.constant 0 : index
    %8 = vector.load %arg8[%c0_6, %c0_7] : memref<32x128xf32, #tpu.memory_space<vmem>>, vector<32x128xf32>
    tpu.vector_store %arg8[%c0_6, %c0_7], %7 {strides = array<i32>} : memref<32x128xf32, #tpu.memory_space<vmem>>, vector<32x128xf32>,
    %c1_i32 = arith.constant 1 : i32
    %9 = arith.cmpi eq, %arg2, %c1_i32 : i32
    %10 = arith.extui %9 : i1 to i32
    %c0_i32_8 = arith.constant 0 : i32
    %11 = arith.cmpi ne, %10, %c0_i32_8 : i32
    scf.if %11 {
      %c0_9 = arith.constant 0 : index
      %c0_10 = arith.constant 0 : index
      %12 = vector.load %arg8[%c0_9, %c0_10] : memref<32x128xf32, #tpu.memory_space<vmem>>, vector<32x128xf32>
      %c0_11 = arith.constant 0 : index
      %c0_12 = arith.constant 0 : index
      %13 = vector.load %arg5[%c0_11, %c0_12] : memref<1x128xf32, #tpu.memory_space<vmem>>, vector<1x128xf32>
      %14 = vector.broadcast %13 : vector<1x128xf32> to vector<32x128xf32>
      %15 = arith.mulf %12, %14 : vector<32x128xf32>
      %c0_13 = arith.constant 0 : index
      %c0_14 = arith.constant 0 : index
      %16 = vector.load %arg6[%c0_13, %c0_14] : memref<1x128xf32, #tpu.memory_space<vmem>>, vector<1x128xf32>
      %17 = vector.broadcast %16 : vector<1x128xf32> to vector<32x128xf32>
      %18 = arith.addf %15, %17 : vector<32x128xf32>
      %cst_15 = arith.constant 0.000000e+00 : f32
      %19 = vector.broadcast %cst_15 : f32 to vector<32x128xf32>
      %20 = arith.maximumf %18, %19 : vector<32x128xf32>
      %c0_16 = arith.constant 0 : index
      %c0_17 = arith.constant 0 : index
      %21 = vector.load %arg7[%c0_16, %c0_17] : memref<32x128xf32, #tpu.memory_space<vmem>>, vector<32x128xf32>
      tpu.vector_store %arg7[%c0_16, %c0_17], %20 {strides = array<i32>} : memref<32x128xf32, #tpu.memory_space<vmem>>, vector<32x128xf32>,
    } else {
    }
    return
  }
  func.func @transform_0(%arg0: i32, %arg1: i32, %arg2: i32) -> (i32, i32) {
    %c0_i32 = arith.constant 0 : i32
    return %arg0, %arg2 : i32, i32
  }
  func.func @transform_1(%arg0: i32, %arg1: i32, %arg2: i32) -> (i32, i32) {
    %c0_i32 = arith.constant 0 : i32
    return %arg2, %arg1 : i32, i32
  }
  func.func @transform_2(%arg0: i32, %arg1: i32, %arg2: i32) -> (i32, i32) {
    %c0_i32 = arith.constant 0 : i32
    %c0_i32_0 = arith.constant 0 : i32
    return %c0_i32, %arg1 : i32, i32
  }
  func.func @transform_3(%arg0: i32, %arg1: i32, %arg2: i32) -> (i32, i32) {
    %c0_i32 = arith.constant 0 : i32
    %c0_i32_0 = arith.constant 0 : i32
    return %c0_i32, %arg1 : i32, i32
  }
  func.func @transform_4(%arg0: i32, %arg1: i32, %arg2: i32) -> (i32, i32) {
    %c0_i32 = arith.constant 0 : i32
    return %arg0, %arg1 : i32, i32
  }
}

module attributes {stable_mosaic.version = 11 : i64} {
  func.func @_mm_affine_act_kernel(%arg0: i32, %arg1: i32, %arg2: i32, %arg3: memref<32x128xbf16, #tpu.memory_space<vmem>>, %arg4: memref<128x128xbf16, #tpu.memory_space<vmem>>, %arg5: memref<1x128xf32, #tpu.memory_space<vmem>>, %arg6: memref<1x128xf32, #tpu.memory_space<vmem>>, %arg7: memref<32x128xf32, #tpu.memory_space<vmem>>, %arg8: memref<32x128xf32, #tpu.memory_space<vmem>>) attributes {dimension_semantics = [#tpu.dimension_semantics<parallel>, #tpu.dimension_semantics<parallel>, #tpu.dimension_semantics<arbitrary>], iteration_bounds = array<i64: 1, 1, 1>, scalar_prefetch = 0 : i64, scratch_operands = 1 : i64, tpu.core_type = #tpu.core_type<tc>, window_params = [{transform_indices = @transform_0, window_bounds = array<i64: 32, 128>}, {transform_indices = @transform_1, window_bounds = array<i64: 128, 128>}, {transform_indices = @transform_2, window_bounds = array<i64: 1, 128>}, {transform_indices = @transform_3, window_bounds = array<i64: 1, 128>}, {transform_indices = @transform_4, window_bounds = array<i64: 32, 128>}]} {
    %c0_i32 = arith.constant 0 : i32
    %0 = arith.cmpi eq, %arg2, %c0_i32 : i32
    %1 = arith.extui %0 : i1 to i32
    %c0_i32_0 = arith.constant 0 : i32
    %2 = arith.cmpi ne, %1, %c0_i32_0 : i32
    scf.if %2 {
      %cst_10 = arith.constant 0.000000e+00 : f32
      %12 = vector.broadcast %cst_10 : f32 to vector<32x128xf32>
      %c0_11 = arith.constant 0 : index
      %c0_12 = arith.constant 0 : index
      %13 = vector.load %arg8[%c0_11, %c0_12] : memref<32x128xf32, #tpu.memory_space<vmem>>, vector<32x128xf32>
      tpu.vector_store %arg8[%c0_11, %c0_12], %12 {strides = array<i32>} : memref<32x128xf32, #tpu.memory_space<vmem>>, vector<32x128xf32>,
    } else {
    }
    %c0 = arith.constant 0 : index
    %c0_1 = arith.constant 0 : index
    %3 = vector.load %arg8[%c0, %c0_1] : memref<32x128xf32, #tpu.memory_space<vmem>>, vector<32x128xf32>
    %c0_2 = arith.constant 0 : index
    %c0_3 = arith.constant 0 : index
    %4 = vector.load %arg3[%c0_2, %c0_3] : memref<32x128xbf16, #tpu.memory_space<vmem>>, vector<32x128xbf16>
    %c0_4 = arith.constant 0 : index
    %c0_5 = arith.constant 0 : index
    %5 = vector.load %arg4[%c0_4, %c0_5] : memref<128x128xbf16, #tpu.memory_space<vmem>>, vector<128x128xbf16>
    %cst = arith.constant dense<0.000000e+00> : vector<32x128xf32>
    %6 = tpu.matmul %4, %5, %cst {dimension_numbers = #tpu.dot_dimension_numbers<[1], [0], [0], [1], [0, 0, 1, 1], [], []>} : vector<32x128xbf16>, vector<128x128xbf16>, vector<32x128xf32> -> vector<32x128xf32>
    %7 = arith.addf %3, %6 : vector<32x128xf32>
    %c0_6 = arith.constant 0 : index
    %c0_7 = arith.constant 0 : index
    %8 = vector.load %arg8[%c0_6, %c0_7] : memref<32x128xf32, #tpu.memory_space<vmem>>, vector<32x128xf32>
    tpu.vector_store %arg8[%c0_6, %c0_7], %7 {strides = array<i32>} : memref<32x128xf32, #tpu.memory_space<vmem>>, vector<32x128xf32>,
    %c0_i32_8 = arith.constant 0 : i32
    %9 = arith.cmpi eq, %arg2, %c0_i32_8 : i32
    %10 = arith.extui %9 : i1 to i32
    %c0_i32_9 = arith.constant 0 : i32
    %11 = arith.cmpi ne, %10, %c0_i32_9 : i32
    scf.if %11 {
      %c0_10 = arith.constant 0 : index
      %c0_11 = arith.constant 0 : index
      %12 = vector.load %arg8[%c0_10, %c0_11] : memref<32x128xf32, #tpu.memory_space<vmem>>, vector<32x128xf32>
      %c0_12 = arith.constant 0 : index
      %c0_13 = arith.constant 0 : index
      %13 = vector.load %arg5[%c0_12, %c0_13] : memref<1x128xf32, #tpu.memory_space<vmem>>, vector<1x128xf32>
      %14 = vector.broadcast %13 : vector<1x128xf32> to vector<32x128xf32>
      %15 = arith.mulf %12, %14 : vector<32x128xf32>
      %c0_14 = arith.constant 0 : index
      %c0_15 = arith.constant 0 : index
      %16 = vector.load %arg6[%c0_14, %c0_15] : memref<1x128xf32, #tpu.memory_space<vmem>>, vector<1x128xf32>
      %17 = vector.broadcast %16 : vector<1x128xf32> to vector<32x128xf32>
      %18 = arith.addf %15, %17 : vector<32x128xf32>
      %c0_16 = arith.constant 0 : index
      %c0_17 = arith.constant 0 : index
      %19 = vector.load %arg7[%c0_16, %c0_17] : memref<32x128xf32, #tpu.memory_space<vmem>>, vector<32x128xf32>
      tpu.vector_store %arg7[%c0_16, %c0_17], %18 {strides = array<i32>} : memref<32x128xf32, #tpu.memory_space<vmem>>, vector<32x128xf32>,
    } else {
    }
    return
  }
  func.func @transform_0(%arg0: i32, %arg1: i32, %arg2: i32) -> (i32, i32) {
    %c0_i32 = arith.constant 0 : i32
    return %arg0, %arg2 : i32, i32
  }
  func.func @transform_1(%arg0: i32, %arg1: i32, %arg2: i32) -> (i32, i32) {
    %c0_i32 = arith.constant 0 : i32
    return %arg2, %arg1 : i32, i32
  }
  func.func @transform_2(%arg0: i32, %arg1: i32, %arg2: i32) -> (i32, i32) {
    %c0_i32 = arith.constant 0 : i32
    %c0_i32_0 = arith.constant 0 : i32
    return %c0_i32, %arg1 : i32, i32
  }
  func.func @transform_3(%arg0: i32, %arg1: i32, %arg2: i32) -> (i32, i32) {
    %c0_i32 = arith.constant 0 : i32
    %c0_i32_0 = arith.constant 0 : i32
    return %c0_i32, %arg1 : i32, i32
  }
  func.func @transform_4(%arg0: i32, %arg1: i32, %arg2: i32) -> (i32, i32) {
    %c0_i32 = arith.constant 0 : i32
    return %arg0, %arg1 : i32, i32
  }
}

module attributes {stable_mosaic.version = 11 : i64} {
  func.func @_mm_affine_res_act_kernel(%arg0: i32, %arg1: i32, %arg2: i32, %arg3: memref<32x128xbf16, #tpu.memory_space<vmem>>, %arg4: memref<128x128xbf16, #tpu.memory_space<vmem>>, %arg5: memref<1x128xf32, #tpu.memory_space<vmem>>, %arg6: memref<1x128xf32, #tpu.memory_space<vmem>>, %arg7: memref<32x128xf32, #tpu.memory_space<vmem>>, %arg8: memref<32x128xf32, #tpu.memory_space<vmem>>, %arg9: memref<32x128xf32, #tpu.memory_space<vmem>>) attributes {dimension_semantics = [#tpu.dimension_semantics<parallel>, #tpu.dimension_semantics<parallel>, #tpu.dimension_semantics<arbitrary>], iteration_bounds = array<i64: 1, 1, 1>, scalar_prefetch = 0 : i64, scratch_operands = 1 : i64, tpu.core_type = #tpu.core_type<tc>, window_params = [{transform_indices = @transform_0, window_bounds = array<i64: 32, 128>}, {transform_indices = @transform_1, window_bounds = array<i64: 128, 128>}, {transform_indices = @transform_2, window_bounds = array<i64: 1, 128>}, {transform_indices = @transform_3, window_bounds = array<i64: 1, 128>}, {transform_indices = @transform_4, window_bounds = array<i64: 32, 128>}, {transform_indices = @transform_5, window_bounds = array<i64: 32, 128>}]} {
    %c0_i32 = arith.constant 0 : i32
    %0 = arith.cmpi eq, %arg2, %c0_i32 : i32
    %1 = arith.extui %0 : i1 to i32
    %c0_i32_0 = arith.constant 0 : i32
    %2 = arith.cmpi ne, %1, %c0_i32_0 : i32
    scf.if %2 {
      %cst_10 = arith.constant 0.000000e+00 : f32
      %12 = vector.broadcast %cst_10 : f32 to vector<32x128xf32>
      %c0_11 = arith.constant 0 : index
      %c0_12 = arith.constant 0 : index
      %13 = vector.load %arg9[%c0_11, %c0_12] : memref<32x128xf32, #tpu.memory_space<vmem>>, vector<32x128xf32>
      tpu.vector_store %arg9[%c0_11, %c0_12], %12 {strides = array<i32>} : memref<32x128xf32, #tpu.memory_space<vmem>>, vector<32x128xf32>,
    } else {
    }
    %c0 = arith.constant 0 : index
    %c0_1 = arith.constant 0 : index
    %3 = vector.load %arg9[%c0, %c0_1] : memref<32x128xf32, #tpu.memory_space<vmem>>, vector<32x128xf32>
    %c0_2 = arith.constant 0 : index
    %c0_3 = arith.constant 0 : index
    %4 = vector.load %arg3[%c0_2, %c0_3] : memref<32x128xbf16, #tpu.memory_space<vmem>>, vector<32x128xbf16>
    %c0_4 = arith.constant 0 : index
    %c0_5 = arith.constant 0 : index
    %5 = vector.load %arg4[%c0_4, %c0_5] : memref<128x128xbf16, #tpu.memory_space<vmem>>, vector<128x128xbf16>
    %cst = arith.constant dense<0.000000e+00> : vector<32x128xf32>
    %6 = tpu.matmul %4, %5, %cst {dimension_numbers = #tpu.dot_dimension_numbers<[1], [0], [0], [1], [0, 0, 1, 1], [], []>} : vector<32x128xbf16>, vector<128x128xbf16>, vector<32x128xf32> -> vector<32x128xf32>
    %7 = arith.addf %3, %6 : vector<32x128xf32>
    %c0_6 = arith.constant 0 : index
    %c0_7 = arith.constant 0 : index
    %8 = vector.load %arg9[%c0_6, %c0_7] : memref<32x128xf32, #tpu.memory_space<vmem>>, vector<32x128xf32>
    tpu.vector_store %arg9[%c0_6, %c0_7], %7 {strides = array<i32>} : memref<32x128xf32, #tpu.memory_space<vmem>>, vector<32x128xf32>,
    %c0_i32_8 = arith.constant 0 : i32
    %9 = arith.cmpi eq, %arg2, %c0_i32_8 : i32
    %10 = arith.extui %9 : i1 to i32
    %c0_i32_9 = arith.constant 0 : i32
    %11 = arith.cmpi ne, %10, %c0_i32_9 : i32
    scf.if %11 {
      %c0_10 = arith.constant 0 : index
      %c0_11 = arith.constant 0 : index
      %12 = vector.load %arg9[%c0_10, %c0_11] : memref<32x128xf32, #tpu.memory_space<vmem>>, vector<32x128xf32>
      %c0_12 = arith.constant 0 : index
      %c0_13 = arith.constant 0 : index
      %13 = vector.load %arg5[%c0_12, %c0_13] : memref<1x128xf32, #tpu.memory_space<vmem>>, vector<1x128xf32>
      %14 = vector.broadcast %13 : vector<1x128xf32> to vector<32x128xf32>
      %15 = arith.mulf %12, %14 : vector<32x128xf32>
      %c0_14 = arith.constant 0 : index
      %c0_15 = arith.constant 0 : index
      %16 = vector.load %arg6[%c0_14, %c0_15] : memref<1x128xf32, #tpu.memory_space<vmem>>, vector<1x128xf32>
      %17 = vector.broadcast %16 : vector<1x128xf32> to vector<32x128xf32>
      %18 = arith.addf %15, %17 : vector<32x128xf32>
      %c0_16 = arith.constant 0 : index
      %c0_17 = arith.constant 0 : index
      %19 = vector.load %arg7[%c0_16, %c0_17] : memref<32x128xf32, #tpu.memory_space<vmem>>, vector<32x128xf32>
      %20 = arith.addf %18, %19 : vector<32x128xf32>
      %cst_18 = arith.constant 0.000000e+00 : f32
      %21 = vector.broadcast %cst_18 : f32 to vector<32x128xf32>
      %22 = arith.maximumf %20, %21 : vector<32x128xf32>
      %c0_19 = arith.constant 0 : index
      %c0_20 = arith.constant 0 : index
      %23 = vector.load %arg8[%c0_19, %c0_20] : memref<32x128xf32, #tpu.memory_space<vmem>>, vector<32x128xf32>
      tpu.vector_store %arg8[%c0_19, %c0_20], %22 {strides = array<i32>} : memref<32x128xf32, #tpu.memory_space<vmem>>, vector<32x128xf32>,
    } else {
    }
    return
  }
  func.func @transform_0(%arg0: i32, %arg1: i32, %arg2: i32) -> (i32, i32) {
    %c0_i32 = arith.constant 0 : i32
    return %arg0, %arg2 : i32, i32
  }
  func.func @transform_1(%arg0: i32, %arg1: i32, %arg2: i32) -> (i32, i32) {
    %c0_i32 = arith.constant 0 : i32
    return %arg2, %arg1 : i32, i32
  }
  func.func @transform_2(%arg0: i32, %arg1: i32, %arg2: i32) -> (i32, i32) {
    %c0_i32 = arith.constant 0 : i32
    %c0_i32_0 = arith.constant 0 : i32
    return %c0_i32, %arg1 : i32, i32
  }
  func.func @transform_3(%arg0: i32, %arg1: i32, %arg2: i32) -> (i32, i32) {
    %c0_i32 = arith.constant 0 : i32
    %c0_i32_0 = arith.constant 0 : i32
    return %c0_i32, %arg1 : i32, i32
  }
  func.func @transform_4(%arg0: i32, %arg1: i32, %arg2: i32) -> (i32, i32) {
    %c0_i32 = arith.constant 0 : i32
    return %arg0, %arg1 : i32, i32
  }
  func.func @transform_5(%arg0: i32, %arg1: i32, %arg2: i32) -> (i32, i32) {
    %c0_i32 = arith.constant 0 : i32
    return %arg0, %arg1 : i32, i32
  }
}

module attributes {stable_mosaic.version = 11 : i64} {
  func.func @_mm_affine_act_kernel(%arg0: i32, %arg1: i32, %arg2: i32, %arg3: memref<32x512xbf16, #tpu.memory_space<vmem>>, %arg4: memref<512x128xbf16, #tpu.memory_space<vmem>>, %arg5: memref<1x128xf32, #tpu.memory_space<vmem>>, %arg6: memref<1x128xf32, #tpu.memory_space<vmem>>, %arg7: memref<32x128xf32, #tpu.memory_space<vmem>>, %arg8: memref<32x128xf32, #tpu.memory_space<vmem>>) attributes {dimension_semantics = [#tpu.dimension_semantics<parallel>, #tpu.dimension_semantics<parallel>, #tpu.dimension_semantics<arbitrary>], iteration_bounds = array<i64: 1, 1, 7>, scalar_prefetch = 0 : i64, scratch_operands = 1 : i64, tpu.core_type = #tpu.core_type<tc>, window_params = [{transform_indices = @transform_0, window_bounds = array<i64: 32, 512>}, {transform_indices = @transform_1, window_bounds = array<i64: 512, 128>}, {transform_indices = @transform_2, window_bounds = array<i64: 1, 128>}, {transform_indices = @transform_3, window_bounds = array<i64: 1, 128>}, {transform_indices = @transform_4, window_bounds = array<i64: 32, 128>}]} {
    %c0_i32 = arith.constant 0 : i32
    %0 = arith.cmpi eq, %arg2, %c0_i32 : i32
    %1 = arith.extui %0 : i1 to i32
    %c0_i32_0 = arith.constant 0 : i32
    %2 = arith.cmpi ne, %1, %c0_i32_0 : i32
    scf.if %2 {
      %cst_9 = arith.constant 0.000000e+00 : f32
      %12 = vector.broadcast %cst_9 : f32 to vector<32x128xf32>
      %c0_10 = arith.constant 0 : index
      %c0_11 = arith.constant 0 : index
      %13 = vector.load %arg8[%c0_10, %c0_11] : memref<32x128xf32, #tpu.memory_space<vmem>>, vector<32x128xf32>
      tpu.vector_store %arg8[%c0_10, %c0_11], %12 {strides = array<i32>} : memref<32x128xf32, #tpu.memory_space<vmem>>, vector<32x128xf32>,
    } else {
    }
    %c0 = arith.constant 0 : index
    %c0_1 = arith.constant 0 : index
    %3 = vector.load %arg8[%c0, %c0_1] : memref<32x128xf32, #tpu.memory_space<vmem>>, vector<32x128xf32>
    %c0_2 = arith.constant 0 : index
    %c0_3 = arith.constant 0 : index
    %4 = vector.load %arg3[%c0_2, %c0_3] : memref<32x512xbf16, #tpu.memory_space<vmem>>, vector<32x512xbf16>
    %c0_4 = arith.constant 0 : index
    %c0_5 = arith.constant 0 : index
    %5 = vector.load %arg4[%c0_4, %c0_5] : memref<512x128xbf16, #tpu.memory_space<vmem>>, vector<512x128xbf16>
    %cst = arith.constant dense<0.000000e+00> : vector<32x128xf32>
    %6 = tpu.matmul %4, %5, %cst {dimension_numbers = #tpu.dot_dimension_numbers<[1], [0], [0], [1], [0, 0, 1, 1], [], []>} : vector<32x512xbf16>, vector<512x128xbf16>, vector<32x128xf32> -> vector<32x128xf32>
    %7 = arith.addf %3, %6 : vector<32x128xf32>
    %c0_6 = arith.constant 0 : index
    %c0_7 = arith.constant 0 : index
    %8 = vector.load %arg8[%c0_6, %c0_7] : memref<32x128xf32, #tpu.memory_space<vmem>>, vector<32x128xf32>
    tpu.vector_store %arg8[%c0_6, %c0_7], %7 {strides = array<i32>} : memref<32x128xf32, #tpu.memory_space<vmem>>, vector<32x128xf32>,
    %c6_i32 = arith.constant 6 : i32
    %9 = arith.cmpi eq, %arg2, %c6_i32 : i32
    %10 = arith.extui %9 : i1 to i32
    %c0_i32_8 = arith.constant 0 : i32
    %11 = arith.cmpi ne, %10, %c0_i32_8 : i32
    scf.if %11 {
      %c0_9 = arith.constant 0 : index
      %c0_10 = arith.constant 0 : index
      %12 = vector.load %arg8[%c0_9, %c0_10] : memref<32x128xf32, #tpu.memory_space<vmem>>, vector<32x128xf32>
      %c0_11 = arith.constant 0 : index
      %c0_12 = arith.constant 0 : index
      %13 = vector.load %arg5[%c0_11, %c0_12] : memref<1x128xf32, #tpu.memory_space<vmem>>, vector<1x128xf32>
      %14 = vector.broadcast %13 : vector<1x128xf32> to vector<32x128xf32>
      %15 = arith.mulf %12, %14 : vector<32x128xf32>
      %c0_13 = arith.constant 0 : index
      %c0_14 = arith.constant 0 : index
      %16 = vector.load %arg6[%c0_13, %c0_14] : memref<1x128xf32, #tpu.memory_space<vmem>>, vector<1x128xf32>
      %17 = vector.broadcast %16 : vector<1x128xf32> to vector<32x128xf32>
      %18 = arith.addf %15, %17 : vector<32x128xf32>
      %cst_15 = arith.constant 0.000000e+00 : f32
      %19 = vector.broadcast %cst_15 : f32 to vector<32x128xf32>
      %20 = arith.maximumf %18, %19 : vector<32x128xf32>
      %c0_16 = arith.constant 0 : index
      %c0_17 = arith.constant 0 : index
      %21 = vector.load %arg7[%c0_16, %c0_17] : memref<32x128xf32, #tpu.memory_space<vmem>>, vector<32x128xf32>
      tpu.vector_store %arg7[%c0_16, %c0_17], %20 {strides = array<i32>} : memref<32x128xf32, #tpu.memory_space<vmem>>, vector<32x128xf32>,
    } else {
    }
    return
  }
  func.func @transform_0(%arg0: i32, %arg1: i32, %arg2: i32) -> (i32, i32) {
    %c0_i32 = arith.constant 0 : i32
    return %arg0, %arg2 : i32, i32
  }
  func.func @transform_1(%arg0: i32, %arg1: i32, %arg2: i32) -> (i32, i32) {
    %c0_i32 = arith.constant 0 : i32
    return %arg2, %arg1 : i32, i32
  }
  func.func @transform_2(%arg0: i32, %arg1: i32, %arg2: i32) -> (i32, i32) {
    %c0_i32 = arith.constant 0 : i32
    %c0_i32_0 = arith.constant 0 : i32
    return %c0_i32, %arg1 : i32, i32
  }
  func.func @transform_3(%arg0: i32, %arg1: i32, %arg2: i32) -> (i32, i32) {
    %c0_i32 = arith.constant 0 : i32
    %c0_i32_0 = arith.constant 0 : i32
    return %c0_i32, %arg1 : i32, i32
  }
  func.func @transform_4(%arg0: i32, %arg1: i32, %arg2: i32) -> (i32, i32) {
    %c0_i32 = arith.constant 0 : i32
    return %arg0, %arg1 : i32, i32
  }
}

module attributes {stable_mosaic.version = 11 : i64} {
  func.func @_mm_affine_act_kernel(%arg0: i32, %arg1: i32, %arg2: i32, %arg3: memref<32x128xbf16, #tpu.memory_space<vmem>>, %arg4: memref<128x128xbf16, #tpu.memory_space<vmem>>, %arg5: memref<1x128xf32, #tpu.memory_space<vmem>>, %arg6: memref<1x128xf32, #tpu.memory_space<vmem>>, %arg7: memref<32x128xf32, #tpu.memory_space<vmem>>, %arg8: memref<32x128xf32, #tpu.memory_space<vmem>>) attributes {dimension_semantics = [#tpu.dimension_semantics<parallel>, #tpu.dimension_semantics<parallel>, #tpu.dimension_semantics<arbitrary>], iteration_bounds = array<i64: 1, 1, 1>, scalar_prefetch = 0 : i64, scratch_operands = 1 : i64, tpu.core_type = #tpu.core_type<tc>, window_params = [{transform_indices = @transform_0, window_bounds = array<i64: 32, 128>}, {transform_indices = @transform_1, window_bounds = array<i64: 128, 128>}, {transform_indices = @transform_2, window_bounds = array<i64: 1, 128>}, {transform_indices = @transform_3, window_bounds = array<i64: 1, 128>}, {transform_indices = @transform_4, window_bounds = array<i64: 32, 128>}]} {
    %c0_i32 = arith.constant 0 : i32
    %0 = arith.cmpi eq, %arg2, %c0_i32 : i32
    %1 = arith.extui %0 : i1 to i32
    %c0_i32_0 = arith.constant 0 : i32
    %2 = arith.cmpi ne, %1, %c0_i32_0 : i32
    scf.if %2 {
      %cst_10 = arith.constant 0.000000e+00 : f32
      %12 = vector.broadcast %cst_10 : f32 to vector<32x128xf32>
      %c0_11 = arith.constant 0 : index
      %c0_12 = arith.constant 0 : index
      %13 = vector.load %arg8[%c0_11, %c0_12] : memref<32x128xf32, #tpu.memory_space<vmem>>, vector<32x128xf32>
      tpu.vector_store %arg8[%c0_11, %c0_12], %12 {strides = array<i32>} : memref<32x128xf32, #tpu.memory_space<vmem>>, vector<32x128xf32>,
    } else {
    }
    %c0 = arith.constant 0 : index
    %c0_1 = arith.constant 0 : index
    %3 = vector.load %arg8[%c0, %c0_1] : memref<32x128xf32, #tpu.memory_space<vmem>>, vector<32x128xf32>
    %c0_2 = arith.constant 0 : index
    %c0_3 = arith.constant 0 : index
    %4 = vector.load %arg3[%c0_2, %c0_3] : memref<32x128xbf16, #tpu.memory_space<vmem>>, vector<32x128xbf16>
    %c0_4 = arith.constant 0 : index
    %c0_5 = arith.constant 0 : index
    %5 = vector.load %arg4[%c0_4, %c0_5] : memref<128x128xbf16, #tpu.memory_space<vmem>>, vector<128x128xbf16>
    %cst = arith.constant dense<0.000000e+00> : vector<32x128xf32>
    %6 = tpu.matmul %4, %5, %cst {dimension_numbers = #tpu.dot_dimension_numbers<[1], [0], [0], [1], [0, 0, 1, 1], [], []>} : vector<32x128xbf16>, vector<128x128xbf16>, vector<32x128xf32> -> vector<32x128xf32>
    %7 = arith.addf %3, %6 : vector<32x128xf32>
    %c0_6 = arith.constant 0 : index
    %c0_7 = arith.constant 0 : index
    %8 = vector.load %arg8[%c0_6, %c0_7] : memref<32x128xf32, #tpu.memory_space<vmem>>, vector<32x128xf32>
    tpu.vector_store %arg8[%c0_6, %c0_7], %7 {strides = array<i32>} : memref<32x128xf32, #tpu.memory_space<vmem>>, vector<32x128xf32>,
    %c0_i32_8 = arith.constant 0 : i32
    %9 = arith.cmpi eq, %arg2, %c0_i32_8 : i32
    %10 = arith.extui %9 : i1 to i32
    %c0_i32_9 = arith.constant 0 : i32
    %11 = arith.cmpi ne, %10, %c0_i32_9 : i32
    scf.if %11 {
      %c0_10 = arith.constant 0 : index
      %c0_11 = arith.constant 0 : index
      %12 = vector.load %arg8[%c0_10, %c0_11] : memref<32x128xf32, #tpu.memory_space<vmem>>, vector<32x128xf32>
      %c0_12 = arith.constant 0 : index
      %c0_13 = arith.constant 0 : index
      %13 = vector.load %arg5[%c0_12, %c0_13] : memref<1x128xf32, #tpu.memory_space<vmem>>, vector<1x128xf32>
      %14 = vector.broadcast %13 : vector<1x128xf32> to vector<32x128xf32>
      %15 = arith.mulf %12, %14 : vector<32x128xf32>
      %c0_14 = arith.constant 0 : index
      %c0_15 = arith.constant 0 : index
      %16 = vector.load %arg6[%c0_14, %c0_15] : memref<1x128xf32, #tpu.memory_space<vmem>>, vector<1x128xf32>
      %17 = vector.broadcast %16 : vector<1x128xf32> to vector<32x128xf32>
      %18 = arith.addf %15, %17 : vector<32x128xf32>
      %cst_16 = arith.constant 0.000000e+00 : f32
      %19 = vector.broadcast %cst_16 : f32 to vector<32x128xf32>
      %20 = arith.maximumf %18, %19 : vector<32x128xf32>
      %c0_17 = arith.constant 0 : index
      %c0_18 = arith.constant 0 : index
      %21 = vector.load %arg7[%c0_17, %c0_18] : memref<32x128xf32, #tpu.memory_space<vmem>>, vector<32x128xf32>
      tpu.vector_store %arg7[%c0_17, %c0_18], %20 {strides = array<i32>} : memref<32x128xf32, #tpu.memory_space<vmem>>, vector<32x128xf32>,
    } else {
    }
    return
  }
  func.func @transform_0(%arg0: i32, %arg1: i32, %arg2: i32) -> (i32, i32) {
    %c0_i32 = arith.constant 0 : i32
    return %arg0, %arg2 : i32, i32
  }
  func.func @transform_1(%arg0: i32, %arg1: i32, %arg2: i32) -> (i32, i32) {
    %c0_i32 = arith.constant 0 : i32
    return %arg2, %arg1 : i32, i32
  }
  func.func @transform_2(%arg0: i32, %arg1: i32, %arg2: i32) -> (i32, i32) {
    %c0_i32 = arith.constant 0 : i32
    %c0_i32_0 = arith.constant 0 : i32
    return %c0_i32, %arg1 : i32, i32
  }
  func.func @transform_3(%arg0: i32, %arg1: i32, %arg2: i32) -> (i32, i32) {
    %c0_i32 = arith.constant 0 : i32
    %c0_i32_0 = arith.constant 0 : i32
    return %c0_i32, %arg1 : i32, i32
  }
  func.func @transform_4(%arg0: i32, %arg1: i32, %arg2: i32) -> (i32, i32) {
    %c0_i32 = arith.constant 0 : i32
    return %arg0, %arg1 : i32, i32
  }
}

module attributes {stable_mosaic.version = 11 : i64} {
  func.func @_mm_affine_act_kernel(%arg0: i32, %arg1: i32, %arg2: i32, %arg3: memref<8x512xbf16, #tpu.memory_space<vmem>>, %arg4: memref<512x128xbf16, #tpu.memory_space<vmem>>, %arg5: memref<1x128xf32, #tpu.memory_space<vmem>>, %arg6: memref<1x128xf32, #tpu.memory_space<vmem>>, %arg7: memref<8x128xf32, #tpu.memory_space<vmem>>, %arg8: memref<8x128xf32, #tpu.memory_space<vmem>>) attributes {dimension_semantics = [#tpu.dimension_semantics<parallel>, #tpu.dimension_semantics<parallel>, #tpu.dimension_semantics<arbitrary>], iteration_bounds = array<i64: 1, 1, 3>, scalar_prefetch = 0 : i64, scratch_operands = 1 : i64, tpu.core_type = #tpu.core_type<tc>, window_params = [{transform_indices = @transform_0, window_bounds = array<i64: 8, 512>}, {transform_indices = @transform_1, window_bounds = array<i64: 512, 128>}, {transform_indices = @transform_2, window_bounds = array<i64: 1, 128>}, {transform_indices = @transform_3, window_bounds = array<i64: 1, 128>}, {transform_indices = @transform_4, window_bounds = array<i64: 8, 128>}]} {
    %c0_i32 = arith.constant 0 : i32
    %0 = arith.cmpi eq, %arg2, %c0_i32 : i32
    %1 = arith.extui %0 : i1 to i32
    %c0_i32_0 = arith.constant 0 : i32
    %2 = arith.cmpi ne, %1, %c0_i32_0 : i32
    scf.if %2 {
      %cst_9 = arith.constant 0.000000e+00 : f32
      %12 = vector.broadcast %cst_9 : f32 to vector<8x128xf32>
      %c0_10 = arith.constant 0 : index
      %c0_11 = arith.constant 0 : index
      %13 = vector.load %arg8[%c0_10, %c0_11] : memref<8x128xf32, #tpu.memory_space<vmem>>, vector<8x128xf32>
      tpu.vector_store %arg8[%c0_10, %c0_11], %12 {strides = array<i32>} : memref<8x128xf32, #tpu.memory_space<vmem>>, vector<8x128xf32>,
    } else {
    }
    %c0 = arith.constant 0 : index
    %c0_1 = arith.constant 0 : index
    %3 = vector.load %arg8[%c0, %c0_1] : memref<8x128xf32, #tpu.memory_space<vmem>>, vector<8x128xf32>
    %c0_2 = arith.constant 0 : index
    %c0_3 = arith.constant 0 : index
    %4 = vector.load %arg3[%c0_2, %c0_3] : memref<8x512xbf16, #tpu.memory_space<vmem>>, vector<8x512xbf16>
    %c0_4 = arith.constant 0 : index
    %c0_5 = arith.constant 0 : index
    %5 = vector.load %arg4[%c0_4, %c0_5] : memref<512x128xbf16, #tpu.memory_space<vmem>>, vector<512x128xbf16>
    %cst = arith.constant dense<0.000000e+00> : vector<8x128xf32>
    %6 = tpu.matmul %4, %5, %cst {dimension_numbers = #tpu.dot_dimension_numbers<[1], [0], [0], [1], [0, 0, 1, 1], [], []>} : vector<8x512xbf16>, vector<512x128xbf16>, vector<8x128xf32> -> vector<8x128xf32>
    %7 = arith.addf %3, %6 : vector<8x128xf32>
    %c0_6 = arith.constant 0 : index
    %c0_7 = arith.constant 0 : index
    %8 = vector.load %arg8[%c0_6, %c0_7] : memref<8x128xf32, #tpu.memory_space<vmem>>, vector<8x128xf32>
    tpu.vector_store %arg8[%c0_6, %c0_7], %7 {strides = array<i32>} : memref<8x128xf32, #tpu.memory_space<vmem>>, vector<8x128xf32>,
    %c2_i32 = arith.constant 2 : i32
    %9 = arith.cmpi eq, %arg2, %c2_i32 : i32
    %10 = arith.extui %9 : i1 to i32
    %c0_i32_8 = arith.constant 0 : i32
    %11 = arith.cmpi ne, %10, %c0_i32_8 : i32
    scf.if %11 {
      %c0_9 = arith.constant 0 : index
      %c0_10 = arith.constant 0 : index
      %12 = vector.load %arg8[%c0_9, %c0_10] : memref<8x128xf32, #tpu.memory_space<vmem>>, vector<8x128xf32>
      %c0_11 = arith.constant 0 : index
      %c0_12 = arith.constant 0 : index
      %13 = vector.load %arg5[%c0_11, %c0_12] : memref<1x128xf32, #tpu.memory_space<vmem>>, vector<1x128xf32>
      %14 = vector.broadcast %13 : vector<1x128xf32> to vector<8x128xf32>
      %15 = arith.mulf %12, %14 : vector<8x128xf32>
      %c0_13 = arith.constant 0 : index
      %c0_14 = arith.constant 0 : index
      %16 = vector.load %arg6[%c0_13, %c0_14] : memref<1x128xf32, #tpu.memory_space<vmem>>, vector<1x128xf32>
      %17 = vector.broadcast %16 : vector<1x128xf32> to vector<8x128xf32>
      %18 = arith.addf %15, %17 : vector<8x128xf32>
      %cst_15 = arith.constant 0.000000e+00 : f32
      %19 = vector.broadcast %cst_15 : f32 to vector<8x128xf32>
      %20 = arith.maximumf %18, %19 : vector<8x128xf32>
      %c0_16 = arith.constant 0 : index
      %c0_17 = arith.constant 0 : index
      %21 = vector.load %arg7[%c0_16, %c0_17] : memref<8x128xf32, #tpu.memory_space<vmem>>, vector<8x128xf32>
      tpu.vector_store %arg7[%c0_16, %c0_17], %20 {strides = array<i32>} : memref<8x128xf32, #tpu.memory_space<vmem>>, vector<8x128xf32>,
    } else {
    }
    return
  }
  func.func @transform_0(%arg0: i32, %arg1: i32, %arg2: i32) -> (i32, i32) {
    %c0_i32 = arith.constant 0 : i32
    return %arg0, %arg2 : i32, i32
  }
  func.func @transform_1(%arg0: i32, %arg1: i32, %arg2: i32) -> (i32, i32) {
    %c0_i32 = arith.constant 0 : i32
    return %arg2, %arg1 : i32, i32
  }
  func.func @transform_2(%arg0: i32, %arg1: i32, %arg2: i32) -> (i32, i32) {
    %c0_i32 = arith.constant 0 : i32
    %c0_i32_0 = arith.constant 0 : i32
    return %c0_i32, %arg1 : i32, i32
  }
  func.func @transform_3(%arg0: i32, %arg1: i32, %arg2: i32) -> (i32, i32) {
    %c0_i32 = arith.constant 0 : i32
    %c0_i32_0 = arith.constant 0 : i32
    return %c0_i32, %arg1 : i32, i32
  }
  func.func @transform_4(%arg0: i32, %arg1: i32, %arg2: i32) -> (i32, i32) {
    %c0_i32 = arith.constant 0 : i32
    return %arg0, %arg1 : i32, i32
  }
}

module attributes {stable_mosaic.version = 11 : i64} {
  func.func @_mm_affine_act_kernel(%arg0: i32, %arg1: i32, %arg2: i32, %arg3: memref<8x128xbf16, #tpu.memory_space<vmem>>, %arg4: memref<128x128xbf16, #tpu.memory_space<vmem>>, %arg5: memref<1x128xf32, #tpu.memory_space<vmem>>, %arg6: memref<1x128xf32, #tpu.memory_space<vmem>>, %arg7: memref<8x128xf32, #tpu.memory_space<vmem>>, %arg8: memref<8x128xf32, #tpu.memory_space<vmem>>) attributes {dimension_semantics = [#tpu.dimension_semantics<parallel>, #tpu.dimension_semantics<parallel>, #tpu.dimension_semantics<arbitrary>], iteration_bounds = array<i64: 1, 2, 1>, scalar_prefetch = 0 : i64, scratch_operands = 1 : i64, tpu.core_type = #tpu.core_type<tc>, window_params = [{transform_indices = @transform_0, window_bounds = array<i64: 8, 128>}, {transform_indices = @transform_1, window_bounds = array<i64: 128, 128>}, {transform_indices = @transform_2, window_bounds = array<i64: 1, 128>}, {transform_indices = @transform_3, window_bounds = array<i64: 1, 128>}, {transform_indices = @transform_4, window_bounds = array<i64: 8, 128>}]} {
    %c0_i32 = arith.constant 0 : i32
    %0 = arith.cmpi eq, %arg2, %c0_i32 : i32
    %1 = arith.extui %0 : i1 to i32
    %c0_i32_0 = arith.constant 0 : i32
    %2 = arith.cmpi ne, %1, %c0_i32_0 : i32
    scf.if %2 {
      %cst_10 = arith.constant 0.000000e+00 : f32
      %12 = vector.broadcast %cst_10 : f32 to vector<8x128xf32>
      %c0_11 = arith.constant 0 : index
      %c0_12 = arith.constant 0 : index
      %13 = vector.load %arg8[%c0_11, %c0_12] : memref<8x128xf32, #tpu.memory_space<vmem>>, vector<8x128xf32>
      tpu.vector_store %arg8[%c0_11, %c0_12], %12 {strides = array<i32>} : memref<8x128xf32, #tpu.memory_space<vmem>>, vector<8x128xf32>,
    } else {
    }
    %c0 = arith.constant 0 : index
    %c0_1 = arith.constant 0 : index
    %3 = vector.load %arg8[%c0, %c0_1] : memref<8x128xf32, #tpu.memory_space<vmem>>, vector<8x128xf32>
    %c0_2 = arith.constant 0 : index
    %c0_3 = arith.constant 0 : index
    %4 = vector.load %arg3[%c0_2, %c0_3] : memref<8x128xbf16, #tpu.memory_space<vmem>>, vector<8x128xbf16>
    %c0_4 = arith.constant 0 : index
    %c0_5 = arith.constant 0 : index
    %5 = vector.load %arg4[%c0_4, %c0_5] : memref<128x128xbf16, #tpu.memory_space<vmem>>, vector<128x128xbf16>
    %cst = arith.constant dense<0.000000e+00> : vector<8x128xf32>
    %6 = tpu.matmul %4, %5, %cst {dimension_numbers = #tpu.dot_dimension_numbers<[1], [0], [0], [1], [0, 0, 1, 1], [], []>} : vector<8x128xbf16>, vector<128x128xbf16>, vector<8x128xf32> -> vector<8x128xf32>
    %7 = arith.addf %3, %6 : vector<8x128xf32>
    %c0_6 = arith.constant 0 : index
    %c0_7 = arith.constant 0 : index
    %8 = vector.load %arg8[%c0_6, %c0_7] : memref<8x128xf32, #tpu.memory_space<vmem>>, vector<8x128xf32>
    tpu.vector_store %arg8[%c0_6, %c0_7], %7 {strides = array<i32>} : memref<8x128xf32, #tpu.memory_space<vmem>>, vector<8x128xf32>,
    %c0_i32_8 = arith.constant 0 : i32
    %9 = arith.cmpi eq, %arg2, %c0_i32_8 : i32
    %10 = arith.extui %9 : i1 to i32
    %c0_i32_9 = arith.constant 0 : i32
    %11 = arith.cmpi ne, %10, %c0_i32_9 : i32
    scf.if %11 {
      %c0_10 = arith.constant 0 : index
      %c0_11 = arith.constant 0 : index
      %12 = vector.load %arg8[%c0_10, %c0_11] : memref<8x128xf32, #tpu.memory_space<vmem>>, vector<8x128xf32>
      %c0_12 = arith.constant 0 : index
      %c0_13 = arith.constant 0 : index
      %13 = vector.load %arg5[%c0_12, %c0_13] : memref<1x128xf32, #tpu.memory_space<vmem>>, vector<1x128xf32>
      %14 = vector.broadcast %13 : vector<1x128xf32> to vector<8x128xf32>
      %15 = arith.mulf %12, %14 : vector<8x128xf32>
      %c0_14 = arith.constant 0 : index
      %c0_15 = arith.constant 0 : index
      %16 = vector.load %arg6[%c0_14, %c0_15] : memref<1x128xf32, #tpu.memory_space<vmem>>, vector<1x128xf32>
      %17 = vector.broadcast %16 : vector<1x128xf32> to vector<8x128xf32>
      %18 = arith.addf %15, %17 : vector<8x128xf32>
      %c0_16 = arith.constant 0 : index
      %c0_17 = arith.constant 0 : index
      %19 = vector.load %arg7[%c0_16, %c0_17] : memref<8x128xf32, #tpu.memory_space<vmem>>, vector<8x128xf32>
      tpu.vector_store %arg7[%c0_16, %c0_17], %18 {strides = array<i32>} : memref<8x128xf32, #tpu.memory_space<vmem>>, vector<8x128xf32>,
    } else {
    }
    return
  }
  func.func @transform_0(%arg0: i32, %arg1: i32, %arg2: i32) -> (i32, i32) {
    %c0_i32 = arith.constant 0 : i32
    return %arg0, %arg2 : i32, i32
  }
  func.func @transform_1(%arg0: i32, %arg1: i32, %arg2: i32) -> (i32, i32) {
    %c0_i32 = arith.constant 0 : i32
    return %arg2, %arg1 : i32, i32
  }
  func.func @transform_2(%arg0: i32, %arg1: i32, %arg2: i32) -> (i32, i32) {
    %c0_i32 = arith.constant 0 : i32
    %c0_i32_0 = arith.constant 0 : i32
    return %c0_i32, %arg1 : i32, i32
  }
  func.func @transform_3(%arg0: i32, %arg1: i32, %arg2: i32) -> (i32, i32) {
    %c0_i32 = arith.constant 0 : i32
    %c0_i32_0 = arith.constant 0 : i32
    return %c0_i32, %arg1 : i32, i32
  }
  func.func @transform_4(%arg0: i32, %arg1: i32, %arg2: i32) -> (i32, i32) {
    %c0_i32 = arith.constant 0 : i32
    return %arg0, %arg1 : i32, i32
  }
}

module attributes {stable_mosaic.version = 11 : i64} {
  func.func @_mm_affine_res_act_kernel(%arg0: i32, %arg1: i32, %arg2: i32, %arg3: memref<8x128xbf16, #tpu.memory_space<vmem>>, %arg4: memref<128x128xbf16, #tpu.memory_space<vmem>>, %arg5: memref<1x128xf32, #tpu.memory_space<vmem>>, %arg6: memref<1x128xf32, #tpu.memory_space<vmem>>, %arg7: memref<8x128xf32, #tpu.memory_space<vmem>>, %arg8: memref<8x128xf32, #tpu.memory_space<vmem>>, %arg9: memref<8x128xf32, #tpu.memory_space<vmem>>) attributes {dimension_semantics = [#tpu.dimension_semantics<parallel>, #tpu.dimension_semantics<parallel>, #tpu.dimension_semantics<arbitrary>], iteration_bounds = array<i64: 1, 2, 1>, scalar_prefetch = 0 : i64, scratch_operands = 1 : i64, tpu.core_type = #tpu.core_type<tc>, window_params = [{transform_indices = @transform_0, window_bounds = array<i64: 8, 128>}, {transform_indices = @transform_1, window_bounds = array<i64: 128, 128>}, {transform_indices = @transform_2, window_bounds = array<i64: 1, 128>}, {transform_indices = @transform_3, window_bounds = array<i64: 1, 128>}, {transform_indices = @transform_4, window_bounds = array<i64: 8, 128>}, {transform_indices = @transform_5, window_bounds = array<i64: 8, 128>}]} {
    %c0_i32 = arith.constant 0 : i32
    %0 = arith.cmpi eq, %arg2, %c0_i32 : i32
    %1 = arith.extui %0 : i1 to i32
    %c0_i32_0 = arith.constant 0 : i32
    %2 = arith.cmpi ne, %1, %c0_i32_0 : i32
    scf.if %2 {
      %cst_10 = arith.constant 0.000000e+00 : f32
      %12 = vector.broadcast %cst_10 : f32 to vector<8x128xf32>
      %c0_11 = arith.constant 0 : index
      %c0_12 = arith.constant 0 : index
      %13 = vector.load %arg9[%c0_11, %c0_12] : memref<8x128xf32, #tpu.memory_space<vmem>>, vector<8x128xf32>
      tpu.vector_store %arg9[%c0_11, %c0_12], %12 {strides = array<i32>} : memref<8x128xf32, #tpu.memory_space<vmem>>, vector<8x128xf32>,
    } else {
    }
    %c0 = arith.constant 0 : index
    %c0_1 = arith.constant 0 : index
    %3 = vector.load %arg9[%c0, %c0_1] : memref<8x128xf32, #tpu.memory_space<vmem>>, vector<8x128xf32>
    %c0_2 = arith.constant 0 : index
    %c0_3 = arith.constant 0 : index
    %4 = vector.load %arg3[%c0_2, %c0_3] : memref<8x128xbf16, #tpu.memory_space<vmem>>, vector<8x128xbf16>
    %c0_4 = arith.constant 0 : index
    %c0_5 = arith.constant 0 : index
    %5 = vector.load %arg4[%c0_4, %c0_5] : memref<128x128xbf16, #tpu.memory_space<vmem>>, vector<128x128xbf16>
    %cst = arith.constant dense<0.000000e+00> : vector<8x128xf32>
    %6 = tpu.matmul %4, %5, %cst {dimension_numbers = #tpu.dot_dimension_numbers<[1], [0], [0], [1], [0, 0, 1, 1], [], []>} : vector<8x128xbf16>, vector<128x128xbf16>, vector<8x128xf32> -> vector<8x128xf32>
    %7 = arith.addf %3, %6 : vector<8x128xf32>
    %c0_6 = arith.constant 0 : index
    %c0_7 = arith.constant 0 : index
    %8 = vector.load %arg9[%c0_6, %c0_7] : memref<8x128xf32, #tpu.memory_space<vmem>>, vector<8x128xf32>
    tpu.vector_store %arg9[%c0_6, %c0_7], %7 {strides = array<i32>} : memref<8x128xf32, #tpu.memory_space<vmem>>, vector<8x128xf32>,
    %c0_i32_8 = arith.constant 0 : i32
    %9 = arith.cmpi eq, %arg2, %c0_i32_8 : i32
    %10 = arith.extui %9 : i1 to i32
    %c0_i32_9 = arith.constant 0 : i32
    %11 = arith.cmpi ne, %10, %c0_i32_9 : i32
    scf.if %11 {
      %c0_10 = arith.constant 0 : index
      %c0_11 = arith.constant 0 : index
      %12 = vector.load %arg9[%c0_10, %c0_11] : memref<8x128xf32, #tpu.memory_space<vmem>>, vector<8x128xf32>
      %c0_12 = arith.constant 0 : index
      %c0_13 = arith.constant 0 : index
      %13 = vector.load %arg5[%c0_12, %c0_13] : memref<1x128xf32, #tpu.memory_space<vmem>>, vector<1x128xf32>
      %14 = vector.broadcast %13 : vector<1x128xf32> to vector<8x128xf32>
      %15 = arith.mulf %12, %14 : vector<8x128xf32>
      %c0_14 = arith.constant 0 : index
      %c0_15 = arith.constant 0 : index
      %16 = vector.load %arg6[%c0_14, %c0_15] : memref<1x128xf32, #tpu.memory_space<vmem>>, vector<1x128xf32>
      %17 = vector.broadcast %16 : vector<1x128xf32> to vector<8x128xf32>
      %18 = arith.addf %15, %17 : vector<8x128xf32>
      %c0_16 = arith.constant 0 : index
      %c0_17 = arith.constant 0 : index
      %19 = vector.load %arg7[%c0_16, %c0_17] : memref<8x128xf32, #tpu.memory_space<vmem>>, vector<8x128xf32>
      %20 = arith.addf %18, %19 : vector<8x128xf32>
      %cst_18 = arith.constant 0.000000e+00 : f32
      %21 = vector.broadcast %cst_18 : f32 to vector<8x128xf32>
      %22 = arith.maximumf %20, %21 : vector<8x128xf32>
      %c0_19 = arith.constant 0 : index
      %c0_20 = arith.constant 0 : index
      %23 = vector.load %arg8[%c0_19, %c0_20] : memref<8x128xf32, #tpu.memory_space<vmem>>, vector<8x128xf32>
      tpu.vector_store %arg8[%c0_19, %c0_20], %22 {strides = array<i32>} : memref<8x128xf32, #tpu.memory_space<vmem>>, vector<8x128xf32>,
    } else {
    }
    return
  }
  func.func @transform_0(%arg0: i32, %arg1: i32, %arg2: i32) -> (i32, i32) {
    %c0_i32 = arith.constant 0 : i32
    return %arg0, %arg2 : i32, i32
  }
  func.func @transform_1(%arg0: i32, %arg1: i32, %arg2: i32) -> (i32, i32) {
    %c0_i32 = arith.constant 0 : i32
    return %arg2, %arg1 : i32, i32
  }
  func.func @transform_2(%arg0: i32, %arg1: i32, %arg2: i32) -> (i32, i32) {
    %c0_i32 = arith.constant 0 : i32
    %c0_i32_0 = arith.constant 0 : i32
    return %c0_i32, %arg1 : i32, i32
  }
  func.func @transform_3(%arg0: i32, %arg1: i32, %arg2: i32) -> (i32, i32) {
    %c0_i32 = arith.constant 0 : i32
    %c0_i32_0 = arith.constant 0 : i32
    return %c0_i32, %arg1 : i32, i32
  }
  func.func @transform_4(%arg0: i32, %arg1: i32, %arg2: i32) -> (i32, i32) {
    %c0_i32 = arith.constant 0 : i32
    return %arg0, %arg1 : i32, i32
  }
  func.func @transform_5(%arg0: i32, %arg1: i32, %arg2: i32) -> (i32, i32) {
    %c0_i32 = arith.constant 0 : i32
    return %arg0, %arg1 : i32, i32
  }
}

module attributes {stable_mosaic.version = 11 : i64} {
  func.func @_tabnet_kernel(%arg0: memref<32x8xf32, #tpu.memory_space<vmem>>, %arg1: memref<32x8xf32, #tpu.memory_space<vmem>>, %arg2: memref<32x32xf32, #tpu.memory_space<vmem>>, %arg3: memref<8x8xf32, #tpu.memory_space<vmem>>, %arg4: memref<1x8xf32, #tpu.memory_space<vmem>>, %arg5: memref<8x8xf32, #tpu.memory_space<vmem>>, %arg6: memref<1x8xf32, #tpu.memory_space<vmem>>, %arg7: memref<8x8xf32, #tpu.memory_space<vmem>>, %arg8: memref<1x8xf32, #tpu.memory_space<vmem>>, %arg9: memref<8x8xf32, #tpu.memory_space<vmem>>, %arg10: memref<1x8xf32, #tpu.memory_space<vmem>>, %arg11: memref<1x8xf32, #tpu.memory_space<vmem>>, %arg12: memref<1x8xf32, #tpu.memory_space<vmem>>, %arg13: memref<1x8xf32, #tpu.memory_space<vmem>>, %arg14: memref<1x8xf32, #tpu.memory_space<vmem>>, %arg15: memref<1x8xf32, #tpu.memory_space<vmem>>, %arg16: memref<1x8xf32, #tpu.memory_space<vmem>>, %arg17: memref<8x8xf32, #tpu.memory_space<vmem>>, %arg18: memref<1x8xf32, #tpu.memory_space<vmem>>, %arg19: memref<8x8xf32, #tpu.memory_space<vmem>>, %arg20: memref<1x8xf32, #tpu.memory_space<vmem>>, %arg21: memref<7x8x64xf32, #tpu.memory_space<vmem>>, %arg22: memref<1x64xf32, #tpu.memory_space<vmem>>, %arg23: memref<2x20xf32, #tpu.memory_space<vmem>>, %arg24: memref<64x16xf32, #tpu.memory_space<vmem>>, %arg25: memref<1x16xf32, #tpu.memory_space<vmem>>, %arg26: memref<16x4xf32, #tpu.memory_space<vmem>>, %arg27: memref<1x4xf32, #tpu.memory_space<vmem>>, %arg28: memref<2x4xf32, #tpu.memory_space<vmem>>) attributes {dimension_semantics = [], scalar_prefetch = 0 : i64, scratch_operands = 0 : i64, tpu.core_type = #tpu.core_type<tc>} {
    %c0 = arith.constant 0 : index
    %c0_0 = arith.constant 0 : index
    %0 = vector.load %arg0[%c0, %c0_0] : memref<32x8xf32, #tpu.memory_space<vmem>>, vector<32x8xf32>
    %cst = arith.constant 2.82842708 : f32
    %1 = vector.broadcast %cst : f32 to vector<32x8xf32>
    %2 = arith.mulf %0, %1 : vector<32x8xf32>
    %c0_1 = arith.constant 0 : index
    %c0_2 = arith.constant 0 : index
    %3 = vector.load %arg1[%c0_1, %c0_2] : memref<32x8xf32, #tpu.memory_space<vmem>>, vector<32x8xf32>
    %4 = arith.addf %2, %3 : vector<32x8xf32>
    %c0_3 = arith.constant 0 : index
    %c0_4 = arith.constant 0 : index
    %5 = vector.load %arg11[%c0_3, %c0_4] : memref<1x8xf32, #tpu.memory_space<vmem>>, vector<1x8xf32>
    %c0_5 = arith.constant 0 : index
    %c0_6 = arith.constant 0 : index
    %6 = vector.load %arg12[%c0_5, %c0_6] : memref<1x8xf32, #tpu.memory_space<vmem>>, vector<1x8xf32>
    %cst_7 = arith.constant dense<0.000000e+00> : vector<32xf32>
    %7 = vector.multi_reduction <add>, %4, %cst_7 [1] : vector<32x8xf32> to vector<32xf32>
    %8 = vector.shape_cast %7 : vector<32xf32> to vector<32x1xf32>
    %cst_8 = arith.constant 8.000000e+00 : f32
    %9 = vector.broadcast %cst_8 : f32 to vector<32x1xf32>
    %10 = arith.divf %8, %9 : vector<32x1xf32>
    %11 = vector.broadcast %10 : vector<32x1xf32> to vector<32x8xf32>
    %12 = arith.subf %4, %11 : vector<32x8xf32>
    %13 = arith.mulf %12, %12 : vector<32x8xf32>
    %cst_9 = arith.constant dense<0.000000e+00> : vector<32xf32>
    %14 = vector.multi_reduction <add>, %13, %cst_9 [1] : vector<32x8xf32> to vector<32xf32>
    %15 = vector.shape_cast %14 : vector<32xf32> to vector<32x1xf32>
    %cst_10 = arith.constant 8.000000e+00 : f32
    %16 = vector.broadcast %cst_10 : f32 to vector<32x1xf32>
    %17 = arith.divf %15, %16 : vector<32x1xf32>
    %18 = vector.broadcast %10 : vector<32x1xf32> to vector<32x8xf32>
    %19 = arith.subf %4, %18 : vector<32x8xf32>
    %cst_11 = arith.constant 9.99999974E-6 : f32
    %20 = vector.broadcast %cst_11 : f32 to vector<32x1xf32>
    %21 = arith.addf %17, %20 : vector<32x1xf32>
    %22 = math.rsqrt %21 : vector<32x1xf32>
    %23 = vector.broadcast %22 : vector<32x1xf32> to vector<32x8xf32>
    %24 = arith.mulf %19, %23 : vector<32x8xf32>
    %25 = vector.broadcast %5 : vector<1x8xf32> to vector<32x8xf32>
    %26 = arith.mulf %24, %25 : vector<32x8xf32>
    %27 = vector.broadcast %6 : vector<1x8xf32> to vector<32x8xf32>
    %28 = arith.addf %26, %27 : vector<32x8xf32>
    %c0_12 = arith.constant 0 : index
    %c0_13 = arith.constant 0 : index
    %29 = vector.load %arg3[%c0_12, %c0_13] : memref<8x8xf32, #tpu.memory_space<vmem>>, vector<8x8xf32>
    %cst_14 = arith.constant dense<0.000000e+00> : vector<32x8xf32>
    %30 = tpu.matmul %28, %29, %cst_14 {dimension_numbers = #tpu.dot_dimension_numbers<[1], [0], [0], [1], [0, 0, 1, 1], [], []>} : vector<32x8xf32>, vector<8x8xf32>, vector<32x8xf32> -> vector<32x8xf32>
    %c0_15 = arith.constant 0 : index
    %c0_16 = arith.constant 0 : index
    %31 = vector.load %arg4[%c0_15, %c0_16] : memref<1x8xf32, #tpu.memory_space<vmem>>, vector<1x8xf32>
    %32 = vector.broadcast %31 : vector<1x8xf32> to vector<32x8xf32>
    %33 = arith.addf %30, %32 : vector<32x8xf32>
    %cst_17 = arith.constant 0.353553385 : f32
    %34 = vector.broadcast %cst_17 : f32 to vector<32x8xf32>
    %35 = arith.mulf %33, %34 : vector<32x8xf32>
    %c0_18 = arith.constant 0 : index
    %c0_19 = arith.constant 0 : index
    %36 = vector.load %arg5[%c0_18, %c0_19] : memref<8x8xf32, #tpu.memory_space<vmem>>, vector<8x8xf32>
    %cst_20 = arith.constant dense<0.000000e+00> : vector<32x8xf32>
    %37 = tpu.matmul %28, %36, %cst_20 {dimension_numbers = #tpu.dot_dimension_numbers<[1], [0], [0], [1], [0, 0, 1, 1], [], []>} : vector<32x8xf32>, vector<8x8xf32>, vector<32x8xf32> -> vector<32x8xf32>
    %c0_21 = arith.constant 0 : index
    %c0_22 = arith.constant 0 : index
    %38 = vector.load %arg6[%c0_21, %c0_22] : memref<1x8xf32, #tpu.memory_space<vmem>>, vector<1x8xf32>
    %39 = vector.broadcast %38 : vector<1x8xf32> to vector<32x8xf32>
    %40 = arith.addf %37, %39 : vector<32x8xf32>
    %c0_23 = arith.constant 0 : index
    %c0_24 = arith.constant 0 : index
    %41 = vector.load %arg7[%c0_23, %c0_24] : memref<8x8xf32, #tpu.memory_space<vmem>>, vector<8x8xf32>
    %cst_25 = arith.constant dense<0.000000e+00> : vector<32x8xf32>
    %42 = tpu.matmul %28, %41, %cst_25 {dimension_numbers = #tpu.dot_dimension_numbers<[1], [0], [0], [1], [0, 0, 1, 1], [], []>} : vector<32x8xf32>, vector<8x8xf32>, vector<32x8xf32> -> vector<32x8xf32>
    %c0_26 = arith.constant 0 : index
    %c0_27 = arith.constant 0 : index
    %43 = vector.load %arg8[%c0_26, %c0_27] : memref<1x8xf32, #tpu.memory_space<vmem>>, vector<1x8xf32>
    %44 = vector.broadcast %43 : vector<1x8xf32> to vector<32x8xf32>
    %45 = arith.addf %42, %44 : vector<32x8xf32>
    %cst_28 = arith.constant dense<0.000000e+00> : vector<32x32xf32>
    %46 = tpu.matmul %35, %40, %cst_28 {dimension_numbers = #tpu.dot_dimension_numbers<[1], [1], [0], [0], [0, 0, 1, 0], [], []>} : vector<32x8xf32>, vector<32x8xf32>, vector<32x32xf32> -> vector<32x32xf32>
    %cst_29 = arith.constant 2.500000e-01 : f32
    %47 = vector.broadcast %cst_29 : f32 to vector<32x32xf32>
    %48 = arith.mulf %46, %47 : vector<32x32xf32>
    %c0_30 = arith.constant 0 : index
    %c0_31 = arith.constant 0 : index
    %49 = vector.load %arg2[%c0_30, %c0_31] : memref<32x32xf32, #tpu.memory_space<vmem>>, vector<32x32xf32>
    %50 = arith.addf %48, %49 : vector<32x32xf32>
    %cst_32 = arith.constant dense<0xFF800000> : vector<32xf32>
    %51 = vector.multi_reduction <maximumf>, %50, %cst_32 [1] : vector<32x32xf32> to vector<32xf32>
    %52 = vector.shape_cast %51 : vector<32xf32> to vector<32x1xf32>
    %53 = vector.broadcast %52 : vector<32x1xf32> to vector<32x32xf32>
    %54 = arith.subf %50, %53 : vector<32x32xf32>
    %55 = math.exp %54 : vector<32x32xf32>
    %cst_33 = arith.constant dense<0.000000e+00> : vector<32xf32>
    %56 = vector.multi_reduction <add>, %55, %cst_33 [1] : vector<32x32xf32> to vector<32xf32>
    %57 = vector.shape_cast %56 : vector<32xf32> to vector<32x1xf32>
    %58 = vector.broadcast %57 : vector<32x1xf32> to vector<32x32xf32>
    %59 = arith.divf %55, %58 : vector<32x32xf32>
    %cst_34 = arith.constant dense<0.000000e+00> : vector<32x8xf32>
    %60 = tpu.matmul %59, %45, %cst_34 {dimension_numbers = #tpu.dot_dimension_numbers<[1], [0], [0], [1], [0, 0, 1, 1], [], []>} : vector<32x32xf32>, vector<32x8xf32>, vector<32x8xf32> -> vector<32x8xf32>
    %c0_35 = arith.constant 0 : index
    %c0_36 = arith.constant 0 : index
    %61 = vector.load %arg9[%c0_35, %c0_36] : memref<8x8xf32, #tpu.memory_space<vmem>>, vector<8x8xf32>
    %cst_37 = arith.constant dense<0.000000e+00> : vector<32x8xf32>
    %62 = tpu.matmul %60, %61, %cst_37 {dimension_numbers = #tpu.dot_dimension_numbers<[1], [0], [0], [1], [0, 0, 1, 1], [], []>} : vector<32x8xf32>, vector<8x8xf32>, vector<32x8xf32> -> vector<32x8xf32>
    %63 = arith.addf %4, %62 : vector<32x8xf32>
    %c0_38 = arith.constant 0 : index
    %c0_39 = arith.constant 0 : index
    %64 = vector.load %arg10[%c0_38, %c0_39] : memref<1x8xf32, #tpu.memory_space<vmem>>, vector<1x8xf32>
    %65 = vector.broadcast %64 : vector<1x8xf32> to vector<32x8xf32>
    %66 = arith.addf %63, %65 : vector<32x8xf32>
    %c0_40 = arith.constant 0 : index
    %c0_41 = arith.constant 0 : index
    %67 = vector.load %arg13[%c0_40, %c0_41] : memref<1x8xf32, #tpu.memory_space<vmem>>, vector<1x8xf32>
    %c0_42 = arith.constant 0 : index
    %c0_43 = arith.constant 0 : index
    %68 = vector.load %arg14[%c0_42, %c0_43] : memref<1x8xf32, #tpu.memory_space<vmem>>, vector<1x8xf32>
    %cst_44 = arith.constant dense<0.000000e+00> : vector<32xf32>
    %69 = vector.multi_reduction <add>, %66, %cst_44 [1] : vector<32x8xf32> to vector<32xf32>
    %70 = vector.shape_cast %69 : vector<32xf32> to vector<32x1xf32>
    %cst_45 = arith.constant 8.000000e+00 : f32
    %71 = vector.broadcast %cst_45 : f32 to vector<32x1xf32>
    %72 = arith.divf %70, %71 : vector<32x1xf32>
    %73 = vector.broadcast %72 : vector<32x1xf32> to vector<32x8xf32>
    %74 = arith.subf %66, %73 : vector<32x8xf32>
    %75 = arith.mulf %74, %74 : vector<32x8xf32>
    %cst_46 = arith.constant dense<0.000000e+00> : vector<32xf32>
    %76 = vector.multi_reduction <add>, %75, %cst_46 [1] : vector<32x8xf32> to vector<32xf32>
    %77 = vector.shape_cast %76 : vector<32xf32> to vector<32x1xf32>
    %cst_47 = arith.constant 8.000000e+00 : f32
    %78 = vector.broadcast %cst_47 : f32 to vector<32x1xf32>
    %79 = arith.divf %77, %78 : vector<32x1xf32>
    %80 = vector.broadcast %72 : vector<32x1xf32> to vector<32x8xf32>
    %81 = arith.subf %66, %80 : vector<32x8xf32>
    %cst_48 = arith.constant 9.99999974E-6 : f32
    %82 = vector.broadcast %cst_48 : f32 to vector<32x1xf32>
    %83 = arith.addf %79, %82 : vector<32x1xf32>
    %84 = math.rsqrt %83 : vector<32x1xf32>
    %85 = vector.broadcast %84 : vector<32x1xf32> to vector<32x8xf32>
    %86 = arith.mulf %81, %85 : vector<32x8xf32>
    %87 = vector.broadcast %67 : vector<1x8xf32> to vector<32x8xf32>
    %88 = arith.mulf %86, %87 : vector<32x8xf32>
    %89 = vector.broadcast %68 : vector<1x8xf32> to vector<32x8xf32>
    %90 = arith.addf %88, %89 : vector<32x8xf32>
    %c0_49 = arith.constant 0 : index
    %c0_50 = arith.constant 0 : index
    %91 = vector.load %arg17[%c0_49, %c0_50] : memref<8x8xf32, #tpu.memory_space<vmem>>, vector<8x8xf32>
    %cst_51 = arith.constant dense<0.000000e+00> : vector<32x8xf32>
    %92 = tpu.matmul %90, %91, %cst_51 {dimension_numbers = #tpu.dot_dimension_numbers<[1], [0], [0], [1], [0, 0, 1, 1], [], []>} : vector<32x8xf32>, vector<8x8xf32>, vector<32x8xf32> -> vector<32x8xf32>
    %c0_52 = arith.constant 0 : index
    %c0_53 = arith.constant 0 : index
    %93 = vector.load %arg18[%c0_52, %c0_53] : memref<1x8xf32, #tpu.memory_space<vmem>>, vector<1x8xf32>
    %94 = vector.broadcast %93 : vector<1x8xf32> to vector<32x8xf32>
    %95 = arith.addf %92, %94 : vector<32x8xf32>
    %cst_54 = arith.constant 0.000000e+00 : f32
    %96 = vector.broadcast %cst_54 : f32 to vector<32x8xf32>
    %97 = arith.maximumf %95, %96 : vector<32x8xf32>
    %c0_55 = arith.constant 0 : index
    %c0_56 = arith.constant 0 : index
    %98 = vector.load %arg19[%c0_55, %c0_56] : memref<8x8xf32, #tpu.memory_space<vmem>>, vector<8x8xf32>
    %cst_57 = arith.constant dense<0.000000e+00> : vector<32x8xf32>
    %99 = tpu.matmul %97, %98, %cst_57 {dimension_numbers = #tpu.dot_dimension_numbers<[1], [0], [0], [1], [0, 0, 1, 1], [], []>} : vector<32x8xf32>, vector<8x8xf32>, vector<32x8xf32> -> vector<32x8xf32>
    %100 = arith.addf %66, %99 : vector<32x8xf32>
    %c0_58 = arith.constant 0 : index
    %c0_59 = arith.constant 0 : index
    %101 = vector.load %arg20[%c0_58, %c0_59] : memref<1x8xf32, #tpu.memory_space<vmem>>, vector<1x8xf32>
    %102 = vector.broadcast %101 : vector<1x8xf32> to vector<32x8xf32>
    %103 = arith.addf %100, %102 : vector<32x8xf32>
    %c0_60 = arith.constant 0 : index
    %c0_61 = arith.constant 0 : index
    %104 = vector.load %arg15[%c0_60, %c0_61] : memref<1x8xf32, #tpu.memory_space<vmem>>, vector<1x8xf32>
    %c0_62 = arith.constant 0 : index
    %c0_63 = arith.constant 0 : index
    %105 = vector.load %arg16[%c0_62, %c0_63] : memref<1x8xf32, #tpu.memory_space<vmem>>, vector<1x8xf32>
    %cst_64 = arith.constant dense<0.000000e+00> : vector<32xf32>
    %106 = vector.multi_reduction <add>, %103, %cst_64 [1] : vector<32x8xf32> to vector<32xf32>
    %107 = vector.shape_cast %106 : vector<32xf32> to vector<32x1xf32>
    %cst_65 = arith.constant 8.000000e+00 : f32
    %108 = vector.broadcast %cst_65 : f32 to vector<32x1xf32>
    %109 = arith.divf %107, %108 : vector<32x1xf32>
    %110 = vector.broadcast %109 : vector<32x1xf32> to vector<32x8xf32>
    %111 = arith.subf %103, %110 : vector<32x8xf32>
    %112 = arith.mulf %111, %111 : vector<32x8xf32>
    %cst_66 = arith.constant dense<0.000000e+00> : vector<32xf32>
    %113 = vector.multi_reduction <add>, %112, %cst_66 [1] : vector<32x8xf32> to vector<32xf32>
    %114 = vector.shape_cast %113 : vector<32xf32> to vector<32x1xf32>
    %cst_67 = arith.constant 8.000000e+00 : f32
    %115 = vector.broadcast %cst_67 : f32 to vector<32x1xf32>
    %116 = arith.divf %114, %115 : vector<32x1xf32>
    %117 = vector.broadcast %109 : vector<32x1xf32> to vector<32x8xf32>
    %118 = arith.subf %103, %117 : vector<32x8xf32>
    %cst_68 = arith.constant 9.99999974E-6 : f32
    %119 = vector.broadcast %cst_68 : f32 to vector<32x1xf32>
    %120 = arith.addf %116, %119 : vector<32x1xf32>
    %121 = math.rsqrt %120 : vector<32x1xf32>
    %122 = vector.broadcast %121 : vector<32x1xf32> to vector<32x8xf32>
    %123 = arith.mulf %118, %122 : vector<32x8xf32>
    %124 = vector.broadcast %104 : vector<1x8xf32> to vector<32x8xf32>
    %125 = arith.mulf %123, %124 : vector<32x8xf32>
    %126 = vector.broadcast %105 : vector<1x8xf32> to vector<32x8xf32>
    %127 = arith.addf %125, %126 : vector<32x8xf32>
    %cst_69 = arith.constant 0.000000e+00 : f32
    %128 = vector.broadcast %cst_69 : f32 to vector<20x64xf32>
    %129 = vector.extract_strided_slice %127 {offsets = [0, 0], sizes = [20, 8], strides = [1, 1]} : vector<32x8xf32> to vector<20x8xf32>
    %c0_70 = arith.constant 0 : index
    %c0_71 = arith.constant 0 : index
    %c0_72 = arith.constant 0 : index
    %130 = vector.load %arg21[%c0_70, %c0_71, %c0_72] : memref<7x8x64xf32, #tpu.memory_space<vmem>>, vector<1x8x64xf32>
    %131 = vector.shape_cast %130 : vector<1x8x64xf32> to vector<8x64xf32>
    %cst_73 = arith.constant dense<0.000000e+00> : vector<20x64xf32>
    %132 = tpu.matmul %129, %131, %cst_73 {dimension_numbers = #tpu.dot_dimension_numbers<[1], [0], [0], [1], [0, 0, 1, 1], [], []>} : vector<20x8xf32>, vector<8x64xf32>, vector<20x64xf32> -> vector<20x64xf32>
    %133 = arith.addf %128, %132 : vector<20x64xf32>
    %134 = vector.extract_strided_slice %127 {offsets = [2, 0], sizes = [20, 8], strides = [1, 1]} : vector<32x8xf32> to vector<20x8xf32>
    %c1 = arith.constant 1 : index
    %c0_74 = arith.constant 0 : index
    %c0_75 = arith.constant 0 : index
    %135 = vector.load %arg21[%c1, %c0_74, %c0_75] : memref<7x8x64xf32, #tpu.memory_space<vmem>>, vector<1x8x64xf32>
    %136 = vector.shape_cast %135 : vector<1x8x64xf32> to vector<8x64xf32>
    %cst_76 = arith.constant dense<0.000000e+00> : vector<20x64xf32>
    %137 = tpu.matmul %134, %136, %cst_76 {dimension_numbers = #tpu.dot_dimension_numbers<[1], [0], [0], [1], [0, 0, 1, 1], [], []>} : vector<20x8xf32>, vector<8x64xf32>, vector<20x64xf32> -> vector<20x64xf32>
    %138 = arith.addf %133, %137 : vector<20x64xf32>
    %139 = vector.extract_strided_slice %127 {offsets = [4, 0], sizes = [20, 8], strides = [1, 1]} : vector<32x8xf32> to vector<20x8xf32>
    %c2 = arith.constant 2 : index
    %c0_77 = arith.constant 0 : index
    %c0_78 = arith.constant 0 : index
    %140 = vector.load %arg21[%c2, %c0_77, %c0_78] : memref<7x8x64xf32, #tpu.memory_space<vmem>>, vector<1x8x64xf32>
    %141 = vector.shape_cast %140 : vector<1x8x64xf32> to vector<8x64xf32>
    %cst_79 = arith.constant dense<0.000000e+00> : vector<20x64xf32>
    %142 = tpu.matmul %139, %141, %cst_79 {dimension_numbers = #tpu.dot_dimension_numbers<[1], [0], [0], [1], [0, 0, 1, 1], [], []>} : vector<20x8xf32>, vector<8x64xf32>, vector<20x64xf32> -> vector<20x64xf32>
    %143 = arith.addf %138, %142 : vector<20x64xf32>
    %144 = vector.extract_strided_slice %127 {offsets = [6, 0], sizes = [20, 8], strides = [1, 1]} : vector<32x8xf32> to vector<20x8xf32>
    %c3 = arith.constant 3 : index
    %c0_80 = arith.constant 0 : index
    %c0_81 = arith.constant 0 : index
    %145 = vector.load %arg21[%c3, %c0_80, %c0_81] : memref<7x8x64xf32, #tpu.memory_space<vmem>>, vector<1x8x64xf32>
    %146 = vector.shape_cast %145 : vector<1x8x64xf32> to vector<8x64xf32>
    %cst_82 = arith.constant dense<0.000000e+00> : vector<20x64xf32>
    %147 = tpu.matmul %144, %146, %cst_82 {dimension_numbers = #tpu.dot_dimension_numbers<[1], [0], [0], [1], [0, 0, 1, 1], [], []>} : vector<20x8xf32>, vector<8x64xf32>, vector<20x64xf32> -> vector<20x64xf32>
    %148 = arith.addf %143, %147 : vector<20x64xf32>
    %149 = vector.extract_strided_slice %127 {offsets = [8, 0], sizes = [20, 8], strides = [1, 1]} : vector<32x8xf32> to vector<20x8xf32>
    %c4 = arith.constant 4 : index
    %c0_83 = arith.constant 0 : index
    %c0_84 = arith.constant 0 : index
    %150 = vector.load %arg21[%c4, %c0_83, %c0_84] : memref<7x8x64xf32, #tpu.memory_space<vmem>>, vector<1x8x64xf32>
    %151 = vector.shape_cast %150 : vector<1x8x64xf32> to vector<8x64xf32>
    %cst_85 = arith.constant dense<0.000000e+00> : vector<20x64xf32>
    %152 = tpu.matmul %149, %151, %cst_85 {dimension_numbers = #tpu.dot_dimension_numbers<[1], [0], [0], [1], [0, 0, 1, 1], [], []>} : vector<20x8xf32>, vector<8x64xf32>, vector<20x64xf32> -> vector<20x64xf32>
    %153 = arith.addf %148, %152 : vector<20x64xf32>
    %154 = vector.extract_strided_slice %127 {offsets = [10, 0], sizes = [20, 8], strides = [1, 1]} : vector<32x8xf32> to vector<20x8xf32>
    %c5 = arith.constant 5 : index
    %c0_86 = arith.constant 0 : index
    %c0_87 = arith.constant 0 : index
    %155 = vector.load %arg21[%c5, %c0_86, %c0_87] : memref<7x8x64xf32, #tpu.memory_space<vmem>>, vector<1x8x64xf32>
    %156 = vector.shape_cast %155 : vector<1x8x64xf32> to vector<8x64xf32>
    %cst_88 = arith.constant dense<0.000000e+00> : vector<20x64xf32>
    %157 = tpu.matmul %154, %156, %cst_88 {dimension_numbers = #tpu.dot_dimension_numbers<[1], [0], [0], [1], [0, 0, 1, 1], [], []>} : vector<20x8xf32>, vector<8x64xf32>, vector<20x64xf32> -> vector<20x64xf32>
    %158 = arith.addf %153, %157 : vector<20x64xf32>
    %159 = vector.extract_strided_slice %127 {offsets = [12, 0], sizes = [20, 8], strides = [1, 1]} : vector<32x8xf32> to vector<20x8xf32>
    %c6 = arith.constant 6 : index
    %c0_89 = arith.constant 0 : index
    %c0_90 = arith.constant 0 : index
    %160 = vector.load %arg21[%c6, %c0_89, %c0_90] : memref<7x8x64xf32, #tpu.memory_space<vmem>>, vector<1x8x64xf32>
    %161 = vector.shape_cast %160 : vector<1x8x64xf32> to vector<8x64xf32>
    %cst_91 = arith.constant dense<0.000000e+00> : vector<20x64xf32>
    %162 = tpu.matmul %159, %161, %cst_91 {dimension_numbers = #tpu.dot_dimension_numbers<[1], [0], [0], [1], [0, 0, 1, 1], [], []>} : vector<20x8xf32>, vector<8x64xf32>, vector<20x64xf32> -> vector<20x64xf32>
    %163 = arith.addf %158, %162 : vector<20x64xf32>
    %c0_92 = arith.constant 0 : index
    %c0_93 = arith.constant 0 : index
    %164 = vector.load %arg22[%c0_92, %c0_93] : memref<1x64xf32, #tpu.memory_space<vmem>>, vector<1x64xf32>
    %165 = vector.broadcast %164 : vector<1x64xf32> to vector<20x64xf32>
    %166 = arith.addf %163, %165 : vector<20x64xf32>
    %cst_94 = arith.constant 0.000000e+00 : f32
    %167 = vector.broadcast %cst_94 : f32 to vector<20x64xf32>
    %168 = arith.maximumf %166, %167 : vector<20x64xf32>
    %c0_95 = arith.constant 0 : index
    %c0_96 = arith.constant 0 : index
    %169 = vector.load %arg23[%c0_95, %c0_96] : memref<2x20xf32, #tpu.memory_space<vmem>>, vector<2x20xf32>
    %cst_97 = arith.constant dense<0.000000e+00> : vector<2x64xf32>
    %170 = tpu.matmul %169, %168, %cst_97 {dimension_numbers = #tpu.dot_dimension_numbers<[1], [0], [0], [1], [0, 0, 1, 1], [], []>} : vector<2x20xf32>, vector<20x64xf32>, vector<2x64xf32> -> vector<2x64xf32>
    %c0_98 = arith.constant 0 : index
    %c0_99 = arith.constant 0 : index
    %171 = vector.load %arg24[%c0_98, %c0_99] : memref<64x16xf32, #tpu.memory_space<vmem>>, vector<64x16xf32>
    %cst_100 = arith.constant dense<0.000000e+00> : vector<2x16xf32>
    %172 = tpu.matmul %170, %171, %cst_100 {dimension_numbers = #tpu.dot_dimension_numbers<[1], [0], [0], [1], [0, 0, 1, 1], [], []>} : vector<2x64xf32>, vector<64x16xf32>, vector<2x16xf32> -> vector<2x16xf32>
    %c0_101 = arith.constant 0 : index
    %c0_102 = arith.constant 0 : index
    %173 = vector.load %arg25[%c0_101, %c0_102] : memref<1x16xf32, #tpu.memory_space<vmem>>, vector<1x16xf32>
    %174 = vector.broadcast %173 : vector<1x16xf32> to vector<2x16xf32>
    %175 = arith.addf %172, %174 : vector<2x16xf32>
    %176 = arith.negf %175 : vector<2x16xf32>
    %177 = math.exp %176 : vector<2x16xf32>
    %cst_103 = arith.constant 1.000000e+00 : f32
    %178 = vector.broadcast %cst_103 : f32 to vector<2x16xf32>
    %179 = arith.addf %178, %177 : vector<2x16xf32>
    %180 = arith.divf %178, %179 : vector<2x16xf32>
    %c0_104 = arith.constant 0 : index
    %c0_105 = arith.constant 0 : index
    %181 = vector.load %arg26[%c0_104, %c0_105] : memref<16x4xf32, #tpu.memory_space<vmem>>, vector<16x4xf32>
    %cst_106 = arith.constant dense<0.000000e+00> : vector<2x4xf32>
    %182 = tpu.matmul %180, %181, %cst_106 {dimension_numbers = #tpu.dot_dimension_numbers<[1], [0], [0], [1], [0, 0, 1, 1], [], []>} : vector<2x16xf32>, vector<16x4xf32>, vector<2x4xf32> -> vector<2x4xf32>
    %c0_107 = arith.constant 0 : index
    %c0_108 = arith.constant 0 : index
    %183 = vector.load %arg27[%c0_107, %c0_108] : memref<1x4xf32, #tpu.memory_space<vmem>>, vector<1x4xf32>
    %184 = vector.broadcast %183 : vector<1x4xf32> to vector<2x4xf32>
    %185 = arith.addf %182, %184 : vector<2x4xf32>
    %cst_109 = arith.constant 0.000000e+00 : f32
    %186 = vector.broadcast %cst_109 : f32 to vector<2x4xf32>
    %187 = arith.maximumf %185, %186 : vector<2x4xf32>
    %c0_110 = arith.constant 0 : index
    %c0_111 = arith.constant 0 : index
    %188 = vector.load %arg28[%c0_110, %c0_111] : memref<2x4xf32, #tpu.memory_space<vmem>>, vector<2x4xf32>
    tpu.vector_store %arg28[%c0_110, %c0_111], %187 {strides = array<i32>} : memref<2x4xf32, #tpu.memory_space<vmem>>, vector<2x4xf32>,
    return
  }
}

module attributes {stable_mosaic.version = 11 : i64} {
  func.func @_head_kernel(%arg0: memref<8x256xf32, #tpu.memory_space<vmem>>, %arg1: memref<256x4xf32, #tpu.memory_space<vmem>>, %arg2: memref<1x4xf32, #tpu.memory_space<vmem>>, %arg3: memref<1x4xf32, #tpu.memory_space<vmem>>, %arg4: memref<2x8xf32, #tpu.memory_space<vmem>>, %arg5: memref<2x4xf32, #tpu.memory_space<vmem>>, %arg6: memref<4x2xf32, #tpu.memory_space<vmem>>, %arg7: memref<4x2xf32, #tpu.memory_space<vmem>>, %arg8: memref<1x2xf32, #tpu.memory_space<vmem>>, %arg9: memref<2x2xf32, #tpu.memory_space<vmem>>) attributes {dimension_semantics = [], scalar_prefetch = 0 : i64, scratch_operands = 0 : i64, tpu.core_type = #tpu.core_type<tc>} {
    %c0 = arith.constant 0 : index
    %c0_0 = arith.constant 0 : index
    %0 = vector.load %arg0[%c0, %c0_0] : memref<8x256xf32, #tpu.memory_space<vmem>>, vector<8x256xf32>
    %c0_1 = arith.constant 0 : index
    %c0_2 = arith.constant 0 : index
    %1 = vector.load %arg1[%c0_1, %c0_2] : memref<256x4xf32, #tpu.memory_space<vmem>>, vector<256x4xf32>
    %cst = arith.constant dense<0.000000e+00> : vector<8x4xf32>
    %2 = tpu.matmul %0, %1, %cst {dimension_numbers = #tpu.dot_dimension_numbers<[1], [0], [0], [1], [0, 0, 1, 1], [], []>} : vector<8x256xf32>, vector<256x4xf32>, vector<8x4xf32> -> vector<8x4xf32>
    %c0_3 = arith.constant 0 : index
    %c0_4 = arith.constant 0 : index
    %3 = vector.load %arg2[%c0_3, %c0_4] : memref<1x4xf32, #tpu.memory_space<vmem>>, vector<1x4xf32>
    %4 = vector.broadcast %3 : vector<1x4xf32> to vector<8x4xf32>
    %5 = arith.mulf %2, %4 : vector<8x4xf32>
    %c0_5 = arith.constant 0 : index
    %c0_6 = arith.constant 0 : index
    %6 = vector.load %arg3[%c0_5, %c0_6] : memref<1x4xf32, #tpu.memory_space<vmem>>, vector<1x4xf32>
    %7 = vector.broadcast %6 : vector<1x4xf32> to vector<8x4xf32>
    %8 = arith.addf %5, %7 : vector<8x4xf32>
    %cst_7 = arith.constant 0.000000e+00 : f32
    %9 = vector.broadcast %cst_7 : f32 to vector<8x4xf32>
    %10 = arith.maximumf %8, %9 : vector<8x4xf32>
    %c0_8 = arith.constant 0 : index
    %c0_9 = arith.constant 0 : index
    %11 = vector.load %arg4[%c0_8, %c0_9] : memref<2x8xf32, #tpu.memory_space<vmem>>, vector<2x8xf32>
    %cst_10 = arith.constant dense<0.000000e+00> : vector<2x4xf32>
    %12 = tpu.matmul %11, %10, %cst_10 {dimension_numbers = #tpu.dot_dimension_numbers<[1], [0], [0], [1], [0, 0, 1, 1], [], []>} : vector<2x8xf32>, vector<8x4xf32>, vector<2x4xf32> -> vector<2x4xf32>
    %cst_11 = arith.constant 0.000000e+00 : f32
    %13 = vector.broadcast %cst_11 : f32 to vector<2x4xf32>
    %14 = arith.maximumf %12, %13 : vector<2x4xf32>
    %c0_12 = arith.constant 0 : index
    %c0_13 = arith.constant 0 : index
    %15 = vector.load %arg5[%c0_12, %c0_13] : memref<2x4xf32, #tpu.memory_space<vmem>>, vector<2x4xf32>
    %c0_14 = arith.constant 0 : index
    %c0_15 = arith.constant 0 : index
    %16 = vector.load %arg6[%c0_14, %c0_15] : memref<4x2xf32, #tpu.memory_space<vmem>>, vector<4x2xf32>
    %cst_16 = arith.constant dense<0.000000e+00> : vector<2x2xf32>
    %17 = tpu.matmul %15, %16, %cst_16 {dimension_numbers = #tpu.dot_dimension_numbers<[1], [0], [0], [1], [0, 0, 1, 1], [], []>} : vector<2x4xf32>, vector<4x2xf32>, vector<2x2xf32> -> vector<2x2xf32>
    %c0_17 = arith.constant 0 : index
    %c0_18 = arith.constant 0 : index
    %18 = vector.load %arg7[%c0_17, %c0_18] : memref<4x2xf32, #tpu.memory_space<vmem>>, vector<4x2xf32>
    %cst_19 = arith.constant dense<0.000000e+00> : vector<2x2xf32>
    %19 = tpu.matmul %14, %18, %cst_19 {dimension_numbers = #tpu.dot_dimension_numbers<[1], [0], [0], [1], [0, 0, 1, 1], [], []>} : vector<2x4xf32>, vector<4x2xf32>, vector<2x2xf32> -> vector<2x2xf32>
    %20 = arith.addf %17, %19 : vector<2x2xf32>
    %c0_20 = arith.constant 0 : index
    %c0_21 = arith.constant 0 : index
    %21 = vector.load %arg8[%c0_20, %c0_21] : memref<1x2xf32, #tpu.memory_space<vmem>>, vector<1x2xf32>
    %22 = vector.broadcast %21 : vector<1x2xf32> to vector<2x2xf32>
    %23 = arith.addf %20, %22 : vector<2x2xf32>
    %c0_22 = arith.constant 0 : index
    %c0_23 = arith.constant 0 : index
    %24 = vector.load %arg9[%c0_22, %c0_23] : memref<2x2xf32, #tpu.memory_space<vmem>>, vector<2x2xf32>
    tpu.vector_store %arg9[%c0_22, %c0_23], %23 {strides = array<i32>} : memref<2x2xf32, #tpu.memory_space<vmem>>, vector<2x2xf32>,
    return
  }
}

</mosaic_0001>

<bundles_post_ra>
// kernel: dbpnet_forward.18
= control target key start
LH: loop header
LB: loop body
LE: loop exit
PB: predicated region body
PF: predicated region fallthrough
CT: control target
= control target key end

     0   :  { %s1375_s15 = smov 0   ;;  %s1377_s16 = smov 0   ;;  %s1562_s0 = inlined_call_operand.vmem [shape: bf16[512,128], index: 0, kind: input, shape index: {}]   ;;  %s1563_s1 = inlined_call_operand.vmem [shape: bf16[128,128], index: 1, kind: input, shape index: {}]   ;;  %s1564_s2 = inlined_call_operand.vmem [shape: f32[1,128], index: 2, kind: input, shape index: {}]   ;;  %s1565_s3 = inlined_call_operand.vmem [shape: f32[1,128], index: 3, kind: input, shape index: {}]   ;;  %s1566_s4 = inlined_call_operand.vmem [shape: f32[512,128], index: 4, kind: output, shape index: {}]  }
   0x1   :  { %s1379_s17 = smov 0  }
   0x2 LB: > { %s33_s18 = sadd.s32 1, %s1344_s16  ;;  %p1093_p0 = scmp.ge.s32.totalorder %s1348_s17, 1  ;;  %s1348_s17 = sphi %s1379_s17, %s14_s17   ;;  %s1344_s16 = sphi %s1377_s16, %s1568_s16   ;;  %s1340_s15 = sphi %s1375_s15, %s1567_s15  }
   0x3   : > { %p35_p1 = scmp.ge.s32.totalorder %s33_s18, 2  ;;  %p221_p2 = scmp.lt.s32.totalorder %s1348_s17, 3 }
   0x5   : > { %s1570_s18 = smov (%p35_p1, %s33_s18), 0  ;;  %p222_p3 = pnand %p1093_p0, %p221_p2 }
   0x6   : > { %v1238_v0 = vld [vmem:[%s1563_s1] sm:$0xff] (!%p222_p3)   ;;  %s1094_s21 = sshll.u32 (!%p222_p3), %s1340_s15, 5  ;;  %v1239_v1 = vld [vmem:[%s1563_s1 + $0x8] sm:$0xff] (!%p222_p3)   ;;  %v1240_v2 = vld [vmem:[%s1563_s1 + $0x10] sm:$0xff] (!%p222_p3)  }
   0x7   : > { %225 = sbr.rel (%p222_p3) target bundleno = 301 (0x12d), region = 36  ;;  %p268_p4 = scmp.lt.s32.totalorder (!%p222_p3), %s1094_s21, 63  ;;  %1150 = vmatprep.subr.bf16.mxu0 (!%p222_p3), %v1238_v0  ;;  %1198 = vmatprep.subr.bf16.mxu1 (!%p222_p3), %v1238_v0  ;;  %v1241_v3 = vld [vmem:[%s1563_s1 + $0x18] sm:$0xff] (!%p222_p3)   ;;  %v1242_v6 = vld [vmem:[%s1563_s1 + $0x20] sm:$0xff] (!%p222_p3)   ;;  %v1243_v7 = vld [vmem:[%s1563_s1 + $0x28] sm:$0xff] (!%p222_p3)  }
   0x8   : > { %1151 = vmatpush3.bf16.msra.mxu0 (!%p222_p3), %v1238_v0  ;;  %1206 = vmatpush3.bf16.msra.mxu1 (!%p222_p3), %v1238_v0  ;;  %v1244_v8 = vld [vmem:[%s1563_s1 + $0x30] sm:$0xff] (!%p222_p3)   ;;  %v1245_v9 = vld [vmem:[%s1563_s1 + $0x38] sm:$0xff] (!%p222_p3)   ;;  %v1444_v24 = vld [vmem:[%s1564_s2] ss:$0 sm:$0xff] (!%p222_p3) }
   0x9   : > { %1152 = vmatprep.subr.bf16.mxu0 (!%p222_p3), %v1239_v1  ;;  %1199 = vmatprep.subr.bf16.mxu1 (!%p222_p3), %v1239_v1  ;;  %v1449_v26 = vld [vmem:[%s1565_s3] ss:$0 sm:$0xff] (!%p222_p3) }
   0xc   : > { %1153 = vmatpush3.bf16.msra.mxu0 (!%p222_p3), %v1239_v1  ;;  %1207 = vmatpush3.bf16.msra.mxu1 (!%p222_p3), %v1239_v1 }
   0xd   : > { %1154 = vmatprep.subr.bf16.mxu0 (!%p222_p3), %v1240_v2  ;;  %1200 = vmatprep.subr.bf16.mxu1 (!%p222_p3), %v1240_v2 }
   0xe   : > { %s1572_s21 = smov (!%p268_p4, %s1094_s21), 63 }
   0xf   : > { %s1095_s26 = sshll.u32 %s1572_s21, 2  ;;  %s1097_s22 = sshll.u32 %s1572_s21, 3 }
  0x10   : > { %s1408_s29 = scalar_lea.vmem %s1562_s0, %s1095_s26  ;;  %1155 = vmatpush3.bf16.msra.mxu0 %v1240_v2  ;;  %1208 = vmatpush3.bf16.msra.mxu1 %v1240_v2  ;;  %s1481_s24 = scalar_lea.vmem %s1566_s4, %s1097_s22 }
  0x11   : > { %v1246_v4 = vld [vmem:[%s1408_s29] sm:$0xff]   ;;  %1156 = vmatprep.subr.bf16.mxu0 %v1241_v3  ;;  %1201 = vmatprep.subr.bf16.mxu1 %v1241_v3  ;;  %v1248_v10 = vld [vmem:[%s1408_s29 + $0x8] sm:$0xff]   ;;  %v1250_v12 = vld [vmem:[%s1408_s29 + $0x10] sm:$0xff]  }
  0x12   : > { %v1247_v5 = vld [vmem:[%s1408_s29 + $0x40] sm:$0xff]   ;;  %1166 = vmatprep.mubr.bf16.mxu0 %v1246_v4  ;;  %v1249_v11 = vld [vmem:[%s1408_s29 + $0x48] sm:$0xff]   ;;  %v1251_v13 = vld [vmem:[%s1408_s29 + $0x50] sm:$0xff]  }
  0x13   : > { %1182 = vmatprep.mubr.bf16.mxu1 %v1247_v5  ;;  %v1252_v14 = vld [vmem:[%s1408_s29 + $0x18] sm:$0xff]   ;;  %v1254_v16 = vld [vmem:[%s1408_s29 + $0x20] sm:$0xff]   ;;  %v1256_v18 = vld [vmem:[%s1408_s29 + $0x28] sm:$0xff]  }
  0x14   : > { %1157 = vmatpush3.bf16.msra.mxu0 %v1241_v3  ;;  %1209 = vmatpush3.bf16.msra.mxu1 %v1241_v3  ;;  %v1253_v15 = vld [vmem:[%s1408_s29 + $0x58] sm:$0xff]   ;;  %v1255_v17 = vld [vmem:[%s1408_s29 + $0x60] sm:$0xff]   ;;  %v1257_v19 = vld [vmem:[%s1408_s29 + $0x68] sm:$0xff]  }
  0x15   : > { %1158 = vmatprep.subr.bf16.mxu0 %v1242_v6  ;;  %1202 = vmatprep.subr.bf16.mxu1 %v1242_v6  ;;  %v1258_v20 = vld [vmem:[%s1408_s29 + $0x30] sm:$0xff]   ;;  %v1260_v22 = vld [vmem:[%s1408_s29 + $0x38] sm:$0xff]  }
  0x16   : > { %v1259_v21 = vld [vmem:[%s1408_s29 + $0x70] sm:$0xff]   ;;  %v1261_v23 = vld [vmem:[%s1408_s29 + $0x78] sm:$0xff]  }
  0x18   : > { %1159 = vmatpush3.bf16.msra.mxu0 %v1242_v6  ;;  %1210 = vmatpush3.bf16.msra.mxu1 %v1242_v6 }
  0x19   : > { %1160 = vmatprep.subr.bf16.mxu0 %v1243_v7  ;;  %1203 = vmatprep.subr.bf16.mxu1 %v1243_v7 }
  0x1c   : > { %1161 = vmatpush3.bf16.msra.mxu0 %v1243_v7  ;;  %1211 = vmatpush3.bf16.msra.mxu1 %v1243_v7 }
  0x1d   : > { %1162 = vmatprep.subr.bf16.mxu0 %v1244_v8  ;;  %1204 = vmatprep.subr.bf16.mxu1 %v1244_v8 }
  0x20   : > { %1163 = vmatpush3.bf16.msra.mxu0 %v1244_v8  ;;  %1212 = vmatpush3.bf16.msra.mxu1 %v1244_v8 }
  0x21   : > { %1164 = vmatprep.subr.bf16.mxu0 %v1245_v9  ;;  %1205 = vmatprep.subr.bf16.mxu1 %v1245_v9 }
  0x24   : > { %1165 = vmatpush3.bf16.msra.mxu0 %v1245_v9  ;;  %1213 = vmatpush3.bf16.msra.mxu1 %v1245_v9 }
  0x27   : > { %1167 = vmatmul.mubr.bf16.vlgmr.msra.gmra.mrb[0].mxu0 %v1248_v10  ;;  %1183 = vmatmul.mubr.bf16.vlgmr.msra.gmra.mrb[0].mxu1 %v1249_v11 }
  0x28   : > { %1170 = vmatprep.mubr.bf16.mxu0 %v1250_v12  ;;  %1186 = vmatprep.mubr.bf16.mxu1 %v1251_v13 }
  0x2f   : > { %1171 = vmatmul.mubr.bf16.gmra.mrb[4].mxu0 %v1252_v14  ;;  %1187 = vmatmul.mubr.bf16.gmra.mrb[4].mxu1 %v1253_v15 }
  0x30   : > { %1174 = vmatprep.mubr.bf16.mxu0 %v1254_v16  ;;  %1190 = vmatprep.mubr.bf16.mxu1 %v1255_v17 }
  0x37   : > { %1175 = vmatmul.mubr.bf16.gmra.mrb[8].mxu0 %v1256_v18  ;;  %1191 = vmatmul.mubr.bf16.gmra.mrb[8].mxu1 %v1257_v19 }
  0x38   : > { %1178 = vmatprep.mubr.bf16.mxu0 %v1258_v20  ;;  %1194 = vmatprep.mubr.bf16.mxu1 %v1259_v21 }
  0x3f   : > { %1179 = vmatmul.mubr.bf16.gmra.mrb[12].mxu0 %v1260_v22  ;;  %1195 = vmatmul.mubr.bf16.gmra.mrb[12].mxu1 %v1261_v23 }
  0xfa   : > { %v1168_v25 = vpop.f32.mrb[0].mxu0  ;;  %v1184_v27 = vpop.f32.mrb[0].mxu1 }
  0xfb   : > { %v830_v28 = vmul.f32 %v1168_v25, %v1444_v24  ;;  %v846_v29 = vmul.f32 %v1184_v27, %v1444_v24  ;;  %v595_v30 = vpop.f32.mrb[1].mxu0  ;;  %v659_v31 = vpop.f32.mrb[1].mxu1 }
  0xfc   : > { %v828_v32 = vmul.f32 %v1444_v24, %v595_v30  ;;  %v844_v33 = vmul.f32 %v1444_v24, %v659_v31  ;;  %v1169_v34 = vpop.f32.mrb[2].mxu0  ;;  %v1185_v35 = vpop.f32.mrb[2].mxu1 }
  0xfd   : > { %v869_v36 = vadd.f32 %v1449_v26, %v830_v28  ;;  %v885_v37 = vadd.f32 %v1449_v26, %v846_v29  ;;  %v831_v38 = vmul.f32 %v1169_v34, %v1444_v24  ;;  %v847_v39 = vmul.f32 %v1185_v35, %v1444_v24  ;;  %v598_v40 = vpop.f32.mrb[3].mxu0  ;;  %v662_v41 = vpop.f32.mrb[3].mxu1 }
  0xfe   : > { %v867_v42 = vadd.f32 %v1449_v26, %v828_v32  ;;  %v883_v43 = vadd.f32 %v1449_v26, %v844_v33  ;;  %v829_v44 = vmul.f32 %v1444_v24, %v598_v40  ;;  %v845_v45 = vmul.f32 %v1444_v24, %v662_v41 }
  0xff   : > { %1262 = vtanh.f32 %v869_v36  ;;  %v870_v46 = vadd.f32 %v1449_v26, %v831_v38  ;;  %v886_v47 = vadd.f32 %v1449_v26, %v847_v39 }
 0x100   : > { %1264 = vtanh.f32 %v885_v37  ;;  %v868_v48 = vadd.f32 %v1449_v26, %v829_v44  ;;  %v884_v49 = vadd.f32 %v1449_v26, %v845_v45 }
 0x101   : > { %1266 = vtanh.f32 %v867_v42 }
 0x102   : > { %1268 = vtanh.f32 %v883_v43  ;;  %v1172_v50 = vpop.f32.mrb[4].mxu0  ;;  %v1188_v51 = vpop.f32.mrb[4].mxu1 }
 0x103   : > { %1270 = vtanh.f32 %v870_v46  ;;  %v834_v52 = vmul.f32 %v1172_v50, %v1444_v24  ;;  %v850_v53 = vmul.f32 %v1188_v51, %v1444_v24  ;;  %v611_v54 = vpop.f32.mrb[5].mxu0  ;;  %v675_v55 = vpop.f32.mrb[5].mxu1 }
 0x104   : > { %1272 = vtanh.f32 %v886_v47  ;;  %v832_v56 = vmul.f32 %v1444_v24, %v611_v54  ;;  %v848_v57 = vmul.f32 %v1444_v24, %v675_v55  ;;  %v1173_v58 = vpop.f32.mrb[6].mxu0  ;;  %v1189_v59 = vpop.f32.mrb[6].mxu1 }
 0x105   : > { %1274 = vtanh.f32 %v868_v48  ;;  %v873_v60 = vadd.f32 %v1449_v26, %v834_v52  ;;  %v889_v61 = vadd.f32 %v1449_v26, %v850_v53  ;;  %v835_v62 = vmul.f32 %v1173_v58, %v1444_v24  ;;  %v614_v63 = vpop.f32.mrb[7].mxu0  ;;  %v678_v0 = vpop.f32.mrb[7].mxu1 }
 0x106   : > { %1276 = vtanh.f32 %v884_v49  ;;  %v871_v1 = vadd.f32 %v1449_v26, %v832_v56  ;;  %v887_v2 = vadd.f32 %v1449_v26, %v848_v57  ;;  %v851_v3 = vmul.f32 %v1189_v59, %v1444_v24 }
 0x107   : > { %1278 = vtanh.f32 %v873_v60  ;;  %v874_v4 = vadd.f32 %v1449_v26, %v835_v62  ;;  %v833_v5 = vmul.f32 %v1444_v24, %v614_v63  ;;  %v849_v6 = vmul.f32 %v1444_v24, %v678_v0 }
 0x108   : > { %1280 = vtanh.f32 %v889_v61  ;;  %v890_v7 = vadd.f32 %v1449_v26, %v851_v3 }
 0x109   : > { %v1263_v8 = vpop.eup %1262  ;;  %1282 = vtanh.f32 %v871_v1  ;;  %v872_v9 = vadd.f32 %v1449_v26, %v833_v5  ;;  %v888_v11 = vadd.f32 %v1449_v26, %v849_v6 }
 0x10a   : > { %v1265_v10 = vpop.eup %1264  ;;  %933 = vst [vmem:[%s1481_s24 + $0x10] sm:$0xff] %v1263_v8  ;;  %1284 = vtanh.f32 %v887_v2  ;;  %v1176_v12 = vpop.f32.mrb[8].mxu0 }
 0x10b   : > { %v1192_v13 = vpop.f32.mrb[8].mxu1  ;;  %v1267_v14 = vpop.eup %1266  ;;  %949 = vst [vmem:[%s1481_s24 + $0x90] sm:$0xff] %v1265_v10  ;;  %1286 = vtanh.f32 %v874_v4  ;;  %v838_v15 = vmul.f32 %v1176_v12, %v1444_v24 }
 0x10c   : > { %v854_v16 = vmul.f32 %v1192_v13, %v1444_v24  ;;  %v627_v17 = vpop.f32.mrb[9].mxu0  ;;  %v691_v18 = vpop.f32.mrb[9].mxu1  ;;  %931 = vst [vmem:[%s1481_s24] sm:$0xff] %v1267_v14  ;;  %1288 = vtanh.f32 %v890_v7 }
 0x10d   : > { %v1269_v19 = vpop.eup %1268  ;;  %v836_v20 = vmul.f32 %v1444_v24, %v627_v17  ;;  %v852_v21 = vmul.f32 %v1444_v24, %v691_v18  ;;  %v1177_v22 = vpop.f32.mrb[10].mxu0  ;;  %1290 = vtanh.f32 %v872_v9  ;;  %v877_v27 = vadd.f32 %v1449_v26, %v838_v15 }
 0x10e   : > { %v1193_v23 = vpop.f32.mrb[10].mxu1  ;;  %v1271_v25 = vpop.eup %1270  ;;  %947 = vst [vmem:[%s1481_s24 + $0x80] sm:$0xff] %v1269_v19  ;;  %v893_v28 = vadd.f32 %v1449_v26, %v854_v16  ;;  %v839_v29 = vmul.f32 %v1177_v22, %v1444_v24  ;;  %1292 = vtanh.f32 %v888_v11 }
 0x10f   : > { %v630_v30 = vpop.f32.mrb[11].mxu0  ;;  %v694_v31 = vpop.f32.mrb[11].mxu1  ;;  %934 = vst [vmem:[%s1481_s24 + $0x18] sm:$0xff] %v1271_v25  ;;  %v875_v33 = vadd.f32 %v1449_v26, %v836_v20  ;;  %v891_v34 = vadd.f32 %v1449_v26, %v852_v21  ;;  %v855_v35 = vmul.f32 %v1193_v23, %v1444_v24  ;;  %1294 = vtanh.f32 %v877_v27 }
 0x110   : > { %v1273_v32 = vpop.eup %1272  ;;  %v878_v37 = vadd.f32 %v1449_v26, %v839_v29  ;;  %v837_v38 = vmul.f32 %v1444_v24, %v630_v30  ;;  %v853_v39 = vmul.f32 %v1444_v24, %v694_v31  ;;  %1296 = vtanh.f32 %v893_v28 }
 0x111   : > { %v1275_v36 = vpop.eup %1274  ;;  %950 = vst [vmem:[%s1481_s24 + $0x98] sm:$0xff] %v1273_v32  ;;  %v894_v41 = vadd.f32 %v1449_v26, %v855_v35  ;;  %1298 = vtanh.f32 %v875_v33 }
 0x112   : > { %v1277_v40 = vpop.eup %1276  ;;  %932 = vst [vmem:[%s1481_s24 + $0x8] sm:$0xff] %v1275_v36  ;;  %v876_v43 = vadd.f32 %v1449_v26, %v837_v38  ;;  %1300 = vtanh.f32 %v891_v34  ;;  %v892_v45 = vadd.f32 %v1449_v26, %v853_v39  ;;  %v1180_v46 = vpop.f32.mrb[12].mxu0 }
 0x113   : > { %v1279_v42 = vpop.eup %1278  ;;  %948 = vst [vmem:[%s1481_s24 + $0x88] sm:$0xff] %v1277_v40  ;;  %v1196_v47 = vpop.f32.mrb[12].mxu1  ;;  %1302 = vtanh.f32 %v878_v37  ;;  %v842_v49 = vmul.f32 %v1180_v46, %v1444_v24 }
 0x114   : > { %v1281_v44 = vpop.eup %1280  ;;  %937 = vst [vmem:[%s1481_s24 + $0x30] sm:$0xff] %v1279_v42  ;;  %v858_v50 = vmul.f32 %v1196_v47, %v1444_v24  ;;  %v643_v51 = vpop.f32.mrb[13].mxu0  ;;  %1304 = vtanh.f32 %v894_v41 }
 0x115   : > { %v1283_v48 = vpop.eup %1282  ;;  %953 = vst [vmem:[%s1481_s24 + $0xb0] sm:$0xff] %v1281_v44  ;;  %v707_v52 = vpop.f32.mrb[13].mxu1  ;;  %v840_v54 = vmul.f32 %v1444_v24, %v643_v51  ;;  %1306 = vtanh.f32 %v876_v43  ;;  %v881_v59 = vadd.f32 %v1449_v26, %v842_v49 }
 0x116   : > { %v1285_v53 = vpop.eup %1284  ;;  %935 = vst [vmem:[%s1481_s24 + $0x20] sm:$0xff] %v1283_v48  ;;  %v856_v55 = vmul.f32 %v1444_v24, %v707_v52  ;;  %v1181_v56 = vpop.f32.mrb[14].mxu0  ;;  %v897_v60 = vadd.f32 %v1449_v26, %v858_v50  ;;  %1308 = vtanh.f32 %v892_v45 }
 0x117   : > { %v1197_v57 = vpop.f32.mrb[14].mxu1  ;;  %v1287_v58 = vpop.eup %1286  ;;  %951 = vst [vmem:[%s1481_s24 + $0xa0] sm:$0xff] %v1285_v53  ;;  %v843_v61 = vmul.f32 %v1181_v56, %v1444_v24  ;;  %v879_v1 = vadd.f32 %v1449_v26, %v840_v54  ;;  %1310 = vtanh.f32 %v881_v59 }
 0x118   : > { %v646_v62 = vpop.f32.mrb[15].mxu0  ;;  %v710_v63 = vpop.f32.mrb[15].mxu1  ;;  %938 = vst [vmem:[%s1481_s24 + $0x38] sm:$0xff] %v1287_v58  ;;  %v895_v2 = vadd.f32 %v1449_v26, %v856_v55  ;;  %v859_v3 = vmul.f32 %v1197_v57, %v1444_v24  ;;  %1312 = vtanh.f32 %v897_v60 }
 0x119   : > { %v1289_v0 = vpop.eup %1288  ;;  %v882_v5 = vadd.f32 %v1449_v26, %v843_v61  ;;  %v841_v6 = vmul.f32 %v1444_v24, %v646_v62  ;;  %v857_v7 = vmul.f32 %v1444_v24, %v710_v63  ;;  %1314 = vtanh.f32 %v879_v1 }
 0x11a   : > { %v1291_v4 = vpop.eup %1290  ;;  %954 = vst [vmem:[%s1481_s24 + $0xb8] sm:$0xff] %v1289_v0  ;;  %v898_v9 = vadd.f32 %v1449_v26, %v859_v3  ;;  %1316 = vtanh.f32 %v895_v2 }
 0x11b   : > { %v1293_v8 = vpop.eup %1292  ;;  %936 = vst [vmem:[%s1481_s24 + $0x28] sm:$0xff] %v1291_v4  ;;  %v880_v11 = vadd.f32 %v1449_v26, %v841_v6  ;;  %v896_v13 = vadd.f32 %v1449_v26, %v857_v7  ;;  %1318 = vtanh.f32 %v882_v5 }
 0x11c   : > { %v1295_v10 = vpop.eup %1294  ;;  %952 = vst [vmem:[%s1481_s24 + $0xa8] sm:$0xff] %v1293_v8  ;;  %1320 = vtanh.f32 %v898_v9 }
 0x11d   : > { %v1297_v12 = vpop.eup %1296  ;;  %941 = vst [vmem:[%s1481_s24 + $0x50] sm:$0xff] %v1295_v10  ;;  %1322 = vtanh.f32 %v880_v11 }
 0x11e   : > { %v1299_v24 = vpop.eup %1298  ;;  %957 = vst [vmem:[%s1481_s24 + $0xd0] sm:$0xff] %v1297_v12  ;;  %1324 = vtanh.f32 %v896_v13 }
 0x11f   : > { %v1301_v14 = vpop.eup %1300  ;;  %939 = vst [vmem:[%s1481_s24 + $0x40] sm:$0xff] %v1299_v24 }
 0x120   : > { %v1303_v15 = vpop.eup %1302  ;;  %955 = vst [vmem:[%s1481_s24 + $0xc0] sm:$0xff] %v1301_v14 }
 0x121   : > { %v1305_v16 = vpop.eup %1304  ;;  %942 = vst [vmem:[%s1481_s24 + $0x58] sm:$0xff] %v1303_v15 }
 0x122   : > { %v1307_v26 = vpop.eup %1306  ;;  %958 = vst [vmem:[%s1481_s24 + $0xd8] sm:$0xff] %v1305_v16 }
 0x123   : > { %v1309_v17 = vpop.eup %1308  ;;  %940 = vst [vmem:[%s1481_s24 + $0x48] sm:$0xff] %v1307_v26 }
 0x124   : > { %v1311_v18 = vpop.eup %1310  ;;  %956 = vst [vmem:[%s1481_s24 + $0xc8] sm:$0xff] %v1309_v17 }
 0x125   : > { %v1313_v19 = vpop.eup %1312  ;;  %945 = vst [vmem:[%s1481_s24 + $0x70] sm:$0xff] %v1311_v18 }
 0x126   : > { %v1315_v20 = vpop.eup %1314  ;;  %961 = vst [vmem:[%s1481_s24 + $0xf0] sm:$0xff] %v1313_v19 }
 0x127   : > { %v1317_v21 = vpop.eup %1316  ;;  %943 = vst [vmem:[%s1481_s24 + $0x60] sm:$0xff] %v1315_v20 }
 0x128   : > { %v1319_v22 = vpop.eup %1318  ;;  %959 = vst [vmem:[%s1481_s24 + $0xe0] sm:$0xff] %v1317_v21 }
 0x129   : > { %v1321_v23 = vpop.eup %1320  ;;  %946 = vst [vmem:[%s1481_s24 + $0x78] sm:$0xff] %v1319_v22 }
 0x12a   : > { %v1323_v25 = vpop.eup %1322  ;;  %962 = vst [vmem:[%s1481_s24 + $0xf8] sm:$0xff] %v1321_v23 }
 0x12b   : > { %v1325_v27 = vpop.eup %1324  ;;  %944 = vst [vmem:[%s1481_s24 + $0x68] sm:$0xff] %v1323_v25 }
 0x12c   : > { %960 = vst [vmem:[%s1481_s24 + $0xe8] sm:$0xff] %v1325_v27 }
 0x12d PF: > { %s14_s17 = sadd.s32 1, %s1348_s17   ;;  %s1567_s15 = smov %s1344_s16 }
 0x12e   : > { %p11_p5 = scmp.ge.s32.totalorder %s14_s17, 4   ;;  %s1568_s16 = smov %s1570_s18 }
 0x130   :  { %13 = sbr.rel (!%p11_p5) target bundleno = 2 (0x2), region = 83 }

// kernel: dbpnet_forward.20
= control target key start
LH: loop header
LB: loop body
LE: loop exit
PB: predicated region body
PF: predicated region fallthrough
CT: control target
= control target key end

     0   :  { %s655_s1 = inlined_call_operand.vmem [shape: bf16[128,128], index: 1, kind: input, shape index: {}]   ;;  %s656_s0 = inlined_call_operand.vmem [shape: bf16[128,128], index: 0, kind: input, shape index: {}]   ;;  %s657_s2 = inlined_call_operand.vmem [shape: f32[1,128], index: 2, kind: input, shape index: {}]   ;;  %s658_s3 = inlined_call_operand.vmem [shape: f32[1,128], index: 3, kind: input, shape index: {}]   ;;  %s659_s4 = inlined_call_operand.vmem [shape: f32[128,128], index: 4, kind: output, shape index: {}]  }
   0x1   :  { %v494_v0 = vld [vmem:[%s655_s1] sm:$0xff]   ;;  %v495_v1 = vld [vmem:[%s655_s1 + $0x8] sm:$0xff]   ;;  %v496_v2 = vld [vmem:[%s655_s1 + $0x10] sm:$0xff]  }
   0x2   :  { %446 = vmatprep.subr.bf16.mxu0 %v494_v0  ;;  %478 = vmatprep.subr.bf16.mxu1 %v494_v0  ;;  %v497_v3 = vld [vmem:[%s655_s1 + $0x18] sm:$0xff]   ;;  %v502_v4 = vld [vmem:[%s656_s0] sm:$0xff]   ;;  %v499_v7 = vld [vmem:[%s655_s1 + $0x28] sm:$0xff]  }
   0x3   :  { %447 = vmatpush3.bf16.msra.mxu0 %v494_v0  ;;  %486 = vmatpush3.bf16.msra.mxu1 %v494_v0  ;;  %v503_v5 = vld [vmem:[%s656_s0 + $0x20] sm:$0xff]   ;;  %v500_v8 = vld [vmem:[%s655_s1 + $0x30] sm:$0xff]   ;;  %v501_v9 = vld [vmem:[%s655_s1 + $0x38] sm:$0xff]  }
   0x4   :  { %448 = vmatprep.subr.bf16.mxu0 %v495_v1  ;;  %479 = vmatprep.subr.bf16.mxu1 %v495_v1  ;;  %v498_v6 = vld [vmem:[%s655_s1 + $0x20] sm:$0xff]   ;;  %v504_v10 = vld [vmem:[%s656_s0 + $0x8] sm:$0xff]   ;;  %v506_v12 = vld [vmem:[%s656_s0 + $0x10] sm:$0xff]  }
   0x5   :  { %462 = vmatprep.mubr.bf16.mxu0 %v502_v4  ;;  %470 = vmatprep.mubr.bf16.mxu1 %v503_v5  ;;  %v505_v11 = vld [vmem:[%s656_s0 + $0x28] sm:$0xff]   ;;  %v507_v13 = vld [vmem:[%s656_s0 + $0x30] sm:$0xff]   ;;  %v508_v14 = vld [vmem:[%s656_s0 + $0x18] sm:$0xff]  }
   0x6   :  { %v509_v15 = vld [vmem:[%s656_s0 + $0x38] sm:$0xff]   ;;  %v428_v16 = vld [vmem:[%s657_s2] ss:$0 sm:$0xff] }
   0x7   :  { %449 = vmatpush3.bf16.msra.mxu0 %v495_v1  ;;  %487 = vmatpush3.bf16.msra.mxu1 %v495_v1  ;;  %v589_v18 = vld [vmem:[%s658_s3] ss:$0 sm:$0xff] }
   0x8   :  { %450 = vmatprep.subr.bf16.mxu0 %v496_v2  ;;  %480 = vmatprep.subr.bf16.mxu1 %v496_v2 }
   0xb   :  { %451 = vmatpush3.bf16.msra.mxu0 %v496_v2  ;;  %488 = vmatpush3.bf16.msra.mxu1 %v496_v2 }
   0xc   :  { %452 = vmatprep.subr.bf16.mxu0 %v497_v3  ;;  %481 = vmatprep.subr.bf16.mxu1 %v497_v3 }
   0xf   :  { %453 = vmatpush3.bf16.msra.mxu0 %v497_v3  ;;  %489 = vmatpush3.bf16.msra.mxu1 %v497_v3 }
  0x10   :  { %454 = vmatprep.subr.bf16.mxu0 %v498_v6  ;;  %482 = vmatprep.subr.bf16.mxu1 %v498_v6 }
  0x13   :  { %455 = vmatpush3.bf16.msra.mxu0 %v498_v6  ;;  %490 = vmatpush3.bf16.msra.mxu1 %v498_v6 }
  0x14   :  { %456 = vmatprep.subr.bf16.mxu0 %v499_v7  ;;  %483 = vmatprep.subr.bf16.mxu1 %v499_v7 }
  0x17   :  { %457 = vmatpush3.bf16.msra.mxu0 %v499_v7  ;;  %491 = vmatpush3.bf16.msra.mxu1 %v499_v7 }
  0x18   :  { %458 = vmatprep.subr.bf16.mxu0 %v500_v8  ;;  %484 = vmatprep.subr.bf16.mxu1 %v500_v8 }
  0x1b   :  { %459 = vmatpush3.bf16.msra.mxu0 %v500_v8  ;;  %492 = vmatpush3.bf16.msra.mxu1 %v500_v8 }
  0x1c   :  { %460 = vmatprep.subr.bf16.mxu0 %v501_v9  ;;  %485 = vmatprep.subr.bf16.mxu1 %v501_v9 }
  0x1f   :  { %461 = vmatpush3.bf16.msra.mxu0 %v501_v9  ;;  %493 = vmatpush3.bf16.msra.mxu1 %v501_v9 }
  0x22   :  { %463 = vmatmul.mubr.bf16.vlgmr.msra.gmra.mrb[0].mxu0 %v504_v10  ;;  %471 = vmatmul.mubr.bf16.vlgmr.msra.gmra.mrb[0].mxu1 %v505_v11 }
  0x23   :  { %466 = vmatprep.mubr.bf16.mxu0 %v506_v12  ;;  %474 = vmatprep.mubr.bf16.mxu1 %v507_v13 }
  0x2a   :  { %467 = vmatmul.mubr.bf16.gmra.mrb[4].mxu0 %v508_v14  ;;  %475 = vmatmul.mubr.bf16.gmra.mrb[4].mxu1 %v509_v15 }
  0xf5   :  { %v464_v17 = vpop.f32.mrb[0].mxu0  ;;  %v472_v19 = vpop.f32.mrb[0].mxu1 }
  0xf6   :  { %v339_v20 = vmul.f32 %v464_v17, %v428_v16  ;;  %v347_v21 = vmul.f32 %v472_v19, %v428_v16  ;;  %v216_v22 = vpop.f32.mrb[1].mxu0  ;;  %v248_v23 = vpop.f32.mrb[1].mxu1 }
  0xf7   :  { %v337_v24 = vmul.f32 %v428_v16, %v216_v22  ;;  %v345_v25 = vmul.f32 %v428_v16, %v248_v23  ;;  %v465_v26 = vpop.f32.mrb[2].mxu0  ;;  %v473_v27 = vpop.f32.mrb[2].mxu1 }
  0xf8   :  { %v362_v28 = vadd.f32 %v589_v18, %v339_v20  ;;  %v370_v29 = vadd.f32 %v589_v18, %v347_v21  ;;  %v340_v30 = vmul.f32 %v465_v26, %v428_v16  ;;  %v348_v31 = vmul.f32 %v473_v27, %v428_v16  ;;  %v219_v32 = vpop.f32.mrb[3].mxu0  ;;  %v251_v33 = vpop.f32.mrb[3].mxu1 }
  0xf9   :  { %v360_v34 = vadd.f32 %v589_v18, %v337_v24  ;;  %v368_v35 = vadd.f32 %v589_v18, %v345_v25  ;;  %v338_v36 = vmul.f32 %v428_v16, %v219_v32  ;;  %v346_v37 = vmul.f32 %v428_v16, %v251_v33 }
  0xfa   :  { %v378_v38 = vmax.f32 %v362_v28, 0.0  ;;  %v386_v39 = vmax.f32 %v370_v29, 0.0  ;;  %v363_v40 = vadd.f32 %v589_v18, %v340_v30  ;;  %v371_v41 = vadd.f32 %v589_v18, %v348_v31 }
  0xfb   :  { %v376_v42 = vmax.f32 %v360_v34, 0.0  ;;  %v384_v43 = vmax.f32 %v368_v35, 0.0  ;;  %v361_v44 = vadd.f32 %v589_v18, %v338_v36  ;;  %v369_v45 = vadd.f32 %v589_v18, %v346_v37 }
  0xfc   :  { %394 = vst [vmem:[%s659_s4 + $0x10] sm:$0xff] %v378_v38  ;;  %402 = vst [vmem:[%s659_s4 + $0x50] sm:$0xff] %v386_v39  ;;  %v379_v46 = vmax.f32 %v363_v40, 0.0  ;;  %v387_v47 = vmax.f32 %v371_v41, 0.0 }
  0xfd   :  { %392 = vst [vmem:[%s659_s4] sm:$0xff] %v376_v42  ;;  %400 = vst [vmem:[%s659_s4 + $0x40] sm:$0xff] %v384_v43  ;;  %v377_v48 = vmax.f32 %v361_v44, 0.0  ;;  %v385_v49 = vmax.f32 %v369_v45, 0.0  ;;  %v468_v50 = vpop.f32.mrb[4].mxu0  ;;  %v476_v51 = vpop.f32.mrb[4].mxu1 }
  0xfe   :  { %395 = vst [vmem:[%s659_s4 + $0x18] sm:$0xff] %v379_v46  ;;  %403 = vst [vmem:[%s659_s4 + $0x58] sm:$0xff] %v387_v47  ;;  %v343_v52 = vmul.f32 %v468_v50, %v428_v16  ;;  %v351_v53 = vmul.f32 %v476_v51, %v428_v16  ;;  %v232_v54 = vpop.f32.mrb[5].mxu0  ;;  %v264_v55 = vpop.f32.mrb[5].mxu1 }
  0xff   :  { %393 = vst [vmem:[%s659_s4 + $0x8] sm:$0xff] %v377_v48  ;;  %401 = vst [vmem:[%s659_s4 + $0x48] sm:$0xff] %v385_v49  ;;  %v341_v56 = vmul.f32 %v428_v16, %v232_v54  ;;  %v349_v57 = vmul.f32 %v428_v16, %v264_v55  ;;  %v469_v58 = vpop.f32.mrb[6].mxu0  ;;  %v477_v59 = vpop.f32.mrb[6].mxu1 }
 0x100   :  { %v366_v60 = vadd.f32 %v589_v18, %v343_v52  ;;  %v374_v61 = vadd.f32 %v589_v18, %v351_v53  ;;  %v344_v62 = vmul.f32 %v469_v58, %v428_v16  ;;  %v352_v63 = vmul.f32 %v477_v59, %v428_v16  ;;  %v235_v0 = vpop.f32.mrb[7].mxu0  ;;  %v267_v1 = vpop.f32.mrb[7].mxu1 }
 0x101   :  { %v364_v2 = vadd.f32 %v589_v18, %v341_v56  ;;  %v372_v3 = vadd.f32 %v589_v18, %v349_v57  ;;  %v342_v4 = vmul.f32 %v428_v16, %v235_v0  ;;  %v350_v5 = vmul.f32 %v428_v16, %v267_v1 }
 0x102   :  { %v382_v6 = vmax.f32 %v366_v60, 0.0  ;;  %v390_v7 = vmax.f32 %v374_v61, 0.0  ;;  %v367_v8 = vadd.f32 %v589_v18, %v344_v62  ;;  %v375_v9 = vadd.f32 %v589_v18, %v352_v63 }
 0x103   :  { %v380_v10 = vmax.f32 %v364_v2, 0.0  ;;  %v388_v11 = vmax.f32 %v372_v3, 0.0  ;;  %v365_v12 = vadd.f32 %v589_v18, %v342_v4  ;;  %v373_v13 = vadd.f32 %v589_v18, %v350_v5 }
 0x104   :  { %398 = vst [vmem:[%s659_s4 + $0x30] sm:$0xff] %v382_v6  ;;  %406 = vst [vmem:[%s659_s4 + $0x70] sm:$0xff] %v390_v7  ;;  %v383_v14 = vmax.f32 %v367_v8, 0.0  ;;  %v391_v15 = vmax.f32 %v375_v9, 0.0 }
 0x105   :  { %396 = vst [vmem:[%s659_s4 + $0x20] sm:$0xff] %v380_v10  ;;  %404 = vst [vmem:[%s659_s4 + $0x60] sm:$0xff] %v388_v11  ;;  %v381_v16 = vmax.f32 %v365_v12, 0.0  ;;  %v389_v17 = vmax.f32 %v373_v13, 0.0 }
 0x106   :  { %399 = vst [vmem:[%s659_s4 + $0x38] sm:$0xff] %v383_v14  ;;  %407 = vst [vmem:[%s659_s4 + $0x78] sm:$0xff] %v391_v15 }
 0x107   :  { %397 = vst [vmem:[%s659_s4 + $0x28] sm:$0xff] %v381_v16  ;;  %405 = vst [vmem:[%s659_s4 + $0x68] sm:$0xff] %v389_v17 }

// kernel: dbpnet_forward.19
= control target key start
LH: loop header
LB: loop body
LE: loop exit
PB: predicated region body
PF: predicated region fallthrough
CT: control target
= control target key end

     0   :  { %s621_s1 = inlined_call_operand.vmem [shape: bf16[128,128], index: 1, kind: input, shape index: {}]   ;;  %s622_s0 = inlined_call_operand.vmem [shape: bf16[128,128], index: 0, kind: input, shape index: {}]   ;;  %s623_s2 = inlined_call_operand.vmem [shape: f32[1,128], index: 2, kind: input, shape index: {}]   ;;  %s624_s3 = inlined_call_operand.vmem [shape: f32[1,128], index: 3, kind: input, shape index: {}]   ;;  %s625_s4 = inlined_call_operand.vmem [shape: f32[128,128], index: 4, kind: output, shape index: {}]  }
   0x1   :  { %v478_v0 = vld [vmem:[%s621_s1] sm:$0xff]   ;;  %v479_v1 = vld [vmem:[%s621_s1 + $0x8] sm:$0xff]   ;;  %v480_v2 = vld [vmem:[%s621_s1 + $0x10] sm:$0xff]  }
   0x2   :  { %430 = vmatprep.subr.bf16.mxu0 %v478_v0  ;;  %462 = vmatprep.subr.bf16.mxu1 %v478_v0  ;;  %v481_v3 = vld [vmem:[%s621_s1 + $0x18] sm:$0xff]   ;;  %v486_v4 = vld [vmem:[%s622_s0] sm:$0xff]   ;;  %v483_v7 = vld [vmem:[%s621_s1 + $0x28] sm:$0xff]  }
   0x3   :  { %431 = vmatpush3.bf16.msra.mxu0 %v478_v0  ;;  %470 = vmatpush3.bf16.msra.mxu1 %v478_v0  ;;  %v487_v5 = vld [vmem:[%s622_s0 + $0x20] sm:$0xff]   ;;  %v484_v8 = vld [vmem:[%s621_s1 + $0x30] sm:$0xff]   ;;  %v485_v9 = vld [vmem:[%s621_s1 + $0x38] sm:$0xff]  }
   0x4   :  { %432 = vmatprep.subr.bf16.mxu0 %v479_v1  ;;  %463 = vmatprep.subr.bf16.mxu1 %v479_v1  ;;  %v482_v6 = vld [vmem:[%s621_s1 + $0x20] sm:$0xff]   ;;  %v488_v10 = vld [vmem:[%s622_s0 + $0x8] sm:$0xff]   ;;  %v490_v12 = vld [vmem:[%s622_s0 + $0x10] sm:$0xff]  }
   0x5   :  { %446 = vmatprep.mubr.bf16.mxu0 %v486_v4  ;;  %454 = vmatprep.mubr.bf16.mxu1 %v487_v5  ;;  %v489_v11 = vld [vmem:[%s622_s0 + $0x28] sm:$0xff]   ;;  %v491_v13 = vld [vmem:[%s622_s0 + $0x30] sm:$0xff]   ;;  %v492_v14 = vld [vmem:[%s622_s0 + $0x18] sm:$0xff]  }
   0x6   :  { %v493_v15 = vld [vmem:[%s622_s0 + $0x38] sm:$0xff]   ;;  %v412_v16 = vld [vmem:[%s623_s2] ss:$0 sm:$0xff] }
   0x7   :  { %433 = vmatpush3.bf16.msra.mxu0 %v479_v1  ;;  %471 = vmatpush3.bf16.msra.mxu1 %v479_v1  ;;  %v413_v18 = vld [vmem:[%s624_s3] ss:$0 sm:$0xff] }
   0x8   :  { %434 = vmatprep.subr.bf16.mxu0 %v480_v2  ;;  %464 = vmatprep.subr.bf16.mxu1 %v480_v2 }
   0xb   :  { %435 = vmatpush3.bf16.msra.mxu0 %v480_v2  ;;  %472 = vmatpush3.bf16.msra.mxu1 %v480_v2 }
   0xc   :  { %436 = vmatprep.subr.bf16.mxu0 %v481_v3  ;;  %465 = vmatprep.subr.bf16.mxu1 %v481_v3 }
   0xf   :  { %437 = vmatpush3.bf16.msra.mxu0 %v481_v3  ;;  %473 = vmatpush3.bf16.msra.mxu1 %v481_v3 }
  0x10   :  { %438 = vmatprep.subr.bf16.mxu0 %v482_v6  ;;  %466 = vmatprep.subr.bf16.mxu1 %v482_v6 }
  0x13   :  { %439 = vmatpush3.bf16.msra.mxu0 %v482_v6  ;;  %474 = vmatpush3.bf16.msra.mxu1 %v482_v6 }
  0x14   :  { %440 = vmatprep.subr.bf16.mxu0 %v483_v7  ;;  %467 = vmatprep.subr.bf16.mxu1 %v483_v7 }
  0x17   :  { %441 = vmatpush3.bf16.msra.mxu0 %v483_v7  ;;  %475 = vmatpush3.bf16.msra.mxu1 %v483_v7 }
  0x18   :  { %442 = vmatprep.subr.bf16.mxu0 %v484_v8  ;;  %468 = vmatprep.subr.bf16.mxu1 %v484_v8 }
  0x1b   :  { %443 = vmatpush3.bf16.msra.mxu0 %v484_v8  ;;  %476 = vmatpush3.bf16.msra.mxu1 %v484_v8 }
  0x1c   :  { %444 = vmatprep.subr.bf16.mxu0 %v485_v9  ;;  %469 = vmatprep.subr.bf16.mxu1 %v485_v9 }
  0x1f   :  { %445 = vmatpush3.bf16.msra.mxu0 %v485_v9  ;;  %477 = vmatpush3.bf16.msra.mxu1 %v485_v9 }
  0x22   :  { %447 = vmatmul.mubr.bf16.vlgmr.msra.gmra.mrb[0].mxu0 %v488_v10  ;;  %455 = vmatmul.mubr.bf16.vlgmr.msra.gmra.mrb[0].mxu1 %v489_v11 }
  0x23   :  { %450 = vmatprep.mubr.bf16.mxu0 %v490_v12  ;;  %458 = vmatprep.mubr.bf16.mxu1 %v491_v13 }
  0x2a   :  { %451 = vmatmul.mubr.bf16.gmra.mrb[4].mxu0 %v492_v14  ;;  %459 = vmatmul.mubr.bf16.gmra.mrb[4].mxu1 %v493_v15 }
  0xf5   :  { %v448_v17 = vpop.f32.mrb[0].mxu0  ;;  %v456_v19 = vpop.f32.mrb[0].mxu1 }
  0xf6   :  { %v339_v20 = vmul.f32 %v448_v17, %v412_v16  ;;  %v347_v21 = vmul.f32 %v456_v19, %v412_v16  ;;  %v216_v22 = vpop.f32.mrb[1].mxu0  ;;  %v248_v23 = vpop.f32.mrb[1].mxu1 }
  0xf7   :  { %v337_v24 = vmul.f32 %v412_v16, %v216_v22  ;;  %v345_v25 = vmul.f32 %v412_v16, %v248_v23  ;;  %v449_v26 = vpop.f32.mrb[2].mxu0  ;;  %v457_v27 = vpop.f32.mrb[2].mxu1 }
  0xf8   :  { %v362_v28 = vadd.f32 %v413_v18, %v339_v20  ;;  %v370_v29 = vadd.f32 %v413_v18, %v347_v21  ;;  %v340_v30 = vmul.f32 %v449_v26, %v412_v16  ;;  %v348_v31 = vmul.f32 %v457_v27, %v412_v16  ;;  %v219_v32 = vpop.f32.mrb[3].mxu0  ;;  %v251_v33 = vpop.f32.mrb[3].mxu1 }
  0xf9   :  { %v360_v34 = vadd.f32 %v413_v18, %v337_v24  ;;  %v368_v35 = vadd.f32 %v413_v18, %v345_v25  ;;  %v338_v36 = vmul.f32 %v412_v16, %v219_v32  ;;  %v346_v37 = vmul.f32 %v412_v16, %v251_v33 }
  0xfa   :  { %378 = vst [vmem:[%s625_s4 + $0x10] sm:$0xff] %v362_v28  ;;  %386 = vst [vmem:[%s625_s4 + $0x50] sm:$0xff] %v370_v29  ;;  %v363_v38 = vadd.f32 %v413_v18, %v340_v30  ;;  %v371_v39 = vadd.f32 %v413_v18, %v348_v31 }
  0xfb   :  { %376 = vst [vmem:[%s625_s4] sm:$0xff] %v360_v34  ;;  %384 = vst [vmem:[%s625_s4 + $0x40] sm:$0xff] %v368_v35  ;;  %v361_v40 = vadd.f32 %v413_v18, %v338_v36  ;;  %v369_v41 = vadd.f32 %v413_v18, %v346_v37 }
  0xfc   :  { %379 = vst [vmem:[%s625_s4 + $0x18] sm:$0xff] %v363_v38  ;;  %387 = vst [vmem:[%s625_s4 + $0x58] sm:$0xff] %v371_v39 }
  0xfd   :  { %377 = vst [vmem:[%s625_s4 + $0x8] sm:$0xff] %v361_v40  ;;  %385 = vst [vmem:[%s625_s4 + $0x48] sm:$0xff] %v369_v41  ;;  %v452_v42 = vpop.f32.mrb[4].mxu0  ;;  %v460_v43 = vpop.f32.mrb[4].mxu1 }
  0xfe   :  { %v343_v44 = vmul.f32 %v452_v42, %v412_v16  ;;  %v351_v45 = vmul.f32 %v460_v43, %v412_v16  ;;  %v232_v46 = vpop.f32.mrb[5].mxu0  ;;  %v264_v47 = vpop.f32.mrb[5].mxu1 }
  0xff   :  { %v341_v48 = vmul.f32 %v412_v16, %v232_v46  ;;  %v349_v49 = vmul.f32 %v412_v16, %v264_v47  ;;  %v453_v50 = vpop.f32.mrb[6].mxu0  ;;  %v461_v51 = vpop.f32.mrb[6].mxu1 }
 0x100   :  { %v366_v52 = vadd.f32 %v413_v18, %v343_v44  ;;  %v374_v53 = vadd.f32 %v413_v18, %v351_v45  ;;  %v344_v54 = vmul.f32 %v453_v50, %v412_v16  ;;  %v352_v55 = vmul.f32 %v461_v51, %v412_v16  ;;  %v235_v56 = vpop.f32.mrb[7].mxu0  ;;  %v267_v57 = vpop.f32.mrb[7].mxu1 }
 0x101   :  { %v364_v58 = vadd.f32 %v413_v18, %v341_v48  ;;  %v372_v59 = vadd.f32 %v413_v18, %v349_v49  ;;  %v342_v60 = vmul.f32 %v412_v16, %v235_v56  ;;  %v350_v61 = vmul.f32 %v412_v16, %v267_v57 }
 0x102   :  { %382 = vst [vmem:[%s625_s4 + $0x30] sm:$0xff] %v366_v52  ;;  %390 = vst [vmem:[%s625_s4 + $0x70] sm:$0xff] %v374_v53  ;;  %v367_v62 = vadd.f32 %v413_v18, %v344_v54  ;;  %v375_v63 = vadd.f32 %v413_v18, %v352_v55 }
 0x103   :  { %380 = vst [vmem:[%s625_s4 + $0x20] sm:$0xff] %v364_v58  ;;  %388 = vst [vmem:[%s625_s4 + $0x60] sm:$0xff] %v372_v59  ;;  %v365_v0 = vadd.f32 %v413_v18, %v342_v60  ;;  %v373_v1 = vadd.f32 %v413_v18, %v350_v61 }
 0x104   :  { %383 = vst [vmem:[%s625_s4 + $0x38] sm:$0xff] %v367_v62  ;;  %391 = vst [vmem:[%s625_s4 + $0x78] sm:$0xff] %v375_v63 }
 0x105   :  { %381 = vst [vmem:[%s625_s4 + $0x28] sm:$0xff] %v365_v0  ;;  %389 = vst [vmem:[%s625_s4 + $0x68] sm:$0xff] %v373_v1 }

// kernel: dbpnet_forward.21
= control target key start
LH: loop header
LB: loop body
LE: loop exit
PB: predicated region body
PF: predicated region fallthrough
CT: control target
= control target key end

     0   :  { %s1216_s1 = inlined_call_operand.vmem [shape: bf16[384,128], index: 1, kind: input, shape index: {}]   ;;  %s1217_s0 = inlined_call_operand.vmem [shape: bf16[128,384], index: 0, kind: input, shape index: {}]   ;;  %s1218_s2 = inlined_call_operand.vmem [shape: f32[1,128], index: 2, kind: input, shape index: {}]   ;;  %s1219_s3 = inlined_call_operand.vmem [shape: f32[1,128], index: 3, kind: input, shape index: {}]   ;;  %s1220_s4 = inlined_call_operand.vmem [shape: f32[128,128], index: 4, kind: output, shape index: {}]  }
   0x1   :  { %v895_v0 = vld [vmem:[%s1216_s1 + $0x40] sm:$0xff]   ;;  %v898_v3 = vld [vmem:[%s1216_s1 + $0x48] sm:$0xff]   ;;  %v901_v6 = vld [vmem:[%s1216_s1 + $0x50] sm:$0xff]  }
   0x2   :  { %v896_v1 = vld [vmem:[%s1216_s1] sm:$0xff]   ;;  %783 = vmatprep.subr.bf16.mxu0 %v895_v0  ;;  %v899_v4 = vld [vmem:[%s1216_s1 + $0x8] sm:$0xff]   ;;  %v902_v7 = vld [vmem:[%s1216_s1 + $0x10] sm:$0xff]  }
   0x3   :  { %v897_v2 = vld [vmem:[%s1216_s1 + $0x80] sm:$0xff]   ;;  %784 = vmatpush3.bf16.msra.mxu0 %v896_v1  ;;  %v900_v5 = vld [vmem:[%s1216_s1 + $0x88] sm:$0xff]   ;;  %v903_v8 = vld [vmem:[%s1216_s1 + $0x90] sm:$0xff]  }
   0x4   :  { %863 = vmatprep.subr.bf16.mxu1 %v897_v2  ;;  %785 = vmatprep.subr.bf16.mxu0 %v898_v3  ;;  %v904_v9 = vld [vmem:[%s1216_s1 + $0x58] sm:$0xff]   ;;  %v907_v12 = vld [vmem:[%s1216_s1 + $0x60] sm:$0xff]   ;;  %v910_v15 = vld [vmem:[%s1216_s1 + $0x68] sm:$0xff]  }
   0x5   :  { %864 = vmatpush3.bf16.msra.mxu1 %v897_v2  ;;  %v905_v10 = vld [vmem:[%s1216_s1 + $0x18] sm:$0xff]   ;;  %v909_v13 = vld [vmem:[%s1216_s1 + $0xa0] sm:$0xff]   ;;  %v912_v16 = vld [vmem:[%s1216_s1 + $0xa8] sm:$0xff]  }
   0x6   :  { %865 = vmatprep.subr.bf16.mxu1 %v900_v5  ;;  %v906_v11 = vld [vmem:[%s1216_s1 + $0x98] sm:$0xff]   ;;  %v908_v14 = vld [vmem:[%s1216_s1 + $0x20] sm:$0xff]   ;;  %v911_v17 = vld [vmem:[%s1216_s1 + $0x28] sm:$0xff]  }
   0x7   :  { %786 = vmatpush3.bf16.msra.mxu0 %v899_v4  ;;  %v913_v18 = vld [vmem:[%s1216_s1 + $0x70] sm:$0xff]   ;;  %v916_v21 = vld [vmem:[%s1216_s1 + $0x78] sm:$0xff]   ;;  %v919_v26 = vld [vmem:[%s1217_s0] ss:$12 sps:$4 sm:$0xff]  }
   0x8   :  { %787 = vmatprep.subr.bf16.mxu0 %v901_v6  ;;  %v914_v19 = vld [vmem:[%s1216_s1 + $0x30] sm:$0xff]   ;;  %v918_v22 = vld [vmem:[%s1216_s1 + $0xb8] sm:$0xff]   ;;  %v923_v28 = vld [vmem:[%s1217_s0 + $0x20] ss:$12 sps:$4 sm:$0xff]  }
   0x9   :  { %866 = vmatpush3.bf16.msra.mxu1 %v900_v5  ;;  %v915_v20 = vld [vmem:[%s1216_s1 + $0xb0] sm:$0xff]   ;;  %v917_v25 = vld [vmem:[%s1216_s1 + $0x38] sm:$0xff]   ;;  %v939_v36 = vld [vmem:[%s1217_s0 + $0x80] ss:$12 sps:$4 sm:$0xff]  }
   0xa   :  { %867 = vmatprep.subr.bf16.mxu1 %v903_v8  ;;  %v921_v23 = vld [vmem:[%s1217_s0 + $0x4] ss:$12 sps:$4 sm:$0xff]   ;;  %v922_v24 = vld [vmem:[%s1217_s0 + $0x8] ss:$12 sps:$4 sm:$0xff]   ;;  %v932_v35 = vld [vmem:[%s1217_s0 + $0x4c] ss:$12 sps:$4 sm:$0xff]  }
   0xb   :  { %788 = vmatpush3.bf16.msra.mxu0 %v902_v7  ;;  %438 = vmatprep.mubr.bf16.mxu0 %v921_v23  ;;  %v924_v27 = vld [vmem:[%s1217_s0 + $0x1c] ss:$12 sps:$4 sm:$0xff]   ;;  %v930_v29 = vld [vmem:[%s1217_s0 + $0x38] ss:$12 sps:$4 sm:$0xff]   ;;  %v927_v31 = vld [vmem:[%s1217_s0 + $0x34] ss:$12 sps:$4 sm:$0xff]  }
   0xc   :  { %789 = vmatprep.subr.bf16.mxu0 %v904_v9  ;;  %879 = vmatprep.mubr.bf16.mxu1 %v922_v24  ;;  %v926_v30 = vld [vmem:[%s1217_s0 + $0x18] ss:$12 sps:$4 sm:$0xff]   ;;  %v931_v32 = vld [vmem:[%s1217_s0 + $0x50] ss:$12 sps:$4 sm:$0xff]   ;;  %v938_v33 = vld [vmem:[%s1217_s0 + $0x68] ss:$12 sps:$4 sm:$0xff]  }
   0xd   :  { %868 = vmatpush3.bf16.msra.mxu1 %v903_v8  ;;  %v929_v34 = vld [vmem:[%s1217_s0 + $0x30] ss:$12 sps:$4 sm:$0xff]   ;;  %v946_v37 = vld [vmem:[%s1217_s0 + $0x98] ss:$12 sps:$4 sm:$0xff]   ;;  %v934_v38 = vld [vmem:[%s1217_s0 + $0x48] ss:$12 sps:$4 sm:$0xff]  }
   0xe   :  { %869 = vmatprep.subr.bf16.mxu1 %v906_v11  ;;  %v935_v39 = vld [vmem:[%s1217_s0 + $0x64] ss:$12 sps:$4 sm:$0xff]   ;;  %v937_v41 = vld [vmem:[%s1217_s0 + $0x60] ss:$12 sps:$4 sm:$0xff]   ;;  %v940_v42 = vld [vmem:[%s1217_s0 + $0x7c] ss:$12 sps:$4 sm:$0xff]  }
   0xf   :  { %790 = vmatpush3.bf16.msra.mxu0 %v905_v10  ;;  %v947_v40 = vld [vmem:[%s1217_s0 + $0xb0] ss:$12 sps:$4 sm:$0xff]   ;;  %v942_v43 = vld [vmem:[%s1217_s0 + $0x78] ss:$12 sps:$4 sm:$0xff]   ;;  %v943_v44 = vld [vmem:[%s1217_s0 + $0x94] ss:$12 sps:$4 sm:$0xff]  }
  0x10   :  { %791 = vmatprep.subr.bf16.mxu0 %v907_v12  ;;  %v945_v45 = vld [vmem:[%s1217_s0 + $0x90] ss:$12 sps:$4 sm:$0xff]   ;;  %v948_v46 = vld [vmem:[%s1217_s0 + $0xac] ss:$12 sps:$4 sm:$0xff]   ;;  %v950_v47 = vld [vmem:[%s1217_s0 + $0xa8] ss:$12 sps:$4 sm:$0xff]  }
  0x11   :  { %870 = vmatpush3.bf16.msra.mxu1 %v906_v11  ;;  %v1123_v55 = vld [vmem:[%s1218_s2] ss:$0 sm:$0xff] }
  0x12   :  { %871 = vmatprep.subr.bf16.mxu1 %v909_v13  ;;  %v1128_v59 = vld [vmem:[%s1219_s3] ss:$0 sm:$0xff] }
  0x13   :  { %792 = vmatpush3.bf16.msra.mxu0 %v908_v14 }
  0x14   :  { %793 = vmatprep.subr.bf16.mxu0 %v910_v15 }
  0x15   :  { %872 = vmatpush3.bf16.msra.mxu1 %v909_v13 }
  0x16   :  { %873 = vmatprep.subr.bf16.mxu1 %v912_v16 }
  0x17   :  { %794 = vmatpush3.bf16.msra.mxu0 %v911_v17 }
  0x18   :  { %795 = vmatprep.subr.bf16.mxu0 %v913_v18 }
  0x19   :  { %874 = vmatpush3.bf16.msra.mxu1 %v912_v16 }
  0x1a   :  { %875 = vmatprep.subr.bf16.mxu1 %v915_v20 }
  0x1b   :  { %796 = vmatpush3.bf16.msra.mxu0 %v914_v19 }
  0x1c   :  { %797 = vmatprep.subr.bf16.mxu0 %v916_v21 }
  0x1d   :  { %876 = vmatpush3.bf16.msra.mxu1 %v915_v20 }
  0x1e   :  { %877 = vmatprep.subr.bf16.mxu1 %v918_v22 }
  0x1f   :  { %798 = vmatpush3.bf16.msra.mxu0 %v917_v25 }
  0x21   :  { %878 = vmatpush3.bf16.msra.mxu1 %v918_v22 }
  0x22   :  { %439 = vmatmul.mubr.bf16.vlgmr.msra.gmra.mrb[0].mxu0 %v919_v26 }
  0x23   :  { %446 = vmatprep.mubr.bf16.mxu0 %v924_v27 }
  0x24   :  { %880 = vmatmul.mubr.bf16.vlgmr.msra.gmra.mrb[0].mxu1 %v923_v28 }
  0x25   :  { %883 = vmatprep.mubr.bf16.mxu1 %v930_v29 }
  0x2a   :  { %447 = vmatmul.mubr.bf16.gmra.mrb[4].mxu0 %v926_v30 }
  0x2b   :  { %454 = vmatprep.mubr.bf16.mxu0 %v927_v31 }
  0x2c   :  { %884 = vmatmul.mubr.bf16.gmra.mrb[4].mxu1 %v931_v32 }
  0x2d   :  { %887 = vmatprep.mubr.bf16.mxu1 %v938_v33 }
  0x32   :  { %455 = vmatmul.mubr.bf16.gmra.mrb[8].mxu0 %v929_v34 }
  0x33   :  { %462 = vmatprep.mubr.bf16.mxu0 %v932_v35 }
  0x34   :  { %888 = vmatmul.mubr.bf16.gmra.mrb[8].mxu1 %v939_v36 }
  0x35   :  { %891 = vmatprep.mubr.bf16.mxu1 %v946_v37 }
  0x3a   :  { %463 = vmatmul.mubr.bf16.gmra.mrb[12].mxu0 %v934_v38 }
  0x3b   :  { %470 = vmatprep.mubr.bf16.mxu0 %v935_v39 }
  0x3c   :  { %892 = vmatmul.mubr.bf16.gmra.mrb[12].mxu1 %v947_v40 }
  0x42   :  { %471 = vmatmul.mubr.bf16.gmra.mrb[16].mxu0 %v937_v41 }
  0x43   :  { %478 = vmatprep.mubr.bf16.mxu0 %v940_v42 }
  0x4a   :  { %479 = vmatmul.mubr.bf16.gmra.mrb[20].mxu0 %v942_v43 }
  0x4b   :  { %486 = vmatprep.mubr.bf16.mxu0 %v943_v44 }
  0x52   :  { %487 = vmatmul.mubr.bf16.gmra.mrb[24].mxu0 %v945_v45 }
  0x53   :  { %494 = vmatprep.mubr.bf16.mxu0 %v948_v46 }
  0x5a   :  { %495 = vmatmul.mubr.bf16.gmra.mrb[28].mxu0 %v950_v47 }
  0xf5   :  { %v799_v48 = vpop.f32.mrb[0].mxu0 }
  0xf6   :  { %v800_v49 = vpop.f32.mrb[1].mxu0 }
  0xf7   :  { %v801_v50 = vadd.f32 %v800_v49, %v799_v48  ;;  %v802_v51 = vpop.f32.mrb[2].mxu0  ;;  %v881_v52 = vpop.f32.mrb[0].mxu1 }
  0xf8   :  { %v803_v53 = vpop.f32.mrb[3].mxu0  ;;  %v537_v54 = vpop.f32.mrb[1].mxu1 }
  0xf9   :  { %v804_v56 = vadd.f32 %v803_v53, %v802_v51  ;;  %v538_v57 = vadd.f32 %v801_v50, %v537_v54  ;;  %v882_v58 = vpop.f32.mrb[2].mxu1 }
  0xfa   :  { %v540_v60 = vpop.f32.mrb[3].mxu1 }
  0xfb   :  { %v658_v61 = vmul.f32 %v1123_v55, %v538_v57  ;;  %v541_v62 = vadd.f32 %v804_v56, %v540_v60 }
  0xfd   :  { %v681_v63 = vadd.f32 %v1128_v59, %v658_v61  ;;  %v659_v0 = vmul.f32 %v1123_v55, %v541_v62  ;;  %v805_v1 = vpop.f32.mrb[4].mxu0 }
  0xfe   :  { %v806_v2 = vpop.f32.mrb[5].mxu0 }
  0xff   :  { %v697_v3 = vmax.f32 %v681_v63, 0.0  ;;  %v682_v4 = vadd.f32 %v1128_v59, %v659_v0  ;;  %v807_v5 = vadd.f32 %v806_v2, %v805_v1  ;;  %v808_v6 = vpop.f32.mrb[6].mxu0  ;;  %v885_v7 = vpop.f32.mrb[4].mxu1 }
 0x100   :  { %v809_v8 = vpop.f32.mrb[7].mxu0  ;;  %v553_v9 = vpop.f32.mrb[5].mxu1 }
 0x101   :  { %713 = vst [vmem:[%s1220_s4] sm:$0xff] %v697_v3  ;;  %v698_v10 = vmax.f32 %v682_v4, 0.0  ;;  %v546_v11 = vadd.f32 %v881_v52, %v807_v5  ;;  %v810_v12 = vadd.f32 %v809_v8, %v808_v6  ;;  %v886_v13 = vpop.f32.mrb[6].mxu1 }
 0x102   :  { %v556_v14 = vpop.f32.mrb[7].mxu1 }
 0x103   :  { %714 = vst [vmem:[%s1220_s4 + $0x8] sm:$0xff] %v698_v10  ;;  %v660_v15 = vmul.f32 %v1123_v55, %v546_v11  ;;  %v549_v16 = vadd.f32 %v882_v58, %v810_v12 }
 0x105   :  { %v683_v17 = vadd.f32 %v1128_v59, %v660_v15  ;;  %v661_v18 = vmul.f32 %v1123_v55, %v549_v16  ;;  %v811_v19 = vpop.f32.mrb[8].mxu0 }
 0x106   :  { %v812_v20 = vpop.f32.mrb[9].mxu0 }
 0x107   :  { %v699_v21 = vmax.f32 %v683_v17, 0.0  ;;  %v684_v22 = vadd.f32 %v1128_v59, %v661_v18  ;;  %v813_v23 = vadd.f32 %v812_v20, %v811_v19  ;;  %v814_v24 = vpop.f32.mrb[10].mxu0  ;;  %v889_v25 = vpop.f32.mrb[8].mxu1 }
 0x108   :  { %v815_v26 = vpop.f32.mrb[11].mxu0  ;;  %v569_v27 = vpop.f32.mrb[9].mxu1 }
 0x109   :  { %715 = vst [vmem:[%s1220_s4 + $0x10] sm:$0xff] %v699_v21  ;;  %v700_v28 = vmax.f32 %v684_v22, 0.0  ;;  %v816_v29 = vadd.f32 %v815_v26, %v814_v24  ;;  %v554_v30 = vadd.f32 %v813_v23, %v553_v9  ;;  %v890_v31 = vpop.f32.mrb[10].mxu1 }
 0x10a   :  { %v572_v32 = vpop.f32.mrb[11].mxu1 }
 0x10b   :  { %716 = vst [vmem:[%s1220_s4 + $0x18] sm:$0xff] %v700_v28  ;;  %v662_v33 = vmul.f32 %v1123_v55, %v554_v30  ;;  %v557_v34 = vadd.f32 %v816_v29, %v556_v14 }
 0x10d   :  { %v685_v35 = vadd.f32 %v1128_v59, %v662_v33  ;;  %v663_v36 = vmul.f32 %v1123_v55, %v557_v34  ;;  %v817_v37 = vpop.f32.mrb[12].mxu0 }
 0x10e   :  { %v818_v38 = vpop.f32.mrb[13].mxu0 }
 0x10f   :  { %v701_v39 = vmax.f32 %v685_v35, 0.0  ;;  %v686_v40 = vadd.f32 %v1128_v59, %v663_v36  ;;  %v819_v41 = vadd.f32 %v818_v38, %v817_v37  ;;  %v820_v42 = vpop.f32.mrb[14].mxu0  ;;  %v1154_v43 = vpop.f32.mrb[12].mxu1 }
 0x110   :  { %v821_v44 = vpop.f32.mrb[15].mxu0  ;;  %v585_v45 = vpop.f32.mrb[13].mxu1 }
 0x111   :  { %717 = vst [vmem:[%s1220_s4 + $0x20] sm:$0xff] %v701_v39  ;;  %v702_v46 = vmax.f32 %v686_v40, 0.0  ;;  %v562_v47 = vadd.f32 %v885_v7, %v819_v41  ;;  %v822_v48 = vadd.f32 %v821_v44, %v820_v42  ;;  %v1159_v49 = vpop.f32.mrb[14].mxu1 }
 0x112   :  { %v588_v50 = vpop.f32.mrb[15].mxu1 }
 0x113   :  { %718 = vst [vmem:[%s1220_s4 + $0x28] sm:$0xff] %v702_v46  ;;  %v664_v51 = vmul.f32 %v1123_v55, %v562_v47  ;;  %v565_v52 = vadd.f32 %v886_v13, %v822_v48 }
 0x115   :  { %v687_v53 = vadd.f32 %v1128_v59, %v664_v51  ;;  %v665_v54 = vmul.f32 %v1123_v55, %v565_v52  ;;  %v823_v56 = vpop.f32.mrb[16].mxu0 }
 0x116   :  { %v824_v57 = vpop.f32.mrb[17].mxu0 }
 0x117   :  { %v703_v58 = vmax.f32 %v687_v53, 0.0  ;;  %v688_v60 = vadd.f32 %v1128_v59, %v665_v54  ;;  %v825_v61 = vadd.f32 %v824_v57, %v823_v56  ;;  %v826_v62 = vpop.f32.mrb[18].mxu0 }
 0x118   :  { %v827_v63 = vpop.f32.mrb[19].mxu0 }
 0x119   :  { %719 = vst [vmem:[%s1220_s4 + $0x30] sm:$0xff] %v703_v58  ;;  %v704_v0 = vmax.f32 %v688_v60, 0.0  ;;  %v828_v1 = vadd.f32 %v827_v63, %v826_v62  ;;  %v570_v2 = vadd.f32 %v825_v61, %v569_v27 }
 0x11b   :  { %720 = vst [vmem:[%s1220_s4 + $0x38] sm:$0xff] %v704_v0  ;;  %v666_v3 = vmul.f32 %v1123_v55, %v570_v2  ;;  %v573_v4 = vadd.f32 %v828_v1, %v572_v32 }
 0x11d   :  { %v689_v5 = vadd.f32 %v1128_v59, %v666_v3  ;;  %v667_v6 = vmul.f32 %v1123_v55, %v573_v4  ;;  %v829_v7 = vpop.f32.mrb[20].mxu0 }
 0x11e   :  { %v830_v8 = vpop.f32.mrb[21].mxu0 }
 0x11f   :  { %v705_v9 = vmax.f32 %v689_v5, 0.0  ;;  %v690_v10 = vadd.f32 %v1128_v59, %v667_v6  ;;  %v831_v11 = vadd.f32 %v830_v8, %v829_v7  ;;  %v832_v12 = vpop.f32.mrb[22].mxu0 }
 0x120   :  { %v833_v13 = vpop.f32.mrb[23].mxu0 }
 0x121   :  { %721 = vst [vmem:[%s1220_s4 + $0x40] sm:$0xff] %v705_v9  ;;  %v706_v14 = vmax.f32 %v690_v10, 0.0  ;;  %v578_v15 = vadd.f32 %v889_v25, %v831_v11  ;;  %v834_v16 = vadd.f32 %v833_v13, %v832_v12 }
 0x123   :  { %722 = vst [vmem:[%s1220_s4 + $0x48] sm:$0xff] %v706_v14  ;;  %v668_v17 = vmul.f32 %v1123_v55, %v578_v15  ;;  %v581_v18 = vadd.f32 %v890_v31, %v834_v16 }
 0x125   :  { %v691_v19 = vadd.f32 %v1128_v59, %v668_v17  ;;  %v669_v20 = vmul.f32 %v1123_v55, %v581_v18  ;;  %v835_v21 = vpop.f32.mrb[24].mxu0 }
 0x126   :  { %v836_v22 = vpop.f32.mrb[25].mxu0 }
 0x127   :  { %v707_v23 = vmax.f32 %v691_v19, 0.0  ;;  %v692_v24 = vadd.f32 %v1128_v59, %v669_v20  ;;  %v837_v26 = vadd.f32 %v836_v22, %v835_v21  ;;  %v838_v27 = vpop.f32.mrb[26].mxu0 }
 0x128   :  { %v839_v25 = vpop.f32.mrb[27].mxu0 }
 0x129   :  { %723 = vst [vmem:[%s1220_s4 + $0x50] sm:$0xff] %v707_v23  ;;  %v708_v28 = vmax.f32 %v692_v24, 0.0  ;;  %v840_v29 = vadd.f32 %v839_v25, %v838_v27  ;;  %v586_v30 = vadd.f32 %v837_v26, %v585_v45 }
 0x12b   :  { %724 = vst [vmem:[%s1220_s4 + $0x58] sm:$0xff] %v708_v28  ;;  %v670_v31 = vmul.f32 %v1123_v55, %v586_v30  ;;  %v589_v32 = vadd.f32 %v840_v29, %v588_v50 }
 0x12d   :  { %v693_v33 = vadd.f32 %v1128_v59, %v670_v31  ;;  %v671_v34 = vmul.f32 %v1123_v55, %v589_v32  ;;  %v841_v35 = vpop.f32.mrb[28].mxu0 }
 0x12e   :  { %v842_v36 = vpop.f32.mrb[29].mxu0 }
 0x12f   :  { %v709_v37 = vmax.f32 %v693_v33, 0.0  ;;  %v694_v38 = vadd.f32 %v1128_v59, %v671_v34  ;;  %v843_v39 = vadd.f32 %v842_v36, %v841_v35  ;;  %v844_v40 = vpop.f32.mrb[30].mxu0 }
 0x130   :  { %v845_v41 = vpop.f32.mrb[31].mxu0 }
 0x131   :  { %725 = vst [vmem:[%s1220_s4 + $0x60] sm:$0xff] %v709_v37  ;;  %v710_v42 = vmax.f32 %v694_v38, 0.0  ;;  %v594_v44 = vadd.f32 %v1154_v43, %v843_v39  ;;  %v846_v45 = vadd.f32 %v845_v41, %v844_v40 }
 0x133   :  { %726 = vst [vmem:[%s1220_s4 + $0x68] sm:$0xff] %v710_v42  ;;  %v672_v46 = vmul.f32 %v1123_v55, %v594_v44  ;;  %v597_v47 = vadd.f32 %v1159_v49, %v846_v45 }
 0x135   :  { %v695_v48 = vadd.f32 %v1128_v59, %v672_v46  ;;  %v673_v50 = vmul.f32 %v1123_v55, %v597_v47 }
 0x137   :  { %v711_v51 = vmax.f32 %v695_v48, 0.0  ;;  %v696_v52 = vadd.f32 %v1128_v59, %v673_v50 }
 0x139   :  { %727 = vst [vmem:[%s1220_s4 + $0x70] sm:$0xff] %v711_v51  ;;  %v712_v43 = vmax.f32 %v696_v52, 0.0 }
 0x13b   :  { %728 = vst [vmem:[%s1220_s4 + $0x78] sm:$0xff] %v712_v43 }

// kernel: dbpnet_forward.22
= control target key start
LH: loop header
LB: loop body
LE: loop exit
PB: predicated region body
PF: predicated region fallthrough
CT: control target
= control target key end

     0   :  { %s761_s1 = inlined_call_operand.vmem [shape: bf16[128,128], index: 1, kind: input, shape index: {}]   ;;  %s762_s0 = inlined_call_operand.vmem [shape: bf16[128,128], index: 0, kind: input, shape index: {}]   ;;  %s763_s2 = inlined_call_operand.vmem [shape: f32[1,128], index: 2, kind: input, shape index: {}]   ;;  %s764_s3 = inlined_call_operand.vmem [shape: f32[1,128], index: 3, kind: input, shape index: {}]   ;;  %s765_s4 = inlined_call_operand.vmem [shape: f32[128,128], index: 4, kind: input, shape index: {}]   ;;  %s766_s5 = inlined_call_operand.vmem [shape: f32[128,128], index: 5, kind: output, shape index: {}]  }
   0x1   :  { %v529_v0 = vld [vmem:[%s761_s1] sm:$0xff]   ;;  %v530_v1 = vld [vmem:[%s761_s1 + $0x8] sm:$0xff]   ;;  %v531_v2 = vld [vmem:[%s761_s1 + $0x10] sm:$0xff]  }
   0x2   :  { %481 = vmatprep.subr.bf16.mxu0 %v529_v0  ;;  %513 = vmatprep.subr.bf16.mxu1 %v529_v0  ;;  %v532_v3 = vld [vmem:[%s761_s1 + $0x18] sm:$0xff]   ;;  %v537_v4 = vld [vmem:[%s762_s0] sm:$0xff]   ;;  %v534_v7 = vld [vmem:[%s761_s1 + $0x28] sm:$0xff]  }
   0x3   :  { %482 = vmatpush3.bf16.msra.mxu0 %v529_v0  ;;  %521 = vmatpush3.bf16.msra.mxu1 %v529_v0  ;;  %v538_v5 = vld [vmem:[%s762_s0 + $0x20] sm:$0xff]   ;;  %v535_v8 = vld [vmem:[%s761_s1 + $0x30] sm:$0xff]   ;;  %v536_v9 = vld [vmem:[%s761_s1 + $0x38] sm:$0xff]  }
   0x4   :  { %483 = vmatprep.subr.bf16.mxu0 %v530_v1  ;;  %514 = vmatprep.subr.bf16.mxu1 %v530_v1  ;;  %v533_v6 = vld [vmem:[%s761_s1 + $0x20] sm:$0xff]   ;;  %v539_v10 = vld [vmem:[%s762_s0 + $0x8] sm:$0xff]   ;;  %v541_v12 = vld [vmem:[%s762_s0 + $0x10] sm:$0xff]  }
   0x5   :  { %497 = vmatprep.mubr.bf16.mxu0 %v537_v4  ;;  %505 = vmatprep.mubr.bf16.mxu1 %v538_v5  ;;  %v540_v11 = vld [vmem:[%s762_s0 + $0x28] sm:$0xff]   ;;  %v542_v13 = vld [vmem:[%s762_s0 + $0x30] sm:$0xff]   ;;  %v543_v14 = vld [vmem:[%s762_s0 + $0x18] sm:$0xff]  }
   0x6   :  { %v544_v15 = vld [vmem:[%s762_s0 + $0x38] sm:$0xff]   ;;  %v626_v16 = vld [vmem:[%s763_s2] ss:$0 sm:$0xff]  ;;  %v381_v24 = vld [vmem:[%s765_s4 + $0x10] sm:$0xff] }
   0x7   :  { %484 = vmatpush3.bf16.msra.mxu0 %v530_v1  ;;  %522 = vmatpush3.bf16.msra.mxu1 %v530_v1  ;;  %v631_v18 = vld [vmem:[%s764_s3] ss:$0 sm:$0xff]  ;;  %v389_v25 = vld [vmem:[%s765_s4 + $0x50] sm:$0xff]  ;;  %v382_v40 = vld [vmem:[%s765_s4 + $0x18] sm:$0xff] }
   0x8   :  { %485 = vmatprep.subr.bf16.mxu0 %v531_v2  ;;  %515 = vmatprep.subr.bf16.mxu1 %v531_v2  ;;  %v379_v32 = vld [vmem:[%s765_s4] sm:$0xff]  ;;  %v390_v41 = vld [vmem:[%s765_s4 + $0x58] sm:$0xff]  ;;  %v380_v48 = vld [vmem:[%s765_s4 + $0x8] sm:$0xff] }
   0x9   :  { %v387_v33 = vld [vmem:[%s765_s4 + $0x40] sm:$0xff]  ;;  %v388_v49 = vld [vmem:[%s765_s4 + $0x48] sm:$0xff] }
   0xb   :  { %486 = vmatpush3.bf16.msra.mxu0 %v531_v2  ;;  %523 = vmatpush3.bf16.msra.mxu1 %v531_v2 }
   0xc   :  { %487 = vmatprep.subr.bf16.mxu0 %v532_v3  ;;  %516 = vmatprep.subr.bf16.mxu1 %v532_v3 }
   0xf   :  { %488 = vmatpush3.bf16.msra.mxu0 %v532_v3  ;;  %524 = vmatpush3.bf16.msra.mxu1 %v532_v3 }
  0x10   :  { %489 = vmatprep.subr.bf16.mxu0 %v533_v6  ;;  %517 = vmatprep.subr.bf16.mxu1 %v533_v6 }
  0x13   :  { %490 = vmatpush3.bf16.msra.mxu0 %v533_v6  ;;  %525 = vmatpush3.bf16.msra.mxu1 %v533_v6 }
  0x14   :  { %491 = vmatprep.subr.bf16.mxu0 %v534_v7  ;;  %518 = vmatprep.subr.bf16.mxu1 %v534_v7 }
  0x17   :  { %492 = vmatpush3.bf16.msra.mxu0 %v534_v7  ;;  %526 = vmatpush3.bf16.msra.mxu1 %v534_v7 }
  0x18   :  { %493 = vmatprep.subr.bf16.mxu0 %v535_v8  ;;  %519 = vmatprep.subr.bf16.mxu1 %v535_v8 }
  0x1b   :  { %494 = vmatpush3.bf16.msra.mxu0 %v535_v8  ;;  %527 = vmatpush3.bf16.msra.mxu1 %v535_v8  ;;  %v385_v8 = vld [vmem:[%s765_s4 + $0x30] sm:$0xff] }
  0x1c   :  { %495 = vmatprep.subr.bf16.mxu0 %v536_v9  ;;  %520 = vmatprep.subr.bf16.mxu1 %v536_v9 }
  0x1f   :  { %496 = vmatpush3.bf16.msra.mxu0 %v536_v9  ;;  %528 = vmatpush3.bf16.msra.mxu1 %v536_v9  ;;  %v393_v9 = vld [vmem:[%s765_s4 + $0x70] sm:$0xff] }
  0x22   :  { %498 = vmatmul.mubr.bf16.vlgmr.msra.gmra.mrb[0].mxu0 %v539_v10  ;;  %506 = vmatmul.mubr.bf16.vlgmr.msra.gmra.mrb[0].mxu1 %v540_v11 }
  0x23   :  { %501 = vmatprep.mubr.bf16.mxu0 %v541_v12  ;;  %509 = vmatprep.mubr.bf16.mxu1 %v542_v13 }
  0x2a   :  { %502 = vmatmul.mubr.bf16.gmra.mrb[4].mxu0 %v543_v14  ;;  %510 = vmatmul.mubr.bf16.gmra.mrb[4].mxu1 %v544_v15 }
  0xf5   :  { %v499_v17 = vpop.f32.mrb[0].mxu0  ;;  %v507_v19 = vpop.f32.mrb[0].mxu1 }
  0xf6   :  { %v342_v20 = vmul.f32 %v499_v17, %v626_v16  ;;  %v350_v21 = vmul.f32 %v507_v19, %v626_v16  ;;  %v219_v22 = vpop.f32.mrb[1].mxu0  ;;  %v251_v23 = vpop.f32.mrb[1].mxu1  ;;  %v383_v17 = vld [vmem:[%s765_s4 + $0x20] sm:$0xff] }
  0xf7   :  { %v340_v26 = vmul.f32 %v626_v16, %v219_v22  ;;  %v348_v27 = vmul.f32 %v626_v16, %v251_v23  ;;  %v500_v28 = vpop.f32.mrb[2].mxu0  ;;  %v508_v29 = vpop.f32.mrb[2].mxu1  ;;  %v391_v19 = vld [vmem:[%s765_s4 + $0x60] sm:$0xff] }
  0xf8   :  { %v365_v30 = vadd.f32 %v631_v18, %v342_v20  ;;  %v373_v31 = vadd.f32 %v631_v18, %v350_v21  ;;  %v343_v34 = vmul.f32 %v500_v28, %v626_v16  ;;  %v351_v35 = vmul.f32 %v508_v29, %v626_v16  ;;  %v222_v36 = vpop.f32.mrb[3].mxu0  ;;  %v254_v37 = vpop.f32.mrb[3].mxu1 }
  0xf9   :  { %v363_v38 = vadd.f32 %v631_v18, %v340_v26  ;;  %v371_v39 = vadd.f32 %v631_v18, %v348_v27  ;;  %v341_v42 = vmul.f32 %v626_v16, %v222_v36  ;;  %v349_v43 = vmul.f32 %v626_v16, %v254_v37  ;;  %v386_v26 = vld [vmem:[%s765_s4 + $0x38] sm:$0xff] }
  0xfa   :  { %v397_v44 = vadd.f32 %v381_v24, %v365_v30  ;;  %v405_v45 = vadd.f32 %v389_v25, %v373_v31  ;;  %v366_v46 = vadd.f32 %v631_v18, %v343_v34  ;;  %v374_v47 = vadd.f32 %v631_v18, %v351_v35  ;;  %v394_v27 = vld [vmem:[%s765_s4 + $0x78] sm:$0xff]  ;;  %v384_v34 = vld [vmem:[%s765_s4 + $0x28] sm:$0xff] }
  0xfb   :  { %v395_v50 = vadd.f32 %v379_v32, %v363_v38  ;;  %v403_v51 = vadd.f32 %v387_v33, %v371_v39  ;;  %v364_v52 = vadd.f32 %v631_v18, %v341_v42  ;;  %v372_v53 = vadd.f32 %v631_v18, %v349_v43  ;;  %v392_v35 = vld [vmem:[%s765_s4 + $0x68] sm:$0xff] }
  0xfc   :  { %v413_v54 = vmax.f32 %v397_v44, 0.0  ;;  %v421_v55 = vmax.f32 %v405_v45, 0.0  ;;  %v398_v56 = vadd.f32 %v382_v40, %v366_v46  ;;  %v406_v57 = vadd.f32 %v390_v41, %v374_v47 }
  0xfd   :  { %v411_v58 = vmax.f32 %v395_v50, 0.0  ;;  %v419_v59 = vmax.f32 %v403_v51, 0.0  ;;  %v396_v60 = vadd.f32 %v380_v48, %v364_v52  ;;  %v404_v61 = vadd.f32 %v388_v49, %v372_v53  ;;  %v503_v62 = vpop.f32.mrb[4].mxu0  ;;  %v511_v63 = vpop.f32.mrb[4].mxu1 }
  0xfe   :  { %429 = vst [vmem:[%s766_s5 + $0x10] sm:$0xff] %v413_v54  ;;  %437 = vst [vmem:[%s766_s5 + $0x50] sm:$0xff] %v421_v55  ;;  %v414_v0 = vmax.f32 %v398_v56, 0.0  ;;  %v422_v1 = vmax.f32 %v406_v57, 0.0  ;;  %v346_v2 = vmul.f32 %v503_v62, %v626_v16  ;;  %v354_v3 = vmul.f32 %v511_v63, %v626_v16  ;;  %v235_v4 = vpop.f32.mrb[5].mxu0  ;;  %v267_v5 = vpop.f32.mrb[5].mxu1 }
  0xff   :  { %427 = vst [vmem:[%s766_s5] sm:$0xff] %v411_v58  ;;  %435 = vst [vmem:[%s766_s5 + $0x40] sm:$0xff] %v419_v59  ;;  %v412_v6 = vmax.f32 %v396_v60, 0.0  ;;  %v420_v7 = vmax.f32 %v404_v61, 0.0  ;;  %v344_v10 = vmul.f32 %v626_v16, %v235_v4  ;;  %v352_v11 = vmul.f32 %v626_v16, %v267_v5  ;;  %v504_v12 = vpop.f32.mrb[6].mxu0  ;;  %v512_v13 = vpop.f32.mrb[6].mxu1 }
 0x100   :  { %430 = vst [vmem:[%s766_s5 + $0x18] sm:$0xff] %v414_v0  ;;  %438 = vst [vmem:[%s766_s5 + $0x58] sm:$0xff] %v422_v1  ;;  %v369_v14 = vadd.f32 %v631_v18, %v346_v2  ;;  %v377_v15 = vadd.f32 %v631_v18, %v354_v3  ;;  %v347_v20 = vmul.f32 %v504_v12, %v626_v16  ;;  %v238_v22 = vpop.f32.mrb[7].mxu0  ;;  %v270_v23 = vpop.f32.mrb[7].mxu1 }
 0x101   :  { %v355_v21 = vmul.f32 %v512_v13, %v626_v16  ;;  %428 = vst [vmem:[%s766_s5 + $0x8] sm:$0xff] %v412_v6  ;;  %436 = vst [vmem:[%s766_s5 + $0x48] sm:$0xff] %v420_v7  ;;  %v367_v24 = vadd.f32 %v631_v18, %v344_v10  ;;  %v375_v25 = vadd.f32 %v631_v18, %v352_v11 }
 0x102   :  { %v345_v28 = vmul.f32 %v626_v16, %v238_v22  ;;  %v353_v29 = vmul.f32 %v626_v16, %v270_v23  ;;  %v401_v30 = vadd.f32 %v385_v8, %v369_v14  ;;  %v409_v31 = vadd.f32 %v393_v9, %v377_v15 }
 0x103   :  { %v370_v32 = vadd.f32 %v631_v18, %v347_v20  ;;  %v378_v33 = vadd.f32 %v631_v18, %v355_v21  ;;  %v399_v36 = vadd.f32 %v383_v17, %v367_v24  ;;  %v407_v37 = vadd.f32 %v391_v19, %v375_v25 }
 0x104   :  { %v368_v38 = vadd.f32 %v631_v18, %v345_v28  ;;  %v376_v16 = vadd.f32 %v631_v18, %v353_v29  ;;  %v417_v39 = vmax.f32 %v401_v30, 0.0  ;;  %v425_v40 = vmax.f32 %v409_v31, 0.0 }
 0x105   :  { %v402_v41 = vadd.f32 %v386_v26, %v370_v32  ;;  %v410_v42 = vadd.f32 %v394_v27, %v378_v33  ;;  %v415_v43 = vmax.f32 %v399_v36, 0.0  ;;  %v423_v44 = vmax.f32 %v407_v37, 0.0 }
 0x106   :  { %v400_v45 = vadd.f32 %v384_v34, %v368_v38  ;;  %v408_v46 = vadd.f32 %v392_v35, %v376_v16  ;;  %433 = vst [vmem:[%s766_s5 + $0x30] sm:$0xff] %v417_v39  ;;  %441 = vst [vmem:[%s766_s5 + $0x70] sm:$0xff] %v425_v40 }
 0x107   :  { %v418_v47 = vmax.f32 %v402_v41, 0.0  ;;  %v426_v48 = vmax.f32 %v410_v42, 0.0  ;;  %431 = vst [vmem:[%s766_s5 + $0x20] sm:$0xff] %v415_v43  ;;  %439 = vst [vmem:[%s766_s5 + $0x60] sm:$0xff] %v423_v44 }
 0x108   :  { %v416_v18 = vmax.f32 %v400_v45, 0.0  ;;  %v424_v49 = vmax.f32 %v408_v46, 0.0 }
 0x109   :  { %434 = vst [vmem:[%s766_s5 + $0x38] sm:$0xff] %v418_v47  ;;  %442 = vst [vmem:[%s766_s5 + $0x78] sm:$0xff] %v426_v48 }
 0x10a   :  { %432 = vst [vmem:[%s766_s5 + $0x28] sm:$0xff] %v416_v18  ;;  %440 = vst [vmem:[%s766_s5 + $0x68] sm:$0xff] %v424_v49 }

// kernel: dbpnet_forward.23
= control target key start
LH: loop header
LB: loop body
LE: loop exit
PB: predicated region body
PF: predicated region fallthrough
CT: control target
= control target key end

     0   :  { %s1708_s15 = smov 0   ;;  %s1710_s16 = smov 0   ;;  %s1983_s0 = inlined_call_operand.vmem [shape: bf16[128,2048], index: 0, kind: input, shape index: {}]   ;;  %s1984_s1 = inlined_call_operand.vmem [shape: bf16[2048,128], index: 1, kind: input, shape index: {}]   ;;  %s1985_s2 = inlined_call_operand.vmem [shape: f32[1,128], index: 2, kind: input, shape index: {}]   ;;  %s1986_s3 = inlined_call_operand.vmem [shape: f32[1,128], index: 3, kind: input, shape index: {}]   ;;  %s1987_s4 = inlined_call_operand.vmem [shape: f32[128,128], index: 4, kind: output, shape index: {}]  }
   0x1   :  { %s1712_s17 = smov 0   ;;  %s1714_s18 = smov 0  }
   0x2   :  { %s1716_s19 = smov 0  }
   0x3 LB: > { %s26_s20 = sadd.s32 1, %s1676_s18  ;;  %p49_p1 = scmp.ne.s32.totalorder %s1668_s16, %s1664_s15  ;;  %s1680_s19 = sphi %s1716_s19, %s14_s19   ;;  %s1676_s18 = sphi %s1714_s18, %s1991_s18   ;;  %s1672_s17 = sphi %s1712_s17, %s1990_s17   ;;  %s1668_s16 = sphi %s1710_s16, %s1989_s16   ;;  %s1664_s15 = sphi %s1708_s15, %s1988_s15  }
   0x4   : > { %p27_p0 = scmp.ge.s32.totalorder %s26_s20, 4  ;;  %p50_p2 = scmp.eq.s32.totalorder %s1680_s19, 0 }
   0x5   : > { %s42_s22 = sadd.s32 1, %s1668_s16  ;;  %p1312_p5 = scmp.ge.s32.totalorder %s1680_s19, 4 }
   0x6   : > { %s1993_s20 = smov (%p27_p0, %s26_s20), 0  ;;  %p51_p3 = por %p50_p2, %p49_p1 }
   0x7   : > { %s38_s21 = ssub.s32 %s1676_s18, %s1993_s20  ;;  %195 = sbr.rel (%p1312_p5) target bundleno = 34 (0x22), region = 24 }
   0x8   : > { %p40_p4 = scmp.eq.s32.totalorder %s38_s21, 0 }
   0xa   : > { %s1743_s23 = scalar_select %p40_p4, %s1668_s16, %s42_s22  }
   0xe   : > { %198 = sbr.rel (!%p51_p3) target bundleno = 34 (0x22), region = 28  ;;  %s200_s24 = sand.u32 (%p51_p3), 1, %s1668_s16  }
   0xf   : > { %s1392_s25 = sshll.u32 (%p51_p3), %s1676_s18, 4  ;;  %s1313_s26 = sshll.u32 (%p51_p3), %s200_s24, 8 }
  0x10   : > { %s1751_s29 = scalar_lea.vmem (%p51_p3), %s1983_s0, %s1392_s25  ;;  %s1756_s30 = scalar_lea.vmem (%p51_p3), [#allocation3], %s1313_s26 }
  0x11   : > { %v221_v0 = vld [vmem:[%s1751_s29] sm:$0xff] (%p51_p3)  ;;  %v223_v1 = vld [vmem:[%s1751_s29 + $0x8] sm:$0xff] (%p51_p3) }
  0x12   : > { %v225_v2 = vld [vmem:[%s1751_s29 + $0x40] sm:$0xff] (%p51_p3)  ;;  %222 = vst [vmem:[%s1756_s30] sm:$0xff] (%p51_p3), %v221_v0  ;;  %224 = vst [vmem:[%s1756_s30 + $0x8] sm:$0xff] (%p51_p3), %v223_v1  ;;  %v227_v3 = vld [vmem:[%s1751_s29 + $0x48] sm:$0xff] (%p51_p3) }
  0x13   : > { %226 = vst [vmem:[%s1756_s30 + $0x10] sm:$0xff] (%p51_p3), %v225_v2  ;;  %v229_v4 = vld [vmem:[%s1751_s29 + $0x80] sm:$0xff] (%p51_p3)  ;;  %v231_v5 = vld [vmem:[%s1751_s29 + $0x88] sm:$0xff] (%p51_p3)  ;;  %228 = vst [vmem:[%s1756_s30 + $0x18] sm:$0xff] (%p51_p3), %v227_v3 }
  0x14   : > { %230 = vst [vmem:[%s1756_s30 + $0x20] sm:$0xff] (%p51_p3), %v229_v4  ;;  %232 = vst [vmem:[%s1756_s30 + $0x28] sm:$0xff] (%p51_p3), %v231_v5  ;;  %v233_v6 = vld [vmem:[%s1751_s29 + $0xc0] sm:$0xff] (%p51_p3)  ;;  %v235_v7 = vld [vmem:[%s1751_s29 + $0xc8] sm:$0xff] (%p51_p3) }
  0x15   : > { %v237_v8 = vld [vmem:[%s1751_s29 + $0x100] sm:$0xff]  ;;  %234 = vst [vmem:[%s1756_s30 + $0x30] sm:$0xff] %v233_v6  ;;  %236 = vst [vmem:[%s1756_s30 + $0x38] sm:$0xff] %v235_v7  ;;  %v239_v9 = vld [vmem:[%s1751_s29 + $0x108] sm:$0xff] }
  0x16   : > { %238 = vst [vmem:[%s1756_s30 + $0x40] sm:$0xff] %v237_v8  ;;  %v241_v10 = vld [vmem:[%s1751_s29 + $0x140] sm:$0xff]  ;;  %v243_v11 = vld [vmem:[%s1751_s29 + $0x148] sm:$0xff]  ;;  %240 = vst [vmem:[%s1756_s30 + $0x48] sm:$0xff] %v239_v9 }
  0x17   : > { %242 = vst [vmem:[%s1756_s30 + $0x50] sm:$0xff] %v241_v10  ;;  %244 = vst [vmem:[%s1756_s30 + $0x58] sm:$0xff] %v243_v11  ;;  %v245_v12 = vld [vmem:[%s1751_s29 + $0x180] sm:$0xff]  ;;  %v247_v13 = vld [vmem:[%s1751_s29 + $0x188] sm:$0xff] }
  0x18   : > { %v249_v14 = vld [vmem:[%s1751_s29 + $0x1c0] sm:$0xff]  ;;  %246 = vst [vmem:[%s1756_s30 + $0x60] sm:$0xff] %v245_v12  ;;  %248 = vst [vmem:[%s1756_s30 + $0x68] sm:$0xff] %v247_v13  ;;  %v251_v15 = vld [vmem:[%s1751_s29 + $0x1c8] sm:$0xff] }
  0x19   : > { %250 = vst [vmem:[%s1756_s30 + $0x70] sm:$0xff] %v249_v14  ;;  %v253_v16 = vld [vmem:[%s1751_s29 + $0x200] sm:$0xff]  ;;  %v255_v17 = vld [vmem:[%s1751_s29 + $0x208] sm:$0xff]  ;;  %252 = vst [vmem:[%s1756_s30 + $0x78] sm:$0xff] %v251_v15 }
  0x1a   : > { %254 = vst [vmem:[%s1756_s30 + $0x80] sm:$0xff] %v253_v16  ;;  %256 = vst [vmem:[%s1756_s30 + $0x88] sm:$0xff] %v255_v17  ;;  %v257_v18 = vld [vmem:[%s1751_s29 + $0x240] sm:$0xff]  ;;  %v259_v19 = vld [vmem:[%s1751_s29 + $0x248] sm:$0xff] }
  0x1b   : > { %v261_v20 = vld [vmem:[%s1751_s29 + $0x280] sm:$0xff]  ;;  %258 = vst [vmem:[%s1756_s30 + $0x90] sm:$0xff] %v257_v18  ;;  %260 = vst [vmem:[%s1756_s30 + $0x98] sm:$0xff] %v259_v19  ;;  %v263_v21 = vld [vmem:[%s1751_s29 + $0x288] sm:$0xff] }
  0x1c   : > { %262 = vst [vmem:[%s1756_s30 + $0xa0] sm:$0xff] %v261_v20  ;;  %v265_v22 = vld [vmem:[%s1751_s29 + $0x2c0] sm:$0xff]  ;;  %v267_v23 = vld [vmem:[%s1751_s29 + $0x2c8] sm:$0xff]  ;;  %264 = vst [vmem:[%s1756_s30 + $0xa8] sm:$0xff] %v263_v21 }
  0x1d   : > { %266 = vst [vmem:[%s1756_s30 + $0xb0] sm:$0xff] %v265_v22  ;;  %268 = vst [vmem:[%s1756_s30 + $0xb8] sm:$0xff] %v267_v23  ;;  %v269_v24 = vld [vmem:[%s1751_s29 + $0x300] sm:$0xff]  ;;  %v271_v25 = vld [vmem:[%s1751_s29 + $0x308] sm:$0xff] }
  0x1e   : > { %v273_v26 = vld [vmem:[%s1751_s29 + $0x340] sm:$0xff]  ;;  %270 = vst [vmem:[%s1756_s30 + $0xc0] sm:$0xff] %v269_v24  ;;  %272 = vst [vmem:[%s1756_s30 + $0xc8] sm:$0xff] %v271_v25  ;;  %v275_v27 = vld [vmem:[%s1751_s29 + $0x348] sm:$0xff] }
  0x1f   : > { %274 = vst [vmem:[%s1756_s30 + $0xd0] sm:$0xff] %v273_v26  ;;  %v277_v28 = vld [vmem:[%s1751_s29 + $0x380] sm:$0xff]  ;;  %v279_v29 = vld [vmem:[%s1751_s29 + $0x388] sm:$0xff]  ;;  %276 = vst [vmem:[%s1756_s30 + $0xd8] sm:$0xff] %v275_v27 }
  0x20   : > { %278 = vst [vmem:[%s1756_s30 + $0xe0] sm:$0xff] %v277_v28  ;;  %280 = vst [vmem:[%s1756_s30 + $0xe8] sm:$0xff] %v279_v29  ;;  %v281_v30 = vld [vmem:[%s1751_s29 + $0x3c0] sm:$0xff]  ;;  %v283_v31 = vld [vmem:[%s1751_s29 + $0x3c8] sm:$0xff] }
  0x21   : > { %282 = vst [vmem:[%s1756_s30 + $0xf0] sm:$0xff] %v281_v30  ;;  %284 = vst [vmem:[%s1756_s30 + $0xf8] sm:$0xff] %v283_v31 }
  0x22 PF: > { %p1316_p6 = scmp.ge.s32.totalorder %s1680_s19, 1  ;;  %p301_p7 = scmp.lt.s32.totalorder %s1680_s19, 5 }
  0x24   : > { %p302_p8 = pnand %p1316_p6, %p301_p7 }
  0x25   : > { %s308_s5 = sand.u32 (!%p302_p8), 1, %s1664_s15   ;;  %s1318_s6 = sshll.u32 (!%p302_p8), %s1672_s17, 6 }
  0x26   : > { %305 = sbr.rel (%p302_p8) target bundleno = 382 (0x17e), region = 55  ;;  %s1317_s7 = sshll.u32 (!%p302_p8), %s308_s5, 8 }
  0x27   : > { %p353_p9 = scmp.lt.s32.totalorder (!%p302_p8), %s1318_s6, 255  ;;  %s1828_s12 = scalar_lea.vmem (!%p302_p8), [#allocation3], %s1317_s7 }
  0x28   : > { %p1320_p10 = scmp.ne.s32.totalorder (!%p302_p8), %s1672_s17, 0 }
  0x2d   : > { %s1995_s6 = smov (!%p353_p9, %s1318_s6), 255  ;;  %380 = sbr.rel (%p1320_p10) target bundleno = 55 (0x37), region = 63 }
  0x2e   : > { %s1319_s8 = sshll.u32 %s1995_s6, 2  ;;  %v1682_v32 = vmov (!%p1320_p10), 0.0  }
  0x2f   : > { %s1826_s11 = scalar_lea.vmem %s1984_s1, %s1319_s8  ;;  %381 = vst [vmem:[#allocation2] sm:$0xff] (!%p1320_p10), %v1682_v32  ;;  %382 = vst [vmem:[#allocation2 + $0x8] sm:$0xff] (!%p1320_p10), %v1682_v32 }
  0x30   : > { %383 = vst [vmem:[#allocation2 + $0x10] sm:$0xff] (!%p1320_p10), %v1682_v32  ;;  %384 = vst [vmem:[#allocation2 + $0x18] sm:$0xff] (!%p1320_p10), %v1682_v32 }
  0x31   : > { %385 = vst [vmem:[#allocation2 + $0x20] sm:$0xff] (!%p1320_p10), %v1682_v32  ;;  %386 = vst [vmem:[#allocation2 + $0x28] sm:$0xff] (!%p1320_p10), %v1682_v32 }
  0x32   : > { %387 = vst [vmem:[#allocation2 + $0x30] sm:$0xff] (!%p1320_p10), %v1682_v32  ;;  %388 = vst [vmem:[#allocation2 + $0x38] sm:$0xff] (!%p1320_p10), %v1682_v32 }
  0x33   : > { %389 = vst [vmem:[#allocation2 + $0x40] sm:$0xff] (!%p1320_p10), %v1682_v32  ;;  %390 = vst [vmem:[#allocation2 + $0x48] sm:$0xff] (!%p1320_p10), %v1682_v32 }
  0x34   : > { %391 = vst [vmem:[#allocation2 + $0x50] sm:$0xff] %v1682_v32  ;;  %392 = vst [vmem:[#allocation2 + $0x58] sm:$0xff] %v1682_v32 }
  0x35   : > { %393 = vst [vmem:[#allocation2 + $0x60] sm:$0xff] %v1682_v32  ;;  %394 = vst [vmem:[#allocation2 + $0x68] sm:$0xff] %v1682_v32 }
  0x36   : > { %395 = vst [vmem:[#allocation2 + $0x70] sm:$0xff] %v1682_v32  ;;  %396 = vst [vmem:[#allocation2 + $0x78] sm:$0xff] %v1682_v32 }
  0x37 PF: > { %v1562_v33 = vld [vmem:[%s1826_s11 + $0x40] sm:$0xff]   ;;  %v1566_v37 = vld [vmem:[%s1826_s11 + $0x48] sm:$0xff]   ;;  %v1570_v41 = vld [vmem:[%s1826_s11 + $0x50] sm:$0xff]   ;;  %p1385_p11 = scmp.ne.s32.totalorder %s1672_s17, 3 }
  0x38   : > { %v1563_v34 = vld [vmem:[%s1826_s11 + $0xc0] sm:$0xff]   ;;  %1393 = vmatprep.subr.bf16.mxu0 %v1562_v33  ;;  %v1567_v38 = vld [vmem:[%s1826_s11 + $0xc8] sm:$0xff]   ;;  %v1571_v42 = vld [vmem:[%s1826_s11 + $0xd0] sm:$0xff]  }
  0x39   : > { %v1564_v35 = vld [vmem:[%s1826_s11] sm:$0xff]   ;;  %1457 = vmatprep.subr.bf16.mxu1 %v1563_v34  ;;  %v1568_v39 = vld [vmem:[%s1826_s11 + $0x8] sm:$0xff]   ;;  %v1572_v43 = vld [vmem:[%s1826_s11 + $0x10] sm:$0xff]  }
  0x3a   : > { %v1565_v36 = vld [vmem:[%s1826_s11 + $0x80] sm:$0xff]   ;;  %1394 = vmatpush3.bf16.msra.mxu0 %v1564_v35  ;;  %v1569_v40 = vld [vmem:[%s1826_s11 + $0x88] sm:$0xff]   ;;  %v1573_v44 = vld [vmem:[%s1826_s11 + $0x90] sm:$0xff]  }
  0x3b   : > { %1458 = vmatpush3.bf16.msra.mxu1 %v1565_v36  ;;  %1395 = vmatprep.subr.bf16.mxu0 %v1566_v37  ;;  %v1574_v45 = vld [vmem:[%s1826_s11 + $0x58] sm:$0xff]   ;;  %v1578_v49 = vld [vmem:[%s1826_s11 + $0x60] sm:$0xff]   ;;  %v1582_v53 = vld [vmem:[%s1826_s11 + $0x68] sm:$0xff]  }
  0x3c   : > { %1459 = vmatprep.subr.bf16.mxu1 %v1567_v38  ;;  %v1575_v46 = vld [vmem:[%s1826_s11 + $0xd8] sm:$0xff]   ;;  %v1579_v50 = vld [vmem:[%s1826_s11 + $0xe0] sm:$0xff]   ;;  %v1583_v54 = vld [vmem:[%s1826_s11 + $0xe8] sm:$0xff]  }
  0x3d   : > { %v1576_v47 = vld [vmem:[%s1826_s11 + $0x18] sm:$0xff]   ;;  %v1580_v51 = vld [vmem:[%s1826_s11 + $0x20] sm:$0xff]   ;;  %v1584_v55 = vld [vmem:[%s1826_s11 + $0x28] sm:$0xff]  }
  0x3e   : > { %1396 = vmatpush3.bf16.msra.mxu0 %v1568_v39  ;;  %v1577_v48 = vld [vmem:[%s1826_s11 + $0x98] sm:$0xff]   ;;  %v1581_v52 = vld [vmem:[%s1826_s11 + $0xa0] sm:$0xff]   ;;  %v1585_v56 = vld [vmem:[%s1826_s11 + $0xa8] sm:$0xff]  }
  0x3f   : > { %1460 = vmatpush3.bf16.msra.mxu1 %v1569_v40  ;;  %1397 = vmatprep.subr.bf16.mxu0 %v1570_v41  ;;  %v1586_v57 = vld [vmem:[%s1826_s11 + $0x70] sm:$0xff]   ;;  %v1590_v61 = vld [vmem:[%s1826_s11 + $0x78] sm:$0xff]  }
  0x40   : > { %1461 = vmatprep.subr.bf16.mxu1 %v1571_v42  ;;  %v1587_v58 = vld [vmem:[%s1826_s11 + $0xf0] sm:$0xff]   ;;  %v1591_v62 = vld [vmem:[%s1826_s11 + $0xf8] sm:$0xff]   ;;  %v397_v42 = vld [vmem:[#allocation2] sm:$0xff] }
  0x41   : > { %v1588_v59 = vld [vmem:[%s1826_s11 + $0x30] sm:$0xff]   ;;  %v1592_v63 = vld [vmem:[%s1826_s11 + $0x38] sm:$0xff]  }
  0x42   : > { %1398 = vmatpush3.bf16.msra.mxu0 %v1572_v43  ;;  %v1589_v60 = vld [vmem:[%s1826_s11 + $0xb0] sm:$0xff]   ;;  %v1593_v0 = vld [vmem:[%s1826_s11 + $0xb8] sm:$0xff]  }
  0x43   : > { %1462 = vmatpush3.bf16.msra.mxu1 %v1573_v44  ;;  %1399 = vmatprep.subr.bf16.mxu0 %v1574_v45  ;;  %v1594_v1 = vld [vmem:[%s1828_s12] ss:$16 sps:$4 sm:$0xff]   ;;  %v1596_v2 = vld [vmem:[%s1828_s12 + $0x4] ss:$16 sps:$4 sm:$0xff]   ;;  %v1597_v3 = vld [vmem:[%s1828_s12 + $0x8] ss:$16 sps:$4 sm:$0xff]  }
  0x44   : > { %1463 = vmatprep.subr.bf16.mxu1 %v1575_v46  ;;  %v1599_v4 = vld [vmem:[%s1828_s12 + $0xc] ss:$16 sps:$4 sm:$0xff]   ;;  %893 = vmatprep.mubr.bf16.mxu0 %v1596_v2  ;;  %v1600_v5 = vld [vmem:[%s1828_s12 + $0x24] ss:$16 sps:$4 sm:$0xff]   ;;  %v1604_v7 = vld [vmem:[%s1828_s12 + $0x20] ss:$16 sps:$4 sm:$0xff]  }
  0x45   : > { %990 = vmatprep.mubr.bf16.mxu1 %v1599_v4  ;;  %v1602_v6 = vld [vmem:[%s1828_s12 + $0x2c] ss:$16 sps:$4 sm:$0xff]   ;;  %v1605_v8 = vld [vmem:[%s1828_s12 + $0x28] ss:$16 sps:$4 sm:$0xff]   ;;  %v1606_v9 = vld [vmem:[%s1828_s12 + $0x44] ss:$16 sps:$4 sm:$0xff]  }
  0x46   : > { %1400 = vmatpush3.bf16.msra.mxu0 %v1576_v47  ;;  %v1608_v10 = vld [vmem:[%s1828_s12 + $0x4c] ss:$16 sps:$4 sm:$0xff]   ;;  %v1610_v11 = vld [vmem:[%s1828_s12 + $0x40] ss:$16 sps:$4 sm:$0xff]   ;;  %v1611_v12 = vld [vmem:[%s1828_s12 + $0x48] ss:$16 sps:$4 sm:$0xff]  }
  0x47   : > { %1464 = vmatpush3.bf16.msra.mxu1 %v1577_v48  ;;  %1401 = vmatprep.subr.bf16.mxu0 %v1578_v49  ;;  %v1612_v13 = vld [vmem:[%s1828_s12 + $0x64] ss:$16 sps:$4 sm:$0xff]   ;;  %v1614_v14 = vld [vmem:[%s1828_s12 + $0x6c] ss:$16 sps:$4 sm:$0xff]   ;;  %v1616_v15 = vld [vmem:[%s1828_s12 + $0x60] ss:$16 sps:$4 sm:$0xff]  }
  0x48   : > { %1465 = vmatprep.subr.bf16.mxu1 %v1579_v50  ;;  %v1617_v16 = vld [vmem:[%s1828_s12 + $0x68] ss:$16 sps:$4 sm:$0xff]   ;;  %v1618_v17 = vld [vmem:[%s1828_s12 + $0x84] ss:$16 sps:$4 sm:$0xff]   ;;  %v1620_v18 = vld [vmem:[%s1828_s12 + $0x8c] ss:$16 sps:$4 sm:$0xff]  }
  0x49   : > { %v1622_v19 = vld [vmem:[%s1828_s12 + $0x80] ss:$16 sps:$4 sm:$0xff]   ;;  %v1623_v20 = vld [vmem:[%s1828_s12 + $0x88] ss:$16 sps:$4 sm:$0xff]   ;;  %v1624_v21 = vld [vmem:[%s1828_s12 + $0xa4] ss:$16 sps:$4 sm:$0xff]  }
  0x4a   : > { %1402 = vmatpush3.bf16.msra.mxu0 %v1580_v51  ;;  %v1626_v22 = vld [vmem:[%s1828_s12 + $0xac] ss:$16 sps:$4 sm:$0xff]   ;;  %v1628_v23 = vld [vmem:[%s1828_s12 + $0xa0] ss:$16 sps:$4 sm:$0xff]   ;;  %v1629_v24 = vld [vmem:[%s1828_s12 + $0xa8] ss:$16 sps:$4 sm:$0xff]  }
  0x4b   : > { %1466 = vmatpush3.bf16.msra.mxu1 %v1581_v52  ;;  %1403 = vmatprep.subr.bf16.mxu0 %v1582_v53  ;;  %v1630_v25 = vld [vmem:[%s1828_s12 + $0xc4] ss:$16 sps:$4 sm:$0xff]   ;;  %v1632_v26 = vld [vmem:[%s1828_s12 + $0xcc] ss:$16 sps:$4 sm:$0xff]   ;;  %v1634_v27 = vld [vmem:[%s1828_s12 + $0xc0] ss:$16 sps:$4 sm:$0xff]  }
  0x4c   : > { %1467 = vmatprep.subr.bf16.mxu1 %v1583_v54  ;;  %v1635_v28 = vld [vmem:[%s1828_s12 + $0xc8] ss:$16 sps:$4 sm:$0xff]   ;;  %v1636_v29 = vld [vmem:[%s1828_s12 + $0xe4] ss:$16 sps:$4 sm:$0xff]   ;;  %v1638_v30 = vld [vmem:[%s1828_s12 + $0xec] ss:$16 sps:$4 sm:$0xff]  }
  0x4d   : > { %v1640_v31 = vld [vmem:[%s1828_s12 + $0xe0] ss:$16 sps:$4 sm:$0xff]   ;;  %v1641_v32 = vld [vmem:[%s1828_s12 + $0xe8] ss:$16 sps:$4 sm:$0xff]  }
  0x4e   : > { %1404 = vmatpush3.bf16.msra.mxu0 %v1584_v55  ;;  %v398_v47 = vld [vmem:[#allocation2 + $0x8] sm:$0xff] }
  0x4f   : > { %1468 = vmatpush3.bf16.msra.mxu1 %v1585_v56  ;;  %1405 = vmatprep.subr.bf16.mxu0 %v1586_v57 }
  0x50   : > { %1469 = vmatprep.subr.bf16.mxu1 %v1587_v58 }
  0x52   : > { %1406 = vmatpush3.bf16.msra.mxu0 %v1588_v59 }
  0x53   : > { %1470 = vmatpush3.bf16.msra.mxu1 %v1589_v60  ;;  %1407 = vmatprep.subr.bf16.mxu0 %v1590_v61  ;;  %v399_v60 = vld [vmem:[#allocation2 + $0x10] sm:$0xff] }
  0x54   : > { %1471 = vmatprep.subr.bf16.mxu1 %v1591_v62 }
  0x56   : > { %1408 = vmatpush3.bf16.msra.mxu0 %v1592_v63 }
  0x57   : > { %1472 = vmatpush3.bf16.msra.mxu1 %v1593_v0 }
  0x59   : > { %894 = vmatmul.mubr.bf16.vlgmr.msra.gmra.mrb[0].mxu0 %v1594_v1  ;;  %v400_v1 = vld [vmem:[#allocation2 + $0x18] sm:$0xff] }
  0x5a   : > { %991 = vmatmul.mubr.bf16.vlgmr.msra.gmra.mrb[0].mxu1 %v1597_v3  ;;  %901 = vmatprep.mubr.bf16.mxu0 %v1600_v5 }
  0x5b   : > { %998 = vmatprep.mubr.bf16.mxu1 %v1602_v6 }
  0x61   : > { %902 = vmatmul.mubr.bf16.gmra.mrb[4].mxu0 %v1604_v7 }
  0x62   : > { %999 = vmatmul.mubr.bf16.gmra.mrb[4].mxu1 %v1605_v8  ;;  %909 = vmatprep.mubr.bf16.mxu0 %v1606_v9 }
  0x63   : > { %1006 = vmatprep.mubr.bf16.mxu1 %v1608_v10 }
  0x69   : > { %910 = vmatmul.mubr.bf16.gmra.mrb[8].mxu0 %v1610_v11 }
  0x6a   : > { %1007 = vmatmul.mubr.bf16.gmra.mrb[8].mxu1 %v1611_v12  ;;  %917 = vmatprep.mubr.bf16.mxu0 %v1612_v13 }
  0x6b   : > { %1014 = vmatprep.mubr.bf16.mxu1 %v1614_v14  ;;  %v401_v14 = vld [vmem:[#allocation2 + $0x20] sm:$0xff] }
  0x71   : > { %918 = vmatmul.mubr.bf16.gmra.mrb[12].mxu0 %v1616_v15 }
  0x72   : > { %1015 = vmatmul.mubr.bf16.gmra.mrb[12].mxu1 %v1617_v16  ;;  %925 = vmatprep.mubr.bf16.mxu0 %v1618_v17 }
  0x73   : > { %1022 = vmatprep.mubr.bf16.mxu1 %v1620_v18 }
  0x79   : > { %926 = vmatmul.mubr.bf16.gmra.mrb[16].mxu0 %v1622_v19  ;;  %v402_v19 = vld [vmem:[#allocation2 + $0x28] sm:$0xff] }
  0x7a   : > { %1023 = vmatmul.mubr.bf16.gmra.mrb[16].mxu1 %v1623_v20  ;;  %933 = vmatprep.mubr.bf16.mxu0 %v1624_v21 }
  0x7b   : > { %1030 = vmatprep.mubr.bf16.mxu1 %v1626_v22 }
  0x81   : > { %934 = vmatmul.mubr.bf16.gmra.mrb[20].mxu0 %v1628_v23 }
  0x82   : > { %1031 = vmatmul.mubr.bf16.gmra.mrb[20].mxu1 %v1629_v24  ;;  %941 = vmatprep.mubr.bf16.mxu0 %v1630_v25 }
  0x83   : > { %1038 = vmatprep.mubr.bf16.mxu1 %v1632_v26 }
  0x89   : > { %942 = vmatmul.mubr.bf16.gmra.mrb[24].mxu0 %v1634_v27 }
  0x8a   : > { %1039 = vmatmul.mubr.bf16.gmra.mrb[24].mxu1 %v1635_v28  ;;  %949 = vmatprep.mubr.bf16.mxu0 %v1636_v29 }
  0x8b   : > { %1046 = vmatprep.mubr.bf16.mxu1 %v1638_v30 }
  0x91   : > { %950 = vmatmul.mubr.bf16.gmra.mrb[28].mxu0 %v1640_v31 }
  0x92   : > { %1047 = vmatmul.mubr.bf16.gmra.mrb[28].mxu1 %v1641_v32  ;;  %v403_v32 = vld [vmem:[#allocation2 + $0x30] sm:$0xff] }
 0x12c   : > { %v1409_v33 = vpop.f32.mrb[0].mxu0 }
 0x12d   : > { %v1473_v34 = vpop.f32.mrb[0].mxu1  ;;  %v1410_v35 = vpop.f32.mrb[1].mxu0 }
 0x12e   : > { %v1411_v36 = vadd.f32 %v1410_v35, %v1409_v33  ;;  %v1474_v37 = vpop.f32.mrb[1].mxu1  ;;  %v1412_v38 = vpop.f32.mrb[2].mxu0 }
 0x12f   : > { %v1475_v39 = vadd.f32 %v1474_v37, %v1473_v34  ;;  %v1476_v40 = vpop.f32.mrb[2].mxu1  ;;  %v1413_v41 = vpop.f32.mrb[3].mxu0  ;;  %v404_v37 = vld [vmem:[#allocation2 + $0x38] sm:$0xff] }
 0x130   : > { %v1414_v43 = vadd.f32 %v1413_v41, %v1412_v38  ;;  %v1477_v44 = vpop.f32.mrb[3].mxu1 }
 0x131   : > { %v993_v45 = vadd.f32 %v1475_v39, %v1411_v36  ;;  %v1478_v46 = vadd.f32 %v1477_v44, %v1476_v40 }
 0x133   : > { %v1055_v48 = vadd.f32 %v993_v45, %v397_v42  ;;  %v996_v49 = vadd.f32 %v1478_v46, %v1414_v43 }
 0x134   : > { %v1415_v50 = vpop.f32.mrb[4].mxu0 }
 0x135   : > { %1071 = vst [vmem:[#allocation2] sm:$0xff] %v1055_v48  ;;  %v1056_v51 = vadd.f32 %v996_v49, %v398_v47  ;;  %v1479_v52 = vpop.f32.mrb[4].mxu1  ;;  %v1416_v53 = vpop.f32.mrb[5].mxu0 }
 0x136   : > { %v1417_v54 = vadd.f32 %v1416_v53, %v1415_v50  ;;  %v1480_v55 = vpop.f32.mrb[5].mxu1  ;;  %v1418_v56 = vpop.f32.mrb[6].mxu0  ;;  %v405_v50 = vld [vmem:[#allocation2 + $0x40] sm:$0xff] }
 0x137   : > { %1072 = vst [vmem:[#allocation2 + $0x8] sm:$0xff] %v1056_v51  ;;  %v1481_v57 = vadd.f32 %v1480_v55, %v1479_v52  ;;  %v1482_v58 = vpop.f32.mrb[6].mxu1  ;;  %v1419_v59 = vpop.f32.mrb[7].mxu0  ;;  %v406_v55 = vld [vmem:[#allocation2 + $0x48] sm:$0xff] }
 0x138   : > { %v1420_v61 = vadd.f32 %v1419_v59, %v1418_v56  ;;  %v1483_v62 = vpop.f32.mrb[7].mxu1 }
 0x139   : > { %v1001_v63 = vadd.f32 %v1481_v57, %v1417_v54  ;;  %v1484_v0 = vadd.f32 %v1483_v62, %v1482_v58 }
 0x13b   : > { %v1057_v2 = vadd.f32 %v1001_v63, %v399_v60  ;;  %v1004_v3 = vadd.f32 %v1484_v0, %v1420_v61 }
 0x13c   : > { %v1421_v4 = vpop.f32.mrb[8].mxu0 }
 0x13d   : > { %1073 = vst [vmem:[#allocation2 + $0x10] sm:$0xff] %v1057_v2  ;;  %v1058_v5 = vadd.f32 %v1004_v3, %v400_v1  ;;  %v1485_v6 = vpop.f32.mrb[8].mxu1  ;;  %v1422_v7 = vpop.f32.mrb[9].mxu0 }
 0x13e   : > { %v1423_v8 = vadd.f32 %v1422_v7, %v1421_v4  ;;  %v1486_v9 = vpop.f32.mrb[9].mxu1  ;;  %v1424_v10 = vpop.f32.mrb[10].mxu0  ;;  %v407_v4 = vld [vmem:[#allocation2 + $0x50] sm:$0xff] }
 0x13f   : > { %1074 = vst [vmem:[#allocation2 + $0x18] sm:$0xff] %v1058_v5  ;;  %v1487_v11 = vadd.f32 %v1486_v9, %v1485_v6  ;;  %v1488_v12 = vpop.f32.mrb[10].mxu1  ;;  %v1425_v13 = vpop.f32.mrb[11].mxu0  ;;  %v408_v9 = vld [vmem:[#allocation2 + $0x58] sm:$0xff] }
 0x140   : > { %v1426_v15 = vadd.f32 %v1425_v13, %v1424_v10  ;;  %v1489_v16 = vpop.f32.mrb[11].mxu1 }
 0x141   : > { %v1009_v17 = vadd.f32 %v1487_v11, %v1423_v8  ;;  %v1490_v18 = vadd.f32 %v1489_v16, %v1488_v12 }
 0x143   : > { %v1059_v20 = vadd.f32 %v1009_v17, %v401_v14  ;;  %v1012_v21 = vadd.f32 %v1490_v18, %v1426_v15 }
 0x144   : > { %v1427_v22 = vpop.f32.mrb[12].mxu0 }
 0x145   : > { %1075 = vst [vmem:[#allocation2 + $0x20] sm:$0xff] %v1059_v20  ;;  %v1060_v23 = vadd.f32 %v1012_v21, %v402_v19  ;;  %v1491_v24 = vpop.f32.mrb[12].mxu1  ;;  %v1428_v25 = vpop.f32.mrb[13].mxu0 }
 0x146   : > { %v1429_v26 = vadd.f32 %v1428_v25, %v1427_v22  ;;  %v1492_v27 = vpop.f32.mrb[13].mxu1  ;;  %v1430_v28 = vpop.f32.mrb[14].mxu0  ;;  %v409_v22 = vld [vmem:[#allocation2 + $0x60] sm:$0xff] }
 0x147   : > { %1076 = vst [vmem:[#allocation2 + $0x28] sm:$0xff] %v1060_v23  ;;  %v1493_v29 = vadd.f32 %v1492_v27, %v1491_v24  ;;  %v1494_v30 = vpop.f32.mrb[14].mxu1  ;;  %v1431_v31 = vpop.f32.mrb[15].mxu0  ;;  %v410_v27 = vld [vmem:[#allocation2 + $0x68] sm:$0xff] }
 0x148   : > { %v1432_v33 = vadd.f32 %v1431_v31, %v1430_v28  ;;  %v1495_v34 = vpop.f32.mrb[15].mxu1 }
 0x149   : > { %v1017_v35 = vadd.f32 %v1493_v29, %v1429_v26  ;;  %v1496_v36 = vadd.f32 %v1495_v34, %v1494_v30 }
 0x14b   : > { %v1061_v38 = vadd.f32 %v1017_v35, %v403_v32  ;;  %v1020_v39 = vadd.f32 %v1496_v36, %v1432_v33 }
 0x14c   : > { %v1433_v40 = vpop.f32.mrb[16].mxu0 }
 0x14d   : > { %1077 = vst [vmem:[#allocation2 + $0x30] sm:$0xff] %v1061_v38  ;;  %v1062_v41 = vadd.f32 %v1020_v39, %v404_v37  ;;  %v1497_v42 = vpop.f32.mrb[16].mxu1  ;;  %v1434_v43 = vpop.f32.mrb[17].mxu0 }
 0x14e   : > { %v1435_v44 = vadd.f32 %v1434_v43, %v1433_v40  ;;  %v1498_v45 = vpop.f32.mrb[17].mxu1  ;;  %v1436_v46 = vpop.f32.mrb[18].mxu0  ;;  %v411_v40 = vld [vmem:[#allocation2 + $0x70] sm:$0xff] }
 0x14f   : > { %1078 = vst [vmem:[#allocation2 + $0x38] sm:$0xff] %v1062_v41  ;;  %v1499_v47 = vadd.f32 %v1498_v45, %v1497_v42  ;;  %v1500_v48 = vpop.f32.mrb[18].mxu1  ;;  %v1437_v49 = vpop.f32.mrb[19].mxu0  ;;  %v412_v45 = vld [vmem:[#allocation2 + $0x78] sm:$0xff] }
 0x150   : > { %v1438_v51 = vadd.f32 %v1437_v49, %v1436_v46  ;;  %v1501_v52 = vpop.f32.mrb[19].mxu1  ;;  %v1091_v49 = vld [vmem:[#allocation2] sm:$0xff] (!%p1385_p11) }
 0x151   : > { %v1025_v53 = vadd.f32 %v1499_v47, %v1435_v44  ;;  %v1502_v54 = vadd.f32 %v1501_v52, %v1500_v48 }
 0x153   : > { %v1063_v56 = vadd.f32 %v1025_v53, %v405_v50  ;;  %v1028_v57 = vadd.f32 %v1502_v54, %v1438_v51  ;;  %v1386_v50 = vld [vmem:[%s1985_s2] ss:$0 sm:$0xff] (!%p1385_p11)  ;;  %v1092_v53 = vld [vmem:[#allocation2 + $0x8] sm:$0xff] (!%p1385_p11)  ;;  %v1093_v54 = vld [vmem:[#allocation2 + $0x10] sm:$0xff] (!%p1385_p11) }
 0x154   : > { %v1439_v58 = vpop.f32.mrb[20].mxu0  ;;  %v1902_v51 = vld [vmem:[%s1986_s3] ss:$0 sm:$0xff] (!%p1385_p11)  ;;  %v1114_v52 = vmul.f32 (!%p1385_p11), %v1386_v50, %v1091_v49 }
 0x155   : > { %1079 = vst [vmem:[#allocation2 + $0x40] sm:$0xff] %v1063_v56  ;;  %v1064_v59 = vadd.f32 %v1028_v57, %v406_v55  ;;  %v1503_v60 = vpop.f32.mrb[20].mxu1  ;;  %v1440_v61 = vpop.f32.mrb[21].mxu0  ;;  %v1094_v55 = vld [vmem:[#allocation2 + $0x18] sm:$0xff] (!%p1385_p11)  ;;  %v1115_v56 = vmul.f32 (!%p1385_p11), %v1386_v50, %v1092_v53  ;;  %v1116_v57 = vmul.f32 (!%p1385_p11), %v1386_v50, %v1093_v54 }
 0x156   : > { %v1441_v62 = vadd.f32 %v1440_v61, %v1439_v58  ;;  %v1504_v63 = vpop.f32.mrb[21].mxu1  ;;  %v1442_v0 = vpop.f32.mrb[22].mxu0  ;;  %v1117_v58 = vmul.f32 (!%p1385_p11), %v1386_v50, %v1094_v55  ;;  %v1097_v61 = vld [vmem:[#allocation2 + $0x30] sm:$0xff] (!%p1385_p11) }
 0x157   : > { %1080 = vst [vmem:[#allocation2 + $0x48] sm:$0xff] %v1064_v59  ;;  %v1505_v1 = vadd.f32 %v1504_v63, %v1503_v60  ;;  %v1506_v2 = vpop.f32.mrb[22].mxu1  ;;  %v1443_v3 = vpop.f32.mrb[23].mxu0  ;;  %v1095_v59 = vld [vmem:[#allocation2 + $0x20] sm:$0xff] (!%p1385_p11)  ;;  %v1096_v60 = vld [vmem:[#allocation2 + $0x28] sm:$0xff] (!%p1385_p11) }
 0x158   : > { %v1444_v5 = vadd.f32 %v1443_v3, %v1442_v0  ;;  %v1507_v6 = vpop.f32.mrb[23].mxu1  ;;  %v1118_v63 = vmul.f32 (!%p1385_p11), %v1386_v50, %v1095_v59  ;;  %v1119_v0 = vmul.f32 (!%p1385_p11), %v1386_v50, %v1096_v60  ;;  %v1138_v3 = vadd.f32 (!%p1385_p11), %v1902_v51, %v1115_v56 }
 0x159   : > { %v1033_v7 = vadd.f32 %v1505_v1, %v1441_v62  ;;  %v1508_v8 = vadd.f32 %v1507_v6, %v1506_v2  ;;  %v1137_v62 = vadd.f32 (!%p1385_p11), %v1902_v51, %v1114_v52  ;;  %v1120_v1 = vmul.f32 (!%p1385_p11), %v1386_v50, %v1097_v61  ;;  %v1098_v2 = vld [vmem:[#allocation2 + $0x38] sm:$0xff] (!%p1385_p11) }
 0x15a   : > { %v1121_v6 = vmul.f32 (!%p1385_p11), %v1386_v50, %v1098_v2 }
 0x15b   : > { %v1065_v10 = vadd.f32 %v1033_v7, %v407_v4  ;;  %v1036_v11 = vadd.f32 %v1508_v8, %v1444_v5  ;;  %v1139_v4 = vadd.f32 (!%p1385_p11), %v1902_v51, %v1116_v57  ;;  %v1140_v5 = vadd.f32 (!%p1385_p11), %v1902_v51, %v1117_v58 }
 0x15c   : > { %v1445_v12 = vpop.f32.mrb[24].mxu0  ;;  %v1099_v7 = vld [vmem:[#allocation2 + $0x40] sm:$0xff] (!%p1385_p11)  ;;  %v1153_v8 = vmax.f32 (!%p1385_p11), %v1137_v62, 0.0 }
 0x15d   : > { %1081 = vst [vmem:[#allocation2 + $0x50] sm:$0xff] %v1065_v10  ;;  %v1066_v13 = vadd.f32 %v1036_v11, %v408_v9  ;;  %v1509_v14 = vpop.f32.mrb[24].mxu1  ;;  %v1446_v15 = vpop.f32.mrb[25].mxu0  ;;  %v1141_v9 = vadd.f32 (!%p1385_p11), %v1902_v51, %v1118_v63  ;;  %v1142_v10 = vadd.f32 (!%p1385_p11), %v1902_v51, %v1119_v0  ;;  %v1143_v11 = vadd.f32 (!%p1385_p11), %v1902_v51, %v1120_v1 }
 0x15e   : > { %v1447_v16 = vadd.f32 %v1446_v15, %v1445_v12  ;;  %v1510_v17 = vpop.f32.mrb[25].mxu1  ;;  %v1448_v18 = vpop.f32.mrb[26].mxu0  ;;  %v1100_v12 = vld [vmem:[#allocation2 + $0x48] sm:$0xff] (!%p1385_p11)  ;;  %v1154_v15 = vmax.f32 (!%p1385_p11), %v1138_v3, 0.0  ;;  %1169 = vst [vmem:[%s1987_s4] sm:$0xff] (!%p1385_p11), %v1153_v8 }
 0x15f   : > { %1082 = vst [vmem:[#allocation2 + $0x58] sm:$0xff] %v1066_v13  ;;  %v1511_v19 = vadd.f32 %v1510_v17, %v1509_v14  ;;  %v1512_v20 = vpop.f32.mrb[26].mxu1  ;;  %v1449_v21 = vpop.f32.mrb[27].mxu0  ;;  %v1156_v17 = vmax.f32 (!%p1385_p11), %v1140_v5, 0.0 }
 0x160   : > { %v1450_v23 = vadd.f32 %v1449_v21, %v1448_v18  ;;  %v1513_v24 = vpop.f32.mrb[27].mxu1  ;;  %v1144_v18 = vadd.f32 (!%p1385_p11), %v1902_v51, %v1121_v6  ;;  %1170 = vst [vmem:[%s1987_s4 + $0x8] sm:$0xff] (!%p1385_p11), %v1154_v15 }
 0x161   : > { %v1041_v25 = vadd.f32 %v1511_v19, %v1447_v16  ;;  %v1514_v26 = vadd.f32 %v1513_v24, %v1512_v20  ;;  %v1155_v16 = vmax.f32 (!%p1385_p11), %v1139_v4, 0.0  ;;  %v1159_v24 = vmax.f32 (!%p1385_p11), %v1143_v11, 0.0  ;;  %1172 = vst [vmem:[%s1987_s4 + $0x18] sm:$0xff] (!%p1385_p11), %v1156_v17 }
 0x163   : > { %v1067_v28 = vadd.f32 %v1041_v25, %v409_v22  ;;  %v1044_v29 = vadd.f32 %v1514_v26, %v1450_v23  ;;  %v1157_v22 = vmax.f32 (!%p1385_p11), %v1141_v9, 0.0  ;;  %v1158_v23 = vmax.f32 (!%p1385_p11), %v1142_v10, 0.0  ;;  %1171 = vst [vmem:[%s1987_s4 + $0x10] sm:$0xff] (!%p1385_p11), %v1155_v16  ;;  %1175 = vst [vmem:[%s1987_s4 + $0x30] sm:$0xff] (!%p1385_p11), %v1159_v24 }
 0x164   : > { %v1451_v30 = vpop.f32.mrb[28].mxu0  ;;  %v1101_v13 = vld [vmem:[#allocation2 + $0x50] sm:$0xff] (!%p1385_p11)  ;;  %v1122_v25 = vmul.f32 (!%p1385_p11), %v1386_v50, %v1099_v7 }
 0x165   : > { %1083 = vst [vmem:[#allocation2 + $0x60] sm:$0xff] %v1067_v28  ;;  %v1068_v31 = vadd.f32 %v1044_v29, %v410_v27  ;;  %v1515_v32 = vpop.f32.mrb[28].mxu1  ;;  %v1452_v33 = vpop.f32.mrb[29].mxu0  ;;  %v1160_v27 = vmax.f32 (!%p1385_p11), %v1144_v18, 0.0  ;;  %v1123_v28 = vmul.f32 (!%p1385_p11), %v1386_v50, %v1100_v12  ;;  %v1124_v29 = vmul.f32 (!%p1385_p11), %v1386_v50, %v1101_v13  ;;  %1173 = vst [vmem:[%s1987_s4 + $0x20] sm:$0xff] (!%p1385_p11), %v1157_v22 }
 0x166   : > { %v1453_v34 = vadd.f32 %v1452_v33, %v1451_v30  ;;  %v1516_v35 = vpop.f32.mrb[29].mxu1  ;;  %v1454_v36 = vpop.f32.mrb[30].mxu0  ;;  %v1102_v14 = vld [vmem:[#allocation2 + $0x58] sm:$0xff] (!%p1385_p11)  ;;  %1174 = vst [vmem:[%s1987_s4 + $0x28] sm:$0xff] (!%p1385_p11), %v1158_v23 }
 0x167   : > { %1084 = vst [vmem:[#allocation2 + $0x68] sm:$0xff] %v1068_v31  ;;  %v1517_v37 = vadd.f32 %v1516_v35, %v1515_v32  ;;  %v1518_v38 = vpop.f32.mrb[30].mxu1  ;;  %v1455_v39 = vpop.f32.mrb[31].mxu0  ;;  %v1125_v30 = vmul.f32 (!%p1385_p11), %v1386_v50, %v1102_v14  ;;  %v1145_v31 = vadd.f32 (!%p1385_p11), %v1902_v51, %v1122_v25  ;;  %1176 = vst [vmem:[%s1987_s4 + $0x38] sm:$0xff] (!%p1385_p11), %v1160_v27 }
 0x168   : > { %v1456_v41 = vadd.f32 %v1455_v39, %v1454_v36  ;;  %v1519_v42 = vpop.f32.mrb[31].mxu1  ;;  %v1146_v35 = vadd.f32 (!%p1385_p11), %v1902_v51, %v1123_v28  ;;  %v1147_v36 = vadd.f32 (!%p1385_p11), %v1902_v51, %v1124_v29 }
 0x169   : > { %v1049_v43 = vadd.f32 %v1517_v37, %v1453_v34  ;;  %v1520_v44 = vadd.f32 %v1519_v42, %v1518_v38  ;;  %1090 = sbr.rel (%p1385_p11) target bundleno = 382 (0x17e), region = 67  ;;  %v1148_v37 = vadd.f32 (!%p1385_p11), %v1902_v51, %v1125_v30  ;;  %v1161_v39 = vmax.f32 (!%p1385_p11), %v1145_v31, 0.0 }
 0x16b   : > { %v1069_v46 = vadd.f32 %v1049_v43, %v411_v40  ;;  %v1052_v47 = vadd.f32 %v1520_v44, %v1456_v41  ;;  %v1162_v43 = vmax.f32 (!%p1385_p11), %v1146_v35, 0.0  ;;  %v1163_v44 = vmax.f32 (!%p1385_p11), %v1147_v36, 0.0  ;;  %1177 = vst [vmem:[%s1987_s4 + $0x40] sm:$0xff] (!%p1385_p11), %v1161_v39 }
 0x16c   : > { %v1103_v19 = vld [vmem:[#allocation2 + $0x60] sm:$0xff] (!%p1385_p11) }
 0x16d   : > { %1085 = vst [vmem:[#allocation2 + $0x70] sm:$0xff] %v1069_v46  ;;  %v1070_v48 = vadd.f32 %v1052_v47, %v412_v45  ;;  %v1126_v32 = vmul.f32 (!%p1385_p11), %v1386_v50, %v1103_v19  ;;  %v1164_v45 = vmax.f32 (!%p1385_p11), %v1148_v37, 0.0  ;;  %1178 = vst [vmem:[%s1987_s4 + $0x48] sm:$0xff] (!%p1385_p11), %v1162_v43 }
 0x16e   : > { %v1104_v20 = vld [vmem:[#allocation2 + $0x68] sm:$0xff] (!%p1385_p11)  ;;  %1179 = vst [vmem:[%s1987_s4 + $0x50] sm:$0xff] (!%p1385_p11), %v1163_v44 }
 0x16f   : > { %1086 = vst [vmem:[#allocation2 + $0x78] sm:$0xff] %v1070_v48  ;;  %v1127_v33 = vmul.f32 (!%p1385_p11), %v1386_v50, %v1104_v20  ;;  %v1149_v40 = vadd.f32 (!%p1385_p11), %v1902_v51, %v1126_v32  ;;  %1180 = vst [vmem:[%s1987_s4 + $0x58] sm:$0xff] (!%p1385_p11), %v1164_v45 }
 0x171   : > { %v1150_v41 = vadd.f32 %v1902_v51, %v1127_v33  ;;  %v1165_v47 = vmax.f32 %v1149_v40, 0.0 }
 0x173   : > { %v1166_v48 = vmax.f32 %v1150_v41, 0.0  ;;  %1181 = vst [vmem:[%s1987_s4 + $0x60] sm:$0xff] %v1165_v47 }
 0x174   : > { %v1105_v21 = vld [vmem:[#allocation2 + $0x70] sm:$0xff] }
 0x175   : > { %v1128_v34 = vmul.f32 %v1386_v50, %v1105_v21  ;;  %1182 = vst [vmem:[%s1987_s4 + $0x68] sm:$0xff] %v1166_v48 }
 0x176   : > { %v1106_v26 = vld [vmem:[#allocation2 + $0x78] sm:$0xff] }
 0x177   : > { %v1129_v38 = vmul.f32 %v1386_v50, %v1106_v26  ;;  %v1151_v42 = vadd.f32 %v1902_v51, %v1128_v34 }
 0x179   : > { %v1152_v46 = vadd.f32 %v1902_v51, %v1129_v38  ;;  %v1167_v49 = vmax.f32 %v1151_v42, 0.0 }
 0x17b   : > { %v1168_v50 = vmax.f32 %v1152_v46, 0.0  ;;  %1183 = vst [vmem:[%s1987_s4 + $0x70] sm:$0xff] %v1167_v49 }
 0x17d   : > { %1184 = vst [vmem:[%s1987_s4 + $0x78] sm:$0xff] %v1168_v50 }
 0x17e PF: > { %s14_s19 = sadd.s32 1, %s1680_s19   ;;  %s1988_s15 = smov %s1668_s16 }
 0x17f   : > { %p11_p12 = scmp.ge.s32.totalorder %s14_s19, 6   ;;  %s1989_s16 = smov %s1743_s23 }
 0x180   : > { %s1990_s17 = smov %s1676_s18  ;;  %s1991_s18 = smov %s1993_s20 }
 0x181   :  { %13 = sbr.rel (!%p11_p12) target bundleno = 3 (0x3), region = 111 }

// kernel: dbpnet_forward.26
= control target key start
LH: loop header
LB: loop body
LE: loop exit
PB: predicated region body
PF: predicated region fallthrough
CT: control target
= control target key end

     0   :  { %s1180_s15 = smov 0   ;;  %s1182_s16 = smov 0   ;;  %s1309_s0 = inlined_call_operand.vmem [shape: bf16[32,1024], index: 0, kind: input, shape index: {}]   ;;  %s1310_s1 = inlined_call_operand.vmem [shape: bf16[1024,128], index: 1, kind: input, shape index: {}]   ;;  %s1311_s2 = inlined_call_operand.vmem [shape: f32[1,128], index: 2, kind: input, shape index: {}]   ;;  %s1312_s3 = inlined_call_operand.vmem [shape: f32[1,128], index: 3, kind: input, shape index: {}]   ;;  %s1313_s4 = inlined_call_operand.vmem [shape: f32[32,128], index: 4, kind: output, shape index: {}]  }
   0x1   :  { %s1184_s17 = smov 0   ;;  %s1186_s18 = smov 0  }
   0x2   :  { %s1188_s19 = smov 0  }
   0x3 LB: > { %s26_s20 = sadd.s32 1, %s1148_s18  ;;  %p49_p1 = scmp.ne.s32.totalorder %s1140_s16, %s1136_s15  ;;  %s1152_s19 = sphi %s1188_s19, %s14_s19   ;;  %s1148_s18 = sphi %s1186_s18, %s1317_s18   ;;  %s1144_s17 = sphi %s1184_s17, %s1316_s17   ;;  %s1140_s16 = sphi %s1182_s16, %s1315_s16   ;;  %s1136_s15 = sphi %s1180_s15, %s1314_s15  }
   0x4   : > { %p27_p0 = scmp.ge.s32.totalorder %s26_s20, 2  ;;  %p50_p2 = scmp.eq.s32.totalorder %s1152_s19, 0 }
   0x5   : > { %s42_s22 = sadd.s32 1, %s1140_s16  ;;  %p916_p5 = scmp.ge.s32.totalorder %s1152_s19, 2 }
   0x6   : > { %s1319_s20 = smov (%p27_p0, %s26_s20), 0  ;;  %p51_p3 = por %p50_p2, %p49_p1 }
   0x7   : > { %s38_s21 = ssub.s32 %s1148_s18, %s1319_s20  ;;  %195 = sbr.rel (%p916_p5) target bundleno = 22 (0x16), region = 24 }
   0x8   : > { %p40_p4 = scmp.eq.s32.totalorder %s38_s21, 0 }
   0xa   : > { %s1215_s23 = scalar_select %p40_p4, %s1140_s16, %s42_s22  }
   0xe   : > { %198 = sbr.rel (!%p51_p3) target bundleno = 22 (0x16), region = 28  ;;  %s200_s24 = sand.u32 (%p51_p3), 1, %s1140_s16  }
   0xf   : > { %s972_s25 = sshll.u32 (%p51_p3), %s1148_s18, 4  ;;  %s917_s26 = sshll.u32 (%p51_p3), %s200_s24, 6 }
  0x10   : > { %s208_s29 = scalar_lea.vmem (%p51_p3), %s1309_s0, %s972_s25  ;;  %s202_s30 = scalar_lea.vmem (%p51_p3), [#allocation3], %s917_s26 }
  0x11   : > { %v221_v0 = vld [vmem:[%s208_s29] sm:$0xff] (%p51_p3)  ;;  %v223_v1 = vld [vmem:[%s208_s29 + $0x8] sm:$0xff] (%p51_p3) }
  0x12   : > { %v225_v2 = vld [vmem:[%s208_s29 + $0x20] sm:$0xff] (%p51_p3)  ;;  %222 = vst [vmem:[%s202_s30] sm:$0xff] (%p51_p3), %v221_v0  ;;  %224 = vst [vmem:[%s202_s30 + $0x8] sm:$0xff] (%p51_p3), %v223_v1  ;;  %v227_v3 = vld [vmem:[%s208_s29 + $0x28] sm:$0xff] (%p51_p3) }
  0x13   : > { %226 = vst [vmem:[%s202_s30 + $0x10] sm:$0xff] (%p51_p3), %v225_v2  ;;  %v229_v4 = vld [vmem:[%s208_s29 + $0x40] sm:$0xff] (%p51_p3)  ;;  %v231_v5 = vld [vmem:[%s208_s29 + $0x48] sm:$0xff] (%p51_p3)  ;;  %228 = vst [vmem:[%s202_s30 + $0x18] sm:$0xff] (%p51_p3), %v227_v3 }
  0x14   : > { %230 = vst [vmem:[%s202_s30 + $0x20] sm:$0xff] (%p51_p3), %v229_v4  ;;  %232 = vst [vmem:[%s202_s30 + $0x28] sm:$0xff] (%p51_p3), %v231_v5  ;;  %v233_v6 = vld [vmem:[%s208_s29 + $0x60] sm:$0xff] (%p51_p3)  ;;  %v235_v7 = vld [vmem:[%s208_s29 + $0x68] sm:$0xff] (%p51_p3) }
  0x15   : > { %234 = vst [vmem:[%s202_s30 + $0x30] sm:$0xff] %v233_v6  ;;  %236 = vst [vmem:[%s202_s30 + $0x38] sm:$0xff] %v235_v7 }
  0x16 PF: > { %p920_p6 = scmp.ge.s32.totalorder %s1152_s19, 1  ;;  %p253_p7 = scmp.lt.s32.totalorder %s1152_s19, 3 }
  0x18   : > { %p254_p8 = pnand %p920_p6, %p253_p7 }
  0x19   : > { %s260_s5 = sand.u32 (!%p254_p8), 1, %s1136_s15   ;;  %s922_s6 = sshll.u32 (!%p254_p8), %s1144_s17, 6 }
  0x1a   : > { %257 = sbr.rel (%p254_p8) target bundleno = 319 (0x13f), region = 55  ;;  %s921_s7 = sshll.u32 (!%p254_p8), %s260_s5, 6 }
  0x1b   : > { %p305_p9 = scmp.lt.s32.totalorder (!%p254_p8), %s922_s6, 127  ;;  %s1232_s12 = scalar_lea.vmem (!%p254_p8), [#allocation3], %s921_s7 }
  0x1c   : > { %p924_p10 = scmp.ne.s32.totalorder (!%p254_p8), %s1144_s17, 0 }
  0x21   : > { %s1321_s6 = smov (!%p305_p9, %s922_s6), 127  ;;  %332 = sbr.rel (%p924_p10) target bundleno = 40 (0x28), region = 63 }
  0x22   : > { %s923_s8 = sshll.u32 %s1321_s6, 2  ;;  %v1154_v8 = vmov (!%p924_p10), 0.0  }
  0x23   : > { %s1230_s11 = scalar_lea.vmem %s1310_s1, %s923_s8  ;;  %333 = vst [vmem:[#allocation2] sm:$0xff] (!%p924_p10), %v1154_v8  ;;  %334 = vst [vmem:[#allocation2 + $0x8] sm:$0xff] (!%p924_p10), %v1154_v8 }
  0x24   : > { %335 = vst [vmem:[#allocation2 + $0x10] sm:$0xff] (!%p924_p10), %v1154_v8  ;;  %336 = vst [vmem:[#allocation2 + $0x18] sm:$0xff] (!%p924_p10), %v1154_v8 }
  0x28 PF: > { %v1070_v9 = vld [vmem:[%s1230_s11 + $0x40] sm:$0xff]   ;;  %v1074_v13 = vld [vmem:[%s1230_s11 + $0x48] sm:$0xff]   ;;  %v1078_v17 = vld [vmem:[%s1230_s11 + $0x50] sm:$0xff]   ;;  %p965_p11 = scmp.ne.s32.totalorder %s1144_s17, 1 }
  0x29   : > { %v1071_v10 = vld [vmem:[%s1230_s11 + $0xc0] sm:$0xff]   ;;  %973 = vmatprep.subr.bf16.mxu0 %v1070_v9  ;;  %v1075_v14 = vld [vmem:[%s1230_s11 + $0xc8] sm:$0xff]   ;;  %v1079_v18 = vld [vmem:[%s1230_s11 + $0xd0] sm:$0xff]  }
  0x2a   : > { %v1072_v11 = vld [vmem:[%s1230_s11] sm:$0xff]   ;;  %1001 = vmatprep.subr.bf16.mxu1 %v1071_v10  ;;  %v1076_v15 = vld [vmem:[%s1230_s11 + $0x8] sm:$0xff]   ;;  %v1080_v19 = vld [vmem:[%s1230_s11 + $0x10] sm:$0xff]  }
  0x2b   : > { %v1073_v12 = vld [vmem:[%s1230_s11 + $0x80] sm:$0xff]   ;;  %974 = vmatpush3.bf16.msra.mxu0 %v1072_v11  ;;  %v1077_v16 = vld [vmem:[%s1230_s11 + $0x88] sm:$0xff]   ;;  %v1081_v20 = vld [vmem:[%s1230_s11 + $0x90] sm:$0xff]  }
  0x2c   : > { %1002 = vmatpush3.bf16.msra.mxu1 %v1073_v12  ;;  %975 = vmatprep.subr.bf16.mxu0 %v1074_v13  ;;  %v1082_v21 = vld [vmem:[%s1230_s11 + $0x58] sm:$0xff]   ;;  %v1086_v25 = vld [vmem:[%s1230_s11 + $0x60] sm:$0xff]   ;;  %v1090_v29 = vld [vmem:[%s1230_s11 + $0x68] sm:$0xff]  }
  0x2d   : > { %1003 = vmatprep.subr.bf16.mxu1 %v1075_v14  ;;  %v1083_v22 = vld [vmem:[%s1230_s11 + $0xd8] sm:$0xff]   ;;  %v1087_v26 = vld [vmem:[%s1230_s11 + $0xe0] sm:$0xff]   ;;  %v1091_v30 = vld [vmem:[%s1230_s11 + $0xe8] sm:$0xff]  }
  0x2e   : > { %v1084_v23 = vld [vmem:[%s1230_s11 + $0x18] sm:$0xff]   ;;  %v1088_v27 = vld [vmem:[%s1230_s11 + $0x20] sm:$0xff]   ;;  %v1092_v31 = vld [vmem:[%s1230_s11 + $0x28] sm:$0xff]  }
  0x2f   : > { %976 = vmatpush3.bf16.msra.mxu0 %v1076_v15  ;;  %v1085_v24 = vld [vmem:[%s1230_s11 + $0x98] sm:$0xff]   ;;  %v1089_v28 = vld [vmem:[%s1230_s11 + $0xa0] sm:$0xff]   ;;  %v1093_v32 = vld [vmem:[%s1230_s11 + $0xa8] sm:$0xff]  }
  0x30   : > { %1004 = vmatpush3.bf16.msra.mxu1 %v1077_v16  ;;  %977 = vmatprep.subr.bf16.mxu0 %v1078_v17  ;;  %v1094_v33 = vld [vmem:[%s1230_s11 + $0x70] sm:$0xff]   ;;  %v1098_v37 = vld [vmem:[%s1230_s11 + $0x78] sm:$0xff]   ;;  %v337_v58 = vld [vmem:[#allocation2] sm:$0xff] }
  0x31   : > { %1005 = vmatprep.subr.bf16.mxu1 %v1079_v18  ;;  %v1095_v34 = vld [vmem:[%s1230_s11 + $0xf0] sm:$0xff]   ;;  %v1099_v38 = vld [vmem:[%s1230_s11 + $0xf8] sm:$0xff]   ;;  %v338_v63 = vld [vmem:[#allocation2 + $0x8] sm:$0xff] }
  0x32   : > { %v1096_v35 = vld [vmem:[%s1230_s11 + $0x30] sm:$0xff]   ;;  %v1100_v39 = vld [vmem:[%s1230_s11 + $0x38] sm:$0xff]  }
  0x33   : > { %978 = vmatpush3.bf16.msra.mxu0 %v1080_v19  ;;  %v1097_v36 = vld [vmem:[%s1230_s11 + $0xb0] sm:$0xff]   ;;  %v1101_v40 = vld [vmem:[%s1230_s11 + $0xb8] sm:$0xff]  }
  0x34   : > { %1006 = vmatpush3.bf16.msra.mxu1 %v1081_v20  ;;  %979 = vmatprep.subr.bf16.mxu0 %v1082_v21  ;;  %v1102_v41 = vld [vmem:[%s1232_s12] ss:$16 sps:$4 sm:$0xff]   ;;  %v1104_v42 = vld [vmem:[%s1232_s12 + $0x4] ss:$16 sps:$4 sm:$0xff]   ;;  %v1105_v43 = vld [vmem:[%s1232_s12 + $0x8] ss:$16 sps:$4 sm:$0xff]  }
  0x35   : > { %1007 = vmatprep.subr.bf16.mxu1 %v1083_v22  ;;  %v1107_v44 = vld [vmem:[%s1232_s12 + $0xc] ss:$16 sps:$4 sm:$0xff]   ;;  %677 = vmatprep.mubr.bf16.mxu0 %v1104_v42  ;;  %v1108_v45 = vld [vmem:[%s1232_s12 + $0x24] ss:$16 sps:$4 sm:$0xff]   ;;  %v1112_v47 = vld [vmem:[%s1232_s12 + $0x20] ss:$16 sps:$4 sm:$0xff]  }
  0x36   : > { %726 = vmatprep.mubr.bf16.mxu1 %v1107_v44  ;;  %v1110_v46 = vld [vmem:[%s1232_s12 + $0x2c] ss:$16 sps:$4 sm:$0xff]   ;;  %v1113_v48 = vld [vmem:[%s1232_s12 + $0x28] ss:$16 sps:$4 sm:$0xff]   ;;  %v339_v12 = vld [vmem:[#allocation2 + $0x10] sm:$0xff] }
  0x37   : > { %980 = vmatpush3.bf16.msra.mxu0 %v1084_v23  ;;  %v340_v17 = vld [vmem:[#allocation2 + $0x18] sm:$0xff]  ;;  %v966_v22 = vld [vmem:[%s1311_s2] ss:$0 sm:$0xff] (!%p965_p11) }
  0x38   : > { %1008 = vmatpush3.bf16.msra.mxu1 %v1085_v24  ;;  %981 = vmatprep.subr.bf16.mxu0 %v1086_v25  ;;  %v967_v23 = vld [vmem:[%s1312_s3] ss:$0 sm:$0xff] (!%p965_p11) }
  0x39   : > { %1009 = vmatprep.subr.bf16.mxu1 %v1087_v26 }
  0x3b   : > { %982 = vmatpush3.bf16.msra.mxu0 %v1088_v27 }
  0x3c   : > { %1010 = vmatpush3.bf16.msra.mxu1 %v1089_v28  ;;  %983 = vmatprep.subr.bf16.mxu0 %v1090_v29 }
  0x3d   : > { %1011 = vmatprep.subr.bf16.mxu1 %v1091_v30 }
  0x3f   : > { %984 = vmatpush3.bf16.msra.mxu0 %v1092_v31 }
  0x40   : > { %1012 = vmatpush3.bf16.msra.mxu1 %v1093_v32  ;;  %985 = vmatprep.subr.bf16.mxu0 %v1094_v33 }
  0x41   : > { %1013 = vmatprep.subr.bf16.mxu1 %v1095_v34 }
  0x43   : > { %986 = vmatpush3.bf16.msra.mxu0 %v1096_v35 }
  0x44   : > { %1014 = vmatpush3.bf16.msra.mxu1 %v1097_v36  ;;  %987 = vmatprep.subr.bf16.mxu0 %v1098_v37 }
  0x45   : > { %1015 = vmatprep.subr.bf16.mxu1 %v1099_v38 }
  0x47   : > { %988 = vmatpush3.bf16.msra.mxu0 %v1100_v39 }
  0x48   : > { %1016 = vmatpush3.bf16.msra.mxu1 %v1101_v40 }
  0x4a   : > { %678 = vmatmul.mubr.bf16.vlgmr.msra.gmra.mrb[0].mxu0 %v1102_v41 }
  0x4b   : > { %727 = vmatmul.mubr.bf16.vlgmr.msra.gmra.mrb[0].mxu1 %v1105_v43  ;;  %685 = vmatprep.mubr.bf16.mxu0 %v1108_v45 }
  0x4c   : > { %734 = vmatprep.mubr.bf16.mxu1 %v1110_v46 }
  0x52   : > { %686 = vmatmul.mubr.bf16.gmra.mrb[4].mxu0 %v1112_v47 }
  0x53   : > { %735 = vmatmul.mubr.bf16.gmra.mrb[4].mxu1 %v1113_v48 }
 0x11d   : > { %v989_v49 = vpop.f32.mrb[0].mxu0 }
 0x11e   : > { %v1017_v50 = vpop.f32.mrb[0].mxu1  ;;  %v990_v51 = vpop.f32.mrb[1].mxu0 }
 0x11f   : > { %v991_v52 = vadd.f32 %v990_v51, %v989_v49  ;;  %v1018_v53 = vpop.f32.mrb[1].mxu1  ;;  %v992_v54 = vpop.f32.mrb[2].mxu0 }
 0x120   : > { %v1019_v55 = vadd.f32 %v1018_v53, %v1017_v50  ;;  %v1020_v56 = vpop.f32.mrb[2].mxu1  ;;  %v993_v57 = vpop.f32.mrb[3].mxu0 }
 0x121   : > { %v994_v59 = vadd.f32 %v993_v57, %v992_v54  ;;  %v1021_v60 = vpop.f32.mrb[3].mxu1 }
 0x122   : > { %v729_v61 = vadd.f32 %v1019_v55, %v991_v52  ;;  %v1022_v62 = vadd.f32 %v1021_v60, %v1020_v56 }
 0x124   : > { %v743_v0 = vadd.f32 %v729_v61, %v337_v58  ;;  %v732_v1 = vadd.f32 %v1022_v62, %v994_v59 }
 0x125   : > { %v995_v2 = vpop.f32.mrb[4].mxu0 }
 0x126   : > { %747 = vst [vmem:[#allocation2] sm:$0xff] %v743_v0  ;;  %v744_v3 = vadd.f32 %v732_v1, %v338_v63  ;;  %v1023_v4 = vpop.f32.mrb[4].mxu1  ;;  %v996_v5 = vpop.f32.mrb[5].mxu0 }
 0x127   : > { %v997_v6 = vadd.f32 %v996_v5, %v995_v2  ;;  %v1024_v7 = vpop.f32.mrb[5].mxu1  ;;  %v998_v8 = vpop.f32.mrb[6].mxu0 }
 0x128   : > { %748 = vst [vmem:[#allocation2 + $0x8] sm:$0xff] %v744_v3  ;;  %v1025_v9 = vadd.f32 %v1024_v7, %v1023_v4  ;;  %v1026_v10 = vpop.f32.mrb[6].mxu1  ;;  %v999_v11 = vpop.f32.mrb[7].mxu0 }
 0x129   : > { %v1000_v13 = vadd.f32 %v999_v11, %v998_v8  ;;  %v1027_v14 = vpop.f32.mrb[7].mxu1 }
 0x12a   : > { %v737_v15 = vadd.f32 %v1025_v9, %v997_v6  ;;  %v1028_v16 = vadd.f32 %v1027_v14, %v1026_v10  ;;  %754 = sbr.rel (%p965_p11) target bundleno = 319 (0x13f), region = 67 }
 0x12c   : > { %v745_v18 = vadd.f32 %v737_v15, %v339_v12  ;;  %v740_v19 = vadd.f32 %v1028_v16, %v1000_v13 }
 0x12d   : > { %v755_v21 = vld [vmem:[#allocation2] sm:$0xff] (!%p965_p11) }
 0x12e   : > { %749 = vst [vmem:[#allocation2 + $0x10] sm:$0xff] %v745_v18  ;;  %v746_v20 = vadd.f32 %v740_v19, %v340_v17  ;;  %v766_v24 = vmul.f32 (!%p965_p11), %v966_v22, %v755_v21 }
 0x12f   : > { %v756_v25 = vld [vmem:[#allocation2 + $0x8] sm:$0xff] (!%p965_p11) }
 0x130   : > { %750 = vst [vmem:[#allocation2 + $0x18] sm:$0xff] %v746_v20  ;;  %v767_v28 = vmul.f32 (!%p965_p11), %v966_v22, %v756_v25  ;;  %v777_v31 = vadd.f32 (!%p965_p11), %v967_v23, %v766_v24 }
 0x132   : > { %v778_v32 = vadd.f32 %v967_v23, %v767_v28  ;;  %v781_v35 = vmax.f32 %v777_v31, 0.0 }
 0x134   : > { %v782_v36 = vmax.f32 %v778_v32, 0.0  ;;  %785 = vst [vmem:[%s1313_s4] sm:$0xff] %v781_v35 }
 0x135   : > { %v757_v26 = vld [vmem:[#allocation2 + $0x10] sm:$0xff] }
 0x136   : > { %v768_v29 = vmul.f32 %v966_v22, %v757_v26  ;;  %786 = vst [vmem:[%s1313_s4 + $0x8] sm:$0xff] %v782_v36 }
 0x137   : > { %v758_v27 = vld [vmem:[#allocation2 + $0x18] sm:$0xff] }
 0x138   : > { %v769_v30 = vmul.f32 %v966_v22, %v758_v27  ;;  %v779_v33 = vadd.f32 %v967_v23, %v768_v29 }
 0x13a   : > { %v780_v34 = vadd.f32 %v967_v23, %v769_v30  ;;  %v783_v37 = vmax.f32 %v779_v33, 0.0 }
 0x13c   : > { %v784_v38 = vmax.f32 %v780_v34, 0.0  ;;  %787 = vst [vmem:[%s1313_s4 + $0x10] sm:$0xff] %v783_v37 }
 0x13e   : > { %788 = vst [vmem:[%s1313_s4 + $0x18] sm:$0xff] %v784_v38 }
 0x13f PF: > { %s14_s19 = sadd.s32 1, %s1152_s19   ;;  %s1314_s15 = smov %s1140_s16 }
 0x140   : > { %p11_p12 = scmp.ge.s32.totalorder %s14_s19, 4   ;;  %s1315_s16 = smov %s1215_s23 }
 0x141   : > { %s1316_s17 = smov %s1148_s18  ;;  %s1317_s18 = smov %s1319_s20 }
 0x142   :  { %13 = sbr.rel (!%p11_p12) target bundleno = 3 (0x3), region = 111 }

// kernel: dbpnet_forward.24
= control target key start
LH: loop header
LB: loop body
LE: loop exit
PB: predicated region body
PF: predicated region fallthrough
CT: control target
= control target key end

     0   :  { %s329_s1 = inlined_call_operand.vmem [shape: bf16[128,128], index: 1, kind: input, shape index: {}]   ;;  %s330_s0 = inlined_call_operand.vmem [shape: bf16[32,128], index: 0, kind: input, shape index: {}]   ;;  %s331_s2 = inlined_call_operand.vmem [shape: f32[1,128], index: 2, kind: input, shape index: {}]   ;;  %s332_s3 = inlined_call_operand.vmem [shape: f32[1,128], index: 3, kind: input, shape index: {}]   ;;  %s333_s4 = inlined_call_operand.vmem [shape: f32[32,128], index: 4, kind: output, shape index: {}]  }
   0x1   :  { %v246_v0 = vld [vmem:[%s329_s1] sm:$0xff]   ;;  %v247_v1 = vld [vmem:[%s329_s1 + $0x8] sm:$0xff]   ;;  %v248_v2 = vld [vmem:[%s329_s1 + $0x10] sm:$0xff]  }
   0x2   :  { %226 = vmatprep.subr.bf16.mxu0 %v246_v0  ;;  %v249_v3 = vld [vmem:[%s329_s1 + $0x18] sm:$0xff]   ;;  %v254_v4 = vld [vmem:[%s330_s0] sm:$0xff]   ;;  %v251_v6 = vld [vmem:[%s329_s1 + $0x28] sm:$0xff]  }
   0x3   :  { %227 = vmatpush3.bf16.msra.mxu0 %v246_v0  ;;  %242 = vmatprep.mubr.bf16.mxu0 %v254_v4  ;;  %v250_v5 = vld [vmem:[%s329_s1 + $0x20] sm:$0xff]   ;;  %v252_v7 = vld [vmem:[%s329_s1 + $0x30] sm:$0xff]   ;;  %v253_v8 = vld [vmem:[%s329_s1 + $0x38] sm:$0xff]  }
   0x4   :  { %228 = vmatprep.subr.bf16.mxu0 %v247_v1  ;;  %v255_v9 = vld [vmem:[%s330_s0 + $0x8] sm:$0xff]   ;;  %v214_v10 = vld [vmem:[%s331_s2] ss:$0 sm:$0xff] }
   0x5   :  { %v215_v12 = vld [vmem:[%s332_s3] ss:$0 sm:$0xff] }
   0x7   :  { %229 = vmatpush3.bf16.msra.mxu0 %v247_v1 }
   0x8   :  { %230 = vmatprep.subr.bf16.mxu0 %v248_v2 }
   0xb   :  { %231 = vmatpush3.bf16.msra.mxu0 %v248_v2 }
   0xc   :  { %232 = vmatprep.subr.bf16.mxu0 %v249_v3 }
   0xf   :  { %233 = vmatpush3.bf16.msra.mxu0 %v249_v3 }
  0x10   :  { %234 = vmatprep.subr.bf16.mxu0 %v250_v5 }
  0x13   :  { %235 = vmatpush3.bf16.msra.mxu0 %v250_v5 }
  0x14   :  { %236 = vmatprep.subr.bf16.mxu0 %v251_v6 }
  0x17   :  { %237 = vmatpush3.bf16.msra.mxu0 %v251_v6 }
  0x18   :  { %238 = vmatprep.subr.bf16.mxu0 %v252_v7 }
  0x1b   :  { %239 = vmatpush3.bf16.msra.mxu0 %v252_v7 }
  0x1c   :  { %240 = vmatprep.subr.bf16.mxu0 %v253_v8 }
  0x1f   :  { %241 = vmatpush3.bf16.msra.mxu0 %v253_v8 }
  0x22   :  { %243 = vmatmul.mubr.bf16.vlgmr.msra.gmra.mrb[0].mxu0 %v255_v9 }
  0xf5   :  { %v244_v11 = vpop.f32.mrb[0].mxu0 }
  0xf6   :  { %v183_v13 = vmul.f32 %v244_v11, %v214_v10  ;;  %v144_v14 = vpop.f32.mrb[1].mxu0 }
  0xf7   :  { %v181_v15 = vmul.f32 %v214_v10, %v144_v14  ;;  %v245_v16 = vpop.f32.mrb[2].mxu0 }
  0xf8   :  { %v194_v17 = vadd.f32 %v215_v12, %v183_v13  ;;  %v184_v18 = vmul.f32 %v245_v16, %v214_v10  ;;  %v147_v19 = vpop.f32.mrb[3].mxu0 }
  0xf9   :  { %v192_v20 = vadd.f32 %v215_v12, %v181_v15  ;;  %v182_v21 = vmul.f32 %v214_v10, %v147_v19 }
  0xfa   :  { %198 = vst [vmem:[%s333_s4 + $0x10] sm:$0xff] %v194_v17  ;;  %v195_v22 = vadd.f32 %v215_v12, %v184_v18 }
  0xfb   :  { %196 = vst [vmem:[%s333_s4] sm:$0xff] %v192_v20  ;;  %v193_v23 = vadd.f32 %v215_v12, %v182_v21 }
  0xfc   :  { %199 = vst [vmem:[%s333_s4 + $0x18] sm:$0xff] %v195_v22 }
  0xfd   :  { %197 = vst [vmem:[%s333_s4 + $0x8] sm:$0xff] %v193_v23 }

// kernel: dbpnet_forward.27
= control target key start
LH: loop header
LB: loop body
LE: loop exit
PB: predicated region body
PF: predicated region fallthrough
CT: control target
= control target key end

     0   :  { %s361_s1 = inlined_call_operand.vmem [shape: bf16[128,128], index: 1, kind: input, shape index: {}]   ;;  %s362_s0 = inlined_call_operand.vmem [shape: bf16[32,128], index: 0, kind: input, shape index: {}]   ;;  %s363_s2 = inlined_call_operand.vmem [shape: f32[1,128], index: 2, kind: input, shape index: {}]   ;;  %s364_s3 = inlined_call_operand.vmem [shape: f32[1,128], index: 3, kind: input, shape index: {}]   ;;  %s365_s4 = inlined_call_operand.vmem [shape: f32[32,128], index: 4, kind: input, shape index: {}]   ;;  %s366_s5 = inlined_call_operand.vmem [shape: f32[32,128], index: 5, kind: output, shape index: {}]  }
   0x1   :  { %v261_v0 = vld [vmem:[%s361_s1] sm:$0xff]   ;;  %v262_v1 = vld [vmem:[%s361_s1 + $0x8] sm:$0xff]   ;;  %v263_v2 = vld [vmem:[%s361_s1 + $0x10] sm:$0xff]  }
   0x2   :  { %241 = vmatprep.subr.bf16.mxu0 %v261_v0  ;;  %v264_v3 = vld [vmem:[%s361_s1 + $0x18] sm:$0xff]   ;;  %v269_v4 = vld [vmem:[%s362_s0] sm:$0xff]   ;;  %v266_v6 = vld [vmem:[%s361_s1 + $0x28] sm:$0xff]  }
   0x3   :  { %242 = vmatpush3.bf16.msra.mxu0 %v261_v0  ;;  %257 = vmatprep.mubr.bf16.mxu0 %v269_v4  ;;  %v265_v5 = vld [vmem:[%s361_s1 + $0x20] sm:$0xff]   ;;  %v267_v7 = vld [vmem:[%s361_s1 + $0x30] sm:$0xff]   ;;  %v268_v8 = vld [vmem:[%s361_s1 + $0x38] sm:$0xff]  }
   0x4   :  { %243 = vmatprep.subr.bf16.mxu0 %v262_v1  ;;  %v270_v9 = vld [vmem:[%s362_s0 + $0x8] sm:$0xff]   ;;  %v229_v10 = vld [vmem:[%s363_s2] ss:$0 sm:$0xff]  ;;  %v201_v15 = vld [vmem:[%s365_s4 + $0x10] sm:$0xff] }
   0x5   :  { %v230_v12 = vld [vmem:[%s364_s3] ss:$0 sm:$0xff]  ;;  %v202_v23 = vld [vmem:[%s365_s4 + $0x18] sm:$0xff]  ;;  %v200_v27 = vld [vmem:[%s365_s4 + $0x8] sm:$0xff] }
   0x6   :  { %v199_v19 = vld [vmem:[%s365_s4] sm:$0xff] }
   0x7   :  { %244 = vmatpush3.bf16.msra.mxu0 %v262_v1 }
   0x8   :  { %245 = vmatprep.subr.bf16.mxu0 %v263_v2 }
   0xb   :  { %246 = vmatpush3.bf16.msra.mxu0 %v263_v2 }
   0xc   :  { %247 = vmatprep.subr.bf16.mxu0 %v264_v3 }
   0xf   :  { %248 = vmatpush3.bf16.msra.mxu0 %v264_v3 }
  0x10   :  { %249 = vmatprep.subr.bf16.mxu0 %v265_v5 }
  0x13   :  { %250 = vmatpush3.bf16.msra.mxu0 %v265_v5 }
  0x14   :  { %251 = vmatprep.subr.bf16.mxu0 %v266_v6 }
  0x17   :  { %252 = vmatpush3.bf16.msra.mxu0 %v266_v6 }
  0x18   :  { %253 = vmatprep.subr.bf16.mxu0 %v267_v7 }
  0x1b   :  { %254 = vmatpush3.bf16.msra.mxu0 %v267_v7 }
  0x1c   :  { %255 = vmatprep.subr.bf16.mxu0 %v268_v8 }
  0x1f   :  { %256 = vmatpush3.bf16.msra.mxu0 %v268_v8 }
  0x22   :  { %258 = vmatmul.mubr.bf16.vlgmr.msra.gmra.mrb[0].mxu0 %v270_v9 }
  0xf5   :  { %v259_v11 = vpop.f32.mrb[0].mxu0 }
  0xf6   :  { %v186_v13 = vmul.f32 %v259_v11, %v229_v10  ;;  %v147_v14 = vpop.f32.mrb[1].mxu0 }
  0xf7   :  { %v184_v16 = vmul.f32 %v229_v10, %v147_v14  ;;  %v260_v17 = vpop.f32.mrb[2].mxu0 }
  0xf8   :  { %v197_v18 = vadd.f32 %v230_v12, %v186_v13  ;;  %v187_v20 = vmul.f32 %v260_v17, %v229_v10  ;;  %v150_v21 = vpop.f32.mrb[3].mxu0 }
  0xf9   :  { %v195_v22 = vadd.f32 %v230_v12, %v184_v16  ;;  %v185_v24 = vmul.f32 %v229_v10, %v150_v21 }
  0xfa   :  { %v205_v25 = vadd.f32 %v201_v15, %v197_v18  ;;  %v198_v26 = vadd.f32 %v230_v12, %v187_v20 }
  0xfb   :  { %v203_v28 = vadd.f32 %v199_v19, %v195_v22  ;;  %v196_v29 = vadd.f32 %v230_v12, %v185_v24 }
  0xfc   :  { %v209_v30 = vmax.f32 %v205_v25, 0.0  ;;  %v206_v31 = vadd.f32 %v202_v23, %v198_v26 }
  0xfd   :  { %v207_v32 = vmax.f32 %v203_v28, 0.0  ;;  %v204_v33 = vadd.f32 %v200_v27, %v196_v29 }
  0xfe   :  { %213 = vst [vmem:[%s366_s5 + $0x10] sm:$0xff] %v209_v30  ;;  %v210_v34 = vmax.f32 %v206_v31, 0.0 }
  0xff   :  { %211 = vst [vmem:[%s366_s5] sm:$0xff] %v207_v32  ;;  %v208_v35 = vmax.f32 %v204_v33, 0.0 }
 0x100   :  { %214 = vst [vmem:[%s366_s5 + $0x18] sm:$0xff] %v210_v34 }
 0x101   :  { %212 = vst [vmem:[%s366_s5 + $0x8] sm:$0xff] %v208_v35 }

// kernel: dbpnet_forward.30
= control target key start
LH: loop header
LB: loop body
LE: loop exit
PB: predicated region body
PF: predicated region fallthrough
CT: control target
= control target key end

     0   :  { %s333_s1 = inlined_call_operand.vmem [shape: bf16[128,128], index: 1, kind: input, shape index: {}]   ;;  %s334_s0 = inlined_call_operand.vmem [shape: bf16[32,128], index: 0, kind: input, shape index: {}]   ;;  %s335_s2 = inlined_call_operand.vmem [shape: f32[1,128], index: 2, kind: input, shape index: {}]   ;;  %s336_s3 = inlined_call_operand.vmem [shape: f32[1,128], index: 3, kind: input, shape index: {}]   ;;  %s337_s4 = inlined_call_operand.vmem [shape: f32[32,128], index: 4, kind: output, shape index: {}]  }
   0x1   :  { %v250_v0 = vld [vmem:[%s333_s1] sm:$0xff]   ;;  %v251_v1 = vld [vmem:[%s333_s1 + $0x8] sm:$0xff]   ;;  %v252_v2 = vld [vmem:[%s333_s1 + $0x10] sm:$0xff]  }
   0x2   :  { %230 = vmatprep.subr.bf16.mxu0 %v250_v0  ;;  %v253_v3 = vld [vmem:[%s333_s1 + $0x18] sm:$0xff]   ;;  %v258_v4 = vld [vmem:[%s334_s0] sm:$0xff]   ;;  %v255_v6 = vld [vmem:[%s333_s1 + $0x28] sm:$0xff]  }
   0x3   :  { %231 = vmatpush3.bf16.msra.mxu0 %v250_v0  ;;  %246 = vmatprep.mubr.bf16.mxu0 %v258_v4  ;;  %v254_v5 = vld [vmem:[%s333_s1 + $0x20] sm:$0xff]   ;;  %v256_v7 = vld [vmem:[%s333_s1 + $0x30] sm:$0xff]   ;;  %v257_v8 = vld [vmem:[%s333_s1 + $0x38] sm:$0xff]  }
   0x4   :  { %232 = vmatprep.subr.bf16.mxu0 %v251_v1  ;;  %v259_v9 = vld [vmem:[%s334_s0 + $0x8] sm:$0xff]   ;;  %v218_v10 = vld [vmem:[%s335_s2] ss:$0 sm:$0xff] }
   0x5   :  { %v219_v12 = vld [vmem:[%s336_s3] ss:$0 sm:$0xff] }
   0x7   :  { %233 = vmatpush3.bf16.msra.mxu0 %v251_v1 }
   0x8   :  { %234 = vmatprep.subr.bf16.mxu0 %v252_v2 }
   0xb   :  { %235 = vmatpush3.bf16.msra.mxu0 %v252_v2 }
   0xc   :  { %236 = vmatprep.subr.bf16.mxu0 %v253_v3 }
   0xf   :  { %237 = vmatpush3.bf16.msra.mxu0 %v253_v3 }
  0x10   :  { %238 = vmatprep.subr.bf16.mxu0 %v254_v5 }
  0x13   :  { %239 = vmatpush3.bf16.msra.mxu0 %v254_v5 }
  0x14   :  { %240 = vmatprep.subr.bf16.mxu0 %v255_v6 }
  0x17   :  { %241 = vmatpush3.bf16.msra.mxu0 %v255_v6 }
  0x18   :  { %242 = vmatprep.subr.bf16.mxu0 %v256_v7 }
  0x1b   :  { %243 = vmatpush3.bf16.msra.mxu0 %v256_v7 }
  0x1c   :  { %244 = vmatprep.subr.bf16.mxu0 %v257_v8 }
  0x1f   :  { %245 = vmatpush3.bf16.msra.mxu0 %v257_v8 }
  0x22   :  { %247 = vmatmul.mubr.bf16.vlgmr.msra.gmra.mrb[0].mxu0 %v259_v9 }
  0xf5   :  { %v248_v11 = vpop.f32.mrb[0].mxu0 }
  0xf6   :  { %v183_v13 = vmul.f32 %v248_v11, %v218_v10  ;;  %v144_v14 = vpop.f32.mrb[1].mxu0 }
  0xf7   :  { %v181_v15 = vmul.f32 %v218_v10, %v144_v14  ;;  %v249_v16 = vpop.f32.mrb[2].mxu0 }
  0xf8   :  { %v194_v17 = vadd.f32 %v219_v12, %v183_v13  ;;  %v184_v18 = vmul.f32 %v249_v16, %v218_v10  ;;  %v147_v19 = vpop.f32.mrb[3].mxu0 }
  0xf9   :  { %v192_v20 = vadd.f32 %v219_v12, %v181_v15  ;;  %v182_v21 = vmul.f32 %v218_v10, %v147_v19 }
  0xfa   :  { %v198_v22 = vmax.f32 %v194_v17, 0.0  ;;  %v195_v23 = vadd.f32 %v219_v12, %v184_v18 }
  0xfb   :  { %v196_v24 = vmax.f32 %v192_v20, 0.0  ;;  %v193_v25 = vadd.f32 %v219_v12, %v182_v21 }
  0xfc   :  { %202 = vst [vmem:[%s337_s4 + $0x10] sm:$0xff] %v198_v22  ;;  %v199_v26 = vmax.f32 %v195_v23, 0.0 }
  0xfd   :  { %200 = vst [vmem:[%s337_s4] sm:$0xff] %v196_v24  ;;  %v197_v27 = vmax.f32 %v193_v25, 0.0 }
  0xfe   :  { %203 = vst [vmem:[%s337_s4 + $0x18] sm:$0xff] %v199_v26 }
  0xff   :  { %201 = vst [vmem:[%s337_s4 + $0x8] sm:$0xff] %v197_v27 }

// kernel: dbpnet_forward.28
= control target key start
LH: loop header
LB: loop body
LE: loop exit
PB: predicated region body
PF: predicated region fallthrough
CT: control target
= control target key end

     0   :  { %s1180_s15 = smov 0   ;;  %s1182_s16 = smov 0   ;;  %s1309_s0 = inlined_call_operand.vmem [shape: bf16[32,3584], index: 0, kind: input, shape index: {}]   ;;  %s1310_s1 = inlined_call_operand.vmem [shape: bf16[3584,128], index: 1, kind: input, shape index: {}]   ;;  %s1311_s2 = inlined_call_operand.vmem [shape: f32[1,128], index: 2, kind: input, shape index: {}]   ;;  %s1312_s3 = inlined_call_operand.vmem [shape: f32[1,128], index: 3, kind: input, shape index: {}]   ;;  %s1313_s4 = inlined_call_operand.vmem [shape: f32[32,128], index: 4, kind: output, shape index: {}]  }
   0x1   :  { %s1184_s17 = smov 0   ;;  %s1186_s18 = smov 0  }
   0x2   :  { %s1188_s19 = smov 0  }
   0x3 LB: > { %s26_s20 = sadd.s32 1, %s1148_s18  ;;  %p49_p1 = scmp.ne.s32.totalorder %s1140_s16, %s1136_s15  ;;  %s1152_s19 = sphi %s1188_s19, %s14_s19   ;;  %s1148_s18 = sphi %s1186_s18, %s1317_s18   ;;  %s1144_s17 = sphi %s1184_s17, %s1316_s17   ;;  %s1140_s16 = sphi %s1182_s16, %s1315_s16   ;;  %s1136_s15 = sphi %s1180_s15, %s1314_s15  }
   0x4   : > { %p27_p0 = scmp.ge.s32.totalorder %s26_s20, 7  ;;  %p50_p2 = scmp.eq.s32.totalorder %s1152_s19, 0 }
   0x5   : > { %s42_s22 = sadd.s32 1, %s1140_s16  ;;  %p916_p5 = scmp.ge.s32.totalorder %s1152_s19, 7 }
   0x6   : > { %s1319_s20 = smov (%p27_p0, %s26_s20), 0  ;;  %p51_p3 = por %p50_p2, %p49_p1 }
   0x7   : > { %s38_s21 = ssub.s32 %s1148_s18, %s1319_s20  ;;  %195 = sbr.rel (%p916_p5) target bundleno = 22 (0x16), region = 24 }
   0x8   : > { %p40_p4 = scmp.eq.s32.totalorder %s38_s21, 0 }
   0xa   : > { %s1215_s23 = scalar_select %p40_p4, %s1140_s16, %s42_s22  }
   0xe   : > { %198 = sbr.rel (!%p51_p3) target bundleno = 22 (0x16), region = 28  ;;  %s200_s24 = sand.u32 (%p51_p3), 1, %s1140_s16  }
   0xf   : > { %s972_s25 = sshll.u32 (%p51_p3), %s1148_s18, 4  ;;  %s917_s26 = sshll.u32 (%p51_p3), %s200_s24, 6 }
  0x10   : > { %s208_s29 = scalar_lea.vmem (%p51_p3), %s1309_s0, %s972_s25  ;;  %s202_s30 = scalar_lea.vmem (%p51_p3), [#allocation3], %s917_s26 }
  0x11   : > { %v221_v0 = vld [vmem:[%s208_s29] sm:$0xff] (%p51_p3)  ;;  %v223_v1 = vld [vmem:[%s208_s29 + $0x8] sm:$0xff] (%p51_p3)  ;;  %v225_v2 = vld [vmem:[%s208_s29 + $0x70] sm:$0xff] (%p51_p3) }
  0x12   : > { %222 = vst [vmem:[%s202_s30] sm:$0xff] (%p51_p3), %v221_v0  ;;  %224 = vst [vmem:[%s202_s30 + $0x8] sm:$0xff] (%p51_p3), %v223_v1  ;;  %v227_v3 = vld [vmem:[%s208_s29 + $0x78] sm:$0xff] (%p51_p3)  ;;  %v229_v4 = vld [vmem:[%s208_s29 + $0xe0] sm:$0xff] (%p51_p3) }
  0x13   : > { %226 = vst [vmem:[%s202_s30 + $0x10] sm:$0xff] (%p51_p3), %v225_v2  ;;  %v231_v5 = vld [vmem:[%s208_s29 + $0xe8] sm:$0xff] (%p51_p3)  ;;  %228 = vst [vmem:[%s202_s30 + $0x18] sm:$0xff] (%p51_p3), %v227_v3  ;;  %v233_v6 = vld [vmem:[%s208_s29 + $0x150] sm:$0xff] (%p51_p3) }
  0x14   : > { %230 = vst [vmem:[%s202_s30 + $0x20] sm:$0xff] (%p51_p3), %v229_v4  ;;  %232 = vst [vmem:[%s202_s30 + $0x28] sm:$0xff] (%p51_p3), %v231_v5  ;;  %v235_v7 = vld [vmem:[%s208_s29 + $0x158] sm:$0xff] (%p51_p3) }
  0x15   : > { %234 = vst [vmem:[%s202_s30 + $0x30] sm:$0xff] %v233_v6  ;;  %236 = vst [vmem:[%s202_s30 + $0x38] sm:$0xff] %v235_v7 }
  0x16 PF: > { %p920_p6 = scmp.ge.s32.totalorder %s1152_s19, 1  ;;  %p253_p7 = scmp.lt.s32.totalorder %s1152_s19, 8 }
  0x18   : > { %p254_p8 = pnand %p920_p6, %p253_p7 }
  0x19   : > { %s260_s5 = sand.u32 (!%p254_p8), 1, %s1136_s15   ;;  %s922_s6 = sshll.u32 (!%p254_p8), %s1144_s17, 6 }
  0x1a   : > { %257 = sbr.rel (%p254_p8) target bundleno = 319 (0x13f), region = 55  ;;  %s921_s7 = sshll.u32 (!%p254_p8), %s260_s5, 6 }
  0x1b   : > { %p305_p9 = scmp.lt.s32.totalorder (!%p254_p8), %s922_s6, 447  ;;  %s1232_s12 = scalar_lea.vmem (!%p254_p8), [#allocation3], %s921_s7 }
  0x1c   : > { %p924_p10 = scmp.ne.s32.totalorder (!%p254_p8), %s1144_s17, 0 }
  0x21   : > { %s1321_s6 = smov (!%p305_p9, %s922_s6), 447  ;;  %332 = sbr.rel (%p924_p10) target bundleno = 40 (0x28), region = 63 }
  0x22   : > { %s923_s8 = sshll.u32 %s1321_s6, 2  ;;  %v1154_v8 = vmov (!%p924_p10), 0.0  }
  0x23   : > { %s1230_s11 = scalar_lea.vmem %s1310_s1, %s923_s8  ;;  %333 = vst [vmem:[#allocation2] sm:$0xff] (!%p924_p10), %v1154_v8  ;;  %334 = vst [vmem:[#allocation2 + $0x8] sm:$0xff] (!%p924_p10), %v1154_v8 }
  0x24   : > { %335 = vst [vmem:[#allocation2 + $0x10] sm:$0xff] (!%p924_p10), %v1154_v8  ;;  %336 = vst [vmem:[#allocation2 + $0x18] sm:$0xff] (!%p924_p10), %v1154_v8 }
  0x28 PF: > { %v1070_v9 = vld [vmem:[%s1230_s11 + $0x40] sm:$0xff]   ;;  %v1074_v13 = vld [vmem:[%s1230_s11 + $0x48] sm:$0xff]   ;;  %v1078_v17 = vld [vmem:[%s1230_s11 + $0x50] sm:$0xff]   ;;  %p965_p11 = scmp.ne.s32.totalorder %s1144_s17, 6 }
  0x29   : > { %v1071_v10 = vld [vmem:[%s1230_s11 + $0xc0] sm:$0xff]   ;;  %973 = vmatprep.subr.bf16.mxu0 %v1070_v9  ;;  %v1075_v14 = vld [vmem:[%s1230_s11 + $0xc8] sm:$0xff]   ;;  %v1079_v18 = vld [vmem:[%s1230_s11 + $0xd0] sm:$0xff]  }
  0x2a   : > { %v1072_v11 = vld [vmem:[%s1230_s11] sm:$0xff]   ;;  %1001 = vmatprep.subr.bf16.mxu1 %v1071_v10  ;;  %v1076_v15 = vld [vmem:[%s1230_s11 + $0x8] sm:$0xff]   ;;  %v1080_v19 = vld [vmem:[%s1230_s11 + $0x10] sm:$0xff]  }
  0x2b   : > { %v1073_v12 = vld [vmem:[%s1230_s11 + $0x80] sm:$0xff]   ;;  %974 = vmatpush3.bf16.msra.mxu0 %v1072_v11  ;;  %v1077_v16 = vld [vmem:[%s1230_s11 + $0x88] sm:$0xff]   ;;  %v1081_v20 = vld [vmem:[%s1230_s11 + $0x90] sm:$0xff]  }
  0x2c   : > { %1002 = vmatpush3.bf16.msra.mxu1 %v1073_v12  ;;  %975 = vmatprep.subr.bf16.mxu0 %v1074_v13  ;;  %v1082_v21 = vld [vmem:[%s1230_s11 + $0x58] sm:$0xff]   ;;  %v1086_v25 = vld [vmem:[%s1230_s11 + $0x60] sm:$0xff]   ;;  %v1090_v29 = vld [vmem:[%s1230_s11 + $0x68] sm:$0xff]  }
  0x2d   : > { %1003 = vmatprep.subr.bf16.mxu1 %v1075_v14  ;;  %v1083_v22 = vld [vmem:[%s1230_s11 + $0xd8] sm:$0xff]   ;;  %v1087_v26 = vld [vmem:[%s1230_s11 + $0xe0] sm:$0xff]   ;;  %v1091_v30 = vld [vmem:[%s1230_s11 + $0xe8] sm:$0xff]  }
  0x2e   : > { %v1084_v23 = vld [vmem:[%s1230_s11 + $0x18] sm:$0xff]   ;;  %v1088_v27 = vld [vmem:[%s1230_s11 + $0x20] sm:$0xff]   ;;  %v1092_v31 = vld [vmem:[%s1230_s11 + $0x28] sm:$0xff]  }
  0x2f   : > { %976 = vmatpush3.bf16.msra.mxu0 %v1076_v15  ;;  %v1085_v24 = vld [vmem:[%s1230_s11 + $0x98] sm:$0xff]   ;;  %v1089_v28 = vld [vmem:[%s1230_s11 + $0xa0] sm:$0xff]   ;;  %v1093_v32 = vld [vmem:[%s1230_s11 + $0xa8] sm:$0xff]  }
  0x30   : > { %1004 = vmatpush3.bf16.msra.mxu1 %v1077_v16  ;;  %977 = vmatprep.subr.bf16.mxu0 %v1078_v17  ;;  %v1094_v33 = vld [vmem:[%s1230_s11 + $0x70] sm:$0xff]   ;;  %v1098_v37 = vld [vmem:[%s1230_s11 + $0x78] sm:$0xff]   ;;  %v337_v58 = vld [vmem:[#allocation2] sm:$0xff] }
  0x31   : > { %1005 = vmatprep.subr.bf16.mxu1 %v1079_v18  ;;  %v1095_v34 = vld [vmem:[%s1230_s11 + $0xf0] sm:$0xff]   ;;  %v1099_v38 = vld [vmem:[%s1230_s11 + $0xf8] sm:$0xff]   ;;  %v338_v63 = vld [vmem:[#allocation2 + $0x8] sm:$0xff] }
  0x32   : > { %v1096_v35 = vld [vmem:[%s1230_s11 + $0x30] sm:$0xff]   ;;  %v1100_v39 = vld [vmem:[%s1230_s11 + $0x38] sm:$0xff]  }
  0x33   : > { %978 = vmatpush3.bf16.msra.mxu0 %v1080_v19  ;;  %v1097_v36 = vld [vmem:[%s1230_s11 + $0xb0] sm:$0xff]   ;;  %v1101_v40 = vld [vmem:[%s1230_s11 + $0xb8] sm:$0xff]  }
  0x34   : > { %1006 = vmatpush3.bf16.msra.mxu1 %v1081_v20  ;;  %979 = vmatprep.subr.bf16.mxu0 %v1082_v21  ;;  %v1102_v41 = vld [vmem:[%s1232_s12] ss:$16 sps:$4 sm:$0xff]   ;;  %v1104_v42 = vld [vmem:[%s1232_s12 + $0x4] ss:$16 sps:$4 sm:$0xff]   ;;  %v1105_v43 = vld [vmem:[%s1232_s12 + $0x8] ss:$16 sps:$4 sm:$0xff]  }
  0x35   : > { %1007 = vmatprep.subr.bf16.mxu1 %v1083_v22  ;;  %v1107_v44 = vld [vmem:[%s1232_s12 + $0xc] ss:$16 sps:$4 sm:$0xff]   ;;  %677 = vmatprep.mubr.bf16.mxu0 %v1104_v42  ;;  %v1108_v45 = vld [vmem:[%s1232_s12 + $0x24] ss:$16 sps:$4 sm:$0xff]   ;;  %v1112_v47 = vld [vmem:[%s1232_s12 + $0x20] ss:$16 sps:$4 sm:$0xff]  }
  0x36   : > { %726 = vmatprep.mubr.bf16.mxu1 %v1107_v44  ;;  %v1110_v46 = vld [vmem:[%s1232_s12 + $0x2c] ss:$16 sps:$4 sm:$0xff]   ;;  %v1113_v48 = vld [vmem:[%s1232_s12 + $0x28] ss:$16 sps:$4 sm:$0xff]   ;;  %v339_v12 = vld [vmem:[#allocation2 + $0x10] sm:$0xff] }
  0x37   : > { %980 = vmatpush3.bf16.msra.mxu0 %v1084_v23  ;;  %v340_v17 = vld [vmem:[#allocation2 + $0x18] sm:$0xff]  ;;  %v966_v22 = vld [vmem:[%s1311_s2] ss:$0 sm:$0xff] (!%p965_p11) }
  0x38   : > { %1008 = vmatpush3.bf16.msra.mxu1 %v1085_v24  ;;  %981 = vmatprep.subr.bf16.mxu0 %v1086_v25  ;;  %v967_v23 = vld [vmem:[%s1312_s3] ss:$0 sm:$0xff] (!%p965_p11) }
  0x39   : > { %1009 = vmatprep.subr.bf16.mxu1 %v1087_v26 }
  0x3b   : > { %982 = vmatpush3.bf16.msra.mxu0 %v1088_v27 }
  0x3c   : > { %1010 = vmatpush3.bf16.msra.mxu1 %v1089_v28  ;;  %983 = vmatprep.subr.bf16.mxu0 %v1090_v29 }
  0x3d   : > { %1011 = vmatprep.subr.bf16.mxu1 %v1091_v30 }
  0x3f   : > { %984 = vmatpush3.bf16.msra.mxu0 %v1092_v31 }
  0x40   : > { %1012 = vmatpush3.bf16.msra.mxu1 %v1093_v32  ;;  %985 = vmatprep.subr.bf16.mxu0 %v1094_v33 }
  0x41   : > { %1013 = vmatprep.subr.bf16.mxu1 %v1095_v34 }
  0x43   : > { %986 = vmatpush3.bf16.msra.mxu0 %v1096_v35 }
  0x44   : > { %1014 = vmatpush3.bf16.msra.mxu1 %v1097_v36  ;;  %987 = vmatprep.subr.bf16.mxu0 %v1098_v37 }
  0x45   : > { %1015 = vmatprep.subr.bf16.mxu1 %v1099_v38 }
  0x47   : > { %988 = vmatpush3.bf16.msra.mxu0 %v1100_v39 }
  0x48   : > { %1016 = vmatpush3.bf16.msra.mxu1 %v1101_v40 }
  0x4a   : > { %678 = vmatmul.mubr.bf16.vlgmr.msra.gmra.mrb[0].mxu0 %v1102_v41 }
  0x4b   : > { %727 = vmatmul.mubr.bf16.vlgmr.msra.gmra.mrb[0].mxu1 %v1105_v43  ;;  %685 = vmatprep.mubr.bf16.mxu0 %v1108_v45 }
  0x4c   : > { %734 = vmatprep.mubr.bf16.mxu1 %v1110_v46 }
  0x52   : > { %686 = vmatmul.mubr.bf16.gmra.mrb[4].mxu0 %v1112_v47 }
  0x53   : > { %735 = vmatmul.mubr.bf16.gmra.mrb[4].mxu1 %v1113_v48 }
 0x11d   : > { %v989_v49 = vpop.f32.mrb[0].mxu0 }
 0x11e   : > { %v1017_v50 = vpop.f32.mrb[0].mxu1  ;;  %v990_v51 = vpop.f32.mrb[1].mxu0 }
 0x11f   : > { %v991_v52 = vadd.f32 %v990_v51, %v989_v49  ;;  %v1018_v53 = vpop.f32.mrb[1].mxu1  ;;  %v992_v54 = vpop.f32.mrb[2].mxu0 }
 0x120   : > { %v1019_v55 = vadd.f32 %v1018_v53, %v1017_v50  ;;  %v1020_v56 = vpop.f32.mrb[2].mxu1  ;;  %v993_v57 = vpop.f32.mrb[3].mxu0 }
 0x121   : > { %v994_v59 = vadd.f32 %v993_v57, %v992_v54  ;;  %v1021_v60 = vpop.f32.mrb[3].mxu1 }
 0x122   : > { %v729_v61 = vadd.f32 %v1019_v55, %v991_v52  ;;  %v1022_v62 = vadd.f32 %v1021_v60, %v1020_v56 }
 0x124   : > { %v743_v0 = vadd.f32 %v729_v61, %v337_v58  ;;  %v732_v1 = vadd.f32 %v1022_v62, %v994_v59 }
 0x125   : > { %v995_v2 = vpop.f32.mrb[4].mxu0 }
 0x126   : > { %747 = vst [vmem:[#allocation2] sm:$0xff] %v743_v0  ;;  %v744_v3 = vadd.f32 %v732_v1, %v338_v63  ;;  %v1023_v4 = vpop.f32.mrb[4].mxu1  ;;  %v996_v5 = vpop.f32.mrb[5].mxu0 }
 0x127   : > { %v997_v6 = vadd.f32 %v996_v5, %v995_v2  ;;  %v1024_v7 = vpop.f32.mrb[5].mxu1  ;;  %v998_v8 = vpop.f32.mrb[6].mxu0 }
 0x128   : > { %748 = vst [vmem:[#allocation2 + $0x8] sm:$0xff] %v744_v3  ;;  %v1025_v9 = vadd.f32 %v1024_v7, %v1023_v4  ;;  %v1026_v10 = vpop.f32.mrb[6].mxu1  ;;  %v999_v11 = vpop.f32.mrb[7].mxu0 }
 0x129   : > { %v1000_v13 = vadd.f32 %v999_v11, %v998_v8  ;;  %v1027_v14 = vpop.f32.mrb[7].mxu1 }
 0x12a   : > { %v737_v15 = vadd.f32 %v1025_v9, %v997_v6  ;;  %v1028_v16 = vadd.f32 %v1027_v14, %v1026_v10  ;;  %754 = sbr.rel (%p965_p11) target bundleno = 319 (0x13f), region = 67 }
 0x12c   : > { %v745_v18 = vadd.f32 %v737_v15, %v339_v12  ;;  %v740_v19 = vadd.f32 %v1028_v16, %v1000_v13 }
 0x12d   : > { %v755_v21 = vld [vmem:[#allocation2] sm:$0xff] (!%p965_p11) }
 0x12e   : > { %749 = vst [vmem:[#allocation2 + $0x10] sm:$0xff] %v745_v18  ;;  %v746_v20 = vadd.f32 %v740_v19, %v340_v17  ;;  %v766_v24 = vmul.f32 (!%p965_p11), %v966_v22, %v755_v21 }
 0x12f   : > { %v756_v25 = vld [vmem:[#allocation2 + $0x8] sm:$0xff] (!%p965_p11) }
 0x130   : > { %750 = vst [vmem:[#allocation2 + $0x18] sm:$0xff] %v746_v20  ;;  %v767_v28 = vmul.f32 (!%p965_p11), %v966_v22, %v756_v25  ;;  %v777_v31 = vadd.f32 (!%p965_p11), %v967_v23, %v766_v24 }
 0x132   : > { %v778_v32 = vadd.f32 %v967_v23, %v767_v28  ;;  %v781_v35 = vmax.f32 %v777_v31, 0.0 }
 0x134   : > { %v782_v36 = vmax.f32 %v778_v32, 0.0  ;;  %785 = vst [vmem:[%s1313_s4] sm:$0xff] %v781_v35 }
 0x135   : > { %v757_v26 = vld [vmem:[#allocation2 + $0x10] sm:$0xff] }
 0x136   : > { %v768_v29 = vmul.f32 %v966_v22, %v757_v26  ;;  %786 = vst [vmem:[%s1313_s4 + $0x8] sm:$0xff] %v782_v36 }
 0x137   : > { %v758_v27 = vld [vmem:[#allocation2 + $0x18] sm:$0xff] }
 0x138   : > { %v769_v30 = vmul.f32 %v966_v22, %v758_v27  ;;  %v779_v33 = vadd.f32 %v967_v23, %v768_v29 }
 0x13a   : > { %v780_v34 = vadd.f32 %v967_v23, %v769_v30  ;;  %v783_v37 = vmax.f32 %v779_v33, 0.0 }
 0x13c   : > { %v784_v38 = vmax.f32 %v780_v34, 0.0  ;;  %787 = vst [vmem:[%s1313_s4 + $0x10] sm:$0xff] %v783_v37 }
 0x13e   : > { %788 = vst [vmem:[%s1313_s4 + $0x18] sm:$0xff] %v784_v38 }
 0x13f PF: > { %s14_s19 = sadd.s32 1, %s1152_s19   ;;  %s1314_s15 = smov %s1140_s16 }
 0x140   : > { %p11_p12 = scmp.ge.s32.totalorder %s14_s19, 9   ;;  %s1315_s16 = smov %s1215_s23 }
 0x141   : > { %s1316_s17 = smov %s1148_s18  ;;  %s1317_s18 = smov %s1319_s20 }
 0x142   :  { %13 = sbr.rel (!%p11_p12) target bundleno = 3 (0x3), region = 111 }

// kernel: dbpnet_forward.29
= control target key start
LH: loop header
LB: loop body
LE: loop exit
PB: predicated region body
PF: predicated region fallthrough
CT: control target
= control target key end

     0   :  { %s816_s15 = smov 0   ;;  %s818_s16 = smov 0   ;;  %s909_s0 = inlined_call_operand.vmem [shape: bf16[8,128], index: 0, kind: input, shape index: {}]   ;;  %s910_s1 = inlined_call_operand.vmem [shape: bf16[128,256], index: 1, kind: input, shape index: {}]   ;;  %s911_s2 = inlined_call_operand.vmem [shape: f32[1,256], index: 2, kind: input, shape index: {}]   ;;  %s912_s3 = inlined_call_operand.vmem [shape: f32[1,256], index: 3, kind: input, shape index: {}]   ;;  %s913_s4 = inlined_call_operand.vmem [shape: f32[8,256], index: 4, kind: output, shape index: {}]  }
   0x1   :  { %s820_s17 = smov 0   ;;  %s822_s18 = smov 0  }
   0x2   :  { %s824_s19 = smov 0  }
   0x3 LB: > { %s29_s20 = sadd.s32 1, %s783_s18  ;;  %p77_p1 = scmp.ne.s32.totalorder %s775_s16, %s771_s15  ;;  %s787_s19 = sphi %s824_s19, %s14_s19   ;;  %s783_s18 = sphi %s822_s18, %s917_s18   ;;  %s779_s17 = sphi %s820_s17, %s916_s17   ;;  %s775_s16 = sphi %s818_s16, %s915_s16   ;;  %s771_s15 = sphi %s816_s15, %s914_s15  }
   0x4   : > { %p31_p0 = scmp.ge.s32.totalorder %s29_s20, 2  ;;  %p78_p2 = scmp.eq.s32.totalorder %s787_s19, 0 }
   0x5   : > { %s70_s22 = sadd.s32 1, %s775_s16  ;;  %p652_p5 = scmp.ge.s32.totalorder %s787_s19, 2 }
   0x6   : > { %s919_s20 = smov (%p31_p0, %s29_s20), 0  ;;  %p79_p3 = por %p78_p2, %p77_p1 }
   0x7   : > { %s66_s21 = ssub.s32 %s783_s18, %s919_s20  ;;  %193 = sbr.rel (%p652_p5) target bundleno = 28 (0x1c), region = 20 }
   0x8   : > { %p68_p4 = scmp.eq.s32.totalorder %s66_s21, 0 }
   0xa   : > { %s851_s23 = scalar_select %p68_p4, %s775_s16, %s70_s22  }
   0xe   : > { %196 = sbr.rel (!%p79_p3) target bundleno = 28 (0x1c), region = 24  ;;  %s198_s24 = sand.u32 (%p79_p3), 1, %s775_s16  }
   0xf   : > { %s654_s25 = sshll.u32 (%p79_p3), %s783_s18, 2  ;;  %s653_s26 = sshll.u32 (%p79_p3), %s198_s24, 6 }
  0x10   : > { %s859_s29 = scalar_lea.vmem (%p79_p3), %s910_s1, %s654_s25  ;;  %s200_s30 = scalar_lea.vmem (%p79_p3), [#allocation3], %s653_s26 }
  0x11   : > { %v221_v0 = vld [vmem:[%s859_s29] sm:$0xf] (%p79_p3)  ;;  %v223_v1 = vld [vmem:[%s859_s29 + $0x8] sm:$0xf] (%p79_p3)  ;;  %v225_v2 = vld [vmem:[%s859_s29 + $0x10] sm:$0xf] (%p79_p3) }
  0x12   : > { %222 = vst [vmem:[%s200_s30] sm:$0xf] (%p79_p3), %v221_v0  ;;  %224 = vst [vmem:[%s200_s30 + $0x4] sm:$0xf] (%p79_p3), %v223_v1  ;;  %v227_v3 = vld [vmem:[%s859_s29 + $0x18] sm:$0xf] (%p79_p3) }
  0x13   : > { %v229_v4 = vld [vmem:[%s859_s29 + $0x20] sm:$0xf] (%p79_p3)  ;;  %226 = vst [vmem:[%s200_s30 + $0x8] sm:$0xf] (%p79_p3), %v225_v2  ;;  %228 = vst [vmem:[%s200_s30 + $0xc] sm:$0xf] (%p79_p3), %v227_v3 }
  0x14   : > { %230 = vst [vmem:[%s200_s30 + $0x10] sm:$0xf] (%p79_p3), %v229_v4  ;;  %v231_v5 = vld [vmem:[%s859_s29 + $0x28] sm:$0xf] (%p79_p3)  ;;  %v233_v6 = vld [vmem:[%s859_s29 + $0x30] sm:$0xf] (%p79_p3) }
  0x15   : > { %v235_v7 = vld [vmem:[%s859_s29 + $0x38] sm:$0xf]  ;;  %232 = vst [vmem:[%s200_s30 + $0x14] sm:$0xf] %v231_v5  ;;  %234 = vst [vmem:[%s200_s30 + $0x18] sm:$0xf] %v233_v6 }
  0x16   : > { %236 = vst [vmem:[%s200_s30 + $0x1c] sm:$0xf] %v235_v7  ;;  %v237_v8 = vld [vmem:[%s859_s29 + $0x40] sm:$0xf]  ;;  %v239_v9 = vld [vmem:[%s859_s29 + $0x48] sm:$0xf] }
  0x17   : > { %v241_v10 = vld [vmem:[%s859_s29 + $0x50] sm:$0xf]  ;;  %238 = vst [vmem:[%s200_s30 + $0x20] sm:$0xf] %v237_v8  ;;  %240 = vst [vmem:[%s200_s30 + $0x24] sm:$0xf] %v239_v9 }
  0x18   : > { %242 = vst [vmem:[%s200_s30 + $0x28] sm:$0xf] %v241_v10  ;;  %v243_v11 = vld [vmem:[%s859_s29 + $0x58] sm:$0xf]  ;;  %v245_v12 = vld [vmem:[%s859_s29 + $0x60] sm:$0xf] }
  0x19   : > { %v247_v13 = vld [vmem:[%s859_s29 + $0x68] sm:$0xf]  ;;  %244 = vst [vmem:[%s200_s30 + $0x2c] sm:$0xf] %v243_v11  ;;  %246 = vst [vmem:[%s200_s30 + $0x30] sm:$0xf] %v245_v12 }
  0x1a   : > { %248 = vst [vmem:[%s200_s30 + $0x34] sm:$0xf] %v247_v13  ;;  %v249_v14 = vld [vmem:[%s859_s29 + $0x70] sm:$0xf]  ;;  %v251_v15 = vld [vmem:[%s859_s29 + $0x78] sm:$0xf] }
  0x1b   : > { %250 = vst [vmem:[%s200_s30 + $0x38] sm:$0xf] %v249_v14  ;;  %252 = vst [vmem:[%s200_s30 + $0x3c] sm:$0xf] %v251_v15 }
  0x1c PF: > { %p655_p6 = scmp.ge.s32.totalorder %s787_s19, 1  ;;  %p318_p7 = scmp.lt.s32.totalorder %s787_s19, 3 }
  0x1e   : > { %p319_p8 = pnand %p655_p6, %p318_p7 }
  0x1f   : > { %s325_s5 = sand.u32 (!%p319_p8), 1, %s771_s15   ;;  %v789_v16 = vmov (!%p319_p8), 0.0   ;;  %vm790_vm0 = vmmov (!%p319_p8), 0   ;;  %v395_v25 = vld [vmem:[%s909_s0] sm:$0xf] (!%p319_p8)  ;;  %p374_p9 = scmp.lt.s32.totalorder (!%p319_p8), %s779_s17, 1 }
  0x20   : > { %322 = sbr.rel (%p319_p8) target bundleno = 283 (0x11b), region = 73  ;;  %679 = vmatprep.subr.bf16.mxu0 (!%p319_p8), %v789_v16  ;;  %s656_s6 = sshll.u32 (!%p319_p8), %s325_s5, 6  ;;  %695 = vmatprep.mubr.msk.bf16.mxu0 (!%p319_p8), %vm790_vm0, %v789_v16 }
  0x21   : > { %s327_s7 = scalar_lea.vmem (!%p319_p8), [#allocation3], %s656_s6 }
  0x22   : > { %v741_v17 = vld [vmem:[%s327_s7] sm:$0xff] (!%p319_p8)   ;;  %v742_v18 = vld [vmem:[%s327_s7 + $0x8] sm:$0xff] (!%p319_p8)   ;;  %v743_v19 = vld [vmem:[%s327_s7 + $0x10] sm:$0xff] (!%p319_p8)  }
  0x23   : > { %680 = vmatpush3.bf16.msra.mxu0 (!%p319_p8), %v741_v17  ;;  %v744_v20 = vld [vmem:[%s327_s7 + $0x18] sm:$0xff] (!%p319_p8)   ;;  %v745_v21 = vld [vmem:[%s327_s7 + $0x20] sm:$0xff] (!%p319_p8)   ;;  %v746_v22 = vld [vmem:[%s327_s7 + $0x28] sm:$0xff] (!%p319_p8)  }
  0x24   : > { %681 = vmatprep.subr.bf16.mxu0 (!%p319_p8), %v789_v16  ;;  %v747_v23 = vld [vmem:[%s327_s7 + $0x30] sm:$0xff] (!%p319_p8)   ;;  %v748_v24 = vld [vmem:[%s327_s7 + $0x38] sm:$0xff] (!%p319_p8)  }
  0x27   : > { %682 = vmatpush3.bf16.msra.mxu0 %v742_v18  ;;  %s921_s17 = smov (!%p374_p9, %s779_s17), 1 }
  0x28   : > { %683 = vmatprep.subr.bf16.mxu0 %v789_v16  ;;  %s376_s12 = scalar_lea.vmem %s911_s2, %s921_s17  ;;  %s379_s15 = scalar_lea.vmem %s912_s3, %s921_s17 }
  0x29   : > { %v666_v26 = vld [vmem:[%s376_s12] ss:$0 sm:$0xff]  ;;  %s657_s21 = sshll.u32 %s921_s17, 3 }
  0x2a   : > { %v667_v28 = vld [vmem:[%s379_s15] ss:$0 sm:$0xff]  ;;  %s387_s25 = scalar_lea.vmem %s913_s4, %s657_s21 }
  0x2b   : > { %684 = vmatpush3.bf16.msra.mxu0 %v743_v19 }
  0x2c   : > { %685 = vmatprep.subr.bf16.mxu0 %v789_v16 }
  0x2f   : > { %686 = vmatpush3.bf16.msra.mxu0 %v744_v20 }
  0x30   : > { %687 = vmatprep.subr.bf16.mxu0 %v789_v16 }
  0x33   : > { %688 = vmatpush3.bf16.msra.mxu0 %v745_v21 }
  0x34   : > { %689 = vmatprep.subr.bf16.mxu0 %v789_v16 }
  0x37   : > { %690 = vmatpush3.bf16.msra.mxu0 %v746_v22 }
  0x38   : > { %691 = vmatprep.subr.bf16.mxu0 %v789_v16 }
  0x3b   : > { %692 = vmatpush3.bf16.msra.mxu0 %v747_v23 }
  0x3c   : > { %693 = vmatprep.subr.bf16.mxu0 %v789_v16 }
  0x3f   : > { %694 = vmatpush3.bf16.msra.mxu0 %v748_v24 }
  0x42   : > { %696 = vmatmul.mubr.bf16.vlgmr.msra.gmra.mrb[0].mxu0 %v395_v25 }
 0x115   : > { %v494_v27 = vpop.f32.mrb[0].mxu0 }
 0x116   : > { %v513_v29 = vmul.f32 %v666_v26, %v494_v27  ;;  %v697_v30 = vpop.f32.mrb[1].mxu0 }
 0x117   : > { %v497_v31 = vpop.f32.mrb[2].mxu0 }
 0x118   : > { %v521_v32 = vadd.f32 %v667_v28, %v513_v29  ;;  %v698_v33 = vpop.f32.mrb[3].mxu0 }
 0x11a   : > { %522 = vst [vmem:[%s387_s25] sm:$0xff] %v521_v32 }
 0x11b PF: > { %s14_s19 = sadd.s32 1, %s787_s19   ;;  %s914_s15 = smov %s775_s16 }
 0x11c   : > { %p11_p10 = scmp.ge.s32.totalorder %s14_s19, 4   ;;  %s915_s16 = smov %s851_s23 }
 0x11d   : > { %s916_s17 = smov %s783_s18  ;;  %s917_s18 = smov %s919_s20 }
 0x11e   :  { %13 = sbr.rel (!%p11_p10) target bundleno = 3 (0x3), region = 129 }

// kernel: dbpnet_forward.31
= control target key start
LH: loop header
LB: loop body
LE: loop exit
PB: predicated region body
PF: predicated region fallthrough
CT: control target
= control target key end

     0   :  { %s1009_s15 = smov 0   ;;  %s1011_s16 = smov 0   ;;  %s1095_s0 = inlined_call_operand.vmem [shape: bf16[8,1536], index: 0, kind: input, shape index: {}]   ;;  %s1096_s1 = inlined_call_operand.vmem [shape: bf16[1536,128], index: 1, kind: input, shape index: {}]   ;;  %s1097_s2 = inlined_call_operand.vmem [shape: f32[1,128], index: 2, kind: input, shape index: {}]   ;;  %s1098_s3 = inlined_call_operand.vmem [shape: f32[1,128], index: 3, kind: input, shape index: {}]   ;;  %s1099_s4 = inlined_call_operand.vmem [shape: f32[8,128], index: 4, kind: output, shape index: {}]  }
   0x1   :  { %s1013_s17 = smov 0  }
   0x2 LB: > { %s26_s18 = sadd.s32 1, %s977_s16  ;;  %p806_p0 = scmp.ge.s32.totalorder %s981_s17, 1  ;;  %s981_s17 = sphi %s1013_s17, %s14_s17   ;;  %s977_s16 = sphi %s1011_s16, %s1101_s16   ;;  %s973_s15 = sphi %s1009_s15, %s1100_s15  }
   0x3   : > { %p27_p1 = scmp.ge.s32.totalorder %s26_s18, 3  ;;  %p222_p2 = scmp.lt.s32.totalorder %s981_s17, 4 }
   0x5   : > { %s1103_s18 = smov (%p27_p1, %s26_s18), 0  ;;  %p223_p3 = pnand %p806_p0, %p222_p2 }
   0x6   : > { %s807_s19 = sshll.u32 (!%p223_p3), %s973_s15, 2  ;;  %s809_s20 = sshll.u32 (!%p223_p3), %s973_s15, 6 }
   0x7   : > { %226 = sbr.rel (%p223_p3) target bundleno = 293 (0x125), region = 36  ;;  %p271_p4 = scmp.lt.s32.totalorder (!%p223_p3), %s807_s19, 11 }
   0x8   : > { %p279_p5 = scmp.lt.s32.totalorder (!%p223_p3), %s809_s20, 191  ;;  %p811_p6 = scmp.ne.s32.totalorder (!%p223_p3), %s973_s15, 0 }
   0xe   : > { %s1105_s19 = smov (!%p271_p4, %s807_s19), 11  ;;  %s1107_s20 = smov (!%p279_p5, %s809_s20), 191 }
   0xf   : > { %s808_s21 = sshll.u32 %s1105_s19, 2  ;;  %s810_s25 = sshll.u32 %s1107_s20, 2  ;;  %v983_v0 = vmov (!%p811_p6), 0.0  }
  0x10   : > { %s1034_s24 = scalar_lea.vmem %s1095_s0, %s808_s21  ;;  %s1039_s28 = scalar_lea.vmem %s1096_s1, %s810_s25  ;;  %305 = vst [vmem:[#allocation2] sm:$0xff] (!%p811_p6), %v983_v0 }
  0x11   : > { %304 = sbr.rel (%p811_p6) target bundleno = 24 (0x18), region = 40 }
  0x18 PF: > { %v923_v1 = vld [vmem:[%s1039_s28 + $0x40] sm:$0xff]   ;;  %v927_v5 = vld [vmem:[%s1039_s28 + $0x48] sm:$0xff]   ;;  %v931_v9 = vld [vmem:[%s1039_s28 + $0x50] sm:$0xff]   ;;  %p848_p7 = scmp.ne.s32.totalorder %s973_s15, 2 }
  0x19   : > { %v924_v2 = vld [vmem:[%s1039_s28 + $0xc0] sm:$0xff]   ;;  %854 = vmatprep.subr.bf16.mxu0 %v923_v1  ;;  %v928_v6 = vld [vmem:[%s1039_s28 + $0xc8] sm:$0xff]   ;;  %v932_v10 = vld [vmem:[%s1039_s28 + $0xd0] sm:$0xff]  }
  0x1a   : > { %v925_v3 = vld [vmem:[%s1039_s28] sm:$0xff]   ;;  %876 = vmatprep.subr.bf16.mxu1 %v924_v2  ;;  %v929_v7 = vld [vmem:[%s1039_s28 + $0x8] sm:$0xff]   ;;  %v933_v11 = vld [vmem:[%s1039_s28 + $0x10] sm:$0xff]  }
  0x1b   : > { %v926_v4 = vld [vmem:[%s1039_s28 + $0x80] sm:$0xff]   ;;  %855 = vmatpush3.bf16.msra.mxu0 %v925_v3  ;;  %v930_v8 = vld [vmem:[%s1039_s28 + $0x88] sm:$0xff]   ;;  %v934_v12 = vld [vmem:[%s1039_s28 + $0x90] sm:$0xff]  }
  0x1c   : > { %877 = vmatpush3.bf16.msra.mxu1 %v926_v4  ;;  %856 = vmatprep.subr.bf16.mxu0 %v927_v5  ;;  %v935_v13 = vld [vmem:[%s1039_s28 + $0x58] sm:$0xff]   ;;  %v939_v17 = vld [vmem:[%s1039_s28 + $0x60] sm:$0xff]   ;;  %v943_v21 = vld [vmem:[%s1039_s28 + $0x68] sm:$0xff]  }
  0x1d   : > { %878 = vmatprep.subr.bf16.mxu1 %v928_v6  ;;  %v936_v14 = vld [vmem:[%s1039_s28 + $0xd8] sm:$0xff]   ;;  %v940_v18 = vld [vmem:[%s1039_s28 + $0xe0] sm:$0xff]   ;;  %v944_v22 = vld [vmem:[%s1039_s28 + $0xe8] sm:$0xff]  }
  0x1e   : > { %v937_v15 = vld [vmem:[%s1039_s28 + $0x18] sm:$0xff]   ;;  %v941_v19 = vld [vmem:[%s1039_s28 + $0x20] sm:$0xff]   ;;  %v945_v23 = vld [vmem:[%s1039_s28 + $0x28] sm:$0xff]  }
  0x1f   : > { %857 = vmatpush3.bf16.msra.mxu0 %v929_v7  ;;  %v938_v16 = vld [vmem:[%s1039_s28 + $0x98] sm:$0xff]   ;;  %v942_v20 = vld [vmem:[%s1039_s28 + $0xa0] sm:$0xff]   ;;  %v946_v24 = vld [vmem:[%s1039_s28 + $0xa8] sm:$0xff]  }
  0x20   : > { %879 = vmatpush3.bf16.msra.mxu1 %v930_v8  ;;  %858 = vmatprep.subr.bf16.mxu0 %v931_v9  ;;  %v947_v25 = vld [vmem:[%s1039_s28 + $0x70] sm:$0xff]   ;;  %v951_v29 = vld [vmem:[%s1039_s28 + $0x78] sm:$0xff]   ;;  %v307_v33 = vld [vmem:[%s1034_s24] sm:$0xff] }
  0x21   : > { %880 = vmatprep.subr.bf16.mxu1 %v932_v10  ;;  %v948_v26 = vld [vmem:[%s1039_s28 + $0xf0] sm:$0xff]   ;;  %v952_v30 = vld [vmem:[%s1039_s28 + $0xf8] sm:$0xff]   ;;  %v308_v34 = vld [vmem:[%s1034_s24 + $0x8] sm:$0xff]  ;;  %v812_v35 = vcombine.low %v307_v33, %v307_v33  ;;  %v813_v36 = vcombine.high %v307_v33, %v307_v33 }
  0x22   : > { %v949_v27 = vld [vmem:[%s1039_s28 + $0x30] sm:$0xff]   ;;  %v953_v31 = vld [vmem:[%s1039_s28 + $0x38] sm:$0xff]   ;;  %v814_v37 = vcombine.low %v308_v34, %v308_v34  ;;  %v815_v38 = vcombine.high %v308_v34, %v308_v34  ;;  %v306_v47 = vld [vmem:[#allocation2] sm:$0xff] }
  0x23   : > { %859 = vmatpush3.bf16.msra.mxu0 %v933_v11  ;;  %v950_v28 = vld [vmem:[%s1039_s28 + $0xb0] sm:$0xff]   ;;  %v954_v32 = vld [vmem:[%s1039_s28 + $0xb8] sm:$0xff]   ;;  %611 = vmatprep.mubr.bf16.mxu0 %v813_v36  ;;  %v849_v53 = vld [vmem:[%s1097_s2] ss:$0 sm:$0xff] (!%p848_p7) }
  0x24   : > { %881 = vmatpush3.bf16.msra.mxu1 %v934_v12  ;;  %860 = vmatprep.subr.bf16.mxu0 %v935_v13  ;;  %v850_v54 = vld [vmem:[%s1098_s3] ss:$0 sm:$0xff] (!%p848_p7) }
  0x25   : > { %882 = vmatprep.subr.bf16.mxu1 %v936_v14  ;;  %651 = vmatprep.mubr.bf16.mxu1 %v815_v38 }
  0x27   : > { %861 = vmatpush3.bf16.msra.mxu0 %v937_v15 }
  0x28   : > { %883 = vmatpush3.bf16.msra.mxu1 %v938_v16  ;;  %862 = vmatprep.subr.bf16.mxu0 %v939_v17 }
  0x29   : > { %884 = vmatprep.subr.bf16.mxu1 %v940_v18 }
  0x2b   : > { %863 = vmatpush3.bf16.msra.mxu0 %v941_v19 }
  0x2c   : > { %885 = vmatpush3.bf16.msra.mxu1 %v942_v20  ;;  %864 = vmatprep.subr.bf16.mxu0 %v943_v21 }
  0x2d   : > { %886 = vmatprep.subr.bf16.mxu1 %v944_v22 }
  0x2f   : > { %865 = vmatpush3.bf16.msra.mxu0 %v945_v23 }
  0x30   : > { %887 = vmatpush3.bf16.msra.mxu1 %v946_v24  ;;  %866 = vmatprep.subr.bf16.mxu0 %v947_v25 }
  0x31   : > { %888 = vmatprep.subr.bf16.mxu1 %v948_v26 }
  0x33   : > { %867 = vmatpush3.bf16.msra.mxu0 %v949_v27 }
  0x34   : > { %889 = vmatpush3.bf16.msra.mxu1 %v950_v28  ;;  %868 = vmatprep.subr.bf16.mxu0 %v951_v29 }
  0x35   : > { %890 = vmatprep.subr.bf16.mxu1 %v952_v30 }
  0x37   : > { %869 = vmatpush3.bf16.msra.mxu0 %v953_v31 }
  0x38   : > { %891 = vmatpush3.bf16.msra.mxu1 %v954_v32 }
  0x3a   : > { %612 = vmatmul.mubr.bf16.vlgmr.msra.gmra.mrb[0].mxu0 %v812_v35 }
  0x3b   : > { %652 = vmatmul.mubr.bf16.vlgmr.msra.gmra.mrb[0].mxu1 %v814_v37 }
 0x10d   : > { %v870_v39 = vpop.f32.mrb[0].mxu0 }
 0x10e   : > { %v892_v40 = vpop.f32.mrb[0].mxu1  ;;  %v871_v41 = vpop.f32.mrb[1].mxu0 }
 0x10f   : > { %v893_v42 = vpop.f32.mrb[1].mxu1  ;;  %v872_v43 = vadd.f32 %v871_v41, %v870_v39  ;;  %v873_v45 = vpop.f32.mrb[2].mxu0 }
 0x110   : > { %v894_v44 = vadd.f32 %v893_v42, %v892_v40  ;;  %v895_v46 = vpop.f32.mrb[2].mxu1  ;;  %v874_v48 = vpop.f32.mrb[3].mxu0  ;;  %664 = sbr.rel (%p848_p7) target bundleno = 293 (0x125), region = 44 }
 0x111   : > { %v896_v49 = vpop.f32.mrb[3].mxu1 }
 0x112   : > { %v654_v50 = vadd.f32 %v894_v44, %v872_v43 }
 0x114   : > { %v659_v51 = vadd.f32 %v654_v50, %v306_v47 }
 0x116   : > { %660 = vst [vmem:[#allocation2] sm:$0xff] %v659_v51 }
 0x11d   : > { %v665_v52 = vld [vmem:[#allocation2] sm:$0xff] }
 0x11e   : > { %v673_v55 = vmul.f32 %v849_v53, %v665_v52 }
 0x120   : > { %v681_v56 = vadd.f32 %v850_v54, %v673_v55 }
 0x122   : > { %v682_v57 = vmax.f32 %v681_v56, 0.0 }
 0x124   : > { %683 = vst [vmem:[%s1099_s4] sm:$0xff] %v682_v57 }
 0x125 PF: > { %s14_s17 = sadd.s32 1, %s981_s17   ;;  %s1100_s15 = smov %s977_s16 }
 0x126   : > { %p11_p8 = scmp.ge.s32.totalorder %s14_s17, 5   ;;  %s1101_s16 = smov %s1103_s18 }
 0x128   :  { %13 = sbr.rel (!%p11_p8) target bundleno = 2 (0x2), region = 83 }

// kernel: dbpnet_forward.32
= control target key start
LH: loop header
LB: loop body
LE: loop exit
PB: predicated region body
PF: predicated region fallthrough
CT: control target
= control target key end

     0   :  { %s901_s18 = smov 0   ;;  %s903_s19 = smov 0   ;;  %s997_s0 = inlined_call_operand.vmem [shape: bf16[8,128], index: 0, kind: input, shape index: {}]   ;;  %s998_s1 = inlined_call_operand.vmem [shape: bf16[128,256], index: 1, kind: input, shape index: {}]   ;;  %s999_s2 = inlined_call_operand.vmem [shape: f32[1,256], index: 2, kind: input, shape index: {}]   ;;  %s1000_s3 = inlined_call_operand.vmem [shape: f32[1,256], index: 3, kind: input, shape index: {}]   ;;  %s1001_s4 = inlined_call_operand.vmem [shape: f32[8,256], index: 4, kind: input, shape index: {}]   ;;  %s1002_s5 = inlined_call_operand.vmem [shape: f32[8,256], index: 5, kind: output, shape index: {}]  }
   0x1   :  { %s905_s20 = smov 0   ;;  %s907_s21 = smov 0  }
   0x2   :  { %s909_s22 = smov 0  }
   0x3 LB: > { %s30_s23 = sadd.s32 1, %s863_s21  ;;  %p78_p1 = scmp.ne.s32.totalorder %s855_s19, %s851_s18  ;;  %s867_s22 = sphi %s909_s22, %s15_s22   ;;  %s863_s21 = sphi %s907_s21, %s1006_s21   ;;  %s859_s20 = sphi %s905_s20, %s1005_s20   ;;  %s855_s19 = sphi %s903_s19, %s1004_s19   ;;  %s851_s18 = sphi %s901_s18, %s1003_s18  }
   0x4   : > { %p32_p0 = scmp.ge.s32.totalorder %s30_s23, 2  ;;  %p79_p2 = scmp.eq.s32.totalorder %s867_s22, 0 }
   0x5   : > { %s71_s25 = sadd.s32 1, %s855_s19  ;;  %p731_p5 = scmp.ge.s32.totalorder %s867_s22, 2 }
   0x6   : > { %s1008_s23 = smov (%p32_p0, %s30_s23), 0  ;;  %p80_p3 = por %p79_p2, %p78_p1 }
   0x7   : > { %s67_s24 = ssub.s32 %s863_s21, %s1008_s23  ;;  %222 = sbr.rel (%p731_p5) target bundleno = 28 (0x1c), region = 20 }
   0x8   : > { %p69_p4 = scmp.eq.s32.totalorder %s67_s24, 0 }
   0xa   : > { %s936_s26 = scalar_select %p69_p4, %s855_s19, %s71_s25  }
   0xe   : > { %225 = sbr.rel (!%p80_p3) target bundleno = 28 (0x1c), region = 24  ;;  %s227_s27 = sand.u32 (%p80_p3), 1, %s855_s19  }
   0xf   : > { %s733_s28 = sshll.u32 (%p80_p3), %s863_s21, 2  ;;  %s732_s29 = sshll.u32 (%p80_p3), %s227_s27, 6 }
  0x10   : > { %s944_s7 = scalar_lea.vmem (%p80_p3), %s998_s1, %s733_s28  ;;  %s229_s8 = scalar_lea.vmem (%p80_p3), [#allocation3], %s732_s29 }
  0x11   : > { %v250_v0 = vld [vmem:[%s944_s7] sm:$0xf] (%p80_p3)  ;;  %v252_v1 = vld [vmem:[%s944_s7 + $0x8] sm:$0xf] (%p80_p3)  ;;  %v254_v2 = vld [vmem:[%s944_s7 + $0x10] sm:$0xf] (%p80_p3) }
  0x12   : > { %251 = vst [vmem:[%s229_s8] sm:$0xf] (%p80_p3), %v250_v0  ;;  %253 = vst [vmem:[%s229_s8 + $0x4] sm:$0xf] (%p80_p3), %v252_v1  ;;  %v256_v3 = vld [vmem:[%s944_s7 + $0x18] sm:$0xf] (%p80_p3) }
  0x13   : > { %v258_v4 = vld [vmem:[%s944_s7 + $0x20] sm:$0xf] (%p80_p3)  ;;  %255 = vst [vmem:[%s229_s8 + $0x8] sm:$0xf] (%p80_p3), %v254_v2  ;;  %257 = vst [vmem:[%s229_s8 + $0xc] sm:$0xf] (%p80_p3), %v256_v3 }
  0x14   : > { %259 = vst [vmem:[%s229_s8 + $0x10] sm:$0xf] (%p80_p3), %v258_v4  ;;  %v260_v5 = vld [vmem:[%s944_s7 + $0x28] sm:$0xf] (%p80_p3)  ;;  %v262_v6 = vld [vmem:[%s944_s7 + $0x30] sm:$0xf] (%p80_p3) }
  0x15   : > { %v264_v7 = vld [vmem:[%s944_s7 + $0x38] sm:$0xf]  ;;  %261 = vst [vmem:[%s229_s8 + $0x14] sm:$0xf] %v260_v5  ;;  %263 = vst [vmem:[%s229_s8 + $0x18] sm:$0xf] %v262_v6 }
  0x16   : > { %265 = vst [vmem:[%s229_s8 + $0x1c] sm:$0xf] %v264_v7  ;;  %v266_v8 = vld [vmem:[%s944_s7 + $0x40] sm:$0xf]  ;;  %v268_v9 = vld [vmem:[%s944_s7 + $0x48] sm:$0xf] }
  0x17   : > { %v270_v10 = vld [vmem:[%s944_s7 + $0x50] sm:$0xf]  ;;  %267 = vst [vmem:[%s229_s8 + $0x20] sm:$0xf] %v266_v8  ;;  %269 = vst [vmem:[%s229_s8 + $0x24] sm:$0xf] %v268_v9 }
  0x18   : > { %271 = vst [vmem:[%s229_s8 + $0x28] sm:$0xf] %v270_v10  ;;  %v272_v11 = vld [vmem:[%s944_s7 + $0x58] sm:$0xf]  ;;  %v274_v12 = vld [vmem:[%s944_s7 + $0x60] sm:$0xf] }
  0x19   : > { %v276_v13 = vld [vmem:[%s944_s7 + $0x68] sm:$0xf]  ;;  %273 = vst [vmem:[%s229_s8 + $0x2c] sm:$0xf] %v272_v11  ;;  %275 = vst [vmem:[%s229_s8 + $0x30] sm:$0xf] %v274_v12 }
  0x1a   : > { %277 = vst [vmem:[%s229_s8 + $0x34] sm:$0xf] %v276_v13  ;;  %v278_v14 = vld [vmem:[%s944_s7 + $0x70] sm:$0xf]  ;;  %v280_v15 = vld [vmem:[%s944_s7 + $0x78] sm:$0xf] }
  0x1b   : > { %279 = vst [vmem:[%s229_s8 + $0x38] sm:$0xf] %v278_v14  ;;  %281 = vst [vmem:[%s229_s8 + $0x3c] sm:$0xf] %v280_v15 }
  0x1c PF: > { %p734_p6 = scmp.ge.s32.totalorder %s867_s22, 1  ;;  %p358_p7 = scmp.lt.s32.totalorder %s867_s22, 3 }
  0x1e   : > { %p359_p8 = pnand %p734_p6, %p358_p7 }
  0x1f   : > { %s365_s9 = sand.u32 (!%p359_p8), 1, %s851_s18   ;;  %v869_v16 = vmov (!%p359_p8), 0.0   ;;  %vm870_vm0 = vmmov (!%p359_p8), 0   ;;  %v453_v25 = vld [vmem:[%s997_s0] sm:$0xf] (!%p359_p8)  ;;  %p424_p9 = scmp.lt.s32.totalorder (!%p359_p8), %s859_s20, 1 }
  0x20   : > { %362 = sbr.rel (%p359_p8) target bundleno = 287 (0x11f), region = 77  ;;  %759 = vmatprep.subr.bf16.mxu0 (!%p359_p8), %v869_v16  ;;  %s735_s10 = sshll.u32 (!%p359_p8), %s365_s9, 6  ;;  %775 = vmatprep.mubr.msk.bf16.mxu0 (!%p359_p8), %vm870_vm0, %v869_v16 }
  0x21   : > { %s367_s11 = scalar_lea.vmem (!%p359_p8), [#allocation3], %s735_s10 }
  0x22   : > { %v821_v17 = vld [vmem:[%s367_s11] sm:$0xff] (!%p359_p8)   ;;  %v822_v18 = vld [vmem:[%s367_s11 + $0x8] sm:$0xff] (!%p359_p8)   ;;  %v823_v19 = vld [vmem:[%s367_s11 + $0x10] sm:$0xff] (!%p359_p8)  }
  0x23   : > { %760 = vmatpush3.bf16.msra.mxu0 (!%p359_p8), %v821_v17  ;;  %v824_v20 = vld [vmem:[%s367_s11 + $0x18] sm:$0xff] (!%p359_p8)   ;;  %v825_v21 = vld [vmem:[%s367_s11 + $0x20] sm:$0xff] (!%p359_p8)   ;;  %v826_v22 = vld [vmem:[%s367_s11 + $0x28] sm:$0xff] (!%p359_p8)  }
  0x24   : > { %761 = vmatprep.subr.bf16.mxu0 (!%p359_p8), %v869_v16  ;;  %v827_v23 = vld [vmem:[%s367_s11 + $0x30] sm:$0xff] (!%p359_p8)   ;;  %v828_v24 = vld [vmem:[%s367_s11 + $0x38] sm:$0xff] (!%p359_p8)  }
  0x27   : > { %762 = vmatpush3.bf16.msra.mxu0 %v822_v18  ;;  %s1010_s20 = smov (!%p424_p9, %s859_s20), 1 }
  0x28   : > { %763 = vmatprep.subr.bf16.mxu0 %v869_v16  ;;  %s426_s16 = scalar_lea.vmem %s999_s2, %s1010_s20  ;;  %s736_s17 = sshll.u32 %s1010_s20, 3 }
  0x29   : > { %s429_s25 = scalar_lea.vmem %s1000_s3, %s1010_s20  ;;  %v746_v26 = vld [vmem:[%s426_s16] ss:$0 sm:$0xff]  ;;  %s437_s29 = scalar_lea.vmem %s1001_s4, %s736_s17 }
  0x2a   : > { %v747_v28 = vld [vmem:[%s429_s25] ss:$0 sm:$0xff]  ;;  %s445_s7 = scalar_lea.vmem %s1002_s5, %s736_s17 }
  0x2b   : > { %764 = vmatpush3.bf16.msra.mxu0 %v823_v19  ;;  %v580_v31 = vld [vmem:[%s437_s29] sm:$0xff] }
  0x2c   : > { %765 = vmatprep.subr.bf16.mxu0 %v869_v16 }
  0x2f   : > { %766 = vmatpush3.bf16.msra.mxu0 %v824_v20 }
  0x30   : > { %767 = vmatprep.subr.bf16.mxu0 %v869_v16 }
  0x33   : > { %768 = vmatpush3.bf16.msra.mxu0 %v825_v21 }
  0x34   : > { %769 = vmatprep.subr.bf16.mxu0 %v869_v16 }
  0x37   : > { %770 = vmatpush3.bf16.msra.mxu0 %v826_v22 }
  0x38   : > { %771 = vmatprep.subr.bf16.mxu0 %v869_v16 }
  0x3b   : > { %772 = vmatpush3.bf16.msra.mxu0 %v827_v23 }
  0x3c   : > { %773 = vmatprep.subr.bf16.mxu0 %v869_v16 }
  0x3f   : > { %774 = vmatpush3.bf16.msra.mxu0 %v828_v24 }
  0x42   : > { %776 = vmatmul.mubr.bf16.vlgmr.msra.gmra.mrb[0].mxu0 %v453_v25 }
 0x115   : > { %v552_v27 = vpop.f32.mrb[0].mxu0 }
 0x116   : > { %v571_v29 = vmul.f32 %v746_v26, %v552_v27  ;;  %v777_v30 = vpop.f32.mrb[1].mxu0 }
 0x117   : > { %v555_v32 = vpop.f32.mrb[2].mxu0 }
 0x118   : > { %v579_v33 = vadd.f32 %v747_v28, %v571_v29  ;;  %v778_v34 = vpop.f32.mrb[3].mxu0 }
 0x11a   : > { %v581_v35 = vadd.f32 %v580_v31, %v579_v33 }
 0x11c   : > { %v582_v36 = vmax.f32 %v581_v35, 0.0 }
 0x11e   : > { %583 = vst [vmem:[%s445_s7] sm:$0xff] %v582_v36 }
 0x11f PF: > { %s15_s22 = sadd.s32 1, %s867_s22   ;;  %s1003_s18 = smov %s855_s19 }
 0x120   : > { %p12_p10 = scmp.ge.s32.totalorder %s15_s22, 4   ;;  %s1004_s19 = smov %s936_s26 }
 0x121   : > { %s1005_s20 = smov %s863_s21  ;;  %s1006_s21 = smov %s1008_s23 }
 0x122   :  { %14 = sbr.rel (!%p12_p10) target bundleno = 3 (0x3), region = 136 }

// kernel: dbpnet_forward.33
= control target key start
LH: loop header
LB: loop body
LE: loop exit
PB: predicated region body
PF: predicated region fallthrough
CT: control target
= control target key end

     0   :  { %s725_s0 = inlined_call_operand.vmem [shape: f32[8,256], index: 0, kind: input, shape index: {}]   ;;  %s726_s1 = inlined_call_operand.vmem [shape: f32[256,4], index: 1, kind: input, shape index: {}]   ;;  %s727_s2 = inlined_call_operand.vmem [shape: f32[1,4], index: 2, kind: input, shape index: {}]   ;;  %s728_s3 = inlined_call_operand.vmem [shape: f32[1,4], index: 3, kind: input, shape index: {}]   ;;  %s729_s4 = inlined_call_operand.vmem [shape: f32[2,8], index: 4, kind: input, shape index: {}]   ;;  %s730_s5 = inlined_call_operand.vmem [shape: f32[2,4], index: 5, kind: input, shape index: {}]   ;;  %s731_s6 = inlined_call_operand.vmem [shape: f32[4,2], index: 6, kind: input, shape index: {}]   ;;  %s732_s7 = inlined_call_operand.vmem [shape: f32[4,2], index: 7, kind: input, shape index: {}]   ;;  %s733_s8 = inlined_call_operand.vmem [shape: f32[1,2], index: 8, kind: input, shape index: {}]   ;;  %s734_s9 = inlined_call_operand.hbm [shape: f32[2,2], index: 9, kind: output, shape index: {}]  }
   0x1   :  { %v51_v0 = vld [vmem:[%s726_s1 + $0x80] sm:$0xff]  ;;  %v52_v1 = vld [vmem:[%s726_s1 + $0x88] sm:$0xff]  ;;  %v53_v5 = vld [vmem:[%s726_s1 + $0x90] sm:$0xff] }
   0x2   :  { %v35_v2 = vld [vmem:[%s726_s1] sm:$0xff]  ;;  %v475_v3 = vpack.c.bf16 %v52_v1, %v51_v0  ;;  %v36_v4 = vld [vmem:[%s726_s1 + $0x8] sm:$0xff]  ;;  %v54_v6 = vld [vmem:[%s726_s1 + $0x98] sm:$0xff] }
   0x3   :  { %v477_v7 = vpack.c.bf16 %v36_v4, %v35_v2  ;;  %v479_v8 = vpack.c.bf16 %v54_v6, %v53_v5  ;;  %v37_v9 = vld [vmem:[%s726_s1 + $0x10] sm:$0xff]  ;;  %v38_v10 = vld [vmem:[%s726_s1 + $0x18] sm:$0xff]  ;;  %v55_v11 = vld [vmem:[%s726_s1 + $0xa0] sm:$0xff] }
   0x4   :  { %476 = vmatprep.subr.bf16.mxu0 %v475_v3  ;;  %v56_v12 = vld [vmem:[%s726_s1 + $0xa8] sm:$0xff]  ;;  %v481_v13 = vpack.c.bf16 %v38_v10, %v37_v9  ;;  %v39_v15 = vld [vmem:[%s726_s1 + $0x20] sm:$0xff]  ;;  %v57_v17 = vld [vmem:[%s726_s1 + $0xb0] sm:$0xff] }
   0x5   :  { %478 = vmatpush3.bf16.msra.mxu0 %v477_v7  ;;  %v483_v14 = vpack.c.bf16 %v56_v12, %v55_v11  ;;  %v40_v16 = vld [vmem:[%s726_s1 + $0x28] sm:$0xff]  ;;  %v58_v18 = vld [vmem:[%s726_s1 + $0xb8] sm:$0xff]  ;;  %v41_v21 = vld [vmem:[%s726_s1 + $0x30] sm:$0xff] }
   0x6   :  { %480 = vmatprep.subr.bf16.mxu0 %v479_v8  ;;  %v485_v19 = vpack.c.bf16 %v40_v16, %v39_v15  ;;  %v487_v20 = vpack.c.bf16 %v58_v18, %v57_v17  ;;  %v42_v22 = vld [vmem:[%s726_s1 + $0x38] sm:$0xff]  ;;  %v59_v23 = vld [vmem:[%s726_s1 + $0xc0] sm:$0xff]  ;;  %v60_v24 = vld [vmem:[%s726_s1 + $0xc8] sm:$0xff] }
   0x7   :  { %v34_v25 = vld [vmem:[%s725_s0 + $0x8] sm:$0xff] }
   0x8   :  { %131 = vmatprep.mubr.f32.mxu0 %v34_v25 }
   0x9   :  { %482 = vmatpush3.bf16.msra.mxu0 %v481_v13 }
   0xa   :  { %484 = vmatprep.subr.bf16.mxu0 %v483_v14 }
   0xb   :  { %14 = vsyncpa [#allocation3], 0  ;;  %v489_v26 = vpack.c.bf16 %v42_v22, %v41_v21  ;;  %v491_v27 = vpack.c.bf16 %v60_v24, %v59_v23  ;;  %v43_v28 = vld [vmem:[%s726_s1 + $0x40] sm:$0xff]  ;;  %v44_v29 = vld [vmem:[%s726_s1 + $0x48] sm:$0xff]  ;;  %v534_v50 = vmov 0.0   ;;  %vm535_vm0 = vmmov 0  }
   0xc   :  { %v61_v30 = vld [vmem:[%s726_s1 + $0xd0] sm:$0xff]  ;;  %v62_v31 = vld [vmem:[%s726_s1 + $0xd8] sm:$0xff]  ;;  %v493_v32 = vpack.c.bf16 %v44_v29, %v43_v28  ;;  %v63_v36 = vld [vmem:[%s726_s1 + $0xe0] sm:$0xff]  ;;  %460 = vmatprep.subr.mxu1 %v534_v50  ;;  %462 = vmatprep.mubr.msk.f32.mxu1 %vm535_vm0, %v534_v50  ;;  %vm155_vm1 = vcmask 64512   ;;  %vm237_vm2 = vcmask 1043456   ;;  %vm233_vm3 = vcmask 31744  }
   0xd   :  { %486 = vmatpush3.bf16.msra.mxu0 %v485_v19  ;;  %v495_v33 = vpack.c.bf16 %v62_v31, %v61_v30  ;;  %v45_v34 = vld [vmem:[%s726_s1 + $0x50] sm:$0xff]  ;;  %v46_v35 = vld [vmem:[%s726_s1 + $0x58] sm:$0xff]  ;;  %v64_v37 = vld [vmem:[%s726_s1 + $0xe8] sm:$0xff]  ;;  %s536_s22 = smov [#allocation2]   ;;  %vm395_vm4 = vcmask 9216  }
   0xe   :  { %488 = vmatprep.subr.bf16.mxu0 %v487_v20  ;;  %v497_v38 = vpack.c.bf16 %v46_v35, %v45_v34  ;;  %v499_v39 = vpack.c.bf16 %v64_v37, %v63_v36  ;;  %v47_v40 = vld [vmem:[%s726_s1 + $0x60] sm:$0xff]  ;;  %v48_v41 = vld [vmem:[%s726_s1 + $0x68] sm:$0xff]  ;;  %v65_v42 = vld [vmem:[%s726_s1 + $0xf0] sm:$0xff]  ;;  %s403_s23 = sshll.u32 %s536_s22, 4  ;;  %s404_s23 = int_to_ptr.vmem [resolvable:$true] %s403_s23 }
   0xf   :  { %v66_v43 = vld [vmem:[%s726_s1 + $0xf8] sm:$0xff]  ;;  %v501_v44 = vpack.c.bf16 %v48_v41, %v47_v40  ;;  %v49_v46 = vld [vmem:[%s726_s1 + $0x70] sm:$0xff]  ;;  %v33_v49 = vld [vmem:[%s725_s0] sm:$0xff]  ;;  %p515_p1 = scmp.lt.s32.totalorder %s404_s23, %s404_s23 }
  0x10   :  { %v503_v45 = vpack.c.bf16 %v66_v43, %v65_v42  ;;  %v50_v47 = vld [vmem:[%s726_s1 + $0x78] sm:$0xff]  ;;  %v411_v53 = vld [vmem:[%s727_s2] ss:$0 sm:$0xff] }
  0x11   :  { %490 = vmatpush3.bf16.msra.mxu0 %v489_v26  ;;  %v505_v48 = vpack.c.bf16 %v50_v47, %v49_v46  ;;  %v412_v55 = vld [vmem:[%s728_s3] ss:$0 sm:$0xff] }
  0x12   :  { %492 = vmatprep.subr.bf16.mxu0 %v491_v27  ;;  %v154_v59 = vld [vmem:[%s729_s4] sm:$0x3] }
  0x13   :  { %v232_v60 = vld [vmem:[%s732_s7] sm:$0xf] }
  0x14   :  { %v231_v0 = vld [vmem:[%s731_s6] sm:$0xf]  ;;  %s510_s6 = scalar_lea.vmem %s404_s23, 32 }
  0x15   :  { %494 = vmatpush3.bf16.msra.mxu0 %v493_v32  ;;  %v230_v1 = vld [vmem:[%s730_s5] sm:$0x3]  ;;  %p511_p0 = scmp.ne.s32.totalorder %s404_s23, %s510_s6  ;;  %p516_p2 = scmp.lt.s32.totalorder %s510_s6, %s510_s6 }
  0x16   :  { %496 = vmatprep.subr.bf16.mxu0 %v495_v33  ;;  %v418_v5 = vld [vmem:[%s733_s8] ss:$0 sm:$0xff] }
  0x17   :  { %p517_p3 = por %p516_p2, %p515_p1 }
  0x19   :  { %498 = vmatpush3.bf16.msra.mxu0 %v497_v38  ;;  %p518_p4 = pnand %p517_p3, %p511_p0 }
  0x1a   :  { %500 = vmatprep.subr.bf16.mxu0 %v499_v39 }
  0x1d   :  { %502 = vmatpush3.bf16.msra.mxu0 %v501_v44 }
  0x1e   :  { %504 = vmatprep.subr.bf16.mxu0 %v503_v45 }
  0x21   :  { %506 = vmatpush3.bf16.msra.mxu0 %v505_v48 }
  0x24   :  { %132 = vmatmul.mubr.f32.vlgmr.msra.gmra.mrb[0].mxu0 %v33_v49 }
  0xf7   :  { %v451_v51 = vpop.f32.mrb[0].mxu0 }
  0xf8   :  { %v452_v52 = vpop.f32.mrb[1].mxu0 }
  0xf9   :  { %v453_v54 = vadd.f32 %v452_v52, %v451_v51 }
  0xfb   :  { %v144_v56 = vmul.f32 %v453_v54, %v411_v53 }
  0xfd   :  { %v152_v57 = vadd.f32 %v412_v55, %v144_v56 }
  0xff   :  { %v153_v58 = vmax.f32 %v152_v57, 0.0 }
 0x101   :  { %461 = vmatpush3.msra.mxu1 %v153_v58 }
 0x102   :  { %463 = vmatmul.mubr.msk.f32.vlgmr.msra.gmra.mrb[0].mxu1 %vm155_vm1, %v154_v59  ;;  %465 = vmatprep.subr.mxu1 %v534_v50 }
 0x103   :  { %466 = vmatpush3.msk.msra.mxu1 %vm237_vm2, %v232_v60  ;;  %467 = vmatprep.mubr.msk.f32.mxu1 %vm535_vm0, %v534_v50 }
 0x104   :  { %470 = vmatprep.subr.mxu1 %v534_v50 }
 0x1d5   :  { %v225_v61 = vpop.f32.mrb[0].mxu1 }
 0x1d6   :  { %v229_v62 = vmax.f32 %v225_v61, 0.0  ;;  %v464_v63 = vpop.f32.mrb[1].mxu1 }
 0x1d8   :  { %468 = vmatmul.mubr.msk.f32.vlgmr.msra.gmra.mrb[2].mxu1 %vm233_vm3, %v229_v62 }
 0x1d9   :  { %471 = vmatpush3.msk.msra.mxu1 %vm237_vm2, %v231_v0  ;;  %472 = vmatprep.mubr.msk.f32.mxu1 %vm535_vm0, %v534_v50 }
 0x1dc   :  { %473 = vmatmul.mubr.msk.f32.vlgmr.msra.gmra.mrb[4].mxu1 %vm233_vm3, %v230_v1 }
 0x2ab   :  { %v307_v2 = vpop.f32.mrb[2].mxu1 }
 0x2ac   :  { %v469_v3 = vpop.f32.mrb[3].mxu1 }
 0x2af   :  { %v383_v4 = vpop.f32.mrb[4].mxu1 }
 0x2b0   :  { %v384_v6 = vadd.f32 %v383_v4, %v307_v2  ;;  %v474_v7 = vpop.f32.mrb[5].mxu1 }
 0x2b2   :  { %v394_v8 = vadd.f32 %v418_v5, %v384_v6 }
 0x2b4   :  { %396 = vst.msk [vmem:[#allocation2] sm:$0x3] %vm395_vm4, %v394_v8 }
 0x2b5   :  { %521 = shalt.err (!%p518_p4)
}
 0x2b6   :  { %s522_s25 = scalar_lea.hbm %s734_s9, 32 }
 0x2b7   :  { %p523_p5 = scmp.ne.s32.totalorder %s734_s9, %s522_s25  ;;  %p526_p6 = scmp.lt.u32.totalorder %s522_s25, %s734_s9 }
 0x2b9   :  { %p528_p7 = pnand %p526_p6, %p523_p5 }
 0x2bb   :  { %531 = shalt.err (!%p528_p7)
}
 0x2bc   :  { %406 = dma.vmem_to_hbm [thread:$0]  %s404_s23, 32, %s734_s9, [#allocation3]  }
 0x2bd   :  { %532 = dma.done.wait [#allocation3], 32  }
 0x2be   :  { %533 = vsyncadd [#allocation3], 4294967264 }
 0x2bf   :  { %410 = vsyncpa [#allocation3], 1 }

// kernel: dbpnet_forward.17
= control target key start
LH: loop header
LB: loop body
LE: loop exit
PB: predicated region body
PF: predicated region fallthrough
CT: control target
= control target key end

     0   :  { %vm107_vm0 = vcmask 64512   ;;  %vm597_vm2 = vcmask 261120   ;;  %vm2595_vm3 = vmmov 0   ;;  %vm1228_vm4 = vcmask 1045504   ;;  %s3121_s0 = inlined_call_operand.vmem [shape: f32[32,8], index: 0, kind: input, shape index: {}]   ;;  %s3122_s1 = inlined_call_operand.vmem [shape: f32[32,8], index: 1, kind: input, shape index: {}]   ;;  %s3123_s3 = inlined_call_operand.vmem [shape: f32[8,8], index: 3, kind: input, shape index: {}]   ;;  %s3124_s5 = inlined_call_operand.vmem [shape: f32[8,8], index: 5, kind: input, shape index: {}]   ;;  %s3125_s7 = inlined_call_operand.vmem [shape: f32[8,8], index: 7, kind: input, shape index: {}]   ;;  %s3126_s11 = inlined_call_operand.vmem [shape: f32[1,8], index: 11, kind: input, shape index: {}]   ;;  %s3127_s12 = inlined_call_operand.vmem [shape: f32[1,8], index: 12, kind: input, shape index: {}]   ;;  %s3128_s6 = inlined_call_operand.vmem [shape: f32[1,8], index: 6, kind: input, shape index: {}]   ;;  %s3129_s4 = inlined_call_operand.vmem [shape: f32[1,8], index: 4, kind: input, shape index: {}]   ;;  %s3130_s8 = inlined_call_operand.vmem [shape: f32[1,8], index: 8, kind: input, shape index: {}]   ;;  %s3131_s2 = inlined_call_operand.vmem [shape: f32[32,32], index: 2, kind: input, shape index: {}]   ;;  %s3132_s9 = inlined_call_operand.vmem [shape: f32[8,8], index: 9, kind: input, shape index: {}]   ;;  %s3133_s10 = inlined_call_operand.vmem [shape: f32[1,8], index: 10, kind: input, shape index: {}]   ;;  %s3134_s17 = inlined_call_operand.vmem [shape: f32[8,8], index: 17, kind: input, shape index: {}]   ;;  %s3135_s13 = inlined_call_operand.vmem [shape: f32[1,8], index: 13, kind: input, shape index: {}]   ;;  %s3136_s14 = inlined_call_operand.vmem [shape: f32[1,8], index: 14, kind: input, shape index: {}]   ;;  %s3137_s19 = inlined_call_operand.vmem [shape: f32[8,8], index: 19, kind: input, shape index: {}]   ;;  %s3138_s18 = inlined_call_operand.vmem [shape: f32[1,8], index: 18, kind: input, shape index: {}]   ;;  %s3139_s20 = inlined_call_operand.vmem [shape: f32[1,8], index: 20, kind: input, shape index: {}]   ;;  %s3140_s21 = inlined_call_operand.vmem [shape: f32[7,8,64], index: 21, kind: input, shape index: {}]   ;;  %s3141_s15 = inlined_call_operand.vmem [shape: f32[1,8], index: 15, kind: input, shape index: {}]   ;;  %s3142_s16 = inlined_call_operand.vmem [shape: f32[1,8], index: 16, kind: input, shape index: {}]   ;;  %s3143_s24 = inlined_call_operand.vmem [shape: f32[64,16], index: 24, kind: input, shape index: {}]   ;;  %s3144_s22 = inlined_call_operand.vmem [shape: f32[1,64], index: 22, kind: input, shape index: {}]   ;;  %s3145_s23 = inlined_call_operand.vmem [shape: f32[2,20], index: 23, kind: input, shape index: {}]   ;;  %s3146_s26 = inlined_call_operand.vmem [shape: f32[16,4], index: 26, kind: input, shape index: {}]   ;;  %s3147_s25 = inlined_call_operand.vmem [shape: f32[1,16], index: 25, kind: input, shape index: {}]   ;;  %s3148_s27 = inlined_call_operand.vmem [shape: f32[1,4], index: 27, kind: input, shape index: {}]   ;;  %s3149_s28 = inlined_call_operand.vmem [shape: f32[2,4], index: 28, kind: output, shape index: {}]  }
   0x1   :  { %3153 = sst [smem:[#allocation2_spill]] %s3121_s0  ;;  %vm2825_vm1 = vmpackc.low %vm107_vm0, %vm107_vm0  ;;  %vm1506_vm5 = vcmask 1041408   ;;  %vm1408_vm6 = vcmask 1043456   ;;  %vm1886_vm7 = vcmask 162816   ;;  %vm1978_vm8 = vcmask 523264  }
   0x2   :  { %3154 = sst [smem:[#allocation3_spill]] %s3122_s1  ;;  %vm2067_vm9 = vcmask 130048   ;;  %vm2142_vm10 = vcmask 25600  }
   0x3   :  { %3155 = sst [smem:[#allocation4_spill]] %s3123_s3 }
   0x4   :  { %3156 = sst [smem:[#allocation5_spill]] %s3124_s5  ;;  %s3169_s30 = sld [smem:[#allocation4_spill]] }
   0x5   :  { %3157 = sst [smem:[#allocation6_spill]] %s3125_s7 }
   0x6   :  { %3158 = sst [smem:[#allocation7_spill]] %s3126_s11  ;;  %s3167_s11 = sld [smem:[#allocation2_spill]] }
   0x7   :  { %3159 = sst [smem:[#allocation8_spill]] %s3127_s12  ;;  %s3170_s12 = sld [smem:[#allocation5_spill]] }
   0x8   :  { %3160 = sst [smem:[#allocation9_spill]] %s3128_s6  ;;  %s3171_s29 = sld [smem:[#allocation6_spill]] }
   0x9   :  { %3161 = sst [smem:[#allocation10_spill]] %s3129_s4 }
   0xa   :  { %3162 = sst [smem:[#allocation11_spill]] %s3130_s8  ;;  %v181_v40 = vld [vmem:[%s3169_s30] sm:$0xff]  ;;  %s3173_s8 = sld [smem:[#allocation8_spill]] }
   0xb   :  { %3163 = sst [smem:[#allocation12_spill]] %s3131_s2  ;;  %2321 = vmatprep.subr.mxu0 %v181_v40  ;;  %s3175_s5 = sld [smem:[#allocation10_spill]] }
   0xc   :  { %3164 = sst [smem:[#allocation13_spill]] %s3132_s9  ;;  %v89_v0 = vld [vmem:[%s3167_s11] sm:$0xff]  ;;  %v91_v2 = vld [vmem:[%s3167_s11 + $0x10] sm:$0xff]  ;;  %v90_v6 = vld [vmem:[%s3167_s11 + $0x8] sm:$0xff]  ;;  %2322 = vmatpush3.msra.mxu0 %v181_v40  ;;  %s3178_s9 = sld [smem:[#allocation11_spill]] }
   0xd   :  { %3165 = sst [smem:[#allocation14_spill]] %s3133_s10  ;;  %v93_v3 = vmul.f32 2.828427, %v89_v0  ;;  %v95_v4 = vmul.f32 2.828427, %v91_v2  ;;  %v92_v9 = vld [vmem:[%s3167_s11 + $0x18] sm:$0xff] }
   0xe   :  { %3166 = sst [smem:[#allocation15_spill]] %s3144_s22  ;;  %s3168_s22 = sld [smem:[#allocation3_spill]]  ;;  %v94_v7 = vmul.f32 2.828427, %v90_v6  ;;  %v96_v13 = vmul.f32 2.828427, %v92_v9 }
   0xf   :  { %v290_v41 = vld [vmem:[%s3170_s12] sm:$0xff]  ;;  %s3172_s10 = sld [smem:[#allocation7_spill]]  ;;  %s3174_s11 = sld [smem:[#allocation9_spill]] }
  0x10   :  { %2329 = vmatprep.subr.mxu1 %v290_v41  ;;  %v383_v42 = vld [vmem:[%s3171_s29] sm:$0xff]  ;;  %s3179_s6 = sld [smem:[#allocation12_spill]]  ;;  %s3180_s2 = sld [smem:[#allocation13_spill]] }
  0x11   :  { %2330 = vmatpush3.msra.mxu1 %v290_v41  ;;  %2337 = vmatprep.subr.mxu0 %v383_v42  ;;  %v2149_v58 = vld [vmem:[%s3173_s8] ss:$0 sm:$0xff]  ;;  %s3181_s0 = sld [smem:[#allocation14_spill]] }
  0x14   :  { %v97_v1 = vld [vmem:[%s3168_s22] sm:$0xff]  ;;  %v99_v5 = vld [vmem:[%s3168_s22 + $0x10] sm:$0xff]  ;;  %v98_v8 = vld [vmem:[%s3168_s22 + $0x8] sm:$0xff] }
  0x15   :  { %v100_v10 = vld [vmem:[%s3168_s22 + $0x18] sm:$0xff]  ;;  %v2766_v11 = vadd.f32 %v97_v1, %v93_v3  ;;  %v2768_v12 = vadd.f32 %v99_v5, %v95_v4  ;;  %v2770_v14 = vadd.f32 %v98_v8, %v94_v7  ;;  %v2148_v56 = vld [vmem:[%s3172_s10] ss:$0 sm:$0xff] }
  0x16   :  { %v2776_v17 = vadd.f32 %v100_v10, %v96_v13  ;;  %v2155_v9 = vld [vmem:[%s3174_s11] ss:$0 sm:$0xff] }
  0x17   :  { %v108_v15 = vsel %vm107_vm0, %v2766_v11, 0.0  ;;  %v114_v16 = vsel %vm107_vm0, %v2768_v12, 0.0  ;;  %v111_v18 = vsel %vm107_vm0, %v2770_v14, 0.0  ;;  %v2150_v10 = vld [vmem:[%s3175_s5] ss:$0 sm:$0xff] }
  0x18   :  { %109 = vadd.xlane.f32.xlu0 %v108_v15  ;;  %115 = vadd.xlane.f32.xlu1 %v114_v16  ;;  %v117_v19 = vsel %vm107_vm0, %v2776_v17, 0.0 }
  0x1c   :  { %112 = vadd.xlane.f32.xlu0 %v111_v18  ;;  %118 = vadd.xlane.f32.xlu1 %v117_v19 }
  0xa5   :  { %v110_v20 = vpop.xlane.xlu0 %109  ;;  %v116_v21 = vpop.xlane.xlu1 %115 }
  0xa6   :  { %v121_v22 = vmul.f32 0.125, %v110_v20  ;;  %v123_v23 = vmul.f32 0.125, %v116_v21 }
  0xa8   :  { %v125_v24 = vsub.f32 %v2766_v11, %v121_v22  ;;  %v127_v25 = vsub.f32 %v2768_v12, %v123_v23 }
  0xa9   :  { %v113_v26 = vpop.xlane.xlu0 %112  ;;  %v119_v27 = vpop.xlane.xlu1 %118 }
  0xaa   :  { %v122_v28 = vmul.f32 0.125, %v113_v26  ;;  %v124_v29 = vmul.f32 0.125, %v119_v27  ;;  %v129_v30 = vmul.f32 %v125_v24, %v125_v24  ;;  %v131_v31 = vmul.f32 %v127_v25, %v127_v25 }
  0xac   :  { %v126_v32 = vsub.f32 %v2770_v14, %v122_v28  ;;  %v128_v33 = vsub.f32 %v2776_v17, %v124_v29  ;;  %v133_v34 = vsel %vm107_vm0, %v129_v30, 0.0  ;;  %v139_v35 = vsel %vm107_vm0, %v131_v31, 0.0  ;;  %v2160_v31 = vld [vmem:[%s3178_s9] ss:$0 sm:$0xff] }
  0xad   :  { %134 = vadd.xlane.f32.xlu0 %v133_v34 }
  0xae   :  { %v130_v36 = vmul.f32 %v126_v32, %v126_v32  ;;  %v132_v37 = vmul.f32 %v128_v33, %v128_v33 }
  0xb0   :  { %v136_v38 = vsel %vm107_vm0, %v130_v36, 0.0  ;;  %v142_v39 = vsel %vm107_vm0, %v132_v37, 0.0 }
  0xb1   :  { %140 = vadd.xlane.f32.xlu0 %v139_v35  ;;  %137 = vadd.xlane.f32.xlu1 %v136_v38 }
  0xb5   :  { %143 = vadd.xlane.f32.xlu1 %v142_v39 }
 0x13a   :  { %v135_v43 = vpop.xlane.xlu0 %134 }
 0x13b   :  { %v145_v44 = vmul.f32 0.125, %v135_v43 }
 0x13d   :  { %v149_v45 = vadd.f32 1e-05, %v145_v44 }
 0x13e   :  { %v138_v46 = vpop.xlane.xlu1 %137  ;;  %v141_v47 = vpop.xlane.xlu0 %140 }
 0x13f   :  { %2550 = vrsqrt.f32 %v149_v45  ;;  %v146_v48 = vmul.f32 0.125, %v138_v46  ;;  %v147_v49 = vmul.f32 0.125, %v141_v47 }
 0x141   :  { %v150_v50 = vadd.f32 1e-05, %v146_v48  ;;  %v151_v51 = vadd.f32 1e-05, %v147_v49 }
 0x142   :  { %v144_v52 = vpop.xlane.xlu1 %143 }
 0x143   :  { %2552 = vrsqrt.f32 %v150_v50  ;;  %v148_v53 = vmul.f32 0.125, %v144_v52  ;;  %v590_v50 = vld [vmem:[%s3179_s6 + $0x8] sm:$0xff] }
 0x144   :  { %2554 = vrsqrt.f32 %v151_v51 }
 0x145   :  { %v152_v54 = vadd.f32 1e-05, %v148_v53  ;;  %v589_v53 = vld [vmem:[%s3179_s6] sm:$0xff] }
 0x147   :  { %2556 = vrsqrt.f32 %v152_v54 }
 0x149   :  { %v2551_v55 = vpop.eup %2550 }
 0x14a   :  { %v157_v57 = vmul.f32 %v2551_v55, %v125_v24 }
 0x14c   :  { %v167_v59 = vmul.f32 %v2148_v56, %v157_v57 }
 0x14d   :  { %v2553_v60 = vpop.eup %2552 }
 0x14e   :  { %v2555_v61 = vpop.eup %2554  ;;  %v177_v62 = vadd.f32 %v2149_v58, %v167_v59  ;;  %v158_v63 = vmul.f32 %v2553_v60, %v126_v32 }
 0x14f   :  { %v159_v0 = vmul.f32 %v2555_v61, %v127_v25 }
 0x150   :  { %2323 = vmatprep.mubr.msk.f32.mxu0 %vm107_vm0, %v177_v62  ;;  %2331 = vmatprep.mubr.msk.f32.mxu1 %vm107_vm0, %v177_v62  ;;  %v168_v1 = vmul.f32 %v2148_v56, %v158_v63 }
 0x151   :  { %v2557_v2 = vpop.eup %2556  ;;  %v169_v3 = vmul.f32 %v2148_v56, %v159_v0 }
 0x152   :  { %v178_v4 = vadd.f32 %v2149_v58, %v168_v1  ;;  %v160_v5 = vmul.f32 %v2557_v2, %v128_v33 }
 0x153   :  { %v179_v6 = vadd.f32 %v2149_v58, %v169_v3 }
 0x154   :  { %2324 = vmatmul.mubr.msk.f32.vlgmr.msra.gmra.mrb[0].mxu0 %vm107_vm0, %v178_v4  ;;  %2332 = vmatmul.mubr.msk.f32.vlgmr.msra.gmra.mrb[0].mxu1 %vm107_vm0, %v178_v4  ;;  %v170_v7 = vmul.f32 %v2148_v56, %v160_v5 }
 0x155   :  { %2326 = vmatprep.mubr.msk.f32.mxu0 %vm107_vm0, %v179_v6  ;;  %2334 = vmatprep.mubr.msk.f32.mxu1 %vm107_vm0, %v179_v6 }
 0x156   :  { %v180_v8 = vadd.f32 %v2149_v58, %v170_v7  ;;  %2338 = vmatpush3.msra.mxu0 %v383_v42  ;;  %v592_v58 = vld [vmem:[%s3179_s6 + $0x18] sm:$0xff] }
 0x158   :  { %2327 = vmatmul.mubr.msk.f32.gmra.mrb[2].mxu0 %vm107_vm0, %v180_v8  ;;  %2335 = vmatmul.mubr.msk.f32.gmra.mrb[2].mxu1 %vm107_vm0, %v180_v8 }
 0x159   :  { %2339 = vmatprep.mubr.msk.f32.mxu0 %vm107_vm0, %v177_v62  ;;  %v591_v62 = vld [vmem:[%s3179_s6 + $0x10] sm:$0xff] }
 0x15c   :  { %2340 = vmatmul.mubr.msk.f32.vlgmr.msra.gmra.mrb[4].mxu0 %vm107_vm0, %v178_v4 }
 0x15d   :  { %2342 = vmatprep.mubr.msk.f32.mxu0 %vm107_vm0, %v179_v6 }
 0x160   :  { %2343 = vmatmul.mubr.msk.f32.gmra.mrb[6].mxu0 %vm107_vm0, %v180_v8 }
 0x227   :  { %v2325_v13 = vpop.f32.mrb[0].mxu0  ;;  %v2333_v15 = vpop.f32.mrb[0].mxu1 }
 0x228   :  { %v370_v16 = vadd.f32 %v2333_v15, %v2155_v9  ;;  %v267_v18 = vpop.f32.mrb[1].mxu0  ;;  %v364_v19 = vpop.f32.mrb[1].mxu1  ;;  %v273_v42 = vadd.f32 %v2325_v13, %v2150_v10 }
 0x229   :  { %v268_v20 = vadd.f32 %v2150_v10, %v267_v18  ;;  %v365_v21 = vadd.f32 %v2155_v9, %v364_v19 }
 0x22a   :  { %v287_v45 = vmul.f32 0.35355338, %v273_v42 }
 0x22b   :  { %v286_v23 = vmul.f32 0.35355338, %v268_v20  ;;  %v2509_v24 = vpack.c.bf16 %v370_v16, %v365_v21  ;;  %v2328_v25 = vpop.f32.mrb[2].mxu0  ;;  %v2336_v26 = vpop.f32.mrb[2].mxu1 }
 0x22c   :  { %v380_v27 = vadd.f32 %v2336_v26, %v2155_v9  ;;  %v277_v28 = vpop.f32.mrb[3].mxu0  ;;  %v374_v29 = vpop.f32.mrb[3].mxu1  ;;  %v283_v46 = vadd.f32 %v2328_v25, %v2150_v10 }
 0x22d   :  { %v375_v30 = vadd.f32 %v2155_v9, %v374_v29  ;;  %2511 = vmatprep.subr.msk.bf16.mxu1 %vm2825_vm1, %v2509_v24  ;;  %2353 = vmatprep.mubr.msk.f32.mxu1 %vm107_vm0, %v286_v23  ;;  %v278_v44 = vadd.f32 %v2150_v10, %v277_v28 }
 0x22e   :  { %2514 = vmatpush3.bf16.xpose.msk.msra.mxu1 %vm2825_vm1, %v2509_v24  ;;  %v289_v48 = vmul.f32 0.35355338, %v283_v46 }
 0x22f   :  { %v2515_v32 = vpack.c.bf16 %v380_v27, %v375_v30  ;;  %v2341_v33 = vpop.f32.mrb[4].mxu0  ;;  %v288_v47 = vmul.f32 0.35355338, %v278_v44 }
 0x230   :  { %v463_v34 = vadd.f32 %v2341_v33, %v2160_v31  ;;  %v457_v35 = vpop.f32.mrb[5].mxu0 }
 0x231   :  { %v458_v36 = vadd.f32 %v2160_v31, %v457_v35  ;;  %2517 = vmatprep.subr.msk.bf16.mxu1 %vm2825_vm1, %v2515_v32 }
 0x233   :  { %v2521_v37 = vpack.c.bf16 %v463_v34, %v458_v36  ;;  %v2344_v38 = vpop.f32.mrb[6].mxu0 }
 0x234   :  { %v473_v39 = vadd.f32 %v2344_v38, %v2160_v31  ;;  %v467_v40 = vpop.f32.mrb[7].mxu0 }
 0x235   :  { %v468_v41 = vadd.f32 %v2160_v31, %v467_v40  ;;  %2522 = vmatprep.subr.bf16.mxu0 %v2521_v37 }
 0x236   :  { %2520 = vmatpush3.bf16.xpose.msk.msra.mxu1 %vm2825_vm1, %v2515_v32  ;;  %2524 = vmatpush3.bf16.msra.mxu0 %v2521_v37 }
 0x237   :  { %v2525_v43 = vpack.c.bf16 %v473_v39, %v468_v41  ;;  %v739_v41 = vld [vmem:[%s3180_s2] sm:$0xff] }
 0x239   :  { %2526 = vmatprep.subr.bf16.mxu0 %v2525_v43 }
 0x23a   :  { %2528 = vmatpush3.bf16.msra.mxu0 %v2525_v43 }
 0x23b   :  { %2373 = vmatprep.subr.mxu0 %v739_v41 }
 0x23d   :  { %2354 = vmatmul.mubr.msk.f32.vlgmr.msra.gmra.mrb[4].mxu1 %vm107_vm0, %v287_v45 }
 0x23e   :  { %2356 = vmatprep.mubr.msk.f32.mxu1 %vm107_vm0, %v288_v47  ;;  %v2181_v47 = vld [vmem:[%s3181_s0] ss:$0 sm:$0xff] }
 0x241   :  { %2357 = vmatmul.mubr.msk.f32.gmra.mrb[6].mxu1 %vm107_vm0, %v289_v48 }
 0x310   :  { %v2355_v49 = vpop.f32.mrb[4].mxu1 }
 0x311   :  { %v586_v51 = vmul.f32 0.25, %v2355_v49  ;;  %v566_v52 = vpop.f32.mrb[5].mxu1 }
 0x312   :  { %v585_v54 = vmul.f32 0.25, %v566_v52 }
 0x313   :  { %v594_v55 = vadd.f32 %v590_v50, %v586_v51 }
 0x314   :  { %v2358_v56 = vpop.f32.mrb[6].mxu1  ;;  %v593_v57 = vadd.f32 %v589_v53, %v585_v54 }
 0x315   :  { %v588_v59 = vmul.f32 0.25, %v2358_v56  ;;  %v576_v60 = vpop.f32.mrb[7].mxu1  ;;  %v601_v61 = vsel %vm597_vm2, %v594_v55, -inf }
 0x316   :  { %v587_v63 = vmul.f32 0.25, %v576_v60  ;;  %602 = vmax.xlane.f32.xlu1 %v601_v61  ;;  %v598_v0 = vsel %vm597_vm2, %v593_v57, -inf }
 0x317   :  { %599 = vmax.xlane.f32.xlu0 %v598_v0  ;;  %v596_v1 = vadd.f32 %v592_v58, %v588_v59 }
 0x318   :  { %v595_v2 = vadd.f32 %v591_v62, %v587_v63 }
 0x319   :  { %v607_v3 = vsel %vm597_vm2, %v596_v1, -inf }
 0x31a   :  { %608 = vmax.xlane.f32.xlu1 %v607_v3  ;;  %v604_v4 = vsel %vm597_vm2, %v595_v2, -inf }
 0x31b   :  { %605 = vmax.xlane.f32.xlu0 %v604_v4 }
 0x3a3   :  { %v603_v5 = vpop.xlane.xlu1 %602 }
 0x3a4   :  { %v611_v6 = vsub.f32 %v594_v55, %v603_v5  ;;  %v600_v7 = vpop.xlane.xlu0 %599 }
 0x3a5   :  { %v610_v8 = vsub.f32 %v593_v57, %v600_v7 }
 0x3a6   :  { %v616_v9 = vmul.f32 1.442695, %v611_v6 }
 0x3a7   :  { %v614_v10 = vmul.f32 1.442695, %v610_v8  ;;  %v609_v13 = vpop.xlane.xlu1 %608 }
 0x3a8   :  { %2558 = vpow2.f32 %v616_v9  ;;  %v613_v15 = vsub.f32 %v596_v1, %v609_v13  ;;  %v606_v16 = vpop.xlane.xlu0 %605 }
 0x3a9   :  { %2560 = vpow2.f32 %v614_v10  ;;  %v612_v18 = vsub.f32 %v595_v2, %v606_v16 }
 0x3aa   :  { %v620_v19 = vmul.f32 1.442695, %v613_v15 }
 0x3ab   :  { %v618_v20 = vmul.f32 1.442695, %v612_v18 }
 0x3ac   :  { %2562 = vpow2.f32 %v620_v19  ;;  %v926_v19 = vld [vmem:[%s3134_s17] sm:$0xff] }
 0x3ad   :  { %2564 = vpow2.f32 %v618_v20  ;;  %2381 = vmatprep.subr.mxu1 %v926_v19 }
 0x3ae   :  { %2382 = vmatpush3.msra.mxu1 %v926_v19 }
 0x3b2   :  { %v2559_v21 = vpop.eup %2558 }
 0x3b3   :  { %v2561_v22 = vpop.eup %2560  ;;  %v625_v23 = vsel %vm597_vm2, %v2559_v21, 0.0 }
 0x3b4   :  { %626 = vadd.xlane.f32.xlu1 %v625_v23  ;;  %v622_v24 = vsel %vm597_vm2, %v2561_v22, 0.0 }
 0x3b5   :  { %623 = vadd.xlane.f32.xlu0 %v622_v24 }
 0x3b6   :  { %v2563_v25 = vpop.eup %2562 }
 0x3b7   :  { %v2565_v26 = vpop.eup %2564  ;;  %v631_v27 = vsel %vm597_vm2, %v2563_v25, 0.0 }
 0x3b8   :  { %632 = vadd.xlane.f32.xlu1 %v631_v27  ;;  %v628_v28 = vsel %vm597_vm2, %v2565_v26, 0.0 }
 0x3b9   :  { %629 = vadd.xlane.f32.xlu0 %v628_v28 }
 0x441   :  { %v627_v29 = vpop.xlane.xlu1 %626 }
 0x442   :  { %2566 = vrcp.f32 %v627_v29  ;;  %v624_v30 = vpop.xlane.xlu0 %623 }
 0x443   :  { %2568 = vrcp.f32 %v624_v30 }
 0x445   :  { %v633_v31 = vpop.xlane.xlu1 %632 }
 0x446   :  { %2570 = vrcp.f32 %v633_v31  ;;  %v630_v32 = vpop.xlane.xlu0 %629 }
 0x447   :  { %2572 = vrcp.f32 %v630_v32 }
 0x44c   :  { %v2567_v33 = vpop.eup %2566 }
 0x44d   :  { %v2569_v34 = vpop.eup %2568  ;;  %v637_v36 = vmul.f32 %v2567_v33, %v2559_v21  ;;  %v2182_v33 = vld [vmem:[%s3135_s13] ss:$0 sm:$0xff] }
 0x44e   :  { %v635_v35 = vmul.f32 %v2569_v34, %v2561_v22 }
 0x450   :  { %v2571_v37 = vpop.eup %2570  ;;  %2367 = vmatprep.mubr.msk.f32.mxu0 %vm597_vm2, %v635_v35 }
 0x451   :  { %v2573_v38 = vpop.eup %2572  ;;  %2368 = vmatmul.mubr.msk.f32.vlgmr.msra.gmra.mrb[8].mxu0 %vm597_vm2, %v637_v36  ;;  %v641_v40 = vmul.f32 %v2571_v37, %v2563_v25  ;;  %v2183_v37 = vld [vmem:[%s3136_s14] ss:$0 sm:$0xff] }
 0x452   :  { %v639_v39 = vmul.f32 %v2573_v38, %v2565_v26  ;;  %2374 = vmatpush3.msra.mxu0 %v739_v41 }
 0x454   :  { %2370 = vmatprep.mubr.msk.f32.mxu0 %vm597_vm2, %v639_v39 }
 0x455   :  { %2371 = vmatmul.mubr.msk.f32.gmra.mrb[10].mxu0 %vm597_vm2, %v641_v40 }
 0x524   :  { %v2369_v42 = vpop.f32.mrb[8].mxu0 }
 0x525   :  { %v720_v43 = vpop.f32.mrb[9].mxu0 }
 0x526   :  { %2375 = vmatprep.mubr.msk.f32.mxu0 %vm107_vm0, %v720_v43 }
 0x527   :  { %2376 = vmatmul.mubr.msk.f32.vlgmr.msra.gmra.mrb[12].mxu0 %vm107_vm0, %v2369_v42 }
 0x528   :  { %v2372_v44 = vpop.f32.mrb[10].mxu0 }
 0x529   :  { %v730_v45 = vpop.f32.mrb[11].mxu0 }
 0x52a   :  { %2378 = vmatprep.mubr.msk.f32.mxu0 %vm107_vm0, %v730_v45 }
 0x52b   :  { %2379 = vmatmul.mubr.msk.f32.gmra.mrb[14].mxu0 %vm107_vm0, %v2372_v44 }
 0x5fa   :  { %v2377_v46 = vpop.f32.mrb[12].mxu0 }
 0x5fb   :  { %v838_v48 = vadd.f32 %v2377_v46, %v2770_v14  ;;  %v818_v49 = vpop.f32.mrb[13].mxu0 }
 0x5fc   :  { %v837_v50 = vadd.f32 %v818_v49, %v2766_v11 }
 0x5fd   :  { %v2880_v51 = vadd.f32 %v2181_v47, %v838_v48 }
 0x5fe   :  { %v2882_v52 = vadd.f32 %v2181_v47, %v837_v50  ;;  %v2380_v53 = vpop.f32.mrb[14].mxu0  ;;  %v1035_v50 = vld [vmem:[%s3137_s19] sm:$0xff] }
 0x5ff   :  { %v840_v54 = vadd.f32 %v2380_v53, %v2776_v17  ;;  %v828_v55 = vpop.f32.mrb[15].mxu0  ;;  %v857_v56 = vsel %vm107_vm0, %v2880_v51, 0.0  ;;  %2389 = vmatprep.subr.mxu0 %v1035_v50  ;;  %v2184_v53 = vld [vmem:[%s3138_s18] ss:$0 sm:$0xff] }
 0x600   :  { %v839_v57 = vadd.f32 %v828_v55, %v2768_v12  ;;  %858 = vadd.xlane.f32.xlu1 %v857_v56  ;;  %v854_v14 = vsel %vm107_vm0, %v2882_v52, 0.0  ;;  %2390 = vmatpush3.msra.mxu0 %v1035_v50 }
 0x601   :  { %v2890_v58 = vadd.f32 %v2181_v47, %v840_v54  ;;  %855 = vadd.xlane.f32.xlu0 %v854_v14 }
 0x602   :  { %v2892_v11 = vadd.f32 %v2181_v47, %v839_v57 }
 0x603   :  { %v863_v59 = vsel %vm107_vm0, %v2890_v58, 0.0 }
 0x604   :  { %864 = vadd.xlane.f32.xlu1 %v863_v59  ;;  %v860_v17 = vsel %vm107_vm0, %v2892_v11, 0.0 }
 0x605   :  { %861 = vadd.xlane.f32.xlu0 %v860_v17 }
 0x68d   :  { %v859_v60 = vpop.xlane.xlu1 %858 }
 0x68e   :  { %v867_v61 = vmul.f32 0.125, %v859_v60  ;;  %v856_v12 = vpop.xlane.xlu0 %855 }
 0x68f   :  { %v866_v62 = vmul.f32 0.125, %v856_v12 }
 0x690   :  { %v871_v63 = vsub.f32 %v2880_v51, %v867_v61 }
 0x691   :  { %v870_v0 = vsub.f32 %v2882_v52, %v866_v62  ;;  %v865_v1 = vpop.xlane.xlu1 %864 }
 0x692   :  { %v869_v2 = vmul.f32 0.125, %v865_v1  ;;  %v862_v3 = vpop.xlane.xlu0 %861  ;;  %v875_v4 = vmul.f32 %v871_v63, %v871_v63  ;;  %v2193_v1 = vld [vmem:[%s3139_s20] ss:$0 sm:$0xff] }
 0x693   :  { %v868_v5 = vmul.f32 0.125, %v862_v3  ;;  %v874_v6 = vmul.f32 %v870_v0, %v870_v0 }
 0x694   :  { %v873_v7 = vsub.f32 %v2890_v58, %v869_v2  ;;  %v881_v8 = vsel %vm107_vm0, %v875_v4, 0.0 }
 0x695   :  { %v872_v9 = vsub.f32 %v2892_v11, %v868_v5  ;;  %882 = vadd.xlane.f32.xlu1 %v881_v8  ;;  %v878_v10 = vsel %vm107_vm0, %v874_v6, 0.0 }
 0x696   :  { %879 = vadd.xlane.f32.xlu0 %v878_v10  ;;  %v877_v13 = vmul.f32 %v873_v7, %v873_v7 }
 0x697   :  { %v876_v15 = vmul.f32 %v872_v9, %v872_v9 }
 0x698   :  { %v887_v16 = vsel %vm107_vm0, %v877_v13, 0.0 }
 0x699   :  { %888 = vadd.xlane.f32.xlu1 %v887_v16  ;;  %v884_v18 = vsel %vm107_vm0, %v876_v15, 0.0 }
 0x69a   :  { %885 = vadd.xlane.f32.xlu0 %v884_v18 }
 0x722   :  { %v883_v20 = vpop.xlane.xlu1 %882 }
 0x723   :  { %v891_v21 = vmul.f32 0.125, %v883_v20  ;;  %v880_v22 = vpop.xlane.xlu0 %879 }
 0x724   :  { %v890_v23 = vmul.f32 0.125, %v880_v22 }
 0x725   :  { %v895_v24 = vadd.f32 1e-05, %v891_v21 }
 0x726   :  { %v894_v25 = vadd.f32 1e-05, %v890_v23  ;;  %v889_v26 = vpop.xlane.xlu1 %888 }
 0x727   :  { %2574 = vrsqrt.f32 %v895_v24  ;;  %v893_v27 = vmul.f32 0.125, %v889_v26  ;;  %v886_v28 = vpop.xlane.xlu0 %885 }
 0x728   :  { %2576 = vrsqrt.f32 %v894_v25  ;;  %v892_v29 = vmul.f32 0.125, %v886_v28 }
 0x729   :  { %v897_v30 = vadd.f32 1e-05, %v893_v27 }
 0x72a   :  { %v896_v31 = vadd.f32 1e-05, %v892_v29 }
 0x72b   :  { %2578 = vrsqrt.f32 %v897_v30 }
 0x72c   :  { %2580 = vrsqrt.f32 %v896_v31 }
 0x731   :  { %v2575_v32 = vpop.eup %2574 }
 0x732   :  { %v2577_v34 = vpop.eup %2576  ;;  %v903_v35 = vmul.f32 %v2575_v32, %v871_v63 }
 0x733   :  { %v902_v36 = vmul.f32 %v2577_v34, %v870_v0 }
 0x734   :  { %v913_v38 = vmul.f32 %v2182_v33, %v903_v35 }
 0x735   :  { %v2579_v39 = vpop.eup %2578  ;;  %v912_v40 = vmul.f32 %v2182_v33, %v902_v36 }
 0x736   :  { %v2581_v41 = vpop.eup %2580  ;;  %v905_v42 = vmul.f32 %v2579_v39, %v873_v7  ;;  %v923_v45 = vadd.f32 %v2183_v37, %v913_v38  ;;  %v1222_v38 = vld [vmem:[%s3140_s21] sm:$0xff]  ;;  %v2196_v39 = vld [vmem:[%s3140_s21 + $0x8] sm:$0xff] }
 0x737   :  { %v922_v43 = vadd.f32 %v2183_v37, %v912_v40  ;;  %v904_v44 = vmul.f32 %v2581_v41, %v872_v9 }
 0x738   :  { %v915_v46 = vmul.f32 %v2182_v33, %v905_v42 }
 0x739   :  { %2383 = vmatprep.mubr.msk.f32.mxu1 %vm107_vm0, %v922_v43  ;;  %v914_v47 = vmul.f32 %v2182_v33, %v904_v44 }
 0x73a   :  { %2384 = vmatmul.mubr.msk.f32.vlgmr.msra.gmra.mrb[8].mxu1 %vm107_vm0, %v923_v45  ;;  %v925_v49 = vadd.f32 %v2183_v37, %v915_v46 }
 0x73b   :  { %v924_v48 = vadd.f32 %v2183_v37, %v914_v47  ;;  %v2594_v37 = vmov 0.0  }
 0x73c   :  { %2408 = vmatprep.subr.mxu0 %v2594_v37  ;;  %2397 = vmatprep.subr.mxu1 %v2594_v37 }
 0x73d   :  { %2386 = vmatprep.mubr.msk.f32.mxu1 %vm107_vm0, %v924_v48  ;;  %2398 = vmatpush3.msra.mxu1 %v2196_v39 }
 0x73e   :  { %2387 = vmatmul.mubr.msk.f32.gmra.mrb[10].mxu1 %vm107_vm0, %v925_v49  ;;  %2419 = vmatprep.subr.mxu1 %v2594_v37 }
 0x73f   :  { %2399 = vmatprep.mubr.msk.f32.mxu1 %vm2595_vm3, %v2594_v37 }
 0x80d   :  { %v2385_v54 = vpop.f32.mrb[8].mxu1 }
 0x80e   :  { %v1018_v55 = vadd.f32 %v2385_v54, %v2184_v53  ;;  %v1012_v56 = vpop.f32.mrb[9].mxu1 }
 0x80f   :  { %v1013_v57 = vadd.f32 %v2184_v53, %v1012_v56 }
 0x810   :  { %v1032_v17 = vmax.f32 %v1018_v55, 0.0  ;;  %v2194_v55 = vld [vmem:[%s3141_s15] ss:$0 sm:$0xff]  ;;  %s3182_s15 = sld [smem:[#allocation15_spill]] }
 0x811   :  { %v1031_v14 = vmax.f32 %v1013_v57, 0.0  ;;  %v2388_v59 = vpop.f32.mrb[10].mxu1 }
 0x812   :  { %v1028_v60 = vadd.f32 %v2388_v59, %v2184_v53  ;;  %v1022_v61 = vpop.f32.mrb[11].mxu1 }
 0x813   :  { %v1023_v12 = vadd.f32 %v2184_v53, %v1022_v61  ;;  %2391 = vmatprep.mubr.msk.f32.mxu0 %vm107_vm0, %v1031_v14  ;;  %v2195_v14 = vld [vmem:[%s3142_s16] ss:$0 sm:$0xff] }
 0x814   :  { %2392 = vmatmul.mubr.msk.f32.vlgmr.msra.gmra.mrb[16].mxu0 %vm107_vm0, %v1032_v17  ;;  %v1034_v63 = vmax.f32 %v1028_v60, 0.0 }
 0x815   :  { %v1033_v62 = vmax.f32 %v1023_v12, 0.0  ;;  %2409 = vmatpush3.msra.mxu0 %v1222_v38  ;;  %v1966_v38 = vld [vmem:[%s3143_s24 + $0x18] sm:$0xff] }
 0x816   :  { %2430 = vmatprep.subr.mxu0 %v2594_v37 }
 0x817   :  { %2394 = vmatprep.mubr.msk.f32.mxu0 %vm107_vm0, %v1033_v62 }
 0x818   :  { %2395 = vmatmul.mubr.msk.f32.gmra.mrb[18].mxu0 %vm107_vm0, %v1034_v63 }
 0x819   :  { %2410 = vmatprep.mubr.msk.f32.mxu0 %vm2595_vm3, %v2594_v37 }
 0x8e7   :  { %v2393_v0 = vpop.f32.mrb[16].mxu0 }
 0x8e8   :  { %v1134_v2 = vadd.f32 %v2393_v0, %v2880_v51  ;;  %v1114_v3 = vpop.f32.mrb[17].mxu0  ;;  %v2207_v0 = vld [vmem:[%s3140_s21 + $0x18] sm:$0xff] }
 0x8e9   :  { %v1133_v4 = vadd.f32 %v1114_v3, %v2882_v52 }
 0x8ea   :  { %v1145_v5 = vadd.f32 %v2193_v1, %v1134_v2 }
 0x8eb   :  { %v2396_v6 = vpop.f32.mrb[18].mxu0  ;;  %v1144_v7 = vadd.f32 %v2193_v1, %v1133_v4 }
 0x8ec   :  { %v1136_v8 = vadd.f32 %v2396_v6, %v2890_v58  ;;  %v1124_v9 = vpop.f32.mrb[19].mxu0  ;;  %v1153_v10 = vsel %vm107_vm0, %v1145_v5, 0.0 }
 0x8ed   :  { %v1135_v13 = vadd.f32 %v1124_v9, %v2892_v11  ;;  %1154 = vadd.xlane.f32.xlu1 %v1153_v10  ;;  %v1150_v15 = vsel %vm107_vm0, %v1144_v7, 0.0 }
 0x8ee   :  { %1151 = vadd.xlane.f32.xlu0 %v1150_v15  ;;  %v1147_v16 = vadd.f32 %v2193_v1, %v1136_v8 }
 0x8ef   :  { %v1146_v18 = vadd.f32 %v2193_v1, %v1135_v13 }
 0x8f0   :  { %v1159_v51 = vsel %vm107_vm0, %v1147_v16, 0.0 }
 0x8f1   :  { %1160 = vadd.xlane.f32.xlu1 %v1159_v51  ;;  %v1156_v52 = vsel %vm107_vm0, %v1146_v18, 0.0 }
 0x8f2   :  { %1157 = vadd.xlane.f32.xlu0 %v1156_v52  ;;  %v2215_v52 = vld [vmem:[%s3140_s21 + $0x28] sm:$0xff] }
 0x97a   :  { %v1155_v19 = vpop.xlane.xlu1 %1154 }
 0x97b   :  { %v1163_v20 = vmul.f32 0.125, %v1155_v19  ;;  %v1152_v58 = vpop.xlane.xlu0 %1151 }
 0x97c   :  { %v1162_v21 = vmul.f32 0.125, %v1152_v58 }
 0x97d   :  { %v1167_v22 = vsub.f32 %v1145_v5, %v1163_v20 }
 0x97e   :  { %v1166_v23 = vsub.f32 %v1144_v7, %v1162_v21  ;;  %v1161_v24 = vpop.xlane.xlu1 %1160  ;;  %v2203_v7 = vld [vmem:[%s3140_s21 + $0x10] sm:$0xff] }
 0x97f   :  { %v1165_v11 = vmul.f32 0.125, %v1161_v24  ;;  %v1158_v25 = vpop.xlane.xlu0 %1157  ;;  %v1171_v26 = vmul.f32 %v1167_v22, %v1167_v22 }
 0x980   :  { %v1164_v27 = vmul.f32 0.125, %v1158_v25  ;;  %v1170_v28 = vmul.f32 %v1166_v23, %v1166_v23 }
 0x981   :  { %v2940_v29 = vsub.f32 %v1147_v16, %v1165_v11  ;;  %v1177_v30 = vsel %vm107_vm0, %v1171_v26, 0.0 }
 0x982   :  { %v1168_v31 = vsub.f32 %v1146_v18, %v1164_v27  ;;  %1178 = vadd.xlane.f32.xlu1 %v1177_v30  ;;  %v1174_v32 = vsel %vm107_vm0, %v1170_v28, 0.0  ;;  %v2219_v28 = vld [vmem:[%s3140_s21 + $0x30] sm:$0xff] }
 0x983   :  { %1175 = vadd.xlane.f32.xlu0 %v1174_v32  ;;  %v1173_v33 = vmul.f32 %v2940_v29, %v2940_v29  ;;  %v2596_v32 = vmov 0.0|0.0  }
 0x984   :  { %v1172_v34 = vmul.f32 %v1168_v31, %v1168_v31 }
 0x985   :  { %v1183_v35 = vsel %vm107_vm0, %v1173_v33, 0.0  ;;  %v1963_v33 = vld [vmem:[%s3143_s24] sm:$0xff] }
 0x986   :  { %1184 = vadd.xlane.f32.xlu1 %v1183_v35  ;;  %v1180_v36 = vsel %vm107_vm0, %v1172_v34, 0.0  ;;  %v1964_v34 = vld [vmem:[%s3143_s24 + $0x8] sm:$0xff]  ;;  %v1965_v35 = vld [vmem:[%s3143_s24 + $0x10] sm:$0xff] }
 0x987   :  { %1181 = vadd.xlane.f32.xlu0 %v1180_v36  ;;  %v2533_v36 = vpack.c.bf16 %v1964_v34, %v1963_v33  ;;  %v2536_v39 = vpack.c.bf16 %v1966_v38, %v1965_v35  ;;  %v2223_v38 = vld [vmem:[%s3182_s15] ss:$0 sm:$0xff] }
 0xa0f   :  { %v1179_v40 = vpop.xlane.xlu1 %1178 }
 0xa10   :  { %v1187_v41 = vmul.f32 0.125, %v1179_v40  ;;  %v1176_v42 = vpop.xlane.xlu0 %1175  ;;  %v1967_v40 = vld [vmem:[%s3143_s24 + $0x20] sm:$0xff] }
 0xa11   :  { %v1186_v43 = vmul.f32 0.125, %v1176_v42 }
 0xa12   :  { %v1191_v44 = vadd.f32 1e-05, %v1187_v41  ;;  %v1968_v41 = vld [vmem:[%s3143_s24 + $0x28] sm:$0xff] }
 0xa13   :  { %v1190_v45 = vadd.f32 1e-05, %v1186_v43  ;;  %v1185_v46 = vpop.xlane.xlu1 %1184  ;;  %v2539_v42 = vpack.c.bf16 %v1968_v41, %v1967_v40  ;;  %v1969_v43 = vld [vmem:[%s3143_s24 + $0x30] sm:$0xff] }
 0xa14   :  { %2582 = vrsqrt.f32 %v1191_v44  ;;  %v1189_v47 = vmul.f32 0.125, %v1185_v46  ;;  %v1182_v48 = vpop.xlane.xlu0 %1181  ;;  %v1970_v44 = vld [vmem:[%s3143_s24 + $0x38] sm:$0xff] }
 0xa15   :  { %2584 = vrsqrt.f32 %v1190_v45  ;;  %v1188_v49 = vmul.f32 0.125, %v1182_v48  ;;  %v2542_v45 = vpack.c.bf16 %v1970_v44, %v1969_v43 }
 0xa16   :  { %v1193_v53 = vadd.f32 1e-05, %v1189_v47 }
 0xa17   :  { %v1192_v50 = vadd.f32 1e-05, %v1188_v49 }
 0xa19   :  { %2586 = vrsqrt.f32 %v1192_v50 }
 0xa1a   :  { %2588 = vrsqrt.f32 %v1193_v53 }
 0xa1e   :  { %v2583_v54 = vpop.eup %2582 }
 0xa1f   :  { %v2585_v56 = vpop.eup %2584  ;;  %v1199_v57 = vmul.f32 %v2583_v54, %v1167_v22 }
 0xa20   :  { %v1198_v59 = vmul.f32 %v2585_v56, %v1166_v23  ;;  %v2211_v23 = vld [vmem:[%s3140_s21 + $0x20] sm:$0xff] }
 0xa21   :  { %v1209_v17 = vmul.f32 %v2194_v55, %v1199_v57 }
 0xa22   :  { %v1208_v60 = vmul.f32 %v2194_v55, %v1198_v59 }
 0xa23   :  { %v2587_v61 = vpop.eup %2586  ;;  %v2968_v12 = vadd.f32 %v2195_v14, %v1209_v17 }
 0xa24   :  { %v1218_v62 = vadd.f32 %v2195_v14, %v1208_v60  ;;  %v1200_v63 = vmul.f32 %v2587_v61, %v1168_v31  ;;  %v2589_v2 = vpop.eup %2588 }
 0xa25   :  { %v1230_v1 = vrot.slane %v2968_v12, 2  ;;  %v1201_v8 = vmul.f32 %v2589_v2, %v2940_v29  ;;  %v1508_v16 = vrot.slane %v2968_v12, 6  ;;  %v1410_v51 = vrot.slane %v2968_v12, 4 }
 0xa26   :  { %v1210_v3 = vmul.f32 %v2194_v55, %v1200_v63  ;;  %2411 = vmatmul.mubr.msk.f32.vlgmr.msra.gmra.mrb[20].mxu0 %vm107_vm0, %v1218_v62  ;;  %v1229_v4 = vrot.slane %v1218_v62, 2  ;;  %v1507_v15 = vrot.slane %v1218_v62, 6  ;;  %v1409_v18 = vrot.slane %v1218_v62, 4 }
 0xa27   :  { %2413 = vmatprep.mubr.msk.f32.mxu0 %vm2595_vm3, %v2594_v37  ;;  %2431 = vmatpush3.msra.mxu0 %v2207_v0  ;;  %v1211_v13 = vmul.f32 %v2194_v55, %v1201_v8 }
 0xa28   :  { %v1220_v5 = vadd.f32 %v2195_v14, %v1210_v3  ;;  %v1231_v6 = vsel %vm1228_vm4, %v1229_v4, %v1230_v1  ;;  %2452 = vmatprep.subr.mxu0 %v2594_v37  ;;  %v1509_v20 = vsel %vm1506_vm5, %v1507_v15, %v1508_v16  ;;  %v1411_v21 = vsel %vm1408_vm6, %v1409_v18, %v1410_v51 }
 0xa29   :  { %2400 = vmatmul.mubr.msk.f32.vlgmr.msra.gmra.mrb[12].mxu1 %vm107_vm0, %v1231_v6  ;;  %v1221_v19 = vadd.f32 %v2195_v14, %v1211_v13 }
 0xa2a   :  { %2414 = vmatmul.mubr.msk.f32.gmra.mrb[22].mxu0 %vm107_vm0, %v2968_v12  ;;  %2402 = vmatprep.mubr.msk.f32.mxu1 %vm2595_vm3, %v2594_v37  ;;  %v1232_v9 = vrot.slane %v1220_v5, 2  ;;  %v1510_v58 = vrot.slane %v1220_v5, 6  ;;  %v1412_v22 = vrot.slane %v1220_v5, 4 }
 0xa2b   :  { %2416 = vmatprep.mubr.msk.f32.mxu0 %vm2595_vm3, %v2594_v37  ;;  %2420 = vmatpush3.msra.mxu1 %v2203_v7  ;;  %v1512_v11 = vrot.slane %v1221_v19, 6  ;;  %v1692_v27 = vrot.slane %v1221_v19, 2  ;;  %v1783_v30 = vrot.slane %v1221_v19, 4 }
 0xa2c   :  { %v1233_v10 = vsel %vm1228_vm4, %v1230_v1, %v1232_v9  ;;  %2441 = vmatprep.subr.mxu1 %v2594_v37  ;;  %v1511_v24 = vsel %vm1506_vm5, %v1508_v16, %v1510_v58  ;;  %v1413_v25 = vsel %vm1408_vm6, %v1410_v51, %v1412_v22 }
 0xa2d   :  { %2403 = vmatmul.mubr.msk.f32.gmra.mrb[14].mxu1 %vm107_vm0, %v1233_v10  ;;  %v1513_v26 = vsel %vm1506_vm5, %v1510_v58, %v1512_v11  ;;  %v1693_v29 = vsel %vm1228_vm4, %v1232_v9, %v1692_v27  ;;  %v1784_v31 = vsel %vm1408_vm6, %v1412_v22, %v1783_v30 }
 0xa2e   :  { %2417 = vmatmul.mubr.msk.f32.gmra.mrb[24].mxu0 %vm107_vm0, %v1220_v5  ;;  %2405 = vmatprep.mubr.msk.f32.mxu1 %vm2595_vm3, %v2594_v37 }
 0xa2f   :  { %2432 = vmatprep.mubr.msk.f32.mxu0 %vm2595_vm3, %v2594_v37 }
 0xa31   :  { %2406 = vmatmul.mubr.msk.f32.gmra.mrb[16].mxu1 %vm107_vm0, %v1232_v9 }
 0xa32   :  { %2433 = vmatmul.mubr.msk.f32.vlgmr.msra.gmra.mrb[26].mxu0 %vm107_vm0, %v1509_v20  ;;  %2421 = vmatprep.mubr.msk.f32.mxu1 %vm2595_vm3, %v2594_v37 }
 0xa33   :  { %2435 = vmatprep.mubr.msk.f32.mxu0 %vm2595_vm3, %v2594_v37  ;;  %2453 = vmatpush3.msra.mxu0 %v2215_v52 }
 0xa34   :  { %2529 = vmatprep.subr.bf16.mxu0 %v2596_v32 }
 0xa35   :  { %2422 = vmatmul.mubr.msk.f32.vlgmr.msra.gmra.mrb[18].mxu1 %vm107_vm0, %v1411_v21 }
 0xa36   :  { %2436 = vmatmul.mubr.msk.f32.gmra.mrb[28].mxu0 %vm107_vm0, %v1511_v24  ;;  %2424 = vmatprep.mubr.msk.f32.mxu1 %vm2595_vm3, %v2594_v37 }
 0xa37   :  { %2438 = vmatprep.mubr.msk.f32.mxu0 %vm2595_vm3, %v2594_v37  ;;  %2442 = vmatpush3.msra.mxu1 %v2211_v23 }
 0xa38   :  { %2463 = vmatprep.subr.mxu1 %v2594_v37 }
 0xa39   :  { %2425 = vmatmul.mubr.msk.f32.gmra.mrb[20].mxu1 %vm107_vm0, %v1413_v25 }
 0xa3a   :  { %2439 = vmatmul.mubr.msk.f32.gmra.mrb[30].mxu0 %vm107_vm0, %v1513_v26  ;;  %2427 = vmatprep.mubr.msk.f32.mxu1 %vm2595_vm3, %v2594_v37 }
 0xa3b   :  { %2454 = vmatprep.mubr.msk.f32.mxu0 %vm2595_vm3, %v2594_v37 }
 0xa3d   :  { %2428 = vmatmul.mubr.msk.f32.gmra.mrb[22].mxu1 %vm107_vm0, %v1412_v22 }
 0xa3e   :  { %2455 = vmatmul.mubr.msk.f32.vlgmr.msra.gmra.mrb[32].mxu0 %vm107_vm0, %v1233_v10  ;;  %2443 = vmatprep.mubr.msk.f32.mxu1 %vm2595_vm3, %v2594_v37 }
 0xa3f   :  { %2457 = vmatprep.mubr.msk.f32.mxu0 %vm2595_vm3, %v2594_v37 }
 0xa41   :  { %2444 = vmatmul.mubr.msk.f32.vlgmr.msra.gmra.mrb[24].mxu1 %vm107_vm0, %v2968_v12 }
 0xa42   :  { %2458 = vmatmul.mubr.msk.f32.gmra.mrb[34].mxu0 %vm107_vm0, %v1693_v29  ;;  %2446 = vmatprep.mubr.msk.f32.mxu1 %vm2595_vm3, %v2594_v37 }
 0xa43   :  { %2460 = vmatprep.mubr.msk.f32.mxu0 %vm2595_vm3, %v2594_v37  ;;  %2464 = vmatpush3.msra.mxu1 %v2219_v28 }
 0xa44   :  { %2532 = vmatprep.subr.bf16.mxu1 %v2596_v32 }
 0xa45   :  { %2447 = vmatmul.mubr.msk.f32.gmra.mrb[26].mxu1 %vm107_vm0, %v1220_v5 }
 0xa46   :  { %2461 = vmatmul.mubr.msk.f32.gmra.mrb[36].mxu0 %vm107_vm0, %v1692_v27  ;;  %2449 = vmatprep.mubr.msk.f32.mxu1 %vm2595_vm3, %v2594_v37 }
 0xa47   :  { %2480 = vmatprep.mubr.msk.f32.mxu0 %vm2595_vm3, %v2594_v37 }
 0xa49   :  { %2450 = vmatmul.mubr.msk.f32.gmra.mrb[28].mxu1 %vm107_vm0, %v1221_v19 }
 0xa4a   :  { %2465 = vmatprep.mubr.msk.f32.mxu1 %vm2595_vm3, %v2594_v37 }
 0xa4d   :  { %2466 = vmatmul.mubr.msk.f32.vlgmr.msra.gmra.mrb[30].mxu1 %vm107_vm0, %v1413_v25 }
 0xa4e   :  { %2468 = vmatprep.mubr.msk.f32.mxu1 %vm2595_vm3, %v2594_v37  ;;  %2534 = vmatpush3.bf16.msra.mxu1 %v2533_v36 }
 0xa4f   :  { %2535 = vmatprep.subr.bf16.mxu1 %v2596_v32 }
 0xa51   :  { %2469 = vmatmul.mubr.msk.f32.gmra.mrb[32].mxu1 %vm107_vm0, %v1784_v31 }
 0xa52   :  { %2471 = vmatprep.mubr.msk.f32.mxu1 %vm2595_vm3, %v2594_v37  ;;  %2537 = vmatpush3.bf16.msra.mxu1 %v2536_v39 }
 0xa53   :  { %2538 = vmatprep.subr.bf16.mxu1 %v2596_v32 }
 0xa55   :  { %2472 = vmatmul.mubr.msk.f32.gmra.mrb[34].mxu1 %vm107_vm0, %v1783_v30 }
 0xa56   :  { %2499 = vmatprep.mubr.msk.f32.mxu1 %vm2595_vm3, %v2594_v37  ;;  %2540 = vmatpush3.bf16.msra.mxu1 %v2539_v42 }
 0xa57   :  { %2541 = vmatprep.subr.bf16.mxu1 %v2596_v32 }
 0xa5a   :  { %2543 = vmatpush3.bf16.msra.mxu1 %v2542_v45 }
 0xaf9   :  { %v1392_v46 = vpop.f32.mrb[20].mxu0 }
 0xafa   :  { %v2412_v47 = vpop.f32.mrb[21].mxu0 }
 0xafc   :  { %v1306_v48 = vpop.f32.mrb[12].mxu1 }
 0xafd   :  { %v1393_v49 = vadd.f32 %v1392_v46, %v1306_v48  ;;  %v2401_v50 = vpop.f32.mrb[13].mxu1  ;;  %v1397_v53 = vpop.f32.mrb[22].mxu0 }
 0xafe   :  { %v2415_v54 = vpop.f32.mrb[23].mxu0 }
 0xaff   :  { %v1885_v54 = vld [vmem:[%s3145_s23] sm:$0x3] }
 0xb00   :  { %v1311_v55 = vpop.f32.mrb[14].mxu1 }
 0xb01   :  { %v1398_v56 = vadd.f32 %v1397_v53, %v1311_v55  ;;  %v2404_v57 = vpop.f32.mrb[15].mxu1  ;;  %v1402_v14 = vpop.f32.mrb[24].mxu0 }
 0xb02   :  { %v2418_v59 = vpop.f32.mrb[25].mxu0  ;;  %v2058_v57 = vld [vmem:[%s3146_s26] sm:$0xff] }
 0xb04   :  { %v1316_v17 = vpop.f32.mrb[16].mxu1 }
 0xb05   :  { %v1403_v60 = vadd.f32 %v1402_v14, %v1316_v17  ;;  %v2407_v61 = vpop.f32.mrb[17].mxu1  ;;  %v1586_v12 = vpop.f32.mrb[26].mxu0  ;;  %v2059_v14 = vld [vmem:[%s3146_s26 + $0x8] sm:$0xff] }
 0xb06   :  { %v2434_v62 = vpop.f32.mrb[27].mxu0  ;;  %v2545_v59 = vpack.c.bf16 %v2059_v14, %v2058_v57 }
 0xb08   :  { %v1486_v63 = vpop.f32.mrb[18].mxu1 }
 0xb09   :  { %v1500_v0 = vadd.f32 %v1486_v63, %v1393_v49  ;;  %v2423_v1 = vpop.f32.mrb[19].mxu1  ;;  %v1591_v2 = vpop.f32.mrb[28].mxu0 }
 0xb0a   :  { %v2437_v3 = vpop.f32.mrb[29].mxu0 }
 0xb0b   :  { %v1600_v4 = vadd.f32 %v1586_v12, %v1500_v0  ;;  %v2229_v0 = vld [vmem:[%s3148_s27] ss:$0 sm:$0xff] }
 0xb0c   :  { %v1491_v5 = vpop.f32.mrb[20].mxu1 }
 0xb0d   :  { %v1501_v6 = vadd.f32 %v1491_v5, %v1398_v56  ;;  %v2426_v7 = vpop.f32.mrb[21].mxu1  ;;  %v1596_v8 = vpop.f32.mrb[30].mxu0 }
 0xb0e   :  { %v2440_v9 = vpop.f32.mrb[31].mxu0 }
 0xb0f   :  { %v1601_v10 = vadd.f32 %v1591_v2, %v1501_v6 }
 0xb10   :  { %v1496_v13 = vpop.f32.mrb[22].mxu1 }
 0xb11   :  { %v1502_v15 = vadd.f32 %v1496_v13, %v1403_v60  ;;  %v2429_v16 = vpop.f32.mrb[23].mxu1  ;;  %v1764_v18 = vpop.f32.mrb[32].mxu0 }
 0xb12   :  { %v2456_v51 = vpop.f32.mrb[33].mxu0 }
 0xb13   :  { %v1602_v52 = vadd.f32 %v1596_v8, %v1502_v15 }
 0xb14   :  { %v1673_v19 = vpop.f32.mrb[24].mxu1 }
 0xb15   :  { %v1687_v20 = vadd.f32 %v1673_v19, %v1600_v4  ;;  %v2445_v58 = vpop.f32.mrb[25].mxu1  ;;  %v1769_v21 = vpop.f32.mrb[34].mxu0 }
 0xb16   :  { %v2459_v22 = vpop.f32.mrb[35].mxu0 }
 0xb17   :  { %v1778_v23 = vadd.f32 %v1764_v18, %v1687_v20 }
 0xb18   :  { %v1678_v24 = vpop.f32.mrb[26].mxu1 }
 0xb19   :  { %v1688_v11 = vadd.f32 %v1678_v24, %v1601_v10  ;;  %v2448_v25 = vpop.f32.mrb[27].mxu1  ;;  %v1774_v26 = vpop.f32.mrb[36].mxu0 }
 0xb1a   :  { %v2462_v27 = vpop.f32.mrb[37].mxu0 }
 0xb1b   :  { %v1779_v28 = vadd.f32 %v1769_v21, %v1688_v11 }
 0xb1c   :  { %v1683_v29 = vpop.f32.mrb[28].mxu1 }
 0xb1d   :  { %v1689_v30 = vadd.f32 %v1683_v29, %v1602_v52  ;;  %v2451_v31 = vpop.f32.mrb[29].mxu1 }
 0xb1f   :  { %v1780_v33 = vadd.f32 %v1774_v26, %v1689_v30 }
 0xb20   :  { %v1855_v34 = vpop.f32.mrb[30].mxu1 }
 0xb21   :  { %v1869_v35 = vadd.f32 %v1855_v34, %v1778_v23  ;;  %v2467_v36 = vpop.f32.mrb[31].mxu1 }
 0xb23   :  { %v1879_v40 = vadd.f32 %v2223_v38, %v1869_v35 }
 0xb24   :  { %v1860_v39 = vpop.f32.mrb[32].mxu1 }
 0xb25   :  { %v1870_v41 = vadd.f32 %v1860_v39, %v1779_v28  ;;  %v2470_v42 = vpop.f32.mrb[33].mxu1  ;;  %v1882_v45 = vmax.f32 %v1879_v40, 0.0 }
 0xb27   :  { %v1880_v43 = vadd.f32 %v2223_v38, %v1870_v41 }
 0xb28   :  { %v1865_v44 = vpop.f32.mrb[34].mxu1 }
 0xb29   :  { %v1883_v46 = vmax.f32 %v1880_v43, 0.0  ;;  %v1871_v47 = vadd.f32 %v1865_v44, %v1780_v33  ;;  %v2473_v48 = vpop.f32.mrb[35].mxu1 }
 0xb2b   :  { %v2530_v49 = vpack.c.bf16 %v1883_v46, %v1882_v45  ;;  %v1881_v50 = vadd.f32 %v2223_v38, %v1871_v47 }
 0xb2d   :  { %2531 = vmatpush3.bf16.msra.mxu0 %v2530_v49  ;;  %v1884_v53 = vmax.f32 %v1881_v50, 0.0 }
 0xb2e   :  { %2478 = vmatprep.subr.mxu0 %v2594_v37 }
 0xb31   :  { %2479 = vmatpush3.msk.msra.mxu0 %vm1408_vm6, %v1884_v53 }
 0xb32   :  { %2481 = vmatmul.mubr.msk.f32.vlgmr.msra.gmra.mrb[38].mxu0 %vm1886_vm7, %v1885_v54  ;;  %2544 = vmatprep.subr.bf16.mxu0 %v2596_v32  ;;  %v2226_v32 = vld [vmem:[%s3147_s25] ss:$0 sm:$0xff] }
 0xb33   :  { %2506 = vmatprep.mubr.msk.f32.mxu0 %vm2595_vm3, %v2594_v37  ;;  %2546 = vmatpush3.bf16.msra.mxu0 %v2545_v59 }
 0xc05   :  { %v1959_v55 = vpop.f32.mrb[38].mxu0 }
 0xc06   :  { %v2482_v56 = vpop.f32.mrb[39].mxu0  ;;  %2500 = vmatmul.mubr.msk.f32.vlgmr.msra.gmra.mrb[36].mxu1 %vm1978_vm8, %v1959_v55 }
 0xcd9   :  { %v2048_v17 = vpop.f32.mrb[36].mxu1 }
 0xcda   :  { %v2049_v37 = vadd.f32 %v2226_v32, %v2048_v17  ;;  %v2501_v60 = vpop.f32.mrb[37].mxu1 }
 0xcdc   :  { %v2228_v61 = vmul.f32 -1.442695, %v2049_v37 }
 0xcde   :  { %2590 = vpow2.f32 %v2228_v61 }
 0xce8   :  { %v2591_v12 = vpop.eup %2590 }
 0xce9   :  { %v2055_v62 = vadd.f32 1.0, %v2591_v12 }
 0xceb   :  { %2592 = vrcp.f32 %v2055_v62 }
 0xcf5   :  { %v2593_v63 = vpop.eup %2592 }
 0xcf6   :  { %2507 = vmatmul.mubr.msk.f32.vlgmr.msra.gmra.mrb[40].mxu0 %vm2067_vm9, %v2593_v63 }
 0xdc9   :  { %v2137_v1 = vpop.f32.mrb[40].mxu0 }
 0xdca   :  { %v2138_v2 = vadd.f32 %v2229_v0, %v2137_v1  ;;  %v2508_v3 = vpop.f32.mrb[41].mxu0 }
 0xdcc   :  { %v2141_v4 = vmax.f32 %v2138_v2, 0.0 }
 0xdce   :  { %2143 = vst.msk [vmem:[%s3149_s28] sm:$0x3] %vm2142_vm10, %v2141_v4 }

</bundles_post_ra>
